<compile_context>
chip_gen: v7x
topology: tpu7x:2x2x1
jax: 0.10.0
libtpu: 0.0.40
codegen_flags: <defaults>
</compile_context>

<pallas_src>
import jax
import jax.numpy as jnp
from jax.experimental import pallas as pl
from jax.experimental.pallas import tpu as pltpu

LEAK = 0.05
HID = 192                # hidden / feature width of the module
GS = 256                 # per-gate OUTPUT column stride in the packed GRU weights
OUT_DIM = 128
STATE_DIM = 10
V_PAD = 16               # v zero-padded to 16 lanes

# Spatial sizes implied by the module: Flatten -> Linear(128*2*4) forces a 2x4 conv3
# output, which back-propagates to a 12x16 input through conv(2,s2)->conv(3)->conv(3).
H_IN, W_IN = 12, 16
H1, W1 = H_IN // 2, W_IN // 2        # 6 x 8 grid after conv1 (k=2, s=2)
GRID = H1 * W1                       # 48 positions in the shared row layout
SHIFT_PAD = 2 * W1 + 2               # largest row shift used by a 3x3 kernel offset (18)
H3, W3 = H1 - 4, W1 - 4              # 2 x 4 valid conv3 output
R3_POS = (H3 - 1) * W1 + W3          # 12: rows 0..11 cover every valid conv3 position
STEM_POS = tuple(h * W1 + w for h in range(H3) for w in range(W3))  # (0,1,2,3,8,9,10,11)
STEM_K = len(STEM_POS) * 128         # 1024 == 128*2*4 (the nn.Linear fan-in)
SV_ROWS = STEM_K + V_PAD             # 1040
HD_COLS = 6 * GS + OUT_DIM           # 1664 = W_ih(768) | W_hh(768) | W_fc(128)

# --- layout invariants -------------------------------------------------------------
# The shifted-slice conv trick produces spatially-invalid ("wrapped") grid positions;
# these asserts guarantee those positions are never consumed and all slices stay
# in-bounds.  Keep them in sync with H1/W1 if the input size ever changes.
assert GRID + SHIFT_PAD == 66                      # a1 rows incl. zero pad for shifts
assert R3_POS + SHIFT_PAD <= GRID                  # conv3 slab slices stay inside a2
assert max(STEM_POS) < R3_POS                      # stem reads only computed conv3 rows
assert all((p // W1) <= H1 - 5 and (p % W1) <= W1 - 5 for p in STEM_POS)  # valid conv3
assert STEM_K == 128 * H3 * W3


def _leaky(x):
    return jnp.where(x >= 0, x, LEAK * x)


def _sigmoid(t):
    # Divide runs on the EUP reciprocal slot (VALU stays free).  exp(-t) overflow for
    # very negative t gives inf -> reciprocal ~ 0, the correct limit.
    return pl.reciprocal(1.0 + jnp.exp(-t), approx=True)


# ------------------------------------------------------------------------------------
# The single fused kernel
# ------------------------------------------------------------------------------------
def depth_fused_kernel(p1_ref, v_ref, h0_ref, w1_ref, w2_ref, w3_ref,
                       w_sv_hbm, w_hd_hbm, b_ref,
                       act_ref, hx_ref,
                       w_sv, w_hd, slab2, slab3, sem):
    f32, bf16 = jnp.float32, jnp.bfloat16
    bp = h0_ref.shape[0]            # padded batch (multiple of 8 sublanes)
    r2 = GRID * bp                  # rows of the 6x8 grid layout
    r3 = R3_POS * bp                # rows covering the 2x4 conv3 output

    # Prefetch the late-stage weights (~1 MB bf16) so their HBM->VMEM copy overlaps
    # the conv1-3 compute instead of being serialized before the (gridless) body.
    cp_sv = pltpu.make_async_copy(w_sv_hbm, w_sv, sem.at[0])
    cp_hd = pltpu.make_async_copy(w_hd_hbm, w_hd, sem.at[1])
    cp_sv.start()
    cp_hd.start()

    # ---- conv1 (1->32, k=2, s=2) + LeakyReLU ---------------------------------------
    # p1 rows >= GRID*bp are zero so the shifted conv2 slices below stay in bounds.
    a1 = _leaky(jnp.dot(p1_ref[...], w1_ref[...], preferred_element_type=f32))

    # ---- conv2 (32->64, k=3) + LeakyReLU: ONE K=288 matmul -------------------------
    # in-kernel im2col: 9 shifted row slices placed side by side in a VMEM slab
    # (row layout r = (h*W1+w)*bp + b makes each kernel offset a static slice).
    for k in range(9):
        dy, dx = divmod(k, 3)
        s = (dy * W1 + dx) * bp
        slab2[:, k * 32:(k + 1) * 32] = a1[s:s + r2, :]
    a2 = _leaky(jnp.dot(slab2[...].astype(bf16), w2_ref[...],
                        preferred_element_type=f32))            # (GRID*bp, 64)

    # ---- conv3 (64->128, k=3) + LeakyReLU: ONE K=576 matmul ------------------------
    for k in range(9):
        dy, dx = divmod(k, 3)
        s = (dy * W1 + dx) * bp
        slab3[:, k * 64:(k + 1) * 64] = a2[s:s + r3, :]
    a3 = _leaky(jnp.dot(slab3[...].astype(bf16), w3_ref[...],
                        preferred_element_type=f32))            # (R3_POS*bp, 128)

    # ---- flatten + stem Linear (no bias) + v_proj + LeakyReLU: ONE K=1040 matmul ---
    cp_sv.wait()
    stem_in = jnp.concatenate(                                  # 128-aligned lane concat
        [a3[p * bp:(p + 1) * bp, :] for p in STEM_POS] + [v_ref[...]],
        axis=1).astype(bf16)                                    # (bp, 1040)
    x = _leaky(jnp.dot(stem_in, w_sv[...], preferred_element_type=f32)
               + b_ref[:, 0:HID])                               # (bp, 192)

    # ---- GRUCell: two wide K=192 matmuls; gate columns padded to GS=256 so the
    # lane slices below start at multiples of 128 ------------------------------------
    cp_hd.wait()
    h = h0_ref[...]                                             # (bp, 192)
    gi = jnp.dot(x.astype(bf16), w_hd[:, 0:3 * GS],
                 preferred_element_type=f32) + b_ref[:, GS:4 * GS]
    gh = jnp.dot(h.astype(bf16), w_hd[:, 3 * GS:6 * GS],
                 preferred_element_type=f32) + b_ref[:, 4 * GS:7 * GS]
    r = _sigmoid(gi[:, 0:HID] + gh[:, 0:HID])
    z = _sigmoid(gi[:, GS:GS + HID] + gh[:, GS:GS + HID])
    n = jnp.tanh(gi[:, 2 * GS:2 * GS + HID] + r * gh[:, 2 * GS:2 * GS + HID])
    h_new = (1.0 - z) * n + z * h
    hx_ref[...] = h_new

    # ---- fc (no bias) on LeakyReLU(hx) ---------------------------------------------
    act_ref[...] = jnp.dot(_leaky(h_new).astype(bf16),
                           w_hd[:, 6 * GS:6 * GS + OUT_DIM],
                           preferred_element_type=f32)


# ------------------------------------------------------------------------------------
# Plain-JAX glue on the raw input only: conv1 patch layout + zero padding.
# TODO(synk): fold this patch extraction into the kernel (BlockSpec on x + in-kernel
# slices); as written it is a handful of tiny ops XLA fuses ahead of the pallas_call.
# ------------------------------------------------------------------------------------
def _conv1_patches(x_nchw, bp):
    """(B,1,12,16) NCHW -> (66*bp, 4) patches, row = (h*W1 + w)*bp + b."""
    b = x_nchw.shape[0]
    xi = x_nchw[:, 0].astype(jnp.float32)                       # (B, 12, 16)
    xi = jnp.pad(xi, ((0, bp - b), (0, 0), (0, 0)))
    xr = xi.reshape(bp, H1, 2, W1, 2)                           # (b, h, dy, w, dx)
    p = jnp.transpose(xr, (1, 3, 0, 2, 4)).reshape(GRID * bp, 4)
    return jnp.pad(p, ((0, SHIFT_PAD * bp), (0, 0)))            # zero rows for shifts


# ------------------------------------------------------------------------------------
# Forward pass
# ------------------------------------------------------------------------------------
@jax.jit
def depth_model_forward(kp, x, v, hx=None):
    """x: (B,1,12,16) NCHW f32, v: (B,10), hx: (B,192) or None.
    Returns (act (B,128), hx (B,192)) — same semantics as Depth_Model.forward."""
    b = x.shape[0]
    bp = -(-b // 8) * 8                                          # pad batch to 8 sublanes
    p1 = _conv1_patches(x, bp)
    v_p = jnp.zeros((bp, V_PAD), jnp.float32).at[:b, :STATE_DIM].set(v.astype(jnp.float32))
    h_p = jnp.zeros((bp, HID), jnp.float32)
    if hx is not None:
        h_p = h_p.at[:b].set(hx.astype(jnp.float32))

    vmem = pltpu.MemorySpace.VMEM
    act_p, hx_p = pl.pallas_call(
        depth_fused_kernel,
        out_shape=(jax.ShapeDtypeStruct((bp, OUT_DIM), jnp.float32),
                   jax.ShapeDtypeStruct((bp, HID), jnp.float32)),
        in_specs=[
            pl.BlockSpec(memory_space=vmem),     # p1
            pl.BlockSpec(memory_space=vmem),     # v (padded to 16 lanes)
            pl.BlockSpec(memory_space=vmem),     # h0 (aliased to hx output)
            pl.BlockSpec(memory_space=vmem),     # w1  (4, 32)    f32
            pl.BlockSpec(memory_space=vmem),     # w2  (288, 64)  bf16
            pl.BlockSpec(memory_space=vmem),     # w3  (576, 128) bf16
            pl.BlockSpec(memory_space=pl.ANY),   # w_sv (1040,192) bf16 -> manual prefetch
            pl.BlockSpec(memory_space=pl.ANY),   # w_hd (192,1664) bf16 -> manual prefetch
            pl.BlockSpec(memory_space=vmem),     # b_all (1, 1792) f32
        ],
        scratch_shapes=[
            pltpu.VMEM((SV_ROWS, HID), jnp.bfloat16),          # w_sv landing buffer
            pltpu.VMEM((HID, HD_COLS), jnp.bfloat16),          # w_hd landing buffer
            pltpu.VMEM((GRID * bp, 9 * 32), jnp.float32),      # conv2 im2col slab
            pltpu.VMEM((R3_POS * bp, 9 * 64), jnp.float32),    # conv3 im2col slab
            pltpu.SemaphoreType.DMA((2,)),
        ],
        input_output_aliases={2: 1},             # in-place hidden-state update
    )(p1, v_p, h_p, kp["w1"], kp["w2"], kp["w3"], kp["w_sv"], kp["w_hd"], kp["b_all"])

    return act_p[:b], hx_p[:b]


# ------------------------------------------------------------------------------------
# Parameter init (deterministic, PyTorch-style uniform(-1/sqrt(fan_in), ...))
# ------------------------------------------------------------------------------------
def init_params(key):
    ks = jax.random.split(key, 11)

    def unif(k, shape, fan_in):
        bound = 1.0 / jnp.sqrt(float(fan_in))
        return jax.random.uniform(k, shape, jnp.float32, -bound, bound)

    return {
        "conv1_w": unif(ks[0], (32, 1, 2, 2), 1 * 2 * 2),
        "conv2_w": unif(ks[1], (64, 32, 3, 3), 32 * 3 * 3),
        "conv3_w": unif(ks[2], (128, 64, 3, 3), 64 * 3 * 3),
        "stem_lin_w": unif(ks[3], (HID, STEM_K), STEM_K),
        "v_proj_w": unif(ks[4], (HID, STATE_DIM), STATE_DIM) * 0.5,   # .mul_(0.5)
        "v_proj_b": unif(ks[5], (HID,), STATE_DIM),
        "gru_w_ih": unif(ks[6], (3 * HID, HID), HID),
        "gru_w_hh": unif(ks[7], (3 * HID, HID), HID),
        "gru_b_ih": unif(ks[8], (3 * HID,), HID),
        "gru_b_hh": unif(ks[9], (3 * HID,), HID),
        "fc_w": unif(ks[10], (OUT_DIM, HID), HID) * 0.01,             # .mul_(0.01)
    }


def to_kernel_params(p):
    """Reorder / pack PyTorch-layout weights for the fused kernel (big mats in bf16)."""
    f32, bf16 = jnp.float32, jnp.bfloat16

    def conv_w(w, dtype):   # (cout,cin,kh,kw) -> rows (dy,dx,cin)-major, cols cout
        cout, cin, kh, kw = w.shape
        return jnp.transpose(w, (2, 3, 1, 0)).reshape(kh * kw * cin, cout).astype(dtype)

    kp = {"w1": conv_w(p["conv1_w"], f32),       # (4, 32)   tiny -> keep f32
          "w2": conv_w(p["conv2_w"], bf16),      # (288, 64)
          "w3": conv_w(p["conv3_w"], bf16)}      # (576, 128)

    # Stem Linear: PyTorch flattens (C,H,W); kernel flattens (pos=H*W)-major, C-minor.
    ws = p["stem_lin_w"].reshape(HID, 128, H3, W3)
    ws = jnp.transpose(ws, (0, 2, 3, 1)).reshape(HID, STEM_K).T       # (1024, 192)
    wv = jnp.pad(p["v_proj_w"].T, ((0, V_PAD - STATE_DIM), (0, 0)))   # (16, 192)
    kp["w_sv"] = jnp.concatenate([ws, wv], axis=0).astype(bf16)       # (1040, 192)

    def gate_cols(w):   # (HID, HID) -> (HID, GS): pad OUTPUT columns only (K stays 192)
        return jnp.pad(w, ((0, 0), (0, GS - HID)))

    wih, whh = p["gru_w_ih"], p["gru_w_hh"]
    W_ih = jnp.concatenate([gate_cols(wih[g * HID:(g + 1) * HID, :].T)
                            for g in range(3)], axis=1)               # (192, 768)
    W_hh = jnp.concatenate([gate_cols(whh[g * HID:(g + 1) * HID, :].T)
                            for g in range(3)], axis=1)               # (192, 768)
    W_fc = p["fc_w"].T                                                 # (192, 128)
    kp["w_hd"] = jnp.concatenate([W_ih, W_hh, W_fc], axis=1).astype(bf16)  # (192, 1664)

    def gate_bias(bvec):   # (3*HID,) -> (3*GS,): per-gate zero pad matches gi/gh columns
        return jnp.concatenate([jnp.pad(bvec[g * HID:(g + 1) * HID], (0, GS - HID))
                                for g in range(3)])

    b_v = jnp.pad(p["v_proj_b"], (0, GS - HID))
    kp["b_all"] = jnp.concatenate(
        [b_v, gate_bias(p["gru_b_ih"]), gate_bias(p["gru_b_hh"])])[None, :].astype(f32)
    return kp                                                          # b_all: (1, 1792)


if __name__ == "__main__":
    key = jax.random.PRNGKey(0)
    p_key, x_key, v_key = jax.random.split(key, 3)

    params = to_kernel_params(init_params(p_key))

    B = 2
    x = jax.random.normal(x_key, (B, 1, H_IN, W_IN), jnp.float32)   # NCHW, as in PyTorch
    v = jax.random.normal(v_key, (B, STATE_DIM), jnp.float32)

    act, hx = depth_model_forward(params, x, v, None)
    jax.block_until_ready((act, hx))

    assert act.shape == (B, OUT_DIM) and act.dtype == jnp.float32
    assert hx.shape == (B, HID) and hx.dtype == jnp.float32
    assert bool(jnp.all(jnp.isfinite(act))) and bool(jnp.all(jnp.isfinite(hx)))
    print("KERNEL_OK")
</pallas_src>

<mosaic_0001>
module attributes {stable_mosaic.version = 11 : i64} {
  func.func @depth_fused_kernel(%arg0: memref<528x4xf32, #tpu.memory_space<vmem>>, %arg1: memref<8x16xf32, #tpu.memory_space<vmem>>, %arg2: memref<8x192xf32, #tpu.memory_space<vmem>>, %arg3: memref<4x32xf32, #tpu.memory_space<vmem>>, %arg4: memref<288x64xbf16, #tpu.memory_space<vmem>>, %arg5: memref<576x128xbf16, #tpu.memory_space<vmem>>, %arg6: memref<1040x192xbf16, #tpu.memory_space<any>>, %arg7: memref<192x1664xbf16, #tpu.memory_space<any>>, %arg8: memref<1x1792xf32, #tpu.memory_space<vmem>>, %arg9: memref<8x128xf32, #tpu.memory_space<vmem>>, %arg10: memref<8x192xf32, #tpu.memory_space<vmem>>, %arg11: memref<1040x192xbf16, #tpu.memory_space<vmem>>, %arg12: memref<192x1664xbf16, #tpu.memory_space<vmem>>, %arg13: memref<384x288xf32, #tpu.memory_space<vmem>>, %arg14: memref<96x576xf32, #tpu.memory_space<vmem>>, %arg15: memref<2x!tpu.dma_semaphore, #tpu.memory_space<semaphore_mem>>) attributes {dimension_semantics = [], scalar_prefetch = 0 : i64, scratch_operands = 5 : i64, tpu.core_type = #tpu.core_type<tc>} {
    %c0_i32 = arith.constant 0 : i32
    %0 = tpu.memref_slice %arg15[%c0_i32] : memref<2x!tpu.dma_semaphore, #tpu.memory_space<semaphore_mem>> -> memref<1x!tpu.dma_semaphore, #tpu.memory_space<semaphore_mem>>
    %1 = tpu.memref_squeeze %0 : memref<1x!tpu.dma_semaphore, #tpu.memory_space<semaphore_mem>> -> memref<!tpu.dma_semaphore, #tpu.memory_space<semaphore_mem>>
    tpu.enqueue_dma source(%arg6 : memref<1040x192xbf16, #tpu.memory_space<any>>) target(%arg11 : memref<1040x192xbf16, #tpu.memory_space<vmem>>) target_semaphore(%1 : memref<!tpu.dma_semaphore, #tpu.memory_space<semaphore_mem>>)
    %c1_i32 = arith.constant 1 : i32
    %2 = tpu.memref_slice %arg15[%c1_i32] : memref<2x!tpu.dma_semaphore, #tpu.memory_space<semaphore_mem>> -> memref<1x!tpu.dma_semaphore, #tpu.memory_space<semaphore_mem>>
    %3 = tpu.memref_squeeze %2 : memref<1x!tpu.dma_semaphore, #tpu.memory_space<semaphore_mem>> -> memref<!tpu.dma_semaphore, #tpu.memory_space<semaphore_mem>>
    tpu.enqueue_dma source(%arg7 : memref<192x1664xbf16, #tpu.memory_space<any>>) target(%arg12 : memref<192x1664xbf16, #tpu.memory_space<vmem>>) target_semaphore(%3 : memref<!tpu.dma_semaphore, #tpu.memory_space<semaphore_mem>>)
    %c0 = arith.constant 0 : index
    %c0_0 = arith.constant 0 : index
    %4 = vector.load %arg0[%c0, %c0_0] : memref<528x4xf32, #tpu.memory_space<vmem>>, vector<528x4xf32>
    %c0_1 = arith.constant 0 : index
    %c0_2 = arith.constant 0 : index
    %5 = vector.load %arg3[%c0_1, %c0_2] : memref<4x32xf32, #tpu.memory_space<vmem>>, vector<4x32xf32>
    %cst = arith.constant dense<0.000000e+00> : vector<528x32xf32>
    %6 = tpu.matmul %4, %5, %cst {dimension_numbers = #tpu.dot_dimension_numbers<[1], [0], [0], [1], [0, 0, 1, 1], [], []>} : vector<528x4xf32>, vector<4x32xf32>, vector<528x32xf32> -> vector<528x32xf32>
    %cst_3 = arith.constant 0.000000e+00 : f32
    %7 = vector.broadcast %cst_3 : f32 to vector<528x32xf32>
    %8 = arith.cmpf oge, %6, %7 : vector<528x32xf32>
    %cst_4 = arith.constant 5.000000e-02 : f32
    %9 = vector.broadcast %cst_4 : f32 to vector<528x32xf32>
    %10 = arith.mulf %9, %6 : vector<528x32xf32>
    %11 = arith.select %8, %6, %10 : vector<528x32xi1>, vector<528x32xf32>
    %12 = vector.extract_strided_slice %11 {offsets = [0, 0], sizes = [384, 32], strides = [1, 1]} : vector<528x32xf32> to vector<384x32xf32>
    %c0_5 = arith.constant 0 : index
    %c0_6 = arith.constant 0 : index
    %13 = vector.load %arg13[%c0_5, %c0_6] : memref<384x288xf32, #tpu.memory_space<vmem>>, vector<384x32xf32>
    tpu.vector_store %arg13[%c0_5, %c0_6], %12 {strides = array<i32>} : memref<384x288xf32, #tpu.memory_space<vmem>>, vector<384x32xf32>,
    %14 = vector.extract_strided_slice %11 {offsets = [8, 0], sizes = [384, 32], strides = [1, 1]} : vector<528x32xf32> to vector<384x32xf32>
    %c0_7 = arith.constant 0 : index
    %c32 = arith.constant 32 : index
    %15 = vector.load %arg13[%c0_7, %c32] : memref<384x288xf32, #tpu.memory_space<vmem>>, vector<384x32xf32>
    tpu.vector_store %arg13[%c0_7, %c32], %14 {strides = array<i32>} : memref<384x288xf32, #tpu.memory_space<vmem>>, vector<384x32xf32>,
    %16 = vector.extract_strided_slice %11 {offsets = [16, 0], sizes = [384, 32], strides = [1, 1]} : vector<528x32xf32> to vector<384x32xf32>
    %c0_8 = arith.constant 0 : index
    %c64 = arith.constant 64 : index
    %17 = vector.load %arg13[%c0_8, %c64] : memref<384x288xf32, #tpu.memory_space<vmem>>, vector<384x32xf32>
    tpu.vector_store %arg13[%c0_8, %c64], %16 {strides = array<i32>} : memref<384x288xf32, #tpu.memory_space<vmem>>, vector<384x32xf32>,
    %18 = vector.extract_strided_slice %11 {offsets = [64, 0], sizes = [384, 32], strides = [1, 1]} : vector<528x32xf32> to vector<384x32xf32>
    %c0_9 = arith.constant 0 : index
    %c96 = arith.constant 96 : index
    %19 = vector.load %arg13[%c0_9, %c96] : memref<384x288xf32, #tpu.memory_space<vmem>>, vector<384x32xf32>
    tpu.vector_store %arg13[%c0_9, %c96], %18 {strides = array<i32>} : memref<384x288xf32, #tpu.memory_space<vmem>>, vector<384x32xf32>,
    %20 = vector.extract_strided_slice %11 {offsets = [72, 0], sizes = [384, 32], strides = [1, 1]} : vector<528x32xf32> to vector<384x32xf32>
    %c0_10 = arith.constant 0 : index
    %c128 = arith.constant 128 : index
    %21 = vector.load %arg13[%c0_10, %c128] : memref<384x288xf32, #tpu.memory_space<vmem>>, vector<384x32xf32>
    tpu.vector_store %arg13[%c0_10, %c128], %20 {strides = array<i32>} : memref<384x288xf32, #tpu.memory_space<vmem>>, vector<384x32xf32>,
    %22 = vector.extract_strided_slice %11 {offsets = [80, 0], sizes = [384, 32], strides = [1, 1]} : vector<528x32xf32> to vector<384x32xf32>
    %c0_11 = arith.constant 0 : index
    %c160 = arith.constant 160 : index
    %23 = vector.load %arg13[%c0_11, %c160] : memref<384x288xf32, #tpu.memory_space<vmem>>, vector<384x32xf32>
    tpu.vector_store %arg13[%c0_11, %c160], %22 {strides = array<i32>} : memref<384x288xf32, #tpu.memory_space<vmem>>, vector<384x32xf32>,
    %24 = vector.extract_strided_slice %11 {offsets = [128, 0], sizes = [384, 32], strides = [1, 1]} : vector<528x32xf32> to vector<384x32xf32>
    %c0_12 = arith.constant 0 : index
    %c192 = arith.constant 192 : index
    %25 = vector.load %arg13[%c0_12, %c192] : memref<384x288xf32, #tpu.memory_space<vmem>>, vector<384x32xf32>
    tpu.vector_store %arg13[%c0_12, %c192], %24 {strides = array<i32>} : memref<384x288xf32, #tpu.memory_space<vmem>>, vector<384x32xf32>,
    %26 = vector.extract_strided_slice %11 {offsets = [136, 0], sizes = [384, 32], strides = [1, 1]} : vector<528x32xf32> to vector<384x32xf32>
    %c0_13 = arith.constant 0 : index
    %c224 = arith.constant 224 : index
    %27 = vector.load %arg13[%c0_13, %c224] : memref<384x288xf32, #tpu.memory_space<vmem>>, vector<384x32xf32>
    tpu.vector_store %arg13[%c0_13, %c224], %26 {strides = array<i32>} : memref<384x288xf32, #tpu.memory_space<vmem>>, vector<384x32xf32>,
    %28 = vector.extract_strided_slice %11 {offsets = [144, 0], sizes = [384, 32], strides = [1, 1]} : vector<528x32xf32> to vector<384x32xf32>
    %c0_14 = arith.constant 0 : index
    %c256 = arith.constant 256 : index
    %29 = vector.load %arg13[%c0_14, %c256] : memref<384x288xf32, #tpu.memory_space<vmem>>, vector<384x32xf32>
    tpu.vector_store %arg13[%c0_14, %c256], %28 {strides = array<i32>} : memref<384x288xf32, #tpu.memory_space<vmem>>, vector<384x32xf32>,
    %c0_15 = arith.constant 0 : index
    %c0_16 = arith.constant 0 : index
    %30 = vector.load %arg13[%c0_15, %c0_16] : memref<384x288xf32, #tpu.memory_space<vmem>>, vector<384x288xf32>
    %31 = arith.truncf %30 : vector<384x288xf32> to vector<384x288xbf16>
    %c0_17 = arith.constant 0 : index
    %c0_18 = arith.constant 0 : index
    %32 = vector.load %arg4[%c0_17, %c0_18] : memref<288x64xbf16, #tpu.memory_space<vmem>>, vector<288x64xbf16>
    %cst_19 = arith.constant dense<0.000000e+00> : vector<384x64xf32>
    %33 = tpu.matmul %31, %32, %cst_19 {dimension_numbers = #tpu.dot_dimension_numbers<[1], [0], [0], [1], [0, 0, 1, 1], [], []>} : vector<384x288xbf16>, vector<288x64xbf16>, vector<384x64xf32> -> vector<384x64xf32>
    %cst_20 = arith.constant 0.000000e+00 : f32
    %34 = vector.broadcast %cst_20 : f32 to vector<384x64xf32>
    %35 = arith.cmpf oge, %33, %34 : vector<384x64xf32>
    %cst_21 = arith.constant 5.000000e-02 : f32
    %36 = vector.broadcast %cst_21 : f32 to vector<384x64xf32>
    %37 = arith.mulf %36, %33 : vector<384x64xf32>
    %38 = arith.select %35, %33, %37 : vector<384x64xi1>, vector<384x64xf32>
    %39 = vector.extract_strided_slice %38 {offsets = [0, 0], sizes = [96, 64], strides = [1, 1]} : vector<384x64xf32> to vector<96x64xf32>
    %c0_22 = arith.constant 0 : index
    %c0_23 = arith.constant 0 : index
    %40 = vector.load %arg14[%c0_22, %c0_23] : memref<96x576xf32, #tpu.memory_space<vmem>>, vector<96x64xf32>
    tpu.vector_store %arg14[%c0_22, %c0_23], %39 {strides = array<i32>} : memref<96x576xf32, #tpu.memory_space<vmem>>, vector<96x64xf32>,
    %41 = vector.extract_strided_slice %38 {offsets = [8, 0], sizes = [96, 64], strides = [1, 1]} : vector<384x64xf32> to vector<96x64xf32>
    %c0_24 = arith.constant 0 : index
    %c64_25 = arith.constant 64 : index
    %42 = vector.load %arg14[%c0_24, %c64_25] : memref<96x576xf32, #tpu.memory_space<vmem>>, vector<96x64xf32>
    tpu.vector_store %arg14[%c0_24, %c64_25], %41 {strides = array<i32>} : memref<96x576xf32, #tpu.memory_space<vmem>>, vector<96x64xf32>,
    %43 = vector.extract_strided_slice %38 {offsets = [16, 0], sizes = [96, 64], strides = [1, 1]} : vector<384x64xf32> to vector<96x64xf32>
    %c0_26 = arith.constant 0 : index
    %c128_27 = arith.constant 128 : index
    %44 = vector.load %arg14[%c0_26, %c128_27] : memref<96x576xf32, #tpu.memory_space<vmem>>, vector<96x64xf32>
    tpu.vector_store %arg14[%c0_26, %c128_27], %43 {strides = array<i32>} : memref<96x576xf32, #tpu.memory_space<vmem>>, vector<96x64xf32>,
    %45 = vector.extract_strided_slice %38 {offsets = [64, 0], sizes = [96, 64], strides = [1, 1]} : vector<384x64xf32> to vector<96x64xf32>
    %c0_28 = arith.constant 0 : index
    %c192_29 = arith.constant 192 : index
    %46 = vector.load %arg14[%c0_28, %c192_29] : memref<96x576xf32, #tpu.memory_space<vmem>>, vector<96x64xf32>
    tpu.vector_store %arg14[%c0_28, %c192_29], %45 {strides = array<i32>} : memref<96x576xf32, #tpu.memory_space<vmem>>, vector<96x64xf32>,
    %47 = vector.extract_strided_slice %38 {offsets = [72, 0], sizes = [96, 64], strides = [1, 1]} : vector<384x64xf32> to vector<96x64xf32>
    %c0_30 = arith.constant 0 : index
    %c256_31 = arith.constant 256 : index
    %48 = vector.load %arg14[%c0_30, %c256_31] : memref<96x576xf32, #tpu.memory_space<vmem>>, vector<96x64xf32>
    tpu.vector_store %arg14[%c0_30, %c256_31], %47 {strides = array<i32>} : memref<96x576xf32, #tpu.memory_space<vmem>>, vector<96x64xf32>,
    %49 = vector.extract_strided_slice %38 {offsets = [80, 0], sizes = [96, 64], strides = [1, 1]} : vector<384x64xf32> to vector<96x64xf32>
    %c0_32 = arith.constant 0 : index
    %c320 = arith.constant 320 : index
    %50 = vector.load %arg14[%c0_32, %c320] : memref<96x576xf32, #tpu.memory_space<vmem>>, vector<96x64xf32>
    tpu.vector_store %arg14[%c0_32, %c320], %49 {strides = array<i32>} : memref<96x576xf32, #tpu.memory_space<vmem>>, vector<96x64xf32>,
    %51 = vector.extract_strided_slice %38 {offsets = [128, 0], sizes = [96, 64], strides = [1, 1]} : vector<384x64xf32> to vector<96x64xf32>
    %c0_33 = arith.constant 0 : index
    %c384 = arith.constant 384 : index
    %52 = vector.load %arg14[%c0_33, %c384] : memref<96x576xf32, #tpu.memory_space<vmem>>, vector<96x64xf32>
    tpu.vector_store %arg14[%c0_33, %c384], %51 {strides = array<i32>} : memref<96x576xf32, #tpu.memory_space<vmem>>, vector<96x64xf32>,
    %53 = vector.extract_strided_slice %38 {offsets = [136, 0], sizes = [96, 64], strides = [1, 1]} : vector<384x64xf32> to vector<96x64xf32>
    %c0_34 = arith.constant 0 : index
    %c448 = arith.constant 448 : index
    %54 = vector.load %arg14[%c0_34, %c448] : memref<96x576xf32, #tpu.memory_space<vmem>>, vector<96x64xf32>
    tpu.vector_store %arg14[%c0_34, %c448], %53 {strides = array<i32>} : memref<96x576xf32, #tpu.memory_space<vmem>>, vector<96x64xf32>,
    %55 = vector.extract_strided_slice %38 {offsets = [144, 0], sizes = [96, 64], strides = [1, 1]} : vector<384x64xf32> to vector<96x64xf32>
    %c0_35 = arith.constant 0 : index
    %c512 = arith.constant 512 : index
    %56 = vector.load %arg14[%c0_35, %c512] : memref<96x576xf32, #tpu.memory_space<vmem>>, vector<96x64xf32>
    tpu.vector_store %arg14[%c0_35, %c512], %55 {strides = array<i32>} : memref<96x576xf32, #tpu.memory_space<vmem>>, vector<96x64xf32>,
    %c0_36 = arith.constant 0 : index
    %c0_37 = arith.constant 0 : index
    %57 = vector.load %arg14[%c0_36, %c0_37] : memref<96x576xf32, #tpu.memory_space<vmem>>, vector<96x576xf32>
    %58 = arith.truncf %57 : vector<96x576xf32> to vector<96x576xbf16>
    %c0_38 = arith.constant 0 : index
    %c0_39 = arith.constant 0 : index
    %59 = vector.load %arg5[%c0_38, %c0_39] : memref<576x128xbf16, #tpu.memory_space<vmem>>, vector<576x128xbf16>
    %cst_40 = arith.constant dense<0.000000e+00> : vector<96x128xf32>
    %60 = tpu.matmul %58, %59, %cst_40 {dimension_numbers = #tpu.dot_dimension_numbers<[1], [0], [0], [1], [0, 0, 1, 1], [], []>} : vector<96x576xbf16>, vector<576x128xbf16>, vector<96x128xf32> -> vector<96x128xf32>
    %cst_41 = arith.constant 0.000000e+00 : f32
    %61 = vector.broadcast %cst_41 : f32 to vector<96x128xf32>
    %62 = arith.cmpf oge, %60, %61 : vector<96x128xf32>
    %cst_42 = arith.constant 5.000000e-02 : f32
    %63 = vector.broadcast %cst_42 : f32 to vector<96x128xf32>
    %64 = arith.mulf %63, %60 : vector<96x128xf32>
    %65 = arith.select %62, %60, %64 : vector<96x128xi1>, vector<96x128xf32>
    %c0_i32_43 = arith.constant 0 : i32
    %66 = tpu.memref_slice %arg15[%c0_i32_43] : memref<2x!tpu.dma_semaphore, #tpu.memory_space<semaphore_mem>> -> memref<1x!tpu.dma_semaphore, #tpu.memory_space<semaphore_mem>>
    %67 = tpu.memref_squeeze %66 : memref<1x!tpu.dma_semaphore, #tpu.memory_space<semaphore_mem>> -> memref<!tpu.dma_semaphore, #tpu.memory_space<semaphore_mem>>
    tpu.wait_dma2 semaphore(%67 : memref<!tpu.dma_semaphore, #tpu.memory_space<semaphore_mem>>) src(%arg6 : memref<1040x192xbf16, #tpu.memory_space<any>>) dst(%arg11 : memref<1040x192xbf16, #tpu.memory_space<vmem>>)
    %68 = vector.extract_strided_slice %65 {offsets = [0, 0], sizes = [8, 128], strides = [1, 1]} : vector<96x128xf32> to vector<8x128xf32>
    %69 = vector.extract_strided_slice %65 {offsets = [8, 0], sizes = [8, 128], strides = [1, 1]} : vector<96x128xf32> to vector<8x128xf32>
    %70 = vector.extract_strided_slice %65 {offsets = [16, 0], sizes = [8, 128], strides = [1, 1]} : vector<96x128xf32> to vector<8x128xf32>
    %71 = vector.extract_strided_slice %65 {offsets = [24, 0], sizes = [8, 128], strides = [1, 1]} : vector<96x128xf32> to vector<8x128xf32>
    %72 = vector.extract_strided_slice %65 {offsets = [64, 0], sizes = [8, 128], strides = [1, 1]} : vector<96x128xf32> to vector<8x128xf32>
    %73 = vector.extract_strided_slice %65 {offsets = [72, 0], sizes = [8, 128], strides = [1, 1]} : vector<96x128xf32> to vector<8x128xf32>
    %74 = vector.extract_strided_slice %65 {offsets = [80, 0], sizes = [8, 128], strides = [1, 1]} : vector<96x128xf32> to vector<8x128xf32>
    %75 = vector.extract_strided_slice %65 {offsets = [88, 0], sizes = [8, 128], strides = [1, 1]} : vector<96x128xf32> to vector<8x128xf32>
    %c0_44 = arith.constant 0 : index
    %c0_45 = arith.constant 0 : index
    %76 = vector.load %arg1[%c0_44, %c0_45] : memref<8x16xf32, #tpu.memory_space<vmem>>, vector<8x16xf32>
    %77 = tpu.concatenate %68, %69, %70, %71, %72, %73, %74, %75, %76 in 1 : vector<8x128xf32>, vector<8x128xf32>, vector<8x128xf32>, vector<8x128xf32>, vector<8x128xf32>, vector<8x128xf32>, vector<8x128xf32>, vector<8x128xf32>, vector<8x16xf32> -> vector<8x1040xf32>
    %78 = arith.truncf %77 : vector<8x1040xf32> to vector<8x1040xbf16>
    %c0_46 = arith.constant 0 : index
    %c0_47 = arith.constant 0 : index
    %79 = vector.load %arg11[%c0_46, %c0_47] : memref<1040x192xbf16, #tpu.memory_space<vmem>>, vector<1040x192xbf16>
    %cst_48 = arith.constant dense<0.000000e+00> : vector<8x192xf32>
    %80 = tpu.matmul %78, %79, %cst_48 {dimension_numbers = #tpu.dot_dimension_numbers<[1], [0], [0], [1], [0, 0, 1, 1], [], []>} : vector<8x1040xbf16>, vector<1040x192xbf16>, vector<8x192xf32> -> vector<8x192xf32>
    %c0_49 = arith.constant 0 : index
    %c0_50 = arith.constant 0 : index
    %81 = vector.load %arg8[%c0_49, %c0_50] : memref<1x1792xf32, #tpu.memory_space<vmem>>, vector<1x192xf32>
    %82 = vector.broadcast %81 : vector<1x192xf32> to vector<8x192xf32>
    %83 = arith.addf %80, %82 : vector<8x192xf32>
    %cst_51 = arith.constant 0.000000e+00 : f32
    %84 = vector.broadcast %cst_51 : f32 to vector<8x192xf32>
    %85 = arith.cmpf oge, %83, %84 : vector<8x192xf32>
    %cst_52 = arith.constant 5.000000e-02 : f32
    %86 = vector.broadcast %cst_52 : f32 to vector<8x192xf32>
    %87 = arith.mulf %86, %83 : vector<8x192xf32>
    %88 = arith.select %85, %83, %87 : vector<8x192xi1>, vector<8x192xf32>
    %c1_i32_53 = arith.constant 1 : i32
    %89 = tpu.memref_slice %arg15[%c1_i32_53] : memref<2x!tpu.dma_semaphore, #tpu.memory_space<semaphore_mem>> -> memref<1x!tpu.dma_semaphore, #tpu.memory_space<semaphore_mem>>
    %90 = tpu.memref_squeeze %89 : memref<1x!tpu.dma_semaphore, #tpu.memory_space<semaphore_mem>> -> memref<!tpu.dma_semaphore, #tpu.memory_space<semaphore_mem>>
    tpu.wait_dma2 semaphore(%90 : memref<!tpu.dma_semaphore, #tpu.memory_space<semaphore_mem>>) src(%arg7 : memref<192x1664xbf16, #tpu.memory_space<any>>) dst(%arg12 : memref<192x1664xbf16, #tpu.memory_space<vmem>>)
    %c0_54 = arith.constant 0 : index
    %c0_55 = arith.constant 0 : index
    %91 = vector.load %arg2[%c0_54, %c0_55] : memref<8x192xf32, #tpu.memory_space<vmem>>, vector<8x192xf32>
    %92 = arith.truncf %88 : vector<8x192xf32> to vector<8x192xbf16>
    %c0_56 = arith.constant 0 : index
    %c0_57 = arith.constant 0 : index
    %93 = vector.load %arg12[%c0_56, %c0_57] : memref<192x1664xbf16, #tpu.memory_space<vmem>>, vector<192x768xbf16>
    %cst_58 = arith.constant dense<0.000000e+00> : vector<8x768xf32>
    %94 = tpu.matmul %92, %93, %cst_58 {dimension_numbers = #tpu.dot_dimension_numbers<[1], [0], [0], [1], [0, 0, 1, 1], [], []>} : vector<8x192xbf16>, vector<192x768xbf16>, vector<8x768xf32> -> vector<8x768xf32>
    %c0_59 = arith.constant 0 : index
    %c256_60 = arith.constant 256 : index
    %95 = vector.load %arg8[%c0_59, %c256_60] : memref<1x1792xf32, #tpu.memory_space<vmem>>, vector<1x768xf32>
    %96 = vector.broadcast %95 : vector<1x768xf32> to vector<8x768xf32>
    %97 = arith.addf %94, %96 : vector<8x768xf32>
    %98 = arith.truncf %91 : vector<8x192xf32> to vector<8x192xbf16>
    %c0_61 = arith.constant 0 : index
    %c768 = arith.constant 768 : index
    %99 = vector.load %arg12[%c0_61, %c768] : memref<192x1664xbf16, #tpu.memory_space<vmem>>, vector<192x768xbf16>
    %cst_62 = arith.constant dense<0.000000e+00> : vector<8x768xf32>
    %100 = tpu.matmul %98, %99, %cst_62 {dimension_numbers = #tpu.dot_dimension_numbers<[1], [0], [0], [1], [0, 0, 1, 1], [], []>} : vector<8x192xbf16>, vector<192x768xbf16>, vector<8x768xf32> -> vector<8x768xf32>
    %c0_63 = arith.constant 0 : index
    %c1024 = arith.constant 1024 : index
    %101 = vector.load %arg8[%c0_63, %c1024] : memref<1x1792xf32, #tpu.memory_space<vmem>>, vector<1x768xf32>
    %102 = vector.broadcast %101 : vector<1x768xf32> to vector<8x768xf32>
    %103 = arith.addf %100, %102 : vector<8x768xf32>
    %104 = vector.extract_strided_slice %97 {offsets = [0, 0], sizes = [8, 192], strides = [1, 1]} : vector<8x768xf32> to vector<8x192xf32>
    %105 = vector.extract_strided_slice %103 {offsets = [0, 0], sizes = [8, 192], strides = [1, 1]} : vector<8x768xf32> to vector<8x192xf32>
    %106 = arith.addf %104, %105 : vector<8x192xf32>
    %cst_64 = arith.constant 0.000000e+00 : f32
    %107 = vector.broadcast %cst_64 : f32 to vector<8x192xf32>
    %108 = arith.subf %107, %106 : vector<8x192xf32>
    %109 = math.exp %108 : vector<8x192xf32>
    %cst_65 = arith.constant 1.000000e+00 : f32
    %110 = vector.broadcast %cst_65 : f32 to vector<8x192xf32>
    %111 = arith.addf %110, %109 : vector<8x192xf32>
    %112 = tpu.reciprocal %111 {approx = true} : vector<8x192xf32> -> vector<8x192xf32>
    %113 = vector.extract_strided_slice %97 {offsets = [0, 256], sizes = [8, 192], strides = [1, 1]} : vector<8x768xf32> to vector<8x192xf32>
    %114 = vector.extract_strided_slice %103 {offsets = [0, 256], sizes = [8, 192], strides = [1, 1]} : vector<8x768xf32> to vector<8x192xf32>
    %115 = arith.addf %113, %114 : vector<8x192xf32>
    %cst_66 = arith.constant 0.000000e+00 : f32
    %116 = vector.broadcast %cst_66 : f32 to vector<8x192xf32>
    %117 = arith.subf %116, %115 : vector<8x192xf32>
    %118 = math.exp %117 : vector<8x192xf32>
    %cst_67 = arith.constant 1.000000e+00 : f32
    %119 = vector.broadcast %cst_67 : f32 to vector<8x192xf32>
    %120 = arith.addf %119, %118 : vector<8x192xf32>
    %121 = tpu.reciprocal %120 {approx = true} : vector<8x192xf32> -> vector<8x192xf32>
    %122 = vector.extract_strided_slice %97 {offsets = [0, 512], sizes = [8, 192], strides = [1, 1]} : vector<8x768xf32> to vector<8x192xf32>
    %123 = vector.extract_strided_slice %103 {offsets = [0, 512], sizes = [8, 192], strides = [1, 1]} : vector<8x768xf32> to vector<8x192xf32>
    %124 = arith.mulf %112, %123 : vector<8x192xf32>
    %125 = arith.addf %122, %124 : vector<8x192xf32>
    %126 = math.tanh %125 : vector<8x192xf32>
    %cst_68 = arith.constant 1.000000e+00 : f32
    %127 = vector.broadcast %cst_68 : f32 to vector<8x192xf32>
    %128 = arith.subf %127, %121 : vector<8x192xf32>
    %129 = arith.mulf %128, %126 : vector<8x192xf32>
    %130 = arith.mulf %121, %91 : vector<8x192xf32>
    %131 = arith.addf %129, %130 : vector<8x192xf32>
    %c0_69 = arith.constant 0 : index
    %c0_70 = arith.constant 0 : index
    %132 = vector.load %arg10[%c0_69, %c0_70] : memref<8x192xf32, #tpu.memory_space<vmem>>, vector<8x192xf32>
    tpu.vector_store %arg10[%c0_69, %c0_70], %131 {strides = array<i32>} : memref<8x192xf32, #tpu.memory_space<vmem>>, vector<8x192xf32>,
    %cst_71 = arith.constant 0.000000e+00 : f32
    %133 = vector.broadcast %cst_71 : f32 to vector<8x192xf32>
    %134 = arith.cmpf oge, %131, %133 : vector<8x192xf32>
    %cst_72 = arith.constant 5.000000e-02 : f32
    %135 = vector.broadcast %cst_72 : f32 to vector<8x192xf32>
    %136 = arith.mulf %135, %131 : vector<8x192xf32>
    %137 = arith.select %134, %131, %136 : vector<8x192xi1>, vector<8x192xf32>
    %138 = arith.truncf %137 : vector<8x192xf32> to vector<8x192xbf16>
    %c0_73 = arith.constant 0 : index
    %c1536 = arith.constant 1536 : index
    %139 = vector.load %arg12[%c0_73, %c1536] : memref<192x1664xbf16, #tpu.memory_space<vmem>>, vector<192x128xbf16>
    %cst_74 = arith.constant dense<0.000000e+00> : vector<8x128xf32>
    %140 = tpu.matmul %138, %139, %cst_74 {dimension_numbers = #tpu.dot_dimension_numbers<[1], [0], [0], [1], [0, 0, 1, 1], [], []>} : vector<8x192xbf16>, vector<192x128xbf16>, vector<8x128xf32> -> vector<8x128xf32>
    %c0_75 = arith.constant 0 : index
    %c0_76 = arith.constant 0 : index
    %141 = vector.load %arg9[%c0_75, %c0_76] : memref<8x128xf32, #tpu.memory_space<vmem>>, vector<8x128xf32>
    tpu.vector_store %arg9[%c0_75, %c0_76], %140 {strides = array<i32>} : memref<8x128xf32, #tpu.memory_space<vmem>>, vector<8x128xf32>,
    return
  }
}

</mosaic_0001>

<bundles_post_ra>
// kernel: depth_model_forward.1
= control target key start
LH: loop header
LB: loop body
LE: loop exit
PB: predicated region body
PF: predicated region fallthrough
CT: control target
= control target key end

     0   :  { %s11256_s0 = inlined_call_operand.vmem [shape: f32[528,4], index: 0, kind: input, shape index: {}]   ;;  %s11257_s1 = inlined_call_operand.vmem [shape: f32[8,16], index: 1, kind: input, shape index: {}]   ;;  %s11258_s2 = inlined_call_operand.vmem [shape: f32[8,192], index: 2, kind: input, shape index: {}, may-alias: {2,10}]   ;;  %s11259_s3 = inlined_call_operand.vmem [shape: f32[4,32], index: 3, kind: input, shape index: {}]   ;;  %s11260_s4 = inlined_call_operand.vmem [shape: bf16[288,64], index: 4, kind: input, shape index: {}]   ;;  %s11261_s5 = inlined_call_operand.vmem [shape: bf16[576,128], index: 5, kind: input, shape index: {}]   ;;  %s11262_s6 = inlined_call_operand.vmem [shape: bf16[1040,192], index: 6, kind: input, shape index: {}]   ;;  %s11263_s7 = inlined_call_operand.vmem [shape: bf16[192,1664], index: 7, kind: input, shape index: {}]   ;;  %s11264_s8 = inlined_call_operand.vmem [shape: f32[1,1792], index: 8, kind: input, shape index: {}]   ;;  %s11265_s9 = inlined_call_operand.vmem [shape: f32[8,128], index: 9, kind: output, shape index: {0}]   ;;  %s11266_s10 = inlined_call_operand.vmem [shape: f32[8,192], index: 10, kind: output, shape index: {1}, may-alias: {2,10}]  }
   0x1   :  { %v48_v0 = vld [vmem:[%s11262_s6] sm:$0xf]  ;;  %v50_v1 = vld [vmem:[%s11262_s6 + $0x8] sm:$0xf]  ;;  %v52_v2 = vld [vmem:[%s11262_s6 + $0x4] sm:$0xf] }
   0x2   :  { %49 = vst [vmem:[#allocation2] sm:$0xf] %v48_v0  ;;  %51 = vst [vmem:[#allocation2 + $0x4] sm:$0xf] %v50_v1  ;;  %v54_v3 = vld [vmem:[%s11262_s6 + $0xc] sm:$0xff]   ;;  %v62_v6 = vld [vmem:[%s11262_s6 + $0x1c] sm:$0xff]  }
   0x3   :  { %53 = vst [vmem:[#allocation2 + $0x8] sm:$0xf] %v52_v2  ;;  %v58_v4 = vld [vmem:[%s11262_s6 + $0x18] sm:$0xf]  ;;  %v60_v5 = vld [vmem:[%s11262_s6 + $0x14] sm:$0xf] }
   0x4   :  { %55 = vst [vmem:[#allocation2 + $0xc] sm:$0xff] %v54_v3   ;;  %59 = vst [vmem:[#allocation2 + $0x14] sm:$0xf] %v58_v4  ;;  %v66_v7 = vld [vmem:[%s11262_s6 + $0x28] sm:$0xf]  ;;  %v70_v9 = vld [vmem:[%s11262_s6 + $0x2c] sm:$0xff]  }
   0x5   :  { %61 = vst [vmem:[#allocation2 + $0x18] sm:$0xf] %v60_v5  ;;  %v68_v8 = vld [vmem:[%s11262_s6 + $0x24] sm:$0xf]  ;;  %63 = vst [vmem:[#allocation2 + $0x1c] sm:$0xff] %v62_v6   ;;  %v78_v12 = vld [vmem:[%s11262_s6 + $0x3c] sm:$0xff]  }
   0x6   :  { %67 = vst [vmem:[#allocation2 + $0x24] sm:$0xf] %v66_v7  ;;  %69 = vst [vmem:[#allocation2 + $0x28] sm:$0xf] %v68_v8  ;;  %v74_v10 = vld [vmem:[%s11262_s6 + $0x38] sm:$0xf] }
   0x7   :  { %v76_v11 = vld [vmem:[%s11262_s6 + $0x34] sm:$0xf]  ;;  %71 = vst [vmem:[#allocation2 + $0x2c] sm:$0xff] %v70_v9   ;;  %75 = vst [vmem:[#allocation2 + $0x34] sm:$0xf] %v74_v10  ;;  %v86_v15 = vld [vmem:[%s11262_s6 + $0x4c] sm:$0xff]  }
   0x8   :  { %77 = vst [vmem:[#allocation2 + $0x38] sm:$0xf] %v76_v11  ;;  %v82_v13 = vld [vmem:[%s11262_s6 + $0x48] sm:$0xf]  ;;  %v84_v14 = vld [vmem:[%s11262_s6 + $0x44] sm:$0xf] }
   0x9   :  { %79 = vst [vmem:[#allocation2 + $0x3c] sm:$0xff] %v78_v12   ;;  %83 = vst [vmem:[#allocation2 + $0x44] sm:$0xf] %v82_v13  ;;  %v90_v16 = vld [vmem:[%s11262_s6 + $0x58] sm:$0xf]  ;;  %v94_v18 = vld [vmem:[%s11262_s6 + $0x5c] sm:$0xff]  }
   0xa   :  { %85 = vst [vmem:[#allocation2 + $0x48] sm:$0xf] %v84_v14  ;;  %v92_v17 = vld [vmem:[%s11262_s6 + $0x54] sm:$0xf]  ;;  %87 = vst [vmem:[#allocation2 + $0x4c] sm:$0xff] %v86_v15   ;;  %v102_v21 = vld [vmem:[%s11262_s6 + $0x6c] sm:$0xff]  }
   0xb   :  { %91 = vst [vmem:[#allocation2 + $0x54] sm:$0xf] %v90_v16  ;;  %93 = vst [vmem:[#allocation2 + $0x58] sm:$0xf] %v92_v17  ;;  %v98_v19 = vld [vmem:[%s11262_s6 + $0x68] sm:$0xf] }
   0xc   :  { %v100_v20 = vld [vmem:[%s11262_s6 + $0x64] sm:$0xf]  ;;  %95 = vst [vmem:[#allocation2 + $0x5c] sm:$0xff] %v94_v18   ;;  %99 = vst [vmem:[#allocation2 + $0x64] sm:$0xf] %v98_v19  ;;  %v110_v24 = vld [vmem:[%s11262_s6 + $0x7c] sm:$0xff]  }
   0xd   :  { %101 = vst [vmem:[#allocation2 + $0x68] sm:$0xf] %v100_v20  ;;  %v106_v22 = vld [vmem:[%s11262_s6 + $0x78] sm:$0xf]  ;;  %v108_v23 = vld [vmem:[%s11262_s6 + $0x74] sm:$0xf] }
   0xe   :  { %103 = vst [vmem:[#allocation2 + $0x6c] sm:$0xff] %v102_v21   ;;  %107 = vst [vmem:[#allocation2 + $0x74] sm:$0xf] %v106_v22  ;;  %v114_v25 = vld [vmem:[%s11262_s6 + $0x88] sm:$0xf]  ;;  %v118_v27 = vld [vmem:[%s11262_s6 + $0x8c] sm:$0xff]  }
   0xf   :  { %109 = vst [vmem:[#allocation2 + $0x78] sm:$0xf] %v108_v23  ;;  %v116_v26 = vld [vmem:[%s11262_s6 + $0x84] sm:$0xf]  ;;  %111 = vst [vmem:[#allocation2 + $0x7c] sm:$0xff] %v110_v24   ;;  %v126_v30 = vld [vmem:[%s11262_s6 + $0x9c] sm:$0xff]  }
  0x10   :  { %115 = vst [vmem:[#allocation2 + $0x84] sm:$0xf] %v114_v25  ;;  %117 = vst [vmem:[#allocation2 + $0x88] sm:$0xf] %v116_v26  ;;  %v122_v28 = vld [vmem:[%s11262_s6 + $0x98] sm:$0xf] }
  0x11   :  { %v124_v29 = vld [vmem:[%s11262_s6 + $0x94] sm:$0xf]  ;;  %119 = vst [vmem:[#allocation2 + $0x8c] sm:$0xff] %v118_v27   ;;  %123 = vst [vmem:[#allocation2 + $0x94] sm:$0xf] %v122_v28  ;;  %v134_v33 = vld [vmem:[%s11262_s6 + $0xac] sm:$0xff]  }
  0x12   :  { %125 = vst [vmem:[#allocation2 + $0x98] sm:$0xf] %v124_v29  ;;  %v130_v31 = vld [vmem:[%s11262_s6 + $0xa8] sm:$0xf]  ;;  %v132_v32 = vld [vmem:[%s11262_s6 + $0xa4] sm:$0xf] }
  0x13   :  { %127 = vst [vmem:[#allocation2 + $0x9c] sm:$0xff] %v126_v30   ;;  %131 = vst [vmem:[#allocation2 + $0xa4] sm:$0xf] %v130_v31  ;;  %v138_v34 = vld [vmem:[%s11262_s6 + $0xb8] sm:$0xf]  ;;  %v142_v36 = vld [vmem:[%s11262_s6 + $0xbc] sm:$0xff]  }
  0x14   :  { %133 = vst [vmem:[#allocation2 + $0xa8] sm:$0xf] %v132_v32  ;;  %v140_v35 = vld [vmem:[%s11262_s6 + $0xb4] sm:$0xf]  ;;  %135 = vst [vmem:[#allocation2 + $0xac] sm:$0xff] %v134_v33   ;;  %v150_v39 = vld [vmem:[%s11262_s6 + $0xcc] sm:$0xff]  }
  0x15   :  { %139 = vst [vmem:[#allocation2 + $0xb4] sm:$0xf] %v138_v34  ;;  %141 = vst [vmem:[#allocation2 + $0xb8] sm:$0xf] %v140_v35  ;;  %v146_v37 = vld [vmem:[%s11262_s6 + $0xc8] sm:$0xf] }
  0x16   :  { %v148_v38 = vld [vmem:[%s11262_s6 + $0xc4] sm:$0xf]  ;;  %143 = vst [vmem:[#allocation2 + $0xbc] sm:$0xff] %v142_v36   ;;  %147 = vst [vmem:[#allocation2 + $0xc4] sm:$0xf] %v146_v37  ;;  %v158_v42 = vld [vmem:[%s11262_s6 + $0xdc] sm:$0xff]  }
  0x17   :  { %149 = vst [vmem:[#allocation2 + $0xc8] sm:$0xf] %v148_v38  ;;  %v154_v40 = vld [vmem:[%s11262_s6 + $0xd8] sm:$0xf]  ;;  %v156_v41 = vld [vmem:[%s11262_s6 + $0xd4] sm:$0xf] }
  0x18   :  { %151 = vst [vmem:[#allocation2 + $0xcc] sm:$0xff] %v150_v39   ;;  %155 = vst [vmem:[#allocation2 + $0xd4] sm:$0xf] %v154_v40  ;;  %v162_v43 = vld [vmem:[%s11262_s6 + $0xe8] sm:$0xf]  ;;  %v166_v45 = vld [vmem:[%s11262_s6 + $0xec] sm:$0xff]  }
  0x19   :  { %157 = vst [vmem:[#allocation2 + $0xd8] sm:$0xf] %v156_v41  ;;  %v164_v44 = vld [vmem:[%s11262_s6 + $0xe4] sm:$0xf]  ;;  %159 = vst [vmem:[#allocation2 + $0xdc] sm:$0xff] %v158_v42   ;;  %v174_v48 = vld [vmem:[%s11262_s6 + $0xfc] sm:$0xff]  }
  0x1a   :  { %163 = vst [vmem:[#allocation2 + $0xe4] sm:$0xf] %v162_v43  ;;  %165 = vst [vmem:[#allocation2 + $0xe8] sm:$0xf] %v164_v44  ;;  %v170_v46 = vld [vmem:[%s11262_s6 + $0xf8] sm:$0xf] }
  0x1b   :  { %v172_v47 = vld [vmem:[%s11262_s6 + $0xf4] sm:$0xf]  ;;  %167 = vst [vmem:[#allocation2 + $0xec] sm:$0xff] %v166_v45   ;;  %171 = vst [vmem:[#allocation2 + $0xf4] sm:$0xf] %v170_v46  ;;  %v182_v51 = vld [vmem:[%s11262_s6 + $0x10c] sm:$0xff]  }
  0x1c   :  { %173 = vst [vmem:[#allocation2 + $0xf8] sm:$0xf] %v172_v47  ;;  %v178_v49 = vld [vmem:[%s11262_s6 + $0x108] sm:$0xf]  ;;  %v180_v50 = vld [vmem:[%s11262_s6 + $0x104] sm:$0xf] }
  0x1d   :  { %175 = vst [vmem:[#allocation2 + $0xfc] sm:$0xff] %v174_v48   ;;  %179 = vst [vmem:[#allocation2 + $0x104] sm:$0xf] %v178_v49  ;;  %v186_v52 = vld [vmem:[%s11262_s6 + $0x118] sm:$0xf]  ;;  %v190_v54 = vld [vmem:[%s11262_s6 + $0x11c] sm:$0xff]  }
  0x1e   :  { %181 = vst [vmem:[#allocation2 + $0x108] sm:$0xf] %v180_v50  ;;  %v188_v53 = vld [vmem:[%s11262_s6 + $0x114] sm:$0xf]  ;;  %183 = vst [vmem:[#allocation2 + $0x10c] sm:$0xff] %v182_v51   ;;  %v198_v57 = vld [vmem:[%s11262_s6 + $0x12c] sm:$0xff]  }
  0x1f   :  { %187 = vst [vmem:[#allocation2 + $0x114] sm:$0xf] %v186_v52  ;;  %189 = vst [vmem:[#allocation2 + $0x118] sm:$0xf] %v188_v53  ;;  %v194_v55 = vld [vmem:[%s11262_s6 + $0x128] sm:$0xf] }
  0x20   :  { %v196_v56 = vld [vmem:[%s11262_s6 + $0x124] sm:$0xf]  ;;  %191 = vst [vmem:[#allocation2 + $0x11c] sm:$0xff] %v190_v54   ;;  %195 = vst [vmem:[#allocation2 + $0x124] sm:$0xf] %v194_v55  ;;  %v206_v60 = vld [vmem:[%s11262_s6 + $0x13c] sm:$0xff]  }
  0x21   :  { %197 = vst [vmem:[#allocation2 + $0x128] sm:$0xf] %v196_v56  ;;  %v202_v58 = vld [vmem:[%s11262_s6 + $0x138] sm:$0xf]  ;;  %v204_v59 = vld [vmem:[%s11262_s6 + $0x134] sm:$0xf] }
  0x22   :  { %199 = vst [vmem:[#allocation2 + $0x12c] sm:$0xff] %v198_v57   ;;  %203 = vst [vmem:[#allocation2 + $0x134] sm:$0xf] %v202_v58  ;;  %v210_v61 = vld [vmem:[%s11262_s6 + $0x148] sm:$0xf]  ;;  %v214_v63 = vld [vmem:[%s11262_s6 + $0x14c] sm:$0xff]  }
  0x23   :  { %205 = vst [vmem:[#allocation2 + $0x138] sm:$0xf] %v204_v59  ;;  %v212_v62 = vld [vmem:[%s11262_s6 + $0x144] sm:$0xf]  ;;  %207 = vst [vmem:[#allocation2 + $0x13c] sm:$0xff] %v206_v60   ;;  %v222_v2 = vld [vmem:[%s11262_s6 + $0x15c] sm:$0xff]  }
  0x24   :  { %211 = vst [vmem:[#allocation2 + $0x144] sm:$0xf] %v210_v61  ;;  %213 = vst [vmem:[#allocation2 + $0x148] sm:$0xf] %v212_v62  ;;  %v218_v0 = vld [vmem:[%s11262_s6 + $0x158] sm:$0xf] }
  0x25   :  { %v220_v1 = vld [vmem:[%s11262_s6 + $0x154] sm:$0xf]  ;;  %215 = vst [vmem:[#allocation2 + $0x14c] sm:$0xff] %v214_v63   ;;  %219 = vst [vmem:[#allocation2 + $0x154] sm:$0xf] %v218_v0  ;;  %v230_v5 = vld [vmem:[%s11262_s6 + $0x16c] sm:$0xff]  }
  0x26   :  { %221 = vst [vmem:[#allocation2 + $0x158] sm:$0xf] %v220_v1  ;;  %v226_v3 = vld [vmem:[%s11262_s6 + $0x168] sm:$0xf]  ;;  %v228_v4 = vld [vmem:[%s11262_s6 + $0x164] sm:$0xf] }
  0x27   :  { %223 = vst [vmem:[#allocation2 + $0x15c] sm:$0xff] %v222_v2   ;;  %227 = vst [vmem:[#allocation2 + $0x164] sm:$0xf] %v226_v3  ;;  %v234_v6 = vld [vmem:[%s11262_s6 + $0x178] sm:$0xf]  ;;  %v238_v8 = vld [vmem:[%s11262_s6 + $0x17c] sm:$0xff]  }
  0x28   :  { %229 = vst [vmem:[#allocation2 + $0x168] sm:$0xf] %v228_v4  ;;  %v236_v7 = vld [vmem:[%s11262_s6 + $0x174] sm:$0xf]  ;;  %231 = vst [vmem:[#allocation2 + $0x16c] sm:$0xff] %v230_v5   ;;  %v246_v11 = vld [vmem:[%s11262_s6 + $0x18c] sm:$0xff]  }
  0x29   :  { %235 = vst [vmem:[#allocation2 + $0x174] sm:$0xf] %v234_v6  ;;  %237 = vst [vmem:[#allocation2 + $0x178] sm:$0xf] %v236_v7  ;;  %v242_v9 = vld [vmem:[%s11262_s6 + $0x188] sm:$0xf] }
  0x2a   :  { %v244_v10 = vld [vmem:[%s11262_s6 + $0x184] sm:$0xf]  ;;  %239 = vst [vmem:[#allocation2 + $0x17c] sm:$0xff] %v238_v8   ;;  %243 = vst [vmem:[#allocation2 + $0x184] sm:$0xf] %v242_v9  ;;  %v254_v14 = vld [vmem:[%s11262_s6 + $0x19c] sm:$0xff]  }
  0x2b   :  { %245 = vst [vmem:[#allocation2 + $0x188] sm:$0xf] %v244_v10  ;;  %v250_v12 = vld [vmem:[%s11262_s6 + $0x198] sm:$0xf]  ;;  %v252_v13 = vld [vmem:[%s11262_s6 + $0x194] sm:$0xf] }
  0x2c   :  { %247 = vst [vmem:[#allocation2 + $0x18c] sm:$0xff] %v246_v11   ;;  %251 = vst [vmem:[#allocation2 + $0x194] sm:$0xf] %v250_v12  ;;  %v258_v15 = vld [vmem:[%s11262_s6 + $0x1a8] sm:$0xf]  ;;  %v262_v17 = vld [vmem:[%s11262_s6 + $0x1ac] sm:$0xff]  }
  0x2d   :  { %253 = vst [vmem:[#allocation2 + $0x198] sm:$0xf] %v252_v13  ;;  %v260_v16 = vld [vmem:[%s11262_s6 + $0x1a4] sm:$0xf]  ;;  %255 = vst [vmem:[#allocation2 + $0x19c] sm:$0xff] %v254_v14   ;;  %v270_v20 = vld [vmem:[%s11262_s6 + $0x1bc] sm:$0xff]  }
  0x2e   :  { %259 = vst [vmem:[#allocation2 + $0x1a4] sm:$0xf] %v258_v15  ;;  %261 = vst [vmem:[#allocation2 + $0x1a8] sm:$0xf] %v260_v16  ;;  %v266_v18 = vld [vmem:[%s11262_s6 + $0x1b8] sm:$0xf] }
  0x2f   :  { %v268_v19 = vld [vmem:[%s11262_s6 + $0x1b4] sm:$0xf]  ;;  %263 = vst [vmem:[#allocation2 + $0x1ac] sm:$0xff] %v262_v17   ;;  %267 = vst [vmem:[#allocation2 + $0x1b4] sm:$0xf] %v266_v18  ;;  %v278_v23 = vld [vmem:[%s11262_s6 + $0x1cc] sm:$0xff]  }
  0x30   :  { %269 = vst [vmem:[#allocation2 + $0x1b8] sm:$0xf] %v268_v19  ;;  %v274_v21 = vld [vmem:[%s11262_s6 + $0x1c8] sm:$0xf]  ;;  %v276_v22 = vld [vmem:[%s11262_s6 + $0x1c4] sm:$0xf] }
  0x31   :  { %271 = vst [vmem:[#allocation2 + $0x1bc] sm:$0xff] %v270_v20   ;;  %275 = vst [vmem:[#allocation2 + $0x1c4] sm:$0xf] %v274_v21  ;;  %v282_v24 = vld [vmem:[%s11262_s6 + $0x1d8] sm:$0xf]  ;;  %v286_v26 = vld [vmem:[%s11262_s6 + $0x1dc] sm:$0xff]  }
  0x32   :  { %277 = vst [vmem:[#allocation2 + $0x1c8] sm:$0xf] %v276_v22  ;;  %v284_v25 = vld [vmem:[%s11262_s6 + $0x1d4] sm:$0xf]  ;;  %279 = vst [vmem:[#allocation2 + $0x1cc] sm:$0xff] %v278_v23   ;;  %v294_v29 = vld [vmem:[%s11262_s6 + $0x1ec] sm:$0xff]  }
  0x33   :  { %283 = vst [vmem:[#allocation2 + $0x1d4] sm:$0xf] %v282_v24  ;;  %285 = vst [vmem:[#allocation2 + $0x1d8] sm:$0xf] %v284_v25  ;;  %v290_v27 = vld [vmem:[%s11262_s6 + $0x1e8] sm:$0xf] }
  0x34   :  { %v292_v28 = vld [vmem:[%s11262_s6 + $0x1e4] sm:$0xf]  ;;  %287 = vst [vmem:[#allocation2 + $0x1dc] sm:$0xff] %v286_v26   ;;  %291 = vst [vmem:[#allocation2 + $0x1e4] sm:$0xf] %v290_v27  ;;  %v302_v32 = vld [vmem:[%s11262_s6 + $0x1fc] sm:$0xff]  }
  0x35   :  { %293 = vst [vmem:[#allocation2 + $0x1e8] sm:$0xf] %v292_v28  ;;  %v298_v30 = vld [vmem:[%s11262_s6 + $0x1f8] sm:$0xf]  ;;  %v300_v31 = vld [vmem:[%s11262_s6 + $0x1f4] sm:$0xf] }
  0x36   :  { %295 = vst [vmem:[#allocation2 + $0x1ec] sm:$0xff] %v294_v29   ;;  %299 = vst [vmem:[#allocation2 + $0x1f4] sm:$0xf] %v298_v30  ;;  %v306_v33 = vld [vmem:[%s11262_s6 + $0x208] sm:$0xf]  ;;  %v310_v35 = vld [vmem:[%s11262_s6 + $0x20c] sm:$0xff]  }
  0x37   :  { %301 = vst [vmem:[#allocation2 + $0x1f8] sm:$0xf] %v300_v31  ;;  %v308_v34 = vld [vmem:[%s11262_s6 + $0x204] sm:$0xf]  ;;  %303 = vst [vmem:[#allocation2 + $0x1fc] sm:$0xff] %v302_v32   ;;  %v318_v38 = vld [vmem:[%s11262_s6 + $0x21c] sm:$0xff]  }
  0x38   :  { %307 = vst [vmem:[#allocation2 + $0x204] sm:$0xf] %v306_v33  ;;  %309 = vst [vmem:[#allocation2 + $0x208] sm:$0xf] %v308_v34  ;;  %v314_v36 = vld [vmem:[%s11262_s6 + $0x218] sm:$0xf] }
  0x39   :  { %v316_v37 = vld [vmem:[%s11262_s6 + $0x214] sm:$0xf]  ;;  %311 = vst [vmem:[#allocation2 + $0x20c] sm:$0xff] %v310_v35   ;;  %315 = vst [vmem:[#allocation2 + $0x214] sm:$0xf] %v314_v36  ;;  %v326_v41 = vld [vmem:[%s11262_s6 + $0x22c] sm:$0xff]  }
  0x3a   :  { %317 = vst [vmem:[#allocation2 + $0x218] sm:$0xf] %v316_v37  ;;  %v322_v39 = vld [vmem:[%s11262_s6 + $0x228] sm:$0xf]  ;;  %v324_v40 = vld [vmem:[%s11262_s6 + $0x224] sm:$0xf] }
  0x3b   :  { %319 = vst [vmem:[#allocation2 + $0x21c] sm:$0xff] %v318_v38   ;;  %323 = vst [vmem:[#allocation2 + $0x224] sm:$0xf] %v322_v39  ;;  %v330_v42 = vld [vmem:[%s11262_s6 + $0x238] sm:$0xf]  ;;  %v334_v44 = vld [vmem:[%s11262_s6 + $0x23c] sm:$0xff]  }
  0x3c   :  { %325 = vst [vmem:[#allocation2 + $0x228] sm:$0xf] %v324_v40  ;;  %v332_v43 = vld [vmem:[%s11262_s6 + $0x234] sm:$0xf]  ;;  %327 = vst [vmem:[#allocation2 + $0x22c] sm:$0xff] %v326_v41   ;;  %v342_v47 = vld [vmem:[%s11262_s6 + $0x24c] sm:$0xff]  }
  0x3d   :  { %331 = vst [vmem:[#allocation2 + $0x234] sm:$0xf] %v330_v42  ;;  %333 = vst [vmem:[#allocation2 + $0x238] sm:$0xf] %v332_v43  ;;  %v338_v45 = vld [vmem:[%s11262_s6 + $0x248] sm:$0xf] }
  0x3e   :  { %v340_v46 = vld [vmem:[%s11262_s6 + $0x244] sm:$0xf]  ;;  %335 = vst [vmem:[#allocation2 + $0x23c] sm:$0xff] %v334_v44   ;;  %339 = vst [vmem:[#allocation2 + $0x244] sm:$0xf] %v338_v45  ;;  %v350_v50 = vld [vmem:[%s11262_s6 + $0x25c] sm:$0xff]  }
  0x3f   :  { %341 = vst [vmem:[#allocation2 + $0x248] sm:$0xf] %v340_v46  ;;  %v346_v48 = vld [vmem:[%s11262_s6 + $0x258] sm:$0xf]  ;;  %v348_v49 = vld [vmem:[%s11262_s6 + $0x254] sm:$0xf] }
  0x40   :  { %343 = vst [vmem:[#allocation2 + $0x24c] sm:$0xff] %v342_v47   ;;  %347 = vst [vmem:[#allocation2 + $0x254] sm:$0xf] %v346_v48  ;;  %v354_v51 = vld [vmem:[%s11262_s6 + $0x268] sm:$0xf]  ;;  %v358_v53 = vld [vmem:[%s11262_s6 + $0x26c] sm:$0xff]  }
  0x41   :  { %349 = vst [vmem:[#allocation2 + $0x258] sm:$0xf] %v348_v49  ;;  %v356_v52 = vld [vmem:[%s11262_s6 + $0x264] sm:$0xf]  ;;  %351 = vst [vmem:[#allocation2 + $0x25c] sm:$0xff] %v350_v50   ;;  %v366_v56 = vld [vmem:[%s11262_s6 + $0x27c] sm:$0xff]  }
  0x42   :  { %355 = vst [vmem:[#allocation2 + $0x264] sm:$0xf] %v354_v51  ;;  %357 = vst [vmem:[#allocation2 + $0x268] sm:$0xf] %v356_v52  ;;  %v362_v54 = vld [vmem:[%s11262_s6 + $0x278] sm:$0xf] }
  0x43   :  { %v364_v55 = vld [vmem:[%s11262_s6 + $0x274] sm:$0xf]  ;;  %359 = vst [vmem:[#allocation2 + $0x26c] sm:$0xff] %v358_v53   ;;  %363 = vst [vmem:[#allocation2 + $0x274] sm:$0xf] %v362_v54  ;;  %v374_v59 = vld [vmem:[%s11262_s6 + $0x28c] sm:$0xff]  }
  0x44   :  { %365 = vst [vmem:[#allocation2 + $0x278] sm:$0xf] %v364_v55  ;;  %v370_v57 = vld [vmem:[%s11262_s6 + $0x288] sm:$0xf]  ;;  %v372_v58 = vld [vmem:[%s11262_s6 + $0x284] sm:$0xf] }
  0x45   :  { %367 = vst [vmem:[#allocation2 + $0x27c] sm:$0xff] %v366_v56   ;;  %371 = vst [vmem:[#allocation2 + $0x284] sm:$0xf] %v370_v57  ;;  %v378_v60 = vld [vmem:[%s11262_s6 + $0x298] sm:$0xf]  ;;  %v382_v62 = vld [vmem:[%s11262_s6 + $0x29c] sm:$0xff]  }
  0x46   :  { %373 = vst [vmem:[#allocation2 + $0x288] sm:$0xf] %v372_v58  ;;  %v380_v61 = vld [vmem:[%s11262_s6 + $0x294] sm:$0xf]  ;;  %375 = vst [vmem:[#allocation2 + $0x28c] sm:$0xff] %v374_v59   ;;  %v390_v1 = vld [vmem:[%s11262_s6 + $0x2ac] sm:$0xff]  }
  0x47   :  { %379 = vst [vmem:[#allocation2 + $0x294] sm:$0xf] %v378_v60  ;;  %381 = vst [vmem:[#allocation2 + $0x298] sm:$0xf] %v380_v61  ;;  %v386_v63 = vld [vmem:[%s11262_s6 + $0x2a8] sm:$0xf] }
  0x48   :  { %v388_v0 = vld [vmem:[%s11262_s6 + $0x2a4] sm:$0xf]  ;;  %383 = vst [vmem:[#allocation2 + $0x29c] sm:$0xff] %v382_v62   ;;  %387 = vst [vmem:[#allocation2 + $0x2a4] sm:$0xf] %v386_v63  ;;  %v398_v4 = vld [vmem:[%s11262_s6 + $0x2bc] sm:$0xff]  }
  0x49   :  { %389 = vst [vmem:[#allocation2 + $0x2a8] sm:$0xf] %v388_v0  ;;  %v394_v2 = vld [vmem:[%s11262_s6 + $0x2b8] sm:$0xf]  ;;  %v396_v3 = vld [vmem:[%s11262_s6 + $0x2b4] sm:$0xf] }
  0x4a   :  { %391 = vst [vmem:[#allocation2 + $0x2ac] sm:$0xff] %v390_v1   ;;  %395 = vst [vmem:[#allocation2 + $0x2b4] sm:$0xf] %v394_v2  ;;  %v402_v5 = vld [vmem:[%s11262_s6 + $0x2c8] sm:$0xf]  ;;  %v406_v7 = vld [vmem:[%s11262_s6 + $0x2cc] sm:$0xff]  }
  0x4b   :  { %397 = vst [vmem:[#allocation2 + $0x2b8] sm:$0xf] %v396_v3  ;;  %v404_v6 = vld [vmem:[%s11262_s6 + $0x2c4] sm:$0xf]  ;;  %399 = vst [vmem:[#allocation2 + $0x2bc] sm:$0xff] %v398_v4   ;;  %v414_v10 = vld [vmem:[%s11262_s6 + $0x2dc] sm:$0xff]  }
  0x4c   :  { %403 = vst [vmem:[#allocation2 + $0x2c4] sm:$0xf] %v402_v5  ;;  %405 = vst [vmem:[#allocation2 + $0x2c8] sm:$0xf] %v404_v6  ;;  %v410_v8 = vld [vmem:[%s11262_s6 + $0x2d8] sm:$0xf] }
  0x4d   :  { %v412_v9 = vld [vmem:[%s11262_s6 + $0x2d4] sm:$0xf]  ;;  %407 = vst [vmem:[#allocation2 + $0x2cc] sm:$0xff] %v406_v7   ;;  %411 = vst [vmem:[#allocation2 + $0x2d4] sm:$0xf] %v410_v8  ;;  %v422_v13 = vld [vmem:[%s11262_s6 + $0x2ec] sm:$0xff]  }
  0x4e   :  { %413 = vst [vmem:[#allocation2 + $0x2d8] sm:$0xf] %v412_v9  ;;  %v418_v11 = vld [vmem:[%s11262_s6 + $0x2e8] sm:$0xf]  ;;  %v420_v12 = vld [vmem:[%s11262_s6 + $0x2e4] sm:$0xf] }
  0x4f   :  { %415 = vst [vmem:[#allocation2 + $0x2dc] sm:$0xff] %v414_v10   ;;  %419 = vst [vmem:[#allocation2 + $0x2e4] sm:$0xf] %v418_v11  ;;  %v426_v14 = vld [vmem:[%s11262_s6 + $0x2f8] sm:$0xf]  ;;  %v430_v16 = vld [vmem:[%s11262_s6 + $0x2fc] sm:$0xff]  }
  0x50   :  { %421 = vst [vmem:[#allocation2 + $0x2e8] sm:$0xf] %v420_v12  ;;  %v428_v15 = vld [vmem:[%s11262_s6 + $0x2f4] sm:$0xf]  ;;  %423 = vst [vmem:[#allocation2 + $0x2ec] sm:$0xff] %v422_v13   ;;  %v438_v19 = vld [vmem:[%s11262_s6 + $0x30c] sm:$0xff]  }
  0x51   :  { %427 = vst [vmem:[#allocation2 + $0x2f4] sm:$0xf] %v426_v14  ;;  %429 = vst [vmem:[#allocation2 + $0x2f8] sm:$0xf] %v428_v15  ;;  %v434_v17 = vld [vmem:[%s11262_s6 + $0x308] sm:$0xf] }
  0x52   :  { %v436_v18 = vld [vmem:[%s11262_s6 + $0x304] sm:$0xf]  ;;  %431 = vst [vmem:[#allocation2 + $0x2fc] sm:$0xff] %v430_v16   ;;  %435 = vst [vmem:[#allocation2 + $0x304] sm:$0xf] %v434_v17  ;;  %v446_v22 = vld [vmem:[%s11262_s6 + $0x31c] sm:$0xff]  }
  0x53   :  { %437 = vst [vmem:[#allocation2 + $0x308] sm:$0xf] %v436_v18  ;;  %v442_v20 = vld [vmem:[%s11262_s6 + $0x318] sm:$0xf]  ;;  %v444_v21 = vld [vmem:[%s11262_s6 + $0x314] sm:$0xf] }
  0x54   :  { %439 = vst [vmem:[#allocation2 + $0x30c] sm:$0xff] %v438_v19   ;;  %443 = vst [vmem:[#allocation2 + $0x314] sm:$0xf] %v442_v20  ;;  %v450_v23 = vld [vmem:[%s11262_s6 + $0x328] sm:$0xf]  ;;  %v454_v25 = vld [vmem:[%s11262_s6 + $0x32c] sm:$0xff]  }
  0x55   :  { %445 = vst [vmem:[#allocation2 + $0x318] sm:$0xf] %v444_v21  ;;  %v452_v24 = vld [vmem:[%s11262_s6 + $0x324] sm:$0xf]  ;;  %447 = vst [vmem:[#allocation2 + $0x31c] sm:$0xff] %v446_v22   ;;  %v462_v28 = vld [vmem:[%s11262_s6 + $0x33c] sm:$0xff]  }
  0x56   :  { %451 = vst [vmem:[#allocation2 + $0x324] sm:$0xf] %v450_v23  ;;  %453 = vst [vmem:[#allocation2 + $0x328] sm:$0xf] %v452_v24  ;;  %v458_v26 = vld [vmem:[%s11262_s6 + $0x338] sm:$0xf] }
  0x57   :  { %v460_v27 = vld [vmem:[%s11262_s6 + $0x334] sm:$0xf]  ;;  %455 = vst [vmem:[#allocation2 + $0x32c] sm:$0xff] %v454_v25   ;;  %459 = vst [vmem:[#allocation2 + $0x334] sm:$0xf] %v458_v26  ;;  %v470_v31 = vld [vmem:[%s11262_s6 + $0x34c] sm:$0xff]  }
  0x58   :  { %461 = vst [vmem:[#allocation2 + $0x338] sm:$0xf] %v460_v27  ;;  %v466_v29 = vld [vmem:[%s11262_s6 + $0x348] sm:$0xf]  ;;  %v468_v30 = vld [vmem:[%s11262_s6 + $0x344] sm:$0xf] }
  0x59   :  { %463 = vst [vmem:[#allocation2 + $0x33c] sm:$0xff] %v462_v28   ;;  %467 = vst [vmem:[#allocation2 + $0x344] sm:$0xf] %v466_v29  ;;  %v474_v32 = vld [vmem:[%s11262_s6 + $0x358] sm:$0xf]  ;;  %v478_v34 = vld [vmem:[%s11262_s6 + $0x35c] sm:$0xff]  }
  0x5a   :  { %469 = vst [vmem:[#allocation2 + $0x348] sm:$0xf] %v468_v30  ;;  %v476_v33 = vld [vmem:[%s11262_s6 + $0x354] sm:$0xf]  ;;  %471 = vst [vmem:[#allocation2 + $0x34c] sm:$0xff] %v470_v31   ;;  %v486_v37 = vld [vmem:[%s11262_s6 + $0x36c] sm:$0xff]  }
  0x5b   :  { %475 = vst [vmem:[#allocation2 + $0x354] sm:$0xf] %v474_v32  ;;  %477 = vst [vmem:[#allocation2 + $0x358] sm:$0xf] %v476_v33  ;;  %v482_v35 = vld [vmem:[%s11262_s6 + $0x368] sm:$0xf] }
  0x5c   :  { %v484_v36 = vld [vmem:[%s11262_s6 + $0x364] sm:$0xf]  ;;  %479 = vst [vmem:[#allocation2 + $0x35c] sm:$0xff] %v478_v34   ;;  %483 = vst [vmem:[#allocation2 + $0x364] sm:$0xf] %v482_v35  ;;  %v494_v40 = vld [vmem:[%s11262_s6 + $0x37c] sm:$0xff]  }
  0x5d   :  { %485 = vst [vmem:[#allocation2 + $0x368] sm:$0xf] %v484_v36  ;;  %v490_v38 = vld [vmem:[%s11262_s6 + $0x378] sm:$0xf]  ;;  %v492_v39 = vld [vmem:[%s11262_s6 + $0x374] sm:$0xf] }
  0x5e   :  { %487 = vst [vmem:[#allocation2 + $0x36c] sm:$0xff] %v486_v37   ;;  %491 = vst [vmem:[#allocation2 + $0x374] sm:$0xf] %v490_v38  ;;  %v498_v41 = vld [vmem:[%s11262_s6 + $0x388] sm:$0xf]  ;;  %v502_v43 = vld [vmem:[%s11262_s6 + $0x38c] sm:$0xff]  }
  0x5f   :  { %493 = vst [vmem:[#allocation2 + $0x378] sm:$0xf] %v492_v39  ;;  %v500_v42 = vld [vmem:[%s11262_s6 + $0x384] sm:$0xf]  ;;  %495 = vst [vmem:[#allocation2 + $0x37c] sm:$0xff] %v494_v40   ;;  %v510_v46 = vld [vmem:[%s11262_s6 + $0x39c] sm:$0xff]  }
  0x60   :  { %499 = vst [vmem:[#allocation2 + $0x384] sm:$0xf] %v498_v41  ;;  %501 = vst [vmem:[#allocation2 + $0x388] sm:$0xf] %v500_v42  ;;  %v506_v44 = vld [vmem:[%s11262_s6 + $0x398] sm:$0xf] }
  0x61   :  { %v508_v45 = vld [vmem:[%s11262_s6 + $0x394] sm:$0xf]  ;;  %503 = vst [vmem:[#allocation2 + $0x38c] sm:$0xff] %v502_v43   ;;  %507 = vst [vmem:[#allocation2 + $0x394] sm:$0xf] %v506_v44  ;;  %v518_v49 = vld [vmem:[%s11262_s6 + $0x3ac] sm:$0xff]  }
  0x62   :  { %509 = vst [vmem:[#allocation2 + $0x398] sm:$0xf] %v508_v45  ;;  %v514_v47 = vld [vmem:[%s11262_s6 + $0x3a8] sm:$0xf]  ;;  %v516_v48 = vld [vmem:[%s11262_s6 + $0x3a4] sm:$0xf] }
  0x63   :  { %511 = vst [vmem:[#allocation2 + $0x39c] sm:$0xff] %v510_v46   ;;  %515 = vst [vmem:[#allocation2 + $0x3a4] sm:$0xf] %v514_v47  ;;  %v522_v50 = vld [vmem:[%s11262_s6 + $0x3b8] sm:$0xf]  ;;  %v526_v52 = vld [vmem:[%s11262_s6 + $0x3bc] sm:$0xff]  }
  0x64   :  { %517 = vst [vmem:[#allocation2 + $0x3a8] sm:$0xf] %v516_v48  ;;  %v524_v51 = vld [vmem:[%s11262_s6 + $0x3b4] sm:$0xf]  ;;  %519 = vst [vmem:[#allocation2 + $0x3ac] sm:$0xff] %v518_v49   ;;  %v534_v55 = vld [vmem:[%s11262_s6 + $0x3cc] sm:$0xff]  }
  0x65   :  { %523 = vst [vmem:[#allocation2 + $0x3b4] sm:$0xf] %v522_v50  ;;  %525 = vst [vmem:[#allocation2 + $0x3b8] sm:$0xf] %v524_v51  ;;  %v530_v53 = vld [vmem:[%s11262_s6 + $0x3c8] sm:$0xf] }
  0x66   :  { %v532_v54 = vld [vmem:[%s11262_s6 + $0x3c4] sm:$0xf]  ;;  %527 = vst [vmem:[#allocation2 + $0x3bc] sm:$0xff] %v526_v52   ;;  %531 = vst [vmem:[#allocation2 + $0x3c4] sm:$0xf] %v530_v53  ;;  %v542_v58 = vld [vmem:[%s11262_s6 + $0x3dc] sm:$0xff]  }
  0x67   :  { %533 = vst [vmem:[#allocation2 + $0x3c8] sm:$0xf] %v532_v54  ;;  %v538_v56 = vld [vmem:[%s11262_s6 + $0x3d8] sm:$0xf]  ;;  %v540_v57 = vld [vmem:[%s11262_s6 + $0x3d4] sm:$0xf] }
  0x68   :  { %535 = vst [vmem:[#allocation2 + $0x3cc] sm:$0xff] %v534_v55   ;;  %539 = vst [vmem:[#allocation2 + $0x3d4] sm:$0xf] %v538_v56  ;;  %v546_v59 = vld [vmem:[%s11262_s6 + $0x3e8] sm:$0xf]  ;;  %v550_v61 = vld [vmem:[%s11262_s6 + $0x3ec] sm:$0xff]  }
  0x69   :  { %541 = vst [vmem:[#allocation2 + $0x3d8] sm:$0xf] %v540_v57  ;;  %v548_v60 = vld [vmem:[%s11262_s6 + $0x3e4] sm:$0xf]  ;;  %543 = vst [vmem:[#allocation2 + $0x3dc] sm:$0xff] %v542_v58   ;;  %v558_v0 = vld [vmem:[%s11262_s6 + $0x3fc] sm:$0xff]  }
  0x6a   :  { %547 = vst [vmem:[#allocation2 + $0x3e4] sm:$0xf] %v546_v59  ;;  %549 = vst [vmem:[#allocation2 + $0x3e8] sm:$0xf] %v548_v60  ;;  %v554_v62 = vld [vmem:[%s11262_s6 + $0x3f8] sm:$0xf] }
  0x6b   :  { %v556_v63 = vld [vmem:[%s11262_s6 + $0x3f4] sm:$0xf]  ;;  %551 = vst [vmem:[#allocation2 + $0x3ec] sm:$0xff] %v550_v61   ;;  %555 = vst [vmem:[#allocation2 + $0x3f4] sm:$0xf] %v554_v62 }
  0x6c   :  { %557 = vst [vmem:[#allocation2 + $0x3f8] sm:$0xf] %v556_v63  ;;  %v562_v1 = vld [vmem:[%s11262_s6 + $0x408] sm:$0xf]  ;;  %v564_v2 = vld [vmem:[%s11262_s6 + $0x404] sm:$0xf] }
  0x6d   :  { %559 = vst [vmem:[#allocation2 + $0x3fc] sm:$0xff] %v558_v0   ;;  %563 = vst [vmem:[#allocation2 + $0x404] sm:$0xf] %v562_v1  ;;  %v566_v3 = vld [vmem:[%s11262_s6 + $0x40c] sm:$0xf] }
  0x6e   :  { %565 = vst [vmem:[#allocation2 + $0x408] sm:$0xf] %v564_v2  ;;  %567 = vst [vmem:[#allocation2 + $0x40c] sm:$0xf] %v566_v3 }
  0x6f   :  { %1118 = vsyncadd [#allocation6], 16640  ;;  %v1137_v4 = vld [vmem:[%s11263_s7] sm:$0xf]  ;;  %v1139_v5 = vld [vmem:[%s11263_s7 + $0x34] sm:$0xf] }
  0x70   :  { %1138 = vst [vmem:[#allocation3] sm:$0xf] %v1137_v4  ;;  %1140 = vst [vmem:[#allocation3 + $0x4] sm:$0xf] %v1139_v5  ;;  %v1141_v6 = vld [vmem:[%s11263_s7 + $0x4] sm:$0xf] }
  0x71   :  { %v1143_v7 = vld [vmem:[%s11263_s7 + $0x38] sm:$0xf]  ;;  %v1145_v8 = vld [vmem:[%s11263_s7 + $0x8] sm:$0xf]  ;;  %1142 = vst [vmem:[#allocation3 + $0x8] sm:$0xf] %v1141_v6 }
  0x72   :  { %1144 = vst [vmem:[#allocation3 + $0xc] sm:$0xf] %v1143_v7  ;;  %1146 = vst [vmem:[#allocation3 + $0x10] sm:$0xf] %v1145_v8  ;;  %v1147_v9 = vld [vmem:[%s11263_s7 + $0x3c] sm:$0xf] }
  0x73   :  { %v1149_v10 = vld [vmem:[%s11263_s7 + $0xc] sm:$0xf]  ;;  %v1151_v11 = vld [vmem:[%s11263_s7 + $0x40] sm:$0xf]  ;;  %1148 = vst [vmem:[#allocation3 + $0x14] sm:$0xf] %v1147_v9 }
  0x74   :  { %1150 = vst [vmem:[#allocation3 + $0x18] sm:$0xf] %v1149_v10  ;;  %1152 = vst [vmem:[#allocation3 + $0x1c] sm:$0xf] %v1151_v11  ;;  %v1153_v12 = vld [vmem:[%s11263_s7 + $0x10] sm:$0xf] }
  0x75   :  { %v1155_v13 = vld [vmem:[%s11263_s7 + $0x44] sm:$0xf]  ;;  %v1157_v14 = vld [vmem:[%s11263_s7 + $0x14] sm:$0xf]  ;;  %1154 = vst [vmem:[#allocation3 + $0x20] sm:$0xf] %v1153_v12 }
  0x76   :  { %1156 = vst [vmem:[#allocation3 + $0x24] sm:$0xf] %v1155_v13  ;;  %1158 = vst [vmem:[#allocation3 + $0x28] sm:$0xf] %v1157_v14  ;;  %v1159_v15 = vld [vmem:[%s11263_s7 + $0x48] sm:$0xf] }
  0x77   :  { %v1161_v16 = vld [vmem:[%s11263_s7 + $0x18] sm:$0xf]  ;;  %v1163_v17 = vld [vmem:[%s11263_s7 + $0x4c] sm:$0xf]  ;;  %1160 = vst [vmem:[#allocation3 + $0x2c] sm:$0xf] %v1159_v15 }
  0x78   :  { %1162 = vst [vmem:[#allocation3 + $0x30] sm:$0xf] %v1161_v16  ;;  %1164 = vst [vmem:[#allocation3 + $0x34] sm:$0xf] %v1163_v17  ;;  %v1165_v18 = vld [vmem:[%s11263_s7 + $0x1c] sm:$0xf] }
  0x79   :  { %v1167_v19 = vld [vmem:[%s11263_s7 + $0x50] sm:$0xf]  ;;  %v1169_v20 = vld [vmem:[%s11263_s7 + $0x20] sm:$0xf]  ;;  %1166 = vst [vmem:[#allocation3 + $0x38] sm:$0xf] %v1165_v18 }
  0x7a   :  { %1168 = vst [vmem:[#allocation3 + $0x3c] sm:$0xf] %v1167_v19  ;;  %1170 = vst [vmem:[#allocation3 + $0x40] sm:$0xf] %v1169_v20  ;;  %v1171_v21 = vld [vmem:[%s11263_s7 + $0x54] sm:$0xf] }
  0x7b   :  { %v1173_v22 = vld [vmem:[%s11263_s7 + $0x24] sm:$0xf]  ;;  %v1175_v23 = vld [vmem:[%s11263_s7 + $0x58] sm:$0xf]  ;;  %1172 = vst [vmem:[#allocation3 + $0x44] sm:$0xf] %v1171_v21 }
  0x7c   :  { %1174 = vst [vmem:[#allocation3 + $0x48] sm:$0xf] %v1173_v22  ;;  %1176 = vst [vmem:[#allocation3 + $0x4c] sm:$0xf] %v1175_v23  ;;  %v1177_v24 = vld [vmem:[%s11263_s7 + $0x28] sm:$0xf] }
  0x7d   :  { %v1179_v25 = vld [vmem:[%s11263_s7 + $0x5c] sm:$0xf]  ;;  %v1181_v26 = vld [vmem:[%s11263_s7 + $0x2c] sm:$0xf]  ;;  %1178 = vst [vmem:[#allocation3 + $0x50] sm:$0xf] %v1177_v24 }
  0x7e   :  { %1180 = vst [vmem:[#allocation3 + $0x54] sm:$0xf] %v1179_v25  ;;  %1182 = vst [vmem:[#allocation3 + $0x58] sm:$0xf] %v1181_v26  ;;  %v1183_v27 = vld [vmem:[%s11263_s7 + $0x60] sm:$0xf] }
  0x7f   :  { %v1185_v28 = vld [vmem:[%s11263_s7 + $0x30] sm:$0xf]  ;;  %v1187_v29 = vld [vmem:[%s11263_s7 + $0x64] sm:$0xff]   ;;  %1184 = vst [vmem:[#allocation3 + $0x5c] sm:$0xf] %v1183_v27  ;;  %v1291_v15 = vld [vmem:[%s11263_s7 + $0x134] sm:$0xff]  }
  0x80   :  { %1186 = vst [vmem:[#allocation3 + $0x60] sm:$0xf] %v1185_v28  ;;  %1188 = vst [vmem:[#allocation3 + $0x64] sm:$0xff] %v1187_v29   ;;  %v1191_v30 = vld [vmem:[%s11263_s7 + $0x9c] sm:$0xf]  ;;  %v1239_v54 = vld [vmem:[%s11263_s7 + $0xcc] sm:$0xff]  }
  0x81   :  { %v1193_v31 = vld [vmem:[%s11263_s7 + $0x6c] sm:$0xf]  ;;  %v1195_v32 = vld [vmem:[%s11263_s7 + $0xa0] sm:$0xf]  ;;  %1192 = vst [vmem:[#allocation3 + $0x6c] sm:$0xf] %v1191_v30 }
  0x82   :  { %1194 = vst [vmem:[#allocation3 + $0x70] sm:$0xf] %v1193_v31  ;;  %1196 = vst [vmem:[#allocation3 + $0x74] sm:$0xf] %v1195_v32  ;;  %v1197_v33 = vld [vmem:[%s11263_s7 + $0x70] sm:$0xf] }
  0x83   :  { %v1199_v34 = vld [vmem:[%s11263_s7 + $0xa4] sm:$0xf]  ;;  %v1201_v35 = vld [vmem:[%s11263_s7 + $0x74] sm:$0xf]  ;;  %1198 = vst [vmem:[#allocation3 + $0x78] sm:$0xf] %v1197_v33 }
  0x84   :  { %1200 = vst [vmem:[#allocation3 + $0x7c] sm:$0xf] %v1199_v34  ;;  %1202 = vst [vmem:[#allocation3 + $0x80] sm:$0xf] %v1201_v35  ;;  %v1203_v36 = vld [vmem:[%s11263_s7 + $0xa8] sm:$0xf] }
  0x85   :  { %v1205_v37 = vld [vmem:[%s11263_s7 + $0x78] sm:$0xf]  ;;  %v1207_v38 = vld [vmem:[%s11263_s7 + $0xac] sm:$0xf]  ;;  %1204 = vst [vmem:[#allocation3 + $0x84] sm:$0xf] %v1203_v36 }
  0x86   :  { %1206 = vst [vmem:[#allocation3 + $0x88] sm:$0xf] %v1205_v37  ;;  %1208 = vst [vmem:[#allocation3 + $0x8c] sm:$0xf] %v1207_v38  ;;  %v1209_v39 = vld [vmem:[%s11263_s7 + $0x7c] sm:$0xf] }
  0x87   :  { %v1211_v40 = vld [vmem:[%s11263_s7 + $0xb0] sm:$0xf]  ;;  %v1213_v41 = vld [vmem:[%s11263_s7 + $0x80] sm:$0xf]  ;;  %1210 = vst [vmem:[#allocation3 + $0x90] sm:$0xf] %v1209_v39 }
  0x88   :  { %1212 = vst [vmem:[#allocation3 + $0x94] sm:$0xf] %v1211_v40  ;;  %1214 = vst [vmem:[#allocation3 + $0x98] sm:$0xf] %v1213_v41  ;;  %v1215_v42 = vld [vmem:[%s11263_s7 + $0xb4] sm:$0xf] }
  0x89   :  { %v1217_v43 = vld [vmem:[%s11263_s7 + $0x84] sm:$0xf]  ;;  %v1219_v44 = vld [vmem:[%s11263_s7 + $0xb8] sm:$0xf]  ;;  %1216 = vst [vmem:[#allocation3 + $0x9c] sm:$0xf] %v1215_v42 }
  0x8a   :  { %1218 = vst [vmem:[#allocation3 + $0xa0] sm:$0xf] %v1217_v43  ;;  %1220 = vst [vmem:[#allocation3 + $0xa4] sm:$0xf] %v1219_v44  ;;  %v1221_v45 = vld [vmem:[%s11263_s7 + $0x88] sm:$0xf] }
  0x8b   :  { %v1223_v46 = vld [vmem:[%s11263_s7 + $0xbc] sm:$0xf]  ;;  %v1225_v47 = vld [vmem:[%s11263_s7 + $0x8c] sm:$0xf]  ;;  %1222 = vst [vmem:[#allocation3 + $0xa8] sm:$0xf] %v1221_v45 }
  0x8c   :  { %1224 = vst [vmem:[#allocation3 + $0xac] sm:$0xf] %v1223_v46  ;;  %1226 = vst [vmem:[#allocation3 + $0xb0] sm:$0xf] %v1225_v47  ;;  %v1227_v48 = vld [vmem:[%s11263_s7 + $0xc0] sm:$0xf] }
  0x8d   :  { %v1229_v49 = vld [vmem:[%s11263_s7 + $0x90] sm:$0xf]  ;;  %v1231_v50 = vld [vmem:[%s11263_s7 + $0xc4] sm:$0xf]  ;;  %1228 = vst [vmem:[#allocation3 + $0xb4] sm:$0xf] %v1227_v48 }
  0x8e   :  { %1230 = vst [vmem:[#allocation3 + $0xb8] sm:$0xf] %v1229_v49  ;;  %1232 = vst [vmem:[#allocation3 + $0xbc] sm:$0xf] %v1231_v50  ;;  %v1233_v51 = vld [vmem:[%s11263_s7 + $0x94] sm:$0xf] }
  0x8f   :  { %v1235_v52 = vld [vmem:[%s11263_s7 + $0xc8] sm:$0xf]  ;;  %v1237_v53 = vld [vmem:[%s11263_s7 + $0x98] sm:$0xf]  ;;  %1234 = vst [vmem:[#allocation3 + $0xc0] sm:$0xf] %v1233_v51 }
  0x90   :  { %1236 = vst [vmem:[#allocation3 + $0xc4] sm:$0xf] %v1235_v52  ;;  %1238 = vst [vmem:[#allocation3 + $0xc8] sm:$0xf] %v1237_v53  ;;  %v1243_v55 = vld [vmem:[%s11263_s7 + $0x104] sm:$0xf] }
  0x91   :  { %v1245_v56 = vld [vmem:[%s11263_s7 + $0xd4] sm:$0xf]  ;;  %1240 = vst [vmem:[#allocation3 + $0xcc] sm:$0xff] %v1239_v54   ;;  %1244 = vst [vmem:[#allocation3 + $0xd4] sm:$0xf] %v1243_v55  ;;  %v1343_v40 = vld [vmem:[%s11263_s7 + $0x19c] sm:$0xff]  }
  0x92   :  { %1246 = vst [vmem:[#allocation3 + $0xd8] sm:$0xf] %v1245_v56  ;;  %v1247_v57 = vld [vmem:[%s11263_s7 + $0x108] sm:$0xf]  ;;  %v1249_v58 = vld [vmem:[%s11263_s7 + $0xd8] sm:$0xf] }
  0x93   :  { %v1251_v59 = vld [vmem:[%s11263_s7 + $0x10c] sm:$0xf]  ;;  %1248 = vst [vmem:[#allocation3 + $0xdc] sm:$0xf] %v1247_v57  ;;  %1250 = vst [vmem:[#allocation3 + $0xe0] sm:$0xf] %v1249_v58 }
  0x94   :  { %1252 = vst [vmem:[#allocation3 + $0xe4] sm:$0xf] %v1251_v59  ;;  %v1253_v60 = vld [vmem:[%s11263_s7 + $0xdc] sm:$0xf]  ;;  %v1255_v61 = vld [vmem:[%s11263_s7 + $0x110] sm:$0xf] }
  0x95   :  { %v1257_v62 = vld [vmem:[%s11263_s7 + $0xe0] sm:$0xf]  ;;  %1254 = vst [vmem:[#allocation3 + $0xe8] sm:$0xf] %v1253_v60  ;;  %1256 = vst [vmem:[#allocation3 + $0xec] sm:$0xf] %v1255_v61 }
  0x96   :  { %1258 = vst [vmem:[#allocation3 + $0xf0] sm:$0xf] %v1257_v62  ;;  %v1259_v63 = vld [vmem:[%s11263_s7 + $0x114] sm:$0xf]  ;;  %v1261_v0 = vld [vmem:[%s11263_s7 + $0xe4] sm:$0xf] }
  0x97   :  { %v1263_v1 = vld [vmem:[%s11263_s7 + $0x118] sm:$0xf]  ;;  %1260 = vst [vmem:[#allocation3 + $0xf4] sm:$0xf] %v1259_v63  ;;  %1262 = vst [vmem:[#allocation3 + $0xf8] sm:$0xf] %v1261_v0 }
  0x98   :  { %1264 = vst [vmem:[#allocation3 + $0xfc] sm:$0xf] %v1263_v1  ;;  %v1265_v2 = vld [vmem:[%s11263_s7 + $0xe8] sm:$0xf]  ;;  %v1267_v3 = vld [vmem:[%s11263_s7 + $0x11c] sm:$0xf] }
  0x99   :  { %v1269_v4 = vld [vmem:[%s11263_s7 + $0xec] sm:$0xf]  ;;  %1266 = vst [vmem:[#allocation3 + $0x100] sm:$0xf] %v1265_v2  ;;  %1268 = vst [vmem:[#allocation3 + $0x104] sm:$0xf] %v1267_v3 }
  0x9a   :  { %1270 = vst [vmem:[#allocation3 + $0x108] sm:$0xf] %v1269_v4  ;;  %v1271_v5 = vld [vmem:[%s11263_s7 + $0x120] sm:$0xf]  ;;  %v1273_v6 = vld [vmem:[%s11263_s7 + $0xf0] sm:$0xf] }
  0x9b   :  { %v1275_v7 = vld [vmem:[%s11263_s7 + $0x124] sm:$0xf]  ;;  %1272 = vst [vmem:[#allocation3 + $0x10c] sm:$0xf] %v1271_v5  ;;  %1274 = vst [vmem:[#allocation3 + $0x110] sm:$0xf] %v1273_v6 }
  0x9c   :  { %1276 = vst [vmem:[#allocation3 + $0x114] sm:$0xf] %v1275_v7  ;;  %v1277_v8 = vld [vmem:[%s11263_s7 + $0xf4] sm:$0xf]  ;;  %v1279_v9 = vld [vmem:[%s11263_s7 + $0x128] sm:$0xf] }
  0x9d   :  { %v1281_v10 = vld [vmem:[%s11263_s7 + $0xf8] sm:$0xf]  ;;  %1278 = vst [vmem:[#allocation3 + $0x118] sm:$0xf] %v1277_v8  ;;  %1280 = vst [vmem:[#allocation3 + $0x11c] sm:$0xf] %v1279_v9 }
  0x9e   :  { %1282 = vst [vmem:[#allocation3 + $0x120] sm:$0xf] %v1281_v10  ;;  %v1283_v11 = vld [vmem:[%s11263_s7 + $0x12c] sm:$0xf]  ;;  %v1285_v12 = vld [vmem:[%s11263_s7 + $0xfc] sm:$0xf] }
  0x9f   :  { %v1287_v13 = vld [vmem:[%s11263_s7 + $0x130] sm:$0xf]  ;;  %1284 = vst [vmem:[#allocation3 + $0x124] sm:$0xf] %v1283_v11  ;;  %1286 = vst [vmem:[#allocation3 + $0x128] sm:$0xf] %v1285_v12 }
  0xa0   :  { %1288 = vst [vmem:[#allocation3 + $0x12c] sm:$0xf] %v1287_v13  ;;  %v1289_v14 = vld [vmem:[%s11263_s7 + $0x100] sm:$0xf]  ;;  %v1295_v16 = vld [vmem:[%s11263_s7 + $0x16c] sm:$0xf] }
  0xa1   :  { %1290 = vst [vmem:[#allocation3 + $0x130] sm:$0xf] %v1289_v14  ;;  %1292 = vst [vmem:[#allocation3 + $0x134] sm:$0xff] %v1291_v15   ;;  %v1297_v17 = vld [vmem:[%s11263_s7 + $0x13c] sm:$0xf]  ;;  %v1395_v1 = vld [vmem:[%s11263_s7 + $0x204] sm:$0xff]  }
  0xa2   :  { %1296 = vst [vmem:[#allocation3 + $0x13c] sm:$0xf] %v1295_v16  ;;  %v1299_v18 = vld [vmem:[%s11263_s7 + $0x170] sm:$0xf]  ;;  %v1301_v19 = vld [vmem:[%s11263_s7 + $0x140] sm:$0xf] }
  0xa3   :  { %1298 = vst [vmem:[#allocation3 + $0x140] sm:$0xf] %v1297_v17  ;;  %1300 = vst [vmem:[#allocation3 + $0x144] sm:$0xf] %v1299_v18  ;;  %v1303_v20 = vld [vmem:[%s11263_s7 + $0x174] sm:$0xf] }
  0xa4   :  { %1302 = vst [vmem:[#allocation3 + $0x148] sm:$0xf] %v1301_v19  ;;  %v1305_v21 = vld [vmem:[%s11263_s7 + $0x144] sm:$0xf]  ;;  %v1307_v22 = vld [vmem:[%s11263_s7 + $0x178] sm:$0xf] }
  0xa5   :  { %1304 = vst [vmem:[#allocation3 + $0x14c] sm:$0xf] %v1303_v20  ;;  %1306 = vst [vmem:[#allocation3 + $0x150] sm:$0xf] %v1305_v21  ;;  %v1309_v23 = vld [vmem:[%s11263_s7 + $0x148] sm:$0xf] }
  0xa6   :  { %1308 = vst [vmem:[#allocation3 + $0x154] sm:$0xf] %v1307_v22  ;;  %v1311_v24 = vld [vmem:[%s11263_s7 + $0x17c] sm:$0xf]  ;;  %v1313_v25 = vld [vmem:[%s11263_s7 + $0x14c] sm:$0xf] }
  0xa7   :  { %1310 = vst [vmem:[#allocation3 + $0x158] sm:$0xf] %v1309_v23  ;;  %1312 = vst [vmem:[#allocation3 + $0x15c] sm:$0xf] %v1311_v24  ;;  %v1315_v26 = vld [vmem:[%s11263_s7 + $0x180] sm:$0xf] }
  0xa8   :  { %1314 = vst [vmem:[#allocation3 + $0x160] sm:$0xf] %v1313_v25  ;;  %v1317_v27 = vld [vmem:[%s11263_s7 + $0x150] sm:$0xf]  ;;  %v1319_v28 = vld [vmem:[%s11263_s7 + $0x184] sm:$0xf] }
  0xa9   :  { %1316 = vst [vmem:[#allocation3 + $0x164] sm:$0xf] %v1315_v26  ;;  %1318 = vst [vmem:[#allocation3 + $0x168] sm:$0xf] %v1317_v27  ;;  %v1321_v29 = vld [vmem:[%s11263_s7 + $0x154] sm:$0xf] }
  0xaa   :  { %1320 = vst [vmem:[#allocation3 + $0x16c] sm:$0xf] %v1319_v28  ;;  %v1323_v30 = vld [vmem:[%s11263_s7 + $0x188] sm:$0xf]  ;;  %v1325_v31 = vld [vmem:[%s11263_s7 + $0x158] sm:$0xf] }
  0xab   :  { %1322 = vst [vmem:[#allocation3 + $0x170] sm:$0xf] %v1321_v29  ;;  %1324 = vst [vmem:[#allocation3 + $0x174] sm:$0xf] %v1323_v30  ;;  %v1327_v32 = vld [vmem:[%s11263_s7 + $0x18c] sm:$0xf] }
  0xac   :  { %1326 = vst [vmem:[#allocation3 + $0x178] sm:$0xf] %v1325_v31  ;;  %v1329_v33 = vld [vmem:[%s11263_s7 + $0x15c] sm:$0xf]  ;;  %v1331_v34 = vld [vmem:[%s11263_s7 + $0x190] sm:$0xf] }
  0xad   :  { %1328 = vst [vmem:[#allocation3 + $0x17c] sm:$0xf] %v1327_v32  ;;  %1330 = vst [vmem:[#allocation3 + $0x180] sm:$0xf] %v1329_v33  ;;  %v1333_v35 = vld [vmem:[%s11263_s7 + $0x160] sm:$0xf] }
  0xae   :  { %1332 = vst [vmem:[#allocation3 + $0x184] sm:$0xf] %v1331_v34  ;;  %v1335_v36 = vld [vmem:[%s11263_s7 + $0x194] sm:$0xf]  ;;  %v1337_v37 = vld [vmem:[%s11263_s7 + $0x164] sm:$0xf] }
  0xaf   :  { %1334 = vst [vmem:[#allocation3 + $0x188] sm:$0xf] %v1333_v35  ;;  %1336 = vst [vmem:[#allocation3 + $0x18c] sm:$0xf] %v1335_v36  ;;  %v1339_v38 = vld [vmem:[%s11263_s7 + $0x198] sm:$0xf] }
  0xb0   :  { %1338 = vst [vmem:[#allocation3 + $0x190] sm:$0xf] %v1337_v37  ;;  %v1341_v39 = vld [vmem:[%s11263_s7 + $0x168] sm:$0xf]  ;;  %1340 = vst [vmem:[#allocation3 + $0x194] sm:$0xf] %v1339_v38 }
  0xb1   :  { %1342 = vst [vmem:[#allocation3 + $0x198] sm:$0xf] %v1341_v39  ;;  %1344 = vst [vmem:[#allocation3 + $0x19c] sm:$0xff] %v1343_v40   ;;  %v1347_v41 = vld [vmem:[%s11263_s7 + $0x1d4] sm:$0xf]  ;;  %v1447_v26 = vld [vmem:[%s11263_s7 + $0x26c] sm:$0xff]  }
  0xb2   :  { %v1349_v42 = vld [vmem:[%s11263_s7 + $0x1a4] sm:$0xf]  ;;  %v1351_v43 = vld [vmem:[%s11263_s7 + $0x1d8] sm:$0xf]  ;;  %1348 = vst [vmem:[#allocation3 + $0x1a4] sm:$0xf] %v1347_v41 }
  0xb3   :  { %1350 = vst [vmem:[#allocation3 + $0x1a8] sm:$0xf] %v1349_v42  ;;  %1352 = vst [vmem:[#allocation3 + $0x1ac] sm:$0xf] %v1351_v43  ;;  %v1353_v44 = vld [vmem:[%s11263_s7 + $0x1a8] sm:$0xf] }
  0xb4   :  { %v1355_v45 = vld [vmem:[%s11263_s7 + $0x1dc] sm:$0xf]  ;;  %v1357_v46 = vld [vmem:[%s11263_s7 + $0x1ac] sm:$0xf]  ;;  %1354 = vst [vmem:[#allocation3 + $0x1b0] sm:$0xf] %v1353_v44 }
  0xb5   :  { %1356 = vst [vmem:[#allocation3 + $0x1b4] sm:$0xf] %v1355_v45  ;;  %1358 = vst [vmem:[#allocation3 + $0x1b8] sm:$0xf] %v1357_v46  ;;  %v1359_v47 = vld [vmem:[%s11263_s7 + $0x1e0] sm:$0xf] }
  0xb6   :  { %v1361_v48 = vld [vmem:[%s11263_s7 + $0x1b0] sm:$0xf]  ;;  %v1363_v49 = vld [vmem:[%s11263_s7 + $0x1e4] sm:$0xf]  ;;  %1360 = vst [vmem:[#allocation3 + $0x1bc] sm:$0xf] %v1359_v47 }
  0xb7   :  { %1362 = vst [vmem:[#allocation3 + $0x1c0] sm:$0xf] %v1361_v48  ;;  %1364 = vst [vmem:[#allocation3 + $0x1c4] sm:$0xf] %v1363_v49  ;;  %v1365_v50 = vld [vmem:[%s11263_s7 + $0x1b4] sm:$0xf] }
  0xb8   :  { %v1367_v51 = vld [vmem:[%s11263_s7 + $0x1e8] sm:$0xf]  ;;  %v1369_v52 = vld [vmem:[%s11263_s7 + $0x1b8] sm:$0xf]  ;;  %1366 = vst [vmem:[#allocation3 + $0x1c8] sm:$0xf] %v1365_v50 }
  0xb9   :  { %1368 = vst [vmem:[#allocation3 + $0x1cc] sm:$0xf] %v1367_v51  ;;  %1370 = vst [vmem:[#allocation3 + $0x1d0] sm:$0xf] %v1369_v52  ;;  %v1371_v53 = vld [vmem:[%s11263_s7 + $0x1ec] sm:$0xf] }
  0xba   :  { %v1373_v54 = vld [vmem:[%s11263_s7 + $0x1bc] sm:$0xf]  ;;  %v1375_v55 = vld [vmem:[%s11263_s7 + $0x1f0] sm:$0xf]  ;;  %1372 = vst [vmem:[#allocation3 + $0x1d4] sm:$0xf] %v1371_v53 }
  0xbb   :  { %1374 = vst [vmem:[#allocation3 + $0x1d8] sm:$0xf] %v1373_v54  ;;  %1376 = vst [vmem:[#allocation3 + $0x1dc] sm:$0xf] %v1375_v55  ;;  %v1377_v56 = vld [vmem:[%s11263_s7 + $0x1c0] sm:$0xf] }
  0xbc   :  { %v1379_v57 = vld [vmem:[%s11263_s7 + $0x1f4] sm:$0xf]  ;;  %v1381_v58 = vld [vmem:[%s11263_s7 + $0x1c4] sm:$0xf]  ;;  %1378 = vst [vmem:[#allocation3 + $0x1e0] sm:$0xf] %v1377_v56 }
  0xbd   :  { %1380 = vst [vmem:[#allocation3 + $0x1e4] sm:$0xf] %v1379_v57  ;;  %1382 = vst [vmem:[#allocation3 + $0x1e8] sm:$0xf] %v1381_v58  ;;  %v1383_v59 = vld [vmem:[%s11263_s7 + $0x1f8] sm:$0xf] }
  0xbe   :  { %v1385_v60 = vld [vmem:[%s11263_s7 + $0x1c8] sm:$0xf]  ;;  %v1387_v61 = vld [vmem:[%s11263_s7 + $0x1fc] sm:$0xf]  ;;  %1384 = vst [vmem:[#allocation3 + $0x1ec] sm:$0xf] %v1383_v59 }
  0xbf   :  { %1386 = vst [vmem:[#allocation3 + $0x1f0] sm:$0xf] %v1385_v60  ;;  %1388 = vst [vmem:[#allocation3 + $0x1f4] sm:$0xf] %v1387_v61  ;;  %v1389_v62 = vld [vmem:[%s11263_s7 + $0x1cc] sm:$0xf] }
  0xc0   :  { %v1391_v63 = vld [vmem:[%s11263_s7 + $0x200] sm:$0xf]  ;;  %v1393_v0 = vld [vmem:[%s11263_s7 + $0x1d0] sm:$0xf]  ;;  %1390 = vst [vmem:[#allocation3 + $0x1f8] sm:$0xf] %v1389_v62 }
  0xc1   :  { %1392 = vst [vmem:[#allocation3 + $0x1fc] sm:$0xf] %v1391_v63  ;;  %1394 = vst [vmem:[#allocation3 + $0x200] sm:$0xf] %v1393_v0  ;;  %v1399_v2 = vld [vmem:[%s11263_s7 + $0x23c] sm:$0xf] }
  0xc2   :  { %v1401_v3 = vld [vmem:[%s11263_s7 + $0x20c] sm:$0xf]  ;;  %1396 = vst [vmem:[#allocation3 + $0x204] sm:$0xff] %v1395_v1   ;;  %1400 = vst [vmem:[#allocation3 + $0x20c] sm:$0xf] %v1399_v2  ;;  %v1499_v51 = vld [vmem:[%s11263_s7 + $0x2d4] sm:$0xff]  }
  0xc3   :  { %1402 = vst [vmem:[#allocation3 + $0x210] sm:$0xf] %v1401_v3  ;;  %v1403_v4 = vld [vmem:[%s11263_s7 + $0x240] sm:$0xf]  ;;  %v1405_v5 = vld [vmem:[%s11263_s7 + $0x210] sm:$0xf] }
  0xc4   :  { %v1407_v6 = vld [vmem:[%s11263_s7 + $0x244] sm:$0xf]  ;;  %1404 = vst [vmem:[#allocation3 + $0x214] sm:$0xf] %v1403_v4  ;;  %1406 = vst [vmem:[#allocation3 + $0x218] sm:$0xf] %v1405_v5 }
  0xc5   :  { %1408 = vst [vmem:[#allocation3 + $0x21c] sm:$0xf] %v1407_v6  ;;  %v1409_v7 = vld [vmem:[%s11263_s7 + $0x214] sm:$0xf]  ;;  %v1411_v8 = vld [vmem:[%s11263_s7 + $0x248] sm:$0xf] }
  0xc6   :  { %v1413_v9 = vld [vmem:[%s11263_s7 + $0x218] sm:$0xf]  ;;  %1410 = vst [vmem:[#allocation3 + $0x220] sm:$0xf] %v1409_v7  ;;  %1412 = vst [vmem:[#allocation3 + $0x224] sm:$0xf] %v1411_v8 }
  0xc7   :  { %1414 = vst [vmem:[#allocation3 + $0x228] sm:$0xf] %v1413_v9  ;;  %v1415_v10 = vld [vmem:[%s11263_s7 + $0x24c] sm:$0xf]  ;;  %v1417_v11 = vld [vmem:[%s11263_s7 + $0x21c] sm:$0xf] }
  0xc8   :  { %v1419_v12 = vld [vmem:[%s11263_s7 + $0x250] sm:$0xf]  ;;  %1416 = vst [vmem:[#allocation3 + $0x22c] sm:$0xf] %v1415_v10  ;;  %1418 = vst [vmem:[#allocation3 + $0x230] sm:$0xf] %v1417_v11 }
  0xc9   :  { %1420 = vst [vmem:[#allocation3 + $0x234] sm:$0xf] %v1419_v12  ;;  %v1421_v13 = vld [vmem:[%s11263_s7 + $0x220] sm:$0xf]  ;;  %v1423_v14 = vld [vmem:[%s11263_s7 + $0x254] sm:$0xf] }
  0xca   :  { %v1425_v15 = vld [vmem:[%s11263_s7 + $0x224] sm:$0xf]  ;;  %1422 = vst [vmem:[#allocation3 + $0x238] sm:$0xf] %v1421_v13  ;;  %1424 = vst [vmem:[#allocation3 + $0x23c] sm:$0xf] %v1423_v14 }
  0xcb   :  { %1426 = vst [vmem:[#allocation3 + $0x240] sm:$0xf] %v1425_v15  ;;  %v1427_v16 = vld [vmem:[%s11263_s7 + $0x258] sm:$0xf]  ;;  %v1429_v17 = vld [vmem:[%s11263_s7 + $0x228] sm:$0xf] }
  0xcc   :  { %v1431_v18 = vld [vmem:[%s11263_s7 + $0x25c] sm:$0xf]  ;;  %1428 = vst [vmem:[#allocation3 + $0x244] sm:$0xf] %v1427_v16  ;;  %1430 = vst [vmem:[#allocation3 + $0x248] sm:$0xf] %v1429_v17 }
  0xcd   :  { %1432 = vst [vmem:[#allocation3 + $0x24c] sm:$0xf] %v1431_v18  ;;  %v1433_v19 = vld [vmem:[%s11263_s7 + $0x22c] sm:$0xf]  ;;  %v1435_v20 = vld [vmem:[%s11263_s7 + $0x260] sm:$0xf] }
  0xce   :  { %v1437_v21 = vld [vmem:[%s11263_s7 + $0x230] sm:$0xf]  ;;  %1434 = vst [vmem:[#allocation3 + $0x250] sm:$0xf] %v1433_v19  ;;  %1436 = vst [vmem:[#allocation3 + $0x254] sm:$0xf] %v1435_v20 }
  0xcf   :  { %1438 = vst [vmem:[#allocation3 + $0x258] sm:$0xf] %v1437_v21  ;;  %v1439_v22 = vld [vmem:[%s11263_s7 + $0x264] sm:$0xf]  ;;  %v1441_v23 = vld [vmem:[%s11263_s7 + $0x234] sm:$0xf] }
  0xd0   :  { %v1443_v24 = vld [vmem:[%s11263_s7 + $0x268] sm:$0xf]  ;;  %1440 = vst [vmem:[#allocation3 + $0x25c] sm:$0xf] %v1439_v22  ;;  %1442 = vst [vmem:[#allocation3 + $0x260] sm:$0xf] %v1441_v23 }
  0xd1   :  { %1444 = vst [vmem:[#allocation3 + $0x264] sm:$0xf] %v1443_v24  ;;  %v1445_v25 = vld [vmem:[%s11263_s7 + $0x238] sm:$0xf]  ;;  %v1451_v27 = vld [vmem:[%s11263_s7 + $0x2a4] sm:$0xf] }
  0xd2   :  { %1446 = vst [vmem:[#allocation3 + $0x268] sm:$0xf] %v1445_v25  ;;  %1448 = vst [vmem:[#allocation3 + $0x26c] sm:$0xff] %v1447_v26   ;;  %v1453_v28 = vld [vmem:[%s11263_s7 + $0x274] sm:$0xf]  ;;  %v1551_v12 = vld [vmem:[%s11263_s7 + $0x33c] sm:$0xff]  }
  0xd3   :  { %1452 = vst [vmem:[#allocation3 + $0x274] sm:$0xf] %v1451_v27  ;;  %v1455_v29 = vld [vmem:[%s11263_s7 + $0x2a8] sm:$0xf]  ;;  %v1457_v30 = vld [vmem:[%s11263_s7 + $0x278] sm:$0xf] }
  0xd4   :  { %1454 = vst [vmem:[#allocation3 + $0x278] sm:$0xf] %v1453_v28  ;;  %1456 = vst [vmem:[#allocation3 + $0x27c] sm:$0xf] %v1455_v29  ;;  %v1459_v31 = vld [vmem:[%s11263_s7 + $0x2ac] sm:$0xf] }
  0xd5   :  { %1458 = vst [vmem:[#allocation3 + $0x280] sm:$0xf] %v1457_v30  ;;  %v1461_v32 = vld [vmem:[%s11263_s7 + $0x27c] sm:$0xf]  ;;  %v1463_v33 = vld [vmem:[%s11263_s7 + $0x2b0] sm:$0xf] }
  0xd6   :  { %1460 = vst [vmem:[#allocation3 + $0x284] sm:$0xf] %v1459_v31  ;;  %1462 = vst [vmem:[#allocation3 + $0x288] sm:$0xf] %v1461_v32  ;;  %v1465_v34 = vld [vmem:[%s11263_s7 + $0x280] sm:$0xf] }
  0xd7   :  { %1464 = vst [vmem:[#allocation3 + $0x28c] sm:$0xf] %v1463_v33  ;;  %v1467_v35 = vld [vmem:[%s11263_s7 + $0x2b4] sm:$0xf]  ;;  %v1469_v36 = vld [vmem:[%s11263_s7 + $0x284] sm:$0xf] }
  0xd8   :  { %1466 = vst [vmem:[#allocation3 + $0x290] sm:$0xf] %v1465_v34  ;;  %1468 = vst [vmem:[#allocation3 + $0x294] sm:$0xf] %v1467_v35  ;;  %v1471_v37 = vld [vmem:[%s11263_s7 + $0x2b8] sm:$0xf] }
  0xd9   :  { %1470 = vst [vmem:[#allocation3 + $0x298] sm:$0xf] %v1469_v36  ;;  %v1473_v38 = vld [vmem:[%s11263_s7 + $0x288] sm:$0xf]  ;;  %v1475_v39 = vld [vmem:[%s11263_s7 + $0x2bc] sm:$0xf] }
  0xda   :  { %1472 = vst [vmem:[#allocation3 + $0x29c] sm:$0xf] %v1471_v37  ;;  %1474 = vst [vmem:[#allocation3 + $0x2a0] sm:$0xf] %v1473_v38  ;;  %v1477_v40 = vld [vmem:[%s11263_s7 + $0x28c] sm:$0xf] }
  0xdb   :  { %1476 = vst [vmem:[#allocation3 + $0x2a4] sm:$0xf] %v1475_v39  ;;  %v1479_v41 = vld [vmem:[%s11263_s7 + $0x2c0] sm:$0xf]  ;;  %v1481_v42 = vld [vmem:[%s11263_s7 + $0x290] sm:$0xf] }
  0xdc   :  { %1478 = vst [vmem:[#allocation3 + $0x2a8] sm:$0xf] %v1477_v40  ;;  %1480 = vst [vmem:[#allocation3 + $0x2ac] sm:$0xf] %v1479_v41  ;;  %v1483_v43 = vld [vmem:[%s11263_s7 + $0x2c4] sm:$0xf] }
  0xdd   :  { %1482 = vst [vmem:[#allocation3 + $0x2b0] sm:$0xf] %v1481_v42  ;;  %v1485_v44 = vld [vmem:[%s11263_s7 + $0x294] sm:$0xf]  ;;  %v1487_v45 = vld [vmem:[%s11263_s7 + $0x2c8] sm:$0xf] }
  0xde   :  { %1484 = vst [vmem:[#allocation3 + $0x2b4] sm:$0xf] %v1483_v43  ;;  %1486 = vst [vmem:[#allocation3 + $0x2b8] sm:$0xf] %v1485_v44  ;;  %v1489_v46 = vld [vmem:[%s11263_s7 + $0x298] sm:$0xf] }
  0xdf   :  { %1488 = vst [vmem:[#allocation3 + $0x2bc] sm:$0xf] %v1487_v45  ;;  %v1491_v47 = vld [vmem:[%s11263_s7 + $0x2cc] sm:$0xf]  ;;  %v1493_v48 = vld [vmem:[%s11263_s7 + $0x29c] sm:$0xf] }
  0xe0   :  { %1490 = vst [vmem:[#allocation3 + $0x2c0] sm:$0xf] %v1489_v46  ;;  %1492 = vst [vmem:[#allocation3 + $0x2c4] sm:$0xf] %v1491_v47  ;;  %v1495_v49 = vld [vmem:[%s11263_s7 + $0x2d0] sm:$0xf] }
  0xe1   :  { %1494 = vst [vmem:[#allocation3 + $0x2c8] sm:$0xf] %v1493_v48  ;;  %v1497_v50 = vld [vmem:[%s11263_s7 + $0x2a0] sm:$0xf]  ;;  %1496 = vst [vmem:[#allocation3 + $0x2cc] sm:$0xf] %v1495_v49 }
  0xe2   :  { %1498 = vst [vmem:[#allocation3 + $0x2d0] sm:$0xf] %v1497_v50  ;;  %1500 = vst [vmem:[#allocation3 + $0x2d4] sm:$0xff] %v1499_v51   ;;  %v1503_v52 = vld [vmem:[%s11263_s7 + $0x30c] sm:$0xf]  ;;  %v1603_v37 = vld [vmem:[%s11263_s7 + $0x3a4] sm:$0xff]  }
  0xe3   :  { %v1505_v53 = vld [vmem:[%s11263_s7 + $0x2dc] sm:$0xf]  ;;  %v1507_v54 = vld [vmem:[%s11263_s7 + $0x310] sm:$0xf]  ;;  %1504 = vst [vmem:[#allocation3 + $0x2dc] sm:$0xf] %v1503_v52 }
  0xe4   :  { %1506 = vst [vmem:[#allocation3 + $0x2e0] sm:$0xf] %v1505_v53  ;;  %1508 = vst [vmem:[#allocation3 + $0x2e4] sm:$0xf] %v1507_v54  ;;  %v1509_v55 = vld [vmem:[%s11263_s7 + $0x2e0] sm:$0xf] }
  0xe5   :  { %v1511_v56 = vld [vmem:[%s11263_s7 + $0x314] sm:$0xf]  ;;  %v1513_v57 = vld [vmem:[%s11263_s7 + $0x2e4] sm:$0xf]  ;;  %1510 = vst [vmem:[#allocation3 + $0x2e8] sm:$0xf] %v1509_v55 }
  0xe6   :  { %1512 = vst [vmem:[#allocation3 + $0x2ec] sm:$0xf] %v1511_v56  ;;  %1514 = vst [vmem:[#allocation3 + $0x2f0] sm:$0xf] %v1513_v57  ;;  %v1515_v58 = vld [vmem:[%s11263_s7 + $0x318] sm:$0xf] }
  0xe7   :  { %v1517_v59 = vld [vmem:[%s11263_s7 + $0x2e8] sm:$0xf]  ;;  %v1519_v60 = vld [vmem:[%s11263_s7 + $0x31c] sm:$0xf]  ;;  %1516 = vst [vmem:[#allocation3 + $0x2f4] sm:$0xf] %v1515_v58 }
  0xe8   :  { %1518 = vst [vmem:[#allocation3 + $0x2f8] sm:$0xf] %v1517_v59  ;;  %1520 = vst [vmem:[#allocation3 + $0x2fc] sm:$0xf] %v1519_v60  ;;  %v1521_v61 = vld [vmem:[%s11263_s7 + $0x2ec] sm:$0xf] }
  0xe9   :  { %v1523_v62 = vld [vmem:[%s11263_s7 + $0x320] sm:$0xf]  ;;  %v1525_v63 = vld [vmem:[%s11263_s7 + $0x2f0] sm:$0xf]  ;;  %1522 = vst [vmem:[#allocation3 + $0x300] sm:$0xf] %v1521_v61 }
  0xea   :  { %1524 = vst [vmem:[#allocation3 + $0x304] sm:$0xf] %v1523_v62  ;;  %1526 = vst [vmem:[#allocation3 + $0x308] sm:$0xf] %v1525_v63  ;;  %v1527_v0 = vld [vmem:[%s11263_s7 + $0x324] sm:$0xf] }
  0xeb   :  { %v1529_v1 = vld [vmem:[%s11263_s7 + $0x2f4] sm:$0xf]  ;;  %v1531_v2 = vld [vmem:[%s11263_s7 + $0x328] sm:$0xf]  ;;  %1528 = vst [vmem:[#allocation3 + $0x30c] sm:$0xf] %v1527_v0 }
  0xec   :  { %1530 = vst [vmem:[#allocation3 + $0x310] sm:$0xf] %v1529_v1  ;;  %1532 = vst [vmem:[#allocation3 + $0x314] sm:$0xf] %v1531_v2  ;;  %v1533_v3 = vld [vmem:[%s11263_s7 + $0x2f8] sm:$0xf] }
  0xed   :  { %v1535_v4 = vld [vmem:[%s11263_s7 + $0x32c] sm:$0xf]  ;;  %v1537_v5 = vld [vmem:[%s11263_s7 + $0x2fc] sm:$0xf]  ;;  %1534 = vst [vmem:[#allocation3 + $0x318] sm:$0xf] %v1533_v3 }
  0xee   :  { %1536 = vst [vmem:[#allocation3 + $0x31c] sm:$0xf] %v1535_v4  ;;  %1538 = vst [vmem:[#allocation3 + $0x320] sm:$0xf] %v1537_v5  ;;  %v1539_v6 = vld [vmem:[%s11263_s7 + $0x330] sm:$0xf] }
  0xef   :  { %v1541_v7 = vld [vmem:[%s11263_s7 + $0x300] sm:$0xf]  ;;  %v1543_v8 = vld [vmem:[%s11263_s7 + $0x334] sm:$0xf]  ;;  %1540 = vst [vmem:[#allocation3 + $0x324] sm:$0xf] %v1539_v6 }
  0xf0   :  { %1542 = vst [vmem:[#allocation3 + $0x328] sm:$0xf] %v1541_v7  ;;  %1544 = vst [vmem:[#allocation3 + $0x32c] sm:$0xf] %v1543_v8  ;;  %v1545_v9 = vld [vmem:[%s11263_s7 + $0x304] sm:$0xf] }
  0xf1   :  { %v1547_v10 = vld [vmem:[%s11263_s7 + $0x338] sm:$0xf]  ;;  %v1549_v11 = vld [vmem:[%s11263_s7 + $0x308] sm:$0xf]  ;;  %1546 = vst [vmem:[#allocation3 + $0x330] sm:$0xf] %v1545_v9 }
  0xf2   :  { %1548 = vst [vmem:[#allocation3 + $0x334] sm:$0xf] %v1547_v10  ;;  %1550 = vst [vmem:[#allocation3 + $0x338] sm:$0xf] %v1549_v11  ;;  %v1555_v13 = vld [vmem:[%s11263_s7 + $0x374] sm:$0xf] }
  0xf3   :  { %v1557_v14 = vld [vmem:[%s11263_s7 + $0x344] sm:$0xf]  ;;  %1552 = vst [vmem:[#allocation3 + $0x33c] sm:$0xff] %v1551_v12   ;;  %1556 = vst [vmem:[#allocation3 + $0x344] sm:$0xf] %v1555_v13  ;;  %v1655_v62 = vld [vmem:[%s11263_s7 + $0x40c] sm:$0xff]  }
  0xf4   :  { %1558 = vst [vmem:[#allocation3 + $0x348] sm:$0xf] %v1557_v14  ;;  %v1559_v15 = vld [vmem:[%s11263_s7 + $0x378] sm:$0xf]  ;;  %v1561_v16 = vld [vmem:[%s11263_s7 + $0x348] sm:$0xf] }
  0xf5   :  { %v1563_v17 = vld [vmem:[%s11263_s7 + $0x37c] sm:$0xf]  ;;  %1560 = vst [vmem:[#allocation3 + $0x34c] sm:$0xf] %v1559_v15  ;;  %1562 = vst [vmem:[#allocation3 + $0x350] sm:$0xf] %v1561_v16 }
  0xf6   :  { %1564 = vst [vmem:[#allocation3 + $0x354] sm:$0xf] %v1563_v17  ;;  %v1565_v18 = vld [vmem:[%s11263_s7 + $0x34c] sm:$0xf]  ;;  %v1567_v19 = vld [vmem:[%s11263_s7 + $0x380] sm:$0xf] }
  0xf7   :  { %v1569_v20 = vld [vmem:[%s11263_s7 + $0x350] sm:$0xf]  ;;  %1566 = vst [vmem:[#allocation3 + $0x358] sm:$0xf] %v1565_v18  ;;  %1568 = vst [vmem:[#allocation3 + $0x35c] sm:$0xf] %v1567_v19 }
  0xf8   :  { %1570 = vst [vmem:[#allocation3 + $0x360] sm:$0xf] %v1569_v20  ;;  %v1571_v21 = vld [vmem:[%s11263_s7 + $0x384] sm:$0xf]  ;;  %v1573_v22 = vld [vmem:[%s11263_s7 + $0x354] sm:$0xf] }
  0xf9   :  { %v1575_v23 = vld [vmem:[%s11263_s7 + $0x388] sm:$0xf]  ;;  %1572 = vst [vmem:[#allocation3 + $0x364] sm:$0xf] %v1571_v21  ;;  %1574 = vst [vmem:[#allocation3 + $0x368] sm:$0xf] %v1573_v22 }
  0xfa   :  { %1576 = vst [vmem:[#allocation3 + $0x36c] sm:$0xf] %v1575_v23  ;;  %v1577_v24 = vld [vmem:[%s11263_s7 + $0x358] sm:$0xf]  ;;  %v1579_v25 = vld [vmem:[%s11263_s7 + $0x38c] sm:$0xf] }
  0xfb   :  { %v1581_v26 = vld [vmem:[%s11263_s7 + $0x35c] sm:$0xf]  ;;  %1578 = vst [vmem:[#allocation3 + $0x370] sm:$0xf] %v1577_v24  ;;  %1580 = vst [vmem:[#allocation3 + $0x374] sm:$0xf] %v1579_v25 }
  0xfc   :  { %1582 = vst [vmem:[#allocation3 + $0x378] sm:$0xf] %v1581_v26  ;;  %v1583_v27 = vld [vmem:[%s11263_s7 + $0x390] sm:$0xf]  ;;  %v1585_v28 = vld [vmem:[%s11263_s7 + $0x360] sm:$0xf] }
  0xfd   :  { %v1587_v29 = vld [vmem:[%s11263_s7 + $0x394] sm:$0xf]  ;;  %1584 = vst [vmem:[#allocation3 + $0x37c] sm:$0xf] %v1583_v27  ;;  %1586 = vst [vmem:[#allocation3 + $0x380] sm:$0xf] %v1585_v28 }
  0xfe   :  { %1588 = vst [vmem:[#allocation3 + $0x384] sm:$0xf] %v1587_v29  ;;  %v1589_v30 = vld [vmem:[%s11263_s7 + $0x364] sm:$0xf]  ;;  %v1591_v31 = vld [vmem:[%s11263_s7 + $0x398] sm:$0xf] }
  0xff   :  { %v1593_v32 = vld [vmem:[%s11263_s7 + $0x368] sm:$0xf]  ;;  %1590 = vst [vmem:[#allocation3 + $0x388] sm:$0xf] %v1589_v30  ;;  %1592 = vst [vmem:[#allocation3 + $0x38c] sm:$0xf] %v1591_v31 }
 0x100   :  { %1594 = vst [vmem:[#allocation3 + $0x390] sm:$0xf] %v1593_v32  ;;  %v1595_v33 = vld [vmem:[%s11263_s7 + $0x39c] sm:$0xf]  ;;  %v1597_v34 = vld [vmem:[%s11263_s7 + $0x36c] sm:$0xf] }
 0x101   :  { %v1599_v35 = vld [vmem:[%s11263_s7 + $0x3a0] sm:$0xf]  ;;  %1596 = vst [vmem:[#allocation3 + $0x394] sm:$0xf] %v1595_v33  ;;  %1598 = vst [vmem:[#allocation3 + $0x398] sm:$0xf] %v1597_v34 }
 0x102   :  { %1600 = vst [vmem:[#allocation3 + $0x39c] sm:$0xf] %v1599_v35  ;;  %v1601_v36 = vld [vmem:[%s11263_s7 + $0x370] sm:$0xf]  ;;  %v1607_v38 = vld [vmem:[%s11263_s7 + $0x3dc] sm:$0xf] }
 0x103   :  { %1602 = vst [vmem:[#allocation3 + $0x3a0] sm:$0xf] %v1601_v36  ;;  %1604 = vst [vmem:[#allocation3 + $0x3a4] sm:$0xff] %v1603_v37   ;;  %v1609_v39 = vld [vmem:[%s11263_s7 + $0x3ac] sm:$0xf]  ;;  %v1707_v23 = vld [vmem:[%s11263_s7 + $0x474] sm:$0xff]  }
 0x104   :  { %1608 = vst [vmem:[#allocation3 + $0x3ac] sm:$0xf] %v1607_v38  ;;  %v1611_v40 = vld [vmem:[%s11263_s7 + $0x3e0] sm:$0xf]  ;;  %v1613_v41 = vld [vmem:[%s11263_s7 + $0x3b0] sm:$0xf] }
 0x105   :  { %1610 = vst [vmem:[#allocation3 + $0x3b0] sm:$0xf] %v1609_v39  ;;  %1612 = vst [vmem:[#allocation3 + $0x3b4] sm:$0xf] %v1611_v40  ;;  %v1615_v42 = vld [vmem:[%s11263_s7 + $0x3e4] sm:$0xf] }
 0x106   :  { %1614 = vst [vmem:[#allocation3 + $0x3b8] sm:$0xf] %v1613_v41  ;;  %v1617_v43 = vld [vmem:[%s11263_s7 + $0x3b4] sm:$0xf]  ;;  %v1619_v44 = vld [vmem:[%s11263_s7 + $0x3e8] sm:$0xf] }
 0x107   :  { %1616 = vst [vmem:[#allocation3 + $0x3bc] sm:$0xf] %v1615_v42  ;;  %1618 = vst [vmem:[#allocation3 + $0x3c0] sm:$0xf] %v1617_v43  ;;  %v1621_v45 = vld [vmem:[%s11263_s7 + $0x3b8] sm:$0xf] }
 0x108   :  { %1620 = vst [vmem:[#allocation3 + $0x3c4] sm:$0xf] %v1619_v44  ;;  %v1623_v46 = vld [vmem:[%s11263_s7 + $0x3ec] sm:$0xf]  ;;  %v1625_v47 = vld [vmem:[%s11263_s7 + $0x3bc] sm:$0xf] }
 0x109   :  { %1622 = vst [vmem:[#allocation3 + $0x3c8] sm:$0xf] %v1621_v45  ;;  %1624 = vst [vmem:[#allocation3 + $0x3cc] sm:$0xf] %v1623_v46  ;;  %v1627_v48 = vld [vmem:[%s11263_s7 + $0x3f0] sm:$0xf] }
 0x10a   :  { %1626 = vst [vmem:[#allocation3 + $0x3d0] sm:$0xf] %v1625_v47  ;;  %v1629_v49 = vld [vmem:[%s11263_s7 + $0x3c0] sm:$0xf]  ;;  %v1631_v50 = vld [vmem:[%s11263_s7 + $0x3f4] sm:$0xf] }
 0x10b   :  { %1628 = vst [vmem:[#allocation3 + $0x3d4] sm:$0xf] %v1627_v48  ;;  %1630 = vst [vmem:[#allocation3 + $0x3d8] sm:$0xf] %v1629_v49  ;;  %v1633_v51 = vld [vmem:[%s11263_s7 + $0x3c4] sm:$0xf] }
 0x10c   :  { %1632 = vst [vmem:[#allocation3 + $0x3dc] sm:$0xf] %v1631_v50  ;;  %v1635_v52 = vld [vmem:[%s11263_s7 + $0x3f8] sm:$0xf]  ;;  %v1637_v53 = vld [vmem:[%s11263_s7 + $0x3c8] sm:$0xf] }
 0x10d   :  { %1634 = vst [vmem:[#allocation3 + $0x3e0] sm:$0xf] %v1633_v51  ;;  %1636 = vst [vmem:[#allocation3 + $0x3e4] sm:$0xf] %v1635_v52  ;;  %v1639_v54 = vld [vmem:[%s11263_s7 + $0x3fc] sm:$0xf] }
 0x10e   :  { %1638 = vst [vmem:[#allocation3 + $0x3e8] sm:$0xf] %v1637_v53  ;;  %v1641_v55 = vld [vmem:[%s11263_s7 + $0x3cc] sm:$0xf]  ;;  %v1643_v56 = vld [vmem:[%s11263_s7 + $0x400] sm:$0xf] }
 0x10f   :  { %1640 = vst [vmem:[#allocation3 + $0x3ec] sm:$0xf] %v1639_v54  ;;  %1642 = vst [vmem:[#allocation3 + $0x3f0] sm:$0xf] %v1641_v55  ;;  %v1645_v57 = vld [vmem:[%s11263_s7 + $0x3d0] sm:$0xf] }
 0x110   :  { %1644 = vst [vmem:[#allocation3 + $0x3f4] sm:$0xf] %v1643_v56  ;;  %v1647_v58 = vld [vmem:[%s11263_s7 + $0x404] sm:$0xf]  ;;  %v1649_v59 = vld [vmem:[%s11263_s7 + $0x3d4] sm:$0xf] }
 0x111   :  { %1646 = vst [vmem:[#allocation3 + $0x3f8] sm:$0xf] %v1645_v57  ;;  %1648 = vst [vmem:[#allocation3 + $0x3fc] sm:$0xf] %v1647_v58  ;;  %v1651_v60 = vld [vmem:[%s11263_s7 + $0x408] sm:$0xf] }
 0x112   :  { %1650 = vst [vmem:[#allocation3 + $0x400] sm:$0xf] %v1649_v59  ;;  %v1653_v61 = vld [vmem:[%s11263_s7 + $0x3d8] sm:$0xf]  ;;  %1652 = vst [vmem:[#allocation3 + $0x404] sm:$0xf] %v1651_v60 }
 0x113   :  { %1654 = vst [vmem:[#allocation3 + $0x408] sm:$0xf] %v1653_v61  ;;  %1656 = vst [vmem:[#allocation3 + $0x40c] sm:$0xff] %v1655_v62   ;;  %v1659_v63 = vld [vmem:[%s11263_s7 + $0x444] sm:$0xf] }
 0x114   :  { %v1661_v0 = vld [vmem:[%s11263_s7 + $0x414] sm:$0xf]  ;;  %v1663_v1 = vld [vmem:[%s11263_s7 + $0x448] sm:$0xf]  ;;  %1660 = vst [vmem:[#allocation3 + $0x414] sm:$0xf] %v1659_v63 }
 0x115   :  { %1662 = vst [vmem:[#allocation3 + $0x418] sm:$0xf] %v1661_v0  ;;  %1664 = vst [vmem:[#allocation3 + $0x41c] sm:$0xf] %v1663_v1  ;;  %v1665_v2 = vld [vmem:[%s11263_s7 + $0x418] sm:$0xf] }
 0x116   :  { %v1667_v3 = vld [vmem:[%s11263_s7 + $0x44c] sm:$0xf]  ;;  %v1669_v4 = vld [vmem:[%s11263_s7 + $0x41c] sm:$0xf]  ;;  %1666 = vst [vmem:[#allocation3 + $0x420] sm:$0xf] %v1665_v2 }
 0x117   :  { %1668 = vst [vmem:[#allocation3 + $0x424] sm:$0xf] %v1667_v3  ;;  %1670 = vst [vmem:[#allocation3 + $0x428] sm:$0xf] %v1669_v4  ;;  %v1671_v5 = vld [vmem:[%s11263_s7 + $0x450] sm:$0xf] }
 0x118   :  { %v1673_v6 = vld [vmem:[%s11263_s7 + $0x420] sm:$0xf]  ;;  %v1675_v7 = vld [vmem:[%s11263_s7 + $0x454] sm:$0xf]  ;;  %1672 = vst [vmem:[#allocation3 + $0x42c] sm:$0xf] %v1671_v5 }
 0x119   :  { %1674 = vst [vmem:[#allocation3 + $0x430] sm:$0xf] %v1673_v6  ;;  %1676 = vst [vmem:[#allocation3 + $0x434] sm:$0xf] %v1675_v7  ;;  %v1677_v8 = vld [vmem:[%s11263_s7 + $0x424] sm:$0xf] }
 0x11a   :  { %v1679_v9 = vld [vmem:[%s11263_s7 + $0x458] sm:$0xf]  ;;  %v1681_v10 = vld [vmem:[%s11263_s7 + $0x428] sm:$0xf]  ;;  %1678 = vst [vmem:[#allocation3 + $0x438] sm:$0xf] %v1677_v8 }
 0x11b   :  { %1680 = vst [vmem:[#allocation3 + $0x43c] sm:$0xf] %v1679_v9  ;;  %1682 = vst [vmem:[#allocation3 + $0x440] sm:$0xf] %v1681_v10  ;;  %v1683_v11 = vld [vmem:[%s11263_s7 + $0x45c] sm:$0xf] }
 0x11c   :  { %v1685_v12 = vld [vmem:[%s11263_s7 + $0x42c] sm:$0xf]  ;;  %v1687_v13 = vld [vmem:[%s11263_s7 + $0x460] sm:$0xf]  ;;  %1684 = vst [vmem:[#allocation3 + $0x444] sm:$0xf] %v1683_v11 }
 0x11d   :  { %1686 = vst [vmem:[#allocation3 + $0x448] sm:$0xf] %v1685_v12  ;;  %1688 = vst [vmem:[#allocation3 + $0x44c] sm:$0xf] %v1687_v13  ;;  %v1689_v14 = vld [vmem:[%s11263_s7 + $0x430] sm:$0xf] }
 0x11e   :  { %v1691_v15 = vld [vmem:[%s11263_s7 + $0x464] sm:$0xf]  ;;  %v1693_v16 = vld [vmem:[%s11263_s7 + $0x434] sm:$0xf]  ;;  %1690 = vst [vmem:[#allocation3 + $0x450] sm:$0xf] %v1689_v14 }
 0x11f   :  { %1692 = vst [vmem:[#allocation3 + $0x454] sm:$0xf] %v1691_v15  ;;  %1694 = vst [vmem:[#allocation3 + $0x458] sm:$0xf] %v1693_v16  ;;  %v1695_v17 = vld [vmem:[%s11263_s7 + $0x468] sm:$0xf] }
 0x120   :  { %v1697_v18 = vld [vmem:[%s11263_s7 + $0x438] sm:$0xf]  ;;  %v1699_v19 = vld [vmem:[%s11263_s7 + $0x46c] sm:$0xf]  ;;  %1696 = vst [vmem:[#allocation3 + $0x45c] sm:$0xf] %v1695_v17 }
 0x121   :  { %1698 = vst [vmem:[#allocation3 + $0x460] sm:$0xf] %v1697_v18  ;;  %1700 = vst [vmem:[#allocation3 + $0x464] sm:$0xf] %v1699_v19  ;;  %v1701_v20 = vld [vmem:[%s11263_s7 + $0x43c] sm:$0xf] }
 0x122   :  { %v1703_v21 = vld [vmem:[%s11263_s7 + $0x470] sm:$0xf]  ;;  %v1705_v22 = vld [vmem:[%s11263_s7 + $0x440] sm:$0xf]  ;;  %1702 = vst [vmem:[#allocation3 + $0x468] sm:$0xf] %v1701_v20 }
 0x123   :  { %1704 = vst [vmem:[#allocation3 + $0x46c] sm:$0xf] %v1703_v21  ;;  %1706 = vst [vmem:[#allocation3 + $0x470] sm:$0xf] %v1705_v22  ;;  %v1711_v24 = vld [vmem:[%s11263_s7 + $0x4ac] sm:$0xf] }
 0x124   :  { %v1713_v25 = vld [vmem:[%s11263_s7 + $0x47c] sm:$0xf]  ;;  %1708 = vst [vmem:[#allocation3 + $0x474] sm:$0xff] %v1707_v23   ;;  %1712 = vst [vmem:[#allocation3 + $0x47c] sm:$0xf] %v1711_v24 }
 0x125   :  { %1714 = vst [vmem:[#allocation3 + $0x480] sm:$0xf] %v1713_v25  ;;  %v1715_v26 = vld [vmem:[%s11263_s7 + $0x4b0] sm:$0xf]  ;;  %v1717_v27 = vld [vmem:[%s11263_s7 + $0x480] sm:$0xf] }
 0x126   :  { %v1719_v28 = vld [vmem:[%s11263_s7 + $0x4b4] sm:$0xf]  ;;  %1716 = vst [vmem:[#allocation3 + $0x484] sm:$0xf] %v1715_v26  ;;  %1718 = vst [vmem:[#allocation3 + $0x488] sm:$0xf] %v1717_v27 }
 0x127   :  { %1720 = vst [vmem:[#allocation3 + $0x48c] sm:$0xf] %v1719_v28  ;;  %v1721_v29 = vld [vmem:[%s11263_s7 + $0x484] sm:$0xf]  ;;  %v1723_v30 = vld [vmem:[%s11263_s7 + $0x4b8] sm:$0xf] }
 0x128   :  { %v1725_v31 = vld [vmem:[%s11263_s7 + $0x488] sm:$0xf]  ;;  %1722 = vst [vmem:[#allocation3 + $0x490] sm:$0xf] %v1721_v29  ;;  %1724 = vst [vmem:[#allocation3 + $0x494] sm:$0xf] %v1723_v30 }
 0x129   :  { %1726 = vst [vmem:[#allocation3 + $0x498] sm:$0xf] %v1725_v31  ;;  %v1727_v32 = vld [vmem:[%s11263_s7 + $0x4bc] sm:$0xf]  ;;  %v1729_v33 = vld [vmem:[%s11263_s7 + $0x48c] sm:$0xf] }
 0x12a   :  { %v1731_v34 = vld [vmem:[%s11263_s7 + $0x4c0] sm:$0xf]  ;;  %1728 = vst [vmem:[#allocation3 + $0x49c] sm:$0xf] %v1727_v32  ;;  %1730 = vst [vmem:[#allocation3 + $0x4a0] sm:$0xf] %v1729_v33 }
 0x12b   :  { %1732 = vst [vmem:[#allocation3 + $0x4a4] sm:$0xf] %v1731_v34  ;;  %v1733_v35 = vld [vmem:[%s11263_s7 + $0x490] sm:$0xf]  ;;  %v1735_v36 = vld [vmem:[%s11263_s7 + $0x4c4] sm:$0xf] }
 0x12c   :  { %v1737_v37 = vld [vmem:[%s11263_s7 + $0x494] sm:$0xf]  ;;  %1734 = vst [vmem:[#allocation3 + $0x4a8] sm:$0xf] %v1733_v35  ;;  %1736 = vst [vmem:[#allocation3 + $0x4ac] sm:$0xf] %v1735_v36 }
 0x12d   :  { %1738 = vst [vmem:[#allocation3 + $0x4b0] sm:$0xf] %v1737_v37  ;;  %v1739_v38 = vld [vmem:[%s11263_s7 + $0x4c8] sm:$0xf]  ;;  %v1741_v39 = vld [vmem:[%s11263_s7 + $0x498] sm:$0xf] }
 0x12e   :  { %v1743_v40 = vld [vmem:[%s11263_s7 + $0x4cc] sm:$0xf]  ;;  %1740 = vst [vmem:[#allocation3 + $0x4b4] sm:$0xf] %v1739_v38  ;;  %1742 = vst [vmem:[#allocation3 + $0x4b8] sm:$0xf] %v1741_v39 }
 0x12f   :  { %1744 = vst [vmem:[#allocation3 + $0x4bc] sm:$0xf] %v1743_v40  ;;  %v1745_v41 = vld [vmem:[%s11263_s7 + $0x49c] sm:$0xf]  ;;  %v1747_v42 = vld [vmem:[%s11263_s7 + $0x4d0] sm:$0xf] }
 0x130   :  { %v1749_v43 = vld [vmem:[%s11263_s7 + $0x4a0] sm:$0xf]  ;;  %1746 = vst [vmem:[#allocation3 + $0x4c0] sm:$0xf] %v1745_v41  ;;  %1748 = vst [vmem:[#allocation3 + $0x4c4] sm:$0xf] %v1747_v42 }
 0x131   :  { %1750 = vst [vmem:[#allocation3 + $0x4c8] sm:$0xf] %v1749_v43  ;;  %v1751_v44 = vld [vmem:[%s11263_s7 + $0x4d4] sm:$0xf]  ;;  %v1753_v45 = vld [vmem:[%s11263_s7 + $0x4a4] sm:$0xf] }
 0x132   :  { %v1755_v46 = vld [vmem:[%s11263_s7 + $0x4d8] sm:$0xf]  ;;  %1752 = vst [vmem:[#allocation3 + $0x4cc] sm:$0xf] %v1751_v44  ;;  %1754 = vst [vmem:[#allocation3 + $0x4d0] sm:$0xf] %v1753_v45 }
 0x133   :  { %1756 = vst [vmem:[#allocation3 + $0x4d4] sm:$0xf] %v1755_v46  ;;  %v1757_v47 = vld [vmem:[%s11263_s7 + $0x4a8] sm:$0xf]  ;;  %v1759_v48 = vld [vmem:[%s11263_s7 + $0x4dc] sm:$0xf] }
 0x134   :  { %1758 = vst [vmem:[#allocation3 + $0x4d8] sm:$0xf] %v1757_v47  ;;  %1760 = vst [vmem:[#allocation3 + $0x4dc] sm:$0xf] %v1759_v48 }
 0x135   :  { %2415 = vsyncadd [#allocation6 + $0x1], 19968  ;;  %v2482_v49 = vld [vmem:[%s11259_s3] sm:$0xf]  ;;  %vm2682_vm0 = vcmask 1043456   ;;  %vm2483_vm1 = vcmask 31744  }
 0x136   :  { %v2416_v50 = vld [vmem:[%s11256_s0] sm:$0xff]  ;;  %7478 = vmatprep.subr.msk.mxu0 %vm2682_vm0, %v2482_v49  ;;  %v2417_v51 = vld [vmem:[%s11256_s0 + $0x8] sm:$0xff]  ;;  %v2418_v52 = vld [vmem:[%s11256_s0 + $0x10] sm:$0xff]  ;;  %vm3279_vm3 = vcmask 261120   ;;  %s7768_s18 = smov 64   ;;  %s7770_s21 = smov 96  }
 0x137   :  { %7479 = vmatpush3.msk.msra.mxu0 %vm2682_vm0, %v2482_v49  ;;  %7480 = vmatprep.mubr.msk.f32.mxu0 %vm2483_vm1, %v2416_v50  ;;  %v2419_v53 = vld [vmem:[%s11256_s0 + $0x18] sm:$0xff]  ;;  %v2420_v54 = vld [vmem:[%s11256_s0 + $0x20] sm:$0xff]  ;;  %v2421_v55 = vld [vmem:[%s11256_s0 + $0x28] sm:$0xff] }
 0x138   :  { %7481 = vmatmul.mubr.msk.f32.vlgmr.msra.gmra.mrb[0].mxu0 %vm2483_vm1, %v2417_v51  ;;  %v2422_v56 = vld [vmem:[%s11256_s0 + $0x30] sm:$0xff]  ;;  %v2423_v57 = vld [vmem:[%s11256_s0 + $0x38] sm:$0xff]  ;;  %v2424_v58 = vld [vmem:[%s11256_s0 + $0x40] sm:$0xff] }
 0x139   :  { %7483 = vmatprep.mubr.msk.f32.mxu0 %vm2483_vm1, %v2418_v52  ;;  %v2425_v59 = vld [vmem:[%s11256_s0 + $0x48] sm:$0xff]  ;;  %v2426_v60 = vld [vmem:[%s11256_s0 + $0x50] sm:$0xff]  ;;  %v2427_v61 = vld [vmem:[%s11256_s0 + $0x58] sm:$0xff] }
 0x13a   :  { %v2428_v62 = vld [vmem:[%s11256_s0 + $0x60] sm:$0xff]  ;;  %v2429_v63 = vld [vmem:[%s11256_s0 + $0x68] sm:$0xff]  ;;  %v2430_v0 = vld [vmem:[%s11256_s0 + $0x70] sm:$0xff] }
 0x13b   :  { %v2431_v1 = vld [vmem:[%s11256_s0 + $0x78] sm:$0xff]  ;;  %v2432_v2 = vld [vmem:[%s11256_s0 + $0x80] sm:$0xff]  ;;  %v2433_v3 = vld [vmem:[%s11256_s0 + $0x88] sm:$0xff] }
 0x13c   :  { %7484 = vmatmul.mubr.msk.f32.gmra.mrb[2].mxu0 %vm2483_vm1, %v2419_v53  ;;  %v2434_v4 = vld [vmem:[%s11256_s0 + $0x90] sm:$0xff]  ;;  %v2435_v5 = vld [vmem:[%s11256_s0 + $0x98] sm:$0xff]  ;;  %v2436_v6 = vld [vmem:[%s11256_s0 + $0xa0] sm:$0xff] }
 0x13d   :  { %7486 = vmatprep.mubr.msk.f32.mxu0 %vm2483_vm1, %v2420_v54  ;;  %v2437_v7 = vld [vmem:[%s11256_s0 + $0xa8] sm:$0xff]  ;;  %v2438_v8 = vld [vmem:[%s11256_s0 + $0xb0] sm:$0xff]  ;;  %v2439_v9 = vld [vmem:[%s11256_s0 + $0xb8] sm:$0xff] }
 0x13e   :  { %v2440_v10 = vld [vmem:[%s11256_s0 + $0xc0] sm:$0xff]  ;;  %v2441_v11 = vld [vmem:[%s11256_s0 + $0xc8] sm:$0xff]  ;;  %v2442_v12 = vld [vmem:[%s11256_s0 + $0xd0] sm:$0xff] }
 0x13f   :  { %v2443_v13 = vld [vmem:[%s11256_s0 + $0xd8] sm:$0xff]  ;;  %v2444_v14 = vld [vmem:[%s11256_s0 + $0xe0] sm:$0xff]  ;;  %v2445_v15 = vld [vmem:[%s11256_s0 + $0xe8] sm:$0xff] }
 0x140   :  { %7487 = vmatmul.mubr.msk.f32.gmra.mrb[4].mxu0 %vm2483_vm1, %v2421_v55  ;;  %v2446_v16 = vld [vmem:[%s11256_s0 + $0xf0] sm:$0xff]  ;;  %v2447_v17 = vld [vmem:[%s11256_s0 + $0xf8] sm:$0xff]  ;;  %v2448_v18 = vld [vmem:[%s11256_s0 + $0x100] sm:$0xff] }
 0x141   :  { %7489 = vmatprep.mubr.msk.f32.mxu0 %vm2483_vm1, %v2422_v56  ;;  %v2449_v19 = vld [vmem:[%s11256_s0 + $0x108] sm:$0xff]  ;;  %v2450_v20 = vld [vmem:[%s11256_s0 + $0x110] sm:$0xff]  ;;  %v2451_v21 = vld [vmem:[%s11256_s0 + $0x118] sm:$0xff] }
 0x142   :  { %v2452_v22 = vld [vmem:[%s11256_s0 + $0x120] sm:$0xff]  ;;  %v2453_v23 = vld [vmem:[%s11256_s0 + $0x128] sm:$0xff]  ;;  %v2454_v24 = vld [vmem:[%s11256_s0 + $0x130] sm:$0xff] }
 0x143   :  { %v2455_v25 = vld [vmem:[%s11256_s0 + $0x138] sm:$0xff]  ;;  %v2456_v26 = vld [vmem:[%s11256_s0 + $0x140] sm:$0xff]  ;;  %v2457_v27 = vld [vmem:[%s11256_s0 + $0x148] sm:$0xff] }
 0x144   :  { %7490 = vmatmul.mubr.msk.f32.gmra.mrb[6].mxu0 %vm2483_vm1, %v2423_v57  ;;  %v2458_v28 = vld [vmem:[%s11256_s0 + $0x150] sm:$0xff]  ;;  %v2459_v29 = vld [vmem:[%s11256_s0 + $0x158] sm:$0xff]  ;;  %v2460_v30 = vld [vmem:[%s11256_s0 + $0x160] sm:$0xff] }
 0x145   :  { %7492 = vmatprep.mubr.msk.f32.mxu0 %vm2483_vm1, %v2424_v58  ;;  %v2461_v31 = vld [vmem:[%s11256_s0 + $0x168] sm:$0xff]  ;;  %v2462_v32 = vld [vmem:[%s11256_s0 + $0x170] sm:$0xff]  ;;  %v2463_v33 = vld [vmem:[%s11256_s0 + $0x178] sm:$0xff] }
 0x146   :  { %v2464_v34 = vld [vmem:[%s11256_s0 + $0x180] sm:$0xff]  ;;  %v2465_v35 = vld [vmem:[%s11256_s0 + $0x188] sm:$0xff]  ;;  %v2466_v36 = vld [vmem:[%s11256_s0 + $0x190] sm:$0xff] }
 0x147   :  { %v2467_v37 = vld [vmem:[%s11256_s0 + $0x198] sm:$0xff]  ;;  %v2468_v38 = vld [vmem:[%s11256_s0 + $0x1a0] sm:$0xff]  ;;  %v2469_v39 = vld [vmem:[%s11256_s0 + $0x1a8] sm:$0xff] }
 0x148   :  { %7493 = vmatmul.mubr.msk.f32.gmra.mrb[8].mxu0 %vm2483_vm1, %v2425_v59  ;;  %v2470_v40 = vld [vmem:[%s11256_s0 + $0x1b0] sm:$0xff]  ;;  %v2471_v41 = vld [vmem:[%s11256_s0 + $0x1b8] sm:$0xff]  ;;  %v2472_v42 = vld [vmem:[%s11256_s0 + $0x1c0] sm:$0xff] }
 0x149   :  { %7495 = vmatprep.mubr.msk.f32.mxu0 %vm2483_vm1, %v2426_v60  ;;  %v2473_v43 = vld [vmem:[%s11256_s0 + $0x1c8] sm:$0xff]  ;;  %v2474_v44 = vld [vmem:[%s11256_s0 + $0x1d0] sm:$0xff]  ;;  %v2475_v45 = vld [vmem:[%s11256_s0 + $0x1d8] sm:$0xff] }
 0x14a   :  { %v2476_v46 = vld [vmem:[%s11256_s0 + $0x1e0] sm:$0xff]  ;;  %v2477_v47 = vld [vmem:[%s11256_s0 + $0x1e8] sm:$0xff]  ;;  %v2478_v48 = vld [vmem:[%s11256_s0 + $0x1f0] sm:$0xff] }
 0x14b   :  { %v2479_v49 = vld [vmem:[%s11256_s0 + $0x1f8] sm:$0xff]  ;;  %v2480_v50 = vld [vmem:[%s11256_s0 + $0x200] sm:$0xff]  ;;  %v2481_v51 = vld [vmem:[%s11256_s0 + $0x208] sm:$0xff]  ;;  %s7767_s0 = smov 32  }
 0x14c   :  { %7496 = vmatmul.mubr.msk.f32.gmra.mrb[10].mxu0 %vm2483_vm1, %v2427_v61  ;;  %v7689_v52 = vld [vmem:[%s11260_s4 + $0x80] sm:$0xff]   ;;  %v7690_v53 = vld [vmem:[%s11260_s4 + $0x88] sm:$0xff]  }
 0x14d   :  { %7498 = vmatprep.mubr.msk.f32.mxu0 %vm2483_vm1, %v2428_v62  ;;  %7579 = vmatprep.subr.bf16.mxu0 %v7689_v52 }
 0x14e   :  { %7580 = vmatpush3.bf16.msra.mxu0 %v7689_v52 }
 0x14f   :  { %7581 = vmatprep.subr.bf16.mxu0 %v7690_v53 }
 0x150   :  { %7499 = vmatmul.mubr.msk.f32.gmra.mrb[12].mxu0 %vm2483_vm1, %v2429_v63 }
 0x151   :  { %7501 = vmatprep.mubr.msk.f32.mxu0 %vm2483_vm1, %v2430_v0 }
 0x152   :  { %7582 = vmatpush3.bf16.msra.mxu0 %v7690_v53 }
 0x154   :  { %7502 = vmatmul.mubr.msk.f32.gmra.mrb[14].mxu0 %vm2483_vm1, %v2431_v1 }
 0x155   :  { %7504 = vmatprep.mubr.msk.f32.mxu0 %vm2483_vm1, %v2432_v2 }
 0x158   :  { %7505 = vmatmul.mubr.msk.f32.gmra.mrb[16].mxu0 %vm2483_vm1, %v2433_v3 }
 0x159   :  { %7507 = vmatprep.mubr.msk.f32.mxu0 %vm2483_vm1, %v2434_v4 }
 0x15c   :  { %7508 = vmatmul.mubr.msk.f32.gmra.mrb[18].mxu0 %vm2483_vm1, %v2435_v5 }
 0x15d   :  { %7510 = vmatprep.mubr.msk.f32.mxu0 %vm2483_vm1, %v2436_v6 }
 0x160   :  { %7511 = vmatmul.mubr.msk.f32.gmra.mrb[20].mxu0 %vm2483_vm1, %v2437_v7 }
 0x161   :  { %7513 = vmatprep.mubr.msk.f32.mxu0 %vm2483_vm1, %v2438_v8 }
 0x164   :  { %7514 = vmatmul.mubr.msk.f32.gmra.mrb[22].mxu0 %vm2483_vm1, %v2439_v9 }
 0x165   :  { %7516 = vmatprep.mubr.msk.f32.mxu0 %vm2483_vm1, %v2440_v10 }
 0x168   :  { %7517 = vmatmul.mubr.msk.f32.gmra.mrb[24].mxu0 %vm2483_vm1, %v2441_v11 }
 0x169   :  { %7519 = vmatprep.mubr.msk.f32.mxu0 %vm2483_vm1, %v2442_v12 }
 0x16c   :  { %7520 = vmatmul.mubr.msk.f32.gmra.mrb[26].mxu0 %vm2483_vm1, %v2443_v13 }
 0x16d   :  { %7522 = vmatprep.mubr.msk.f32.mxu0 %vm2483_vm1, %v2444_v14 }
 0x170   :  { %7523 = vmatmul.mubr.msk.f32.gmra.mrb[28].mxu0 %vm2483_vm1, %v2445_v15 }
 0x171   :  { %7525 = vmatprep.mubr.msk.f32.mxu0 %vm2483_vm1, %v2446_v16 }
 0x174   :  { %7526 = vmatmul.mubr.msk.f32.gmra.mrb[30].mxu0 %vm2483_vm1, %v2447_v17 }
 0x175   :  { %7528 = vmatprep.mubr.msk.f32.mxu0 %vm2483_vm1, %v2448_v18 }
 0x178   :  { %7529 = vmatmul.mubr.msk.f32.gmra.mrb[32].mxu0 %vm2483_vm1, %v2449_v19 }
 0x179   :  { %7531 = vmatprep.mubr.msk.f32.mxu0 %vm2483_vm1, %v2450_v20 }
 0x17c   :  { %7532 = vmatmul.mubr.msk.f32.gmra.mrb[34].mxu0 %vm2483_vm1, %v2451_v21 }
 0x17d   :  { %7534 = vmatprep.mubr.msk.f32.mxu0 %vm2483_vm1, %v2452_v22 }
 0x180   :  { %7535 = vmatmul.mubr.msk.f32.gmra.mrb[36].mxu0 %vm2483_vm1, %v2453_v23 }
 0x181   :  { %7537 = vmatprep.mubr.msk.f32.mxu0 %vm2483_vm1, %v2454_v24 }
 0x184   :  { %7538 = vmatmul.mubr.msk.f32.gmra.mrb[38].mxu0 %vm2483_vm1, %v2455_v25 }
 0x185   :  { %7540 = vmatprep.mubr.msk.f32.mxu0 %vm2483_vm1, %v2456_v26 }
 0x188   :  { %7541 = vmatmul.mubr.msk.f32.gmra.mrb[40].mxu0 %vm2483_vm1, %v2457_v27 }
 0x189   :  { %7543 = vmatprep.mubr.msk.f32.mxu0 %vm2483_vm1, %v2458_v28 }
 0x18c   :  { %7544 = vmatmul.mubr.msk.f32.gmra.mrb[42].mxu0 %vm2483_vm1, %v2459_v29 }
 0x18d   :  { %7546 = vmatprep.mubr.msk.f32.mxu0 %vm2483_vm1, %v2460_v30 }
 0x190   :  { %7547 = vmatmul.mubr.msk.f32.gmra.mrb[44].mxu0 %vm2483_vm1, %v2461_v31 }
 0x191   :  { %7549 = vmatprep.mubr.msk.f32.mxu0 %vm2483_vm1, %v2462_v32 }
 0x194   :  { %7550 = vmatmul.mubr.msk.f32.gmra.mrb[46].mxu0 %vm2483_vm1, %v2463_v33 }
 0x195   :  { %7552 = vmatprep.mubr.msk.f32.mxu0 %vm2483_vm1, %v2464_v34 }
 0x198   :  { %7553 = vmatmul.mubr.msk.f32.gmra.mrb[48].mxu0 %vm2483_vm1, %v2465_v35  ;;  %v7769_v35 = vmov 0  }
 0x199   :  { %7555 = vmatprep.mubr.msk.f32.mxu0 %vm2483_vm1, %v2466_v36  ;;  %4739 = vmatprep.subr.bf16.mxu1 %v7769_v35  ;;  %v7691_v36 = vld [vmem:[%s11260_s4] sm:$0xff]  }
 0x19a   :  { %4740 = vmatpush1.bf16.msra.mxu1 %v7691_v36 }
 0x19b   :  { %4741 = vmatprep.subr.bf16.mxu1 %v7769_v35 }
 0x19c   :  { %7556 = vmatmul.mubr.msk.f32.gmra.mrb[50].mxu0 %vm2483_vm1, %v2467_v37 }
 0x19d   :  { %7558 = vmatprep.mubr.msk.f32.mxu0 %vm2483_vm1, %v2468_v38 }
 0x1a0   :  { %7559 = vmatmul.mubr.msk.f32.gmra.mrb[52].mxu0 %vm2483_vm1, %v2469_v39 }
 0x1a1   :  { %7561 = vmatprep.mubr.msk.f32.mxu0 %vm2483_vm1, %v2470_v40 }
 0x1a4   :  { %7562 = vmatmul.mubr.msk.f32.gmra.mrb[54].mxu0 %vm2483_vm1, %v2471_v41 }
 0x1a5   :  { %7564 = vmatprep.mubr.msk.f32.mxu0 %vm2483_vm1, %v2472_v42 }
 0x1a8   :  { %7565 = vmatmul.mubr.msk.f32.gmra.mrb[56].mxu0 %vm2483_vm1, %v2473_v43  ;;  %v7692_v43 = vld [vmem:[%s11260_s4 + $0x8] sm:$0xff]  }
 0x1a9   :  { %7567 = vmatprep.mubr.msk.f32.mxu0 %vm2483_vm1, %v2474_v44  ;;  %4742 = vmatpush1.bf16.msra.mxu1 %v7692_v43 }
 0x1aa   :  { %4743 = vmatprep.subr.bf16.mxu1 %v7769_v35 }
 0x1ac   :  { %7568 = vmatmul.mubr.msk.f32.gmra.mrb[58].mxu0 %vm2483_vm1, %v2475_v45 }
 0x1ad   :  { %7570 = vmatprep.mubr.msk.f32.mxu0 %vm2483_vm1, %v2476_v46 }
 0x1b0   :  { %7571 = vmatmul.mubr.msk.f32.gmra.mrb[60].mxu0 %vm2483_vm1, %v2477_v47 }
 0x1b1   :  { %7573 = vmatprep.mubr.msk.f32.mxu0 %vm2483_vm1, %v2478_v48 }
 0x1b4   :  { %7574 = vmatmul.mubr.msk.f32.gmra.mrb[62].mxu0 %vm2483_vm1, %v2479_v49 }
 0x1b5   :  { %7576 = vmatprep.mubr.msk.f32.mxu0 %vm2483_vm1, %v2480_v50  ;;  %v7693_v50 = vld [vmem:[%s11260_s4 + $0x10] sm:$0xff]  }
 0x1b6   :  { %4744 = vmatpush1.bf16.msra.mxu1 %v7693_v50 }
 0x1b7   :  { %4745 = vmatprep.subr.bf16.mxu1 %v7769_v35 }
 0x1b8   :  { %7577 = vmatmul.mubr.msk.f32.gmra.mrb[64].mxu0 %vm2483_vm1, %v2481_v51 }
 0x20b   :  { %v7482_v54 = vpop.f32.mrb[0].mxu0 }
 0x20c   :  { %v3148_v55 = vmul.f32 0.05, %v7482_v54  ;;  %v2752_v56 = vpop.f32.mrb[1].mxu0  ;;  %vm3082_vm2 = vcmp.ge.f32.partialorder %v7482_v54, 0.0 }
 0x20d   :  { %vm3081_vm4 = vcmp.ge.f32.partialorder %v2752_v56, 0.0  ;;  %v3147_v57 = vmul.f32 0.05, %v2752_v56 }
 0x20e   :  { %v3214_v58 = vsel %vm3082_vm2, %v7482_v54, %v3148_v55 }
 0x20f   :  { %v3213_v59 = vsel %vm3081_vm4, %v2752_v56, %v3147_v57  ;;  %3376 = vrot.lane.b32.xlu1 %v3214_v58, %s7767_s0  ;;  %3281 = vst.msk [vmem:[#allocation4 + $0x18] sm:$0xff] %vm3279_vm3, %v3214_v58  ;;  %v7485_v60 = vpop.f32.mrb[2].mxu0  ;;  %v7694_v57 = vld [vmem:[%s11260_s4 + $0x18] sm:$0xff]  }
 0x210   :  { %3280 = vst.msk [vmem:[#allocation4] sm:$0xff] %vm3279_vm3, %v3213_v59  ;;  %vm3084_vm5 = vcmp.ge.f32.partialorder %v7485_v60, 0.0  ;;  %v3150_v61 = vmul.f32 0.05, %v7485_v60  ;;  %v2762_v62 = vpop.f32.mrb[3].mxu0  ;;  %4746 = vmatpush1.bf16.msra.mxu1 %v7694_v57 }
 0x211   :  { %vm3083_vm6 = vcmp.ge.f32.partialorder %v2762_v62, 0.0  ;;  %v3149_v63 = vmul.f32 0.05, %v2762_v62  ;;  %4747 = vmatprep.subr.bf16.mxu1 %v7769_v35 }
 0x212   :  { %v3216_v0 = vsel %vm3084_vm5, %v7485_v60, %v3150_v61 }
 0x213   :  { %3380 = vrot.lane.b32.xlu0 %v3216_v0, %s7767_s0  ;;  %3283 = vst.msk [vmem:[#allocation4 + $0x48] sm:$0xff] %vm3279_vm3, %v3216_v0  ;;  %3572 = vrot.lane.b32.xlu1 %v3216_v0, %s7768_s18  ;;  %v7488_v1 = vpop.f32.mrb[4].mxu0  ;;  %v3215_v2 = vsel %vm3083_vm6, %v2762_v62, %v3149_v63  ;;  %v7695_v0 = vld [vmem:[%s11260_s4 + $0x20] sm:$0xff]  }
 0x214   :  { %vm3086_vm7 = vcmp.ge.f32.partialorder %v7488_v1, 0.0  ;;  %v3152_v3 = vmul.f32 0.05, %v7488_v1  ;;  %v2772_v4 = vpop.f32.mrb[5].mxu0  ;;  %3282 = vst.msk [vmem:[#allocation4 + $0x30] sm:$0xff] %vm3279_vm3, %v3215_v2  ;;  %4748 = vmatpush1.bf16.msra.mxu1 %v7695_v0 }
 0x215   :  { %vm3085_vm8 = vcmp.ge.f32.partialorder %v2772_v4, 0.0  ;;  %v3151_v5 = vmul.f32 0.05, %v2772_v4  ;;  %4749 = vmatprep.subr.bf16.mxu1 %v7769_v35 }
 0x216   :  { %v3218_v6 = vsel %vm3086_vm7, %v7488_v1, %v3152_v3 }
 0x217   :  { %3570 = vrot.lane.b32.xlu0 %v3215_v2, %s7768_s18  ;;  %3378 = vrot.lane.b32.xlu1 %v3215_v2, %s7767_s0  ;;  %3285 = vst.msk [vmem:[#allocation4 + $0x78] sm:$0xff] %vm3279_vm3, %v3218_v6  ;;  %v7491_v7 = vpop.f32.mrb[6].mxu0  ;;  %v3217_v8 = vsel %vm3085_vm8, %v2772_v4, %v3151_v5 }
 0x218   :  { %vm3088_vm9 = vcmp.ge.f32.partialorder %v7491_v7, 0.0  ;;  %v3154_v9 = vmul.f32 0.05, %v7491_v7  ;;  %v2782_v10 = vpop.f32.mrb[7].mxu0  ;;  %3284 = vst.msk [vmem:[#allocation4 + $0x60] sm:$0xff] %vm3279_vm3, %v3217_v8 }
 0x219   :  { %vm3087_vm10 = vcmp.ge.f32.partialorder %v2782_v10, 0.0  ;;  %v3153_v11 = vmul.f32 0.05, %v2782_v10 }
 0x21a   :  { %v3220_v12 = vsel %vm3088_vm9, %v7491_v7, %v3154_v9 }
 0x21b   :  { %3384 = vrot.lane.b32.xlu0 %v3218_v6, %s7767_s0  ;;  %3576 = vrot.lane.b32.xlu1 %v3218_v6, %s7768_s18  ;;  %3287 = vst.msk [vmem:[#allocation4 + $0xa8] sm:$0xff] %vm3279_vm3, %v3220_v12  ;;  %v7494_v13 = vpop.f32.mrb[8].mxu0  ;;  %v3219_v14 = vsel %vm3087_vm10, %v2782_v10, %v3153_v11  ;;  %v7696_v10 = vld [vmem:[%s11260_s4 + $0x28] sm:$0xff]  }
 0x21c   :  { %vm3090_vm11 = vcmp.ge.f32.partialorder %v7494_v13, 0.0  ;;  %v3156_v15 = vmul.f32 0.05, %v7494_v13  ;;  %v2792_v16 = vpop.f32.mrb[9].mxu0  ;;  %3286 = vst.msk [vmem:[#allocation4 + $0x90] sm:$0xff] %vm3279_vm3, %v3219_v14  ;;  %4750 = vmatpush1.bf16.msra.mxu1 %v7696_v10 }
 0x21d   :  { %vm3089_vm12 = vcmp.ge.f32.partialorder %v2792_v16, 0.0  ;;  %v3155_v17 = vmul.f32 0.05, %v2792_v16  ;;  %4751 = vmatprep.subr.bf16.mxu1 %v7769_v35 }
 0x21e   :  { %v9605_v18 = vsel %vm3090_vm11, %v7494_v13, %v3156_v15 }
 0x21f   :  { %3574 = vrot.lane.b32.xlu0 %v3217_v8, %s7768_s18  ;;  %3382 = vrot.lane.b32.xlu1 %v3217_v8, %s7767_s0  ;;  %3289 = vst.msk [vmem:[#allocation4 + $0xd8] sm:$0xff] %vm3279_vm3, %v9605_v18  ;;  %3962 = vst.msk [vmem:[#allocation4 + $0x8] sm:$0xff] %vm3279_vm3, %v9605_v18  ;;  %v9613_v19 = vsel %vm3089_vm12, %v2792_v16, %v3155_v17  ;;  %v7497_v20 = vpop.f32.mrb[10].mxu0 }
 0x220   :  { %3288 = vst.msk [vmem:[#allocation4 + $0xc0] sm:$0xff] %vm3279_vm3, %v9613_v19  ;;  %vm3092_vm13 = vcmp.ge.f32.partialorder %v7497_v20, 0.0  ;;  %v3158_v21 = vmul.f32 0.05, %v7497_v20  ;;  %v2802_v22 = vpop.f32.mrb[11].mxu0 }
 0x221   :  { %vm3091_vm14 = vcmp.ge.f32.partialorder %v2802_v22, 0.0  ;;  %v3157_v23 = vmul.f32 0.05, %v2802_v22 }
 0x222   :  { %v9617_v24 = vsel %vm3092_vm13, %v7497_v20, %v3158_v21  ;;  %v7697_v20 = vld [vmem:[%s11260_s4 + $0x30] sm:$0xff]  }
 0x223   :  { %3388 = vrot.lane.b32.xlu0 %v3220_v12, %s7767_s0  ;;  %3580 = vrot.lane.b32.xlu1 %v3220_v12, %s7768_s18  ;;  %3291 = vst.msk [vmem:[#allocation4 + $0x108] sm:$0xff] %vm3279_vm3, %v9617_v24  ;;  %3964 = vst.msk [vmem:[#allocation4 + $0x38] sm:$0xff] %vm3279_vm3, %v9617_v24  ;;  %v9625_v25 = vsel %vm3091_vm14, %v2802_v22, %v3157_v23  ;;  %v7500_v26 = vpop.f32.mrb[12].mxu0 }
 0x224   :  { %3290 = vst.msk [vmem:[#allocation4 + $0xf0] sm:$0xff] %vm3279_vm3, %v9625_v25  ;;  %3963 = vst.msk [vmem:[#allocation4 + $0x20] sm:$0xff] %vm3279_vm3, %v9625_v25  ;;  %vm3094_vm15 = vcmp.ge.f32.partialorder %v7500_v26, 0.0  ;;  %v3160_v27 = vmul.f32 0.05, %v7500_v26  ;;  %v2812_v28 = vpop.f32.mrb[13].mxu0  ;;  %4752 = vmatpush1.bf16.msra.mxu1 %v7697_v20 }
 0x225   :  { %vm3093_vm0 = vcmp.ge.f32.partialorder %v2812_v28, 0.0  ;;  %v3159_v29 = vmul.f32 0.05, %v2812_v28  ;;  %4753 = vmatprep.subr.bf16.mxu1 %v7769_v35 }
 0x226   :  { %v9631_v30 = vsel %vm3094_vm15, %v7500_v26, %v3160_v27 }
 0x227   :  { %3578 = vrot.lane.b32.xlu0 %v3219_v14, %s7768_s18  ;;  %3386 = vrot.lane.b32.xlu1 %v3219_v14, %s7767_s0  ;;  %3293 = vst.msk [vmem:[#allocation4 + $0x138] sm:$0xff] %vm3279_vm3, %v9631_v30  ;;  %3966 = vst.msk [vmem:[#allocation4 + $0x68] sm:$0xff] %vm3279_vm3, %v9631_v30  ;;  %v9639_v31 = vsel %vm3093_vm0, %v2812_v28, %v3159_v29  ;;  %v7503_v32 = vpop.f32.mrb[14].mxu0 }
 0x228   :  { %3292 = vst.msk [vmem:[#allocation4 + $0x120] sm:$0xff] %vm3279_vm3, %v9639_v31  ;;  %3965 = vst.msk [vmem:[#allocation4 + $0x50] sm:$0xff] %vm3279_vm3, %v9639_v31  ;;  %vm3096_vm1 = vcmp.ge.f32.partialorder %v7503_v32, 0.0  ;;  %v3162_v33 = vmul.f32 0.05, %v7503_v32  ;;  %v2822_v34 = vpop.f32.mrb[15].mxu0 }
 0x229   :  { %vm3095_vm2 = vcmp.ge.f32.partialorder %v2822_v34, 0.0  ;;  %v3161_v37 = vmul.f32 0.05, %v2822_v34 }
 0x22a   :  { %v9649_v38 = vsel %vm3096_vm1, %v7503_v32, %v3162_v33  ;;  %v7698_v32 = vld [vmem:[%s11260_s4 + $0x38] sm:$0xff]  }
 0x22b   :  { %3392 = vrot.lane.b32.xlu0 %v9605_v18, %s7767_s0  ;;  %3771 = vrot.lane.b32.xlu1 %v9605_v18, %s7770_s21  ;;  %3295 = vst.msk [vmem:[#allocation4 + $0x168] sm:$0xff] %vm3279_vm3, %v9649_v38  ;;  %3968 = vst.msk [vmem:[#allocation4 + $0x98] sm:$0xff] %vm3279_vm3, %v9649_v38  ;;  %v9659_v39 = vsel %vm3095_vm2, %v2822_v34, %v3161_v37  ;;  %v7506_v40 = vpop.f32.mrb[16].mxu0 }
 0x22c   :  { %3294 = vst.msk [vmem:[#allocation4 + $0x150] sm:$0xff] %vm3279_vm3, %v9659_v39  ;;  %3967 = vst.msk [vmem:[#allocation4 + $0x80] sm:$0xff] %vm3279_vm3, %v9659_v39  ;;  %vm3098_vm4 = vcmp.ge.f32.partialorder %v7506_v40, 0.0  ;;  %v3164_v41 = vmul.f32 0.05, %v7506_v40  ;;  %v2832_v42 = vpop.f32.mrb[17].mxu0  ;;  %4754 = vmatpush1.bf16.msra.mxu1 %v7698_v32 }
 0x22d   :  { %vm3097_vm5 = vcmp.ge.f32.partialorder %v2832_v42, 0.0  ;;  %v3163_v44 = vmul.f32 0.05, %v2832_v42  ;;  %4755 = vmatprep.subr.bf16.mxu1 %v7769_v35 }
 0x22e   :  { %v9669_v45 = vsel %vm3098_vm4, %v7506_v40, %v3164_v41 }
 0x22f   :  { %3584 = vrot.lane.b32.xlu1 %v9605_v18, %s7768_s18  ;;  %3769 = vrot.lane.b32.xlu0 %v9613_v19, %s7770_s21  ;;  %3297 = vst.msk [vmem:[#allocation4 + $0x198] sm:$0xff] %vm3279_vm3, %v9669_v45  ;;  %3970 = vst.msk [vmem:[#allocation4 + $0xc8] sm:$0xff] %vm3279_vm3, %v9669_v45  ;;  %v9679_v46 = vsel %vm3097_vm5, %v2832_v42, %v3163_v44  ;;  %v7509_v47 = vpop.f32.mrb[18].mxu0  ;;  %v7699_v44 = vld [vmem:[%s11260_s4 + $0x40] sm:$0xff]  }
 0x230   :  { %3296 = vst.msk [vmem:[#allocation4 + $0x180] sm:$0xff] %vm3279_vm3, %v9679_v46  ;;  %3969 = vst.msk [vmem:[#allocation4 + $0xb0] sm:$0xff] %vm3279_vm3, %v9679_v46  ;;  %vm3100_vm6 = vcmp.ge.f32.partialorder %v7509_v47, 0.0  ;;  %v3166_v48 = vmul.f32 0.05, %v7509_v47  ;;  %v2842_v49 = vpop.f32.mrb[19].mxu0  ;;  %4756 = vmatpush1.bf16.msra.mxu1 %v7699_v44 }
 0x231   :  { %vm3099_vm7 = vcmp.ge.f32.partialorder %v2842_v49, 0.0  ;;  %v3165_v51 = vmul.f32 0.05, %v2842_v49  ;;  %4757 = vmatprep.subr.bf16.mxu1 %v7769_v35 }
 0x232   :  { %v9689_v52 = vsel %vm3100_vm6, %v7509_v47, %v3166_v48 }
 0x233   :  { %3390 = vrot.lane.b32.xlu1 %v9613_v19, %s7767_s0  ;;  %3582 = vrot.lane.b32.xlu0 %v9613_v19, %s7768_s18  ;;  %4260 = vst.msk [vmem:[#allocation4 + $0x28] sm:$0xff] %vm3279_vm3, %v9689_v52  ;;  %3299 = vst.msk [vmem:[#allocation4 + $0x1c8] sm:$0xff] %vm3279_vm3, %v9689_v52  ;;  %v9701_v53 = vsel %vm3099_vm7, %v2842_v49, %v3165_v51  ;;  %v7512_v54 = vpop.f32.mrb[20].mxu0 }
 0x234   :  { %3972 = vst.msk [vmem:[#allocation4 + $0xf8] sm:$0xff] %vm3279_vm3, %v9689_v52  ;;  %4259 = vst.msk [vmem:[#allocation4 + $0x10] sm:$0xff] %vm3279_vm3, %v9701_v53  ;;  %vm3102_vm8 = vcmp.ge.f32.partialorder %v7512_v54, 0.0  ;;  %v3168_v55 = vmul.f32 0.05, %v7512_v54  ;;  %v2852_v56 = vpop.f32.mrb[21].mxu0 }
 0x235   :  { %3298 = vst.msk [vmem:[#allocation4 + $0x1b0] sm:$0xff] %vm3279_vm3, %v9701_v53  ;;  %3971 = vst.msk [vmem:[#allocation4 + $0xe0] sm:$0xff] %vm3279_vm3, %v9701_v53  ;;  %vm3101_vm9 = vcmp.ge.f32.partialorder %v2852_v56, 0.0  ;;  %v3167_v58 = vmul.f32 0.05, %v2852_v56 }
 0x236   :  { %v9713_v59 = vsel %vm3102_vm8, %v7512_v54, %v3168_v55 }
 0x237   :  { %3775 = vrot.lane.b32.xlu1 %v9617_v24, %s7770_s21  ;;  %3396 = vrot.lane.b32.xlu0 %v9617_v24, %s7767_s0  ;;  %4262 = vst.msk [vmem:[#allocation4 + $0x58] sm:$0xff] %vm3279_vm3, %v9713_v59  ;;  %3301 = vst.msk [vmem:[#allocation4 + $0x1f8] sm:$0xff] %vm3279_vm3, %v9713_v59  ;;  %v9725_v60 = vsel %vm3101_vm9, %v2852_v56, %v3167_v58  ;;  %v7515_v61 = vpop.f32.mrb[22].mxu0  ;;  %v7700_v58 = vld [vmem:[%s11260_s4 + $0x48] sm:$0xff]  }
 0x238   :  { %3974 = vst.msk [vmem:[#allocation4 + $0x128] sm:$0xff] %vm3279_vm3, %v9713_v59  ;;  %4261 = vst.msk [vmem:[#allocation4 + $0x40] sm:$0xff] %vm3279_vm3, %v9725_v60  ;;  %vm3104_vm10 = vcmp.ge.f32.partialorder %v7515_v61, 0.0  ;;  %v3170_v62 = vmul.f32 0.05, %v7515_v61  ;;  %v2862_v63 = vpop.f32.mrb[23].mxu0  ;;  %4758 = vmatpush1.bf16.msra.mxu1 %v7700_v58 }
 0x239   :  { %3300 = vst.msk [vmem:[#allocation4 + $0x1e0] sm:$0xff] %vm3279_vm3, %v9725_v60  ;;  %3973 = vst.msk [vmem:[#allocation4 + $0x110] sm:$0xff] %vm3279_vm3, %v9725_v60  ;;  %vm3103_vm11 = vcmp.ge.f32.partialorder %v2862_v63, 0.0  ;;  %v3169_v1 = vmul.f32 0.05, %v2862_v63  ;;  %4759 = vmatprep.subr.bf16.mxu1 %v7769_v35  ;;  %v7706_v58 = vld [vmem:[%s11260_s4 + $0x78] sm:$0xff]  }
 0x23a   :  { %v4312_v2 = vld [vmem:[#allocation4 + $0x28] sm:$0xff]  ;;  %v9737_v3 = vsel %vm3104_vm10, %v7515_v61, %v3170_v62 }
 0x23b   :  { %3588 = vrot.lane.b32.xlu0 %v9617_v24, %s7768_s18  ;;  %3586 = vrot.lane.b32.xlu1 %v9625_v25, %s7768_s18  ;;  %v4309_v4 = vld [vmem:[#allocation4 + $0x10] sm:$0xff]  ;;  %4264 = vst.msk [vmem:[#allocation4 + $0x88] sm:$0xff] %vm3279_vm3, %v9737_v3  ;;  %3303 = vst.msk [vmem:[#allocation4 + $0x228] sm:$0xff] %vm3279_vm3, %v9737_v3  ;;  %v9749_v5 = vsel %vm3103_vm11, %v2862_v63, %v3169_v1  ;;  %v7518_v6 = vpop.f32.mrb[24].mxu0 }
 0x23c   :  { %3976 = vst.msk [vmem:[#allocation4 + $0x158] sm:$0xff] %vm3279_vm3, %v9737_v3  ;;  %v4453_v7 = vpack.c.bf16 %v4312_v2, %v4309_v4  ;;  %4263 = vst.msk [vmem:[#allocation4 + $0x70] sm:$0xff] %vm3279_vm3, %v9749_v5  ;;  %vm3106_vm12 = vcmp.ge.f32.partialorder %v7518_v6, 0.0  ;;  %v3172_v8 = vmul.f32 0.05, %v7518_v6  ;;  %v2872_v9 = vpop.f32.mrb[25].mxu0 }
 0x23d   :  { %3302 = vst.msk [vmem:[#allocation4 + $0x210] sm:$0xff] %vm3279_vm3, %v9749_v5  ;;  %3975 = vst.msk [vmem:[#allocation4 + $0x140] sm:$0xff] %vm3279_vm3, %v9749_v5  ;;  %vm3105_vm13 = vcmp.ge.f32.partialorder %v2872_v9, 0.0  ;;  %v3171_v11 = vmul.f32 0.05, %v2872_v9 }
 0x23e   :  { %7583 = vmatprep.mubr.msk.bf16.mxu0 %vm3279_vm3, %v4453_v7  ;;  %v4318_v12 = vld [vmem:[#allocation4 + $0x58] sm:$0xff]  ;;  %v9762_v13 = vsel %vm3106_vm12, %v7518_v6, %v3172_v8  ;;  %v7701_v7 = vld [vmem:[%s11260_s4 + $0x50] sm:$0xff]  }
 0x23f   :  { %3394 = vrot.lane.b32.xlu0 %v9625_v25, %s7767_s0  ;;  %3400 = vrot.lane.b32.xlu1 %v9631_v30, %s7767_s0  ;;  %v4315_v14 = vld [vmem:[#allocation4 + $0x40] sm:$0xff]  ;;  %4266 = vst.msk [vmem:[#allocation4 + $0xb8] sm:$0xff] %vm3279_vm3, %v9762_v13  ;;  %3305 = vst.msk [vmem:[#allocation4 + $0x258] sm:$0xff] %vm3279_vm3, %v9762_v13  ;;  %v9774_v15 = vsel %vm3105_vm13, %v2872_v9, %v3171_v11  ;;  %v7521_v16 = vpop.f32.mrb[26].mxu0 }
 0x240   :  { %3978 = vst.msk [vmem:[#allocation4 + $0x188] sm:$0xff] %vm3279_vm3, %v9762_v13  ;;  %v4456_v17 = vpack.c.bf16 %v4318_v12, %v4315_v14  ;;  %4265 = vst.msk [vmem:[#allocation4 + $0xa0] sm:$0xff] %vm3279_vm3, %v9774_v15  ;;  %vm3108_vm14 = vcmp.ge.f32.partialorder %v7521_v16, 0.0  ;;  %v3174_v18 = vmul.f32 0.05, %v7521_v16  ;;  %v2882_v19 = vpop.f32.mrb[27].mxu0  ;;  %4760 = vmatpush1.bf16.msra.mxu1 %v7701_v7 }
 0x241   :  { %3304 = vst.msk [vmem:[#allocation4 + $0x240] sm:$0xff] %vm3279_vm3, %v9774_v15  ;;  %3977 = vst.msk [vmem:[#allocation4 + $0x170] sm:$0xff] %vm3279_vm3, %v9774_v15  ;;  %vm3107_vm15 = vcmp.ge.f32.partialorder %v2882_v19, 0.0  ;;  %v3173_v21 = vmul.f32 0.05, %v2882_v19  ;;  %4761 = vmatprep.subr.bf16.mxu1 %v7769_v35 }
 0x242   :  { %7584 = vmatmul.mubr.msk.bf16.vlgmr.msra.gmra.mrb[68].mxu0 %vm3279_vm3, %v4456_v17  ;;  %v4324_v22 = vld [vmem:[#allocation4 + $0x88] sm:$0xff]  ;;  %v9787_v23 = vsel %vm3108_vm14, %v7521_v16, %v3174_v18 }
 0x243   :  { %3773 = vrot.lane.b32.xlu0 %v9625_v25, %s7770_s21  ;;  %3779 = vrot.lane.b32.xlu1 %v9631_v30, %s7770_s21  ;;  %v4321_v24 = vld [vmem:[#allocation4 + $0x70] sm:$0xff]  ;;  %4268 = vst.msk [vmem:[#allocation4 + $0xe8] sm:$0xff] %vm3279_vm3, %v9787_v23  ;;  %3307 = vst.msk [vmem:[#allocation4 + $0x288] sm:$0xff] %vm3279_vm3, %v9787_v23  ;;  %v9799_v26 = vsel %vm3107_vm15, %v2882_v19, %v3173_v21  ;;  %v7524_v27 = vpop.f32.mrb[28].mxu0  ;;  %v7702_v18 = vld [vmem:[%s11260_s4 + $0x58] sm:$0xff]  }
 0x244   :  { %3980 = vst.msk [vmem:[#allocation4 + $0x1b8] sm:$0xff] %vm3279_vm3, %v9787_v23  ;;  %v4459_v28 = vpack.c.bf16 %v4324_v22, %v4321_v24  ;;  %4267 = vst.msk [vmem:[#allocation4 + $0xd0] sm:$0xff] %vm3279_vm3, %v9799_v26  ;;  %vm3110_vm0 = vcmp.ge.f32.partialorder %v7524_v27, 0.0  ;;  %v3176_v25 = vmul.f32 0.05, %v7524_v27  ;;  %v2892_v29 = vpop.f32.mrb[29].mxu0  ;;  %4762 = vmatpush1.bf16.msra.mxu1 %v7702_v18 }
 0x245   :  { %3306 = vst.msk [vmem:[#allocation4 + $0x270] sm:$0xff] %vm3279_vm3, %v9799_v26  ;;  %3979 = vst.msk [vmem:[#allocation4 + $0x1a0] sm:$0xff] %vm3279_vm3, %v9799_v26  ;;  %vm3109_vm1 = vcmp.ge.f32.partialorder %v2892_v29, 0.0  ;;  %v3175_v33 = vmul.f32 0.05, %v2892_v29  ;;  %4763 = vmatprep.subr.bf16.mxu1 %v7769_v35 }
 0x246   :  { %7587 = vmatprep.mubr.msk.bf16.mxu0 %vm3279_vm3, %v4459_v28  ;;  %v4330_v34 = vld [vmem:[#allocation4 + $0xb8] sm:$0xff]  ;;  %v9812_v36 = vsel %vm3110_vm0, %v7524_v27, %v3176_v25 }
 0x247   :  { %3592 = vrot.lane.b32.xlu1 %v9631_v30, %s7768_s18  ;;  %3398 = vrot.lane.b32.xlu0 %v9639_v31, %s7767_s0  ;;  %v4327_v37 = vld [vmem:[#allocation4 + $0xa0] sm:$0xff]  ;;  %4270 = vst.msk [vmem:[#allocation4 + $0x118] sm:$0xff] %vm3279_vm3, %v9812_v36  ;;  %3309 = vst.msk [vmem:[#allocation4 + $0x2b8] sm:$0xff] %vm3279_vm3, %v9812_v36  ;;  %v9824_v40 = vsel %vm3109_vm1, %v2892_v29, %v3175_v33  ;;  %v7527_v41 = vpop.f32.mrb[30].mxu0  ;;  %v7703_v29 = vld [vmem:[%s11260_s4 + $0x60] sm:$0xff]  }
 0x248   :  { %3982 = vst.msk [vmem:[#allocation4 + $0x1e8] sm:$0xff] %vm3279_vm3, %v9812_v36  ;;  %v4462_v42 = vpack.c.bf16 %v4330_v34, %v4327_v37  ;;  %4269 = vst.msk [vmem:[#allocation4 + $0x100] sm:$0xff] %vm3279_vm3, %v9824_v40  ;;  %vm3112_vm2 = vcmp.ge.f32.partialorder %v7527_v41, 0.0  ;;  %v3178_v30 = vmul.f32 0.05, %v7527_v41  ;;  %v2902_v43 = vpop.f32.mrb[31].mxu0  ;;  %4764 = vmatpush1.bf16.msra.mxu1 %v7703_v29 }
 0x249   :  { %3308 = vst.msk [vmem:[#allocation4 + $0x2a0] sm:$0xff] %vm3279_vm3, %v9824_v40  ;;  %3981 = vst.msk [vmem:[#allocation4 + $0x1d0] sm:$0xff] %vm3279_vm3, %v9824_v40  ;;  %vm3111_vm4 = vcmp.ge.f32.partialorder %v2902_v43, 0.0  ;;  %v3177_v47 = vmul.f32 0.05, %v2902_v43  ;;  %4765 = vmatprep.subr.bf16.mxu1 %v7769_v35 }
 0x24a   :  { %7588 = vmatmul.mubr.msk.bf16.gmra.mrb[72].mxu0 %vm3279_vm3, %v4462_v42  ;;  %v4336_v48 = vld [vmem:[#allocation4 + $0xe8] sm:$0xff]  ;;  %v9837_v49 = vsel %vm3112_vm2, %v7527_v41, %v3178_v30 }
 0x24b   :  { %3777 = vrot.lane.b32.xlu0 %v9639_v31, %s7770_s21  ;;  %3404 = vrot.lane.b32.xlu1 %v9649_v38, %s7767_s0  ;;  %v4333_v50 = vld [vmem:[#allocation4 + $0xd0] sm:$0xff]  ;;  %4272 = vst.msk [vmem:[#allocation4 + $0x148] sm:$0xff] %vm3279_vm3, %v9837_v49  ;;  %3311 = vst.msk [vmem:[#allocation4 + $0x2e8] sm:$0xff] %vm3279_vm3, %v9837_v49  ;;  %v9849_v51 = vsel %vm3111_vm4, %v2902_v43, %v3177_v47  ;;  %v7530_v54 = vpop.f32.mrb[32].mxu0 }
 0x24c   :  { %3984 = vst.msk [vmem:[#allocation4 + $0x218] sm:$0xff] %vm3279_vm3, %v9837_v49  ;;  %v4465_v55 = vpack.c.bf16 %v4336_v48, %v4333_v50  ;;  %4271 = vst.msk [vmem:[#allocation4 + $0x130] sm:$0xff] %vm3279_vm3, %v9849_v51  ;;  %vm3114_vm5 = vcmp.ge.f32.partialorder %v7530_v54, 0.0  ;;  %v3180_v56 = vmul.f32 0.05, %v7530_v54  ;;  %v2912_v57 = vpop.f32.mrb[33].mxu0 }
 0x24d   :  { %3310 = vst.msk [vmem:[#allocation4 + $0x2d0] sm:$0xff] %vm3279_vm3, %v9849_v51  ;;  %3983 = vst.msk [vmem:[#allocation4 + $0x200] sm:$0xff] %vm3279_vm3, %v9849_v51  ;;  %vm3113_vm6 = vcmp.ge.f32.partialorder %v2912_v57, 0.0  ;;  %v3179_v61 = vmul.f32 0.05, %v2912_v57 }
 0x24e   :  { %7591 = vmatprep.mubr.msk.bf16.mxu0 %vm3279_vm3, %v4465_v55  ;;  %v4342_v62 = vld [vmem:[#allocation4 + $0x118] sm:$0xff]  ;;  %v9862_v63 = vsel %vm3114_vm5, %v7530_v54, %v3180_v56 }
 0x24f   :  { %3590 = vrot.lane.b32.xlu0 %v9639_v31, %s7768_s18  ;;  %3783 = vrot.lane.b32.xlu1 %v9649_v38, %s7770_s21  ;;  %v4339_v0 = vld [vmem:[#allocation4 + $0x100] sm:$0xff]  ;;  %4274 = vst.msk [vmem:[#allocation4 + $0x178] sm:$0xff] %vm3279_vm3, %v9862_v63  ;;  %3313 = vst.msk [vmem:[#allocation4 + $0x318] sm:$0xff] %vm3279_vm3, %v9862_v63  ;;  %v9874_v1 = vsel %vm3113_vm6, %v2912_v57, %v3179_v61  ;;  %v7533_v2 = vpop.f32.mrb[34].mxu0  ;;  %vm3520_vm6 = vcmask 523520  }
 0x250   :  { %3986 = vst.msk [vmem:[#allocation4 + $0x248] sm:$0xff] %vm3279_vm3, %v9862_v63  ;;  %v4468_v4 = vpack.c.bf16 %v4342_v62, %v4339_v0  ;;  %4273 = vst.msk [vmem:[#allocation4 + $0x160] sm:$0xff] %vm3279_vm3, %v9874_v1  ;;  %vm3116_vm7 = vcmp.ge.f32.partialorder %v7533_v2, 0.0  ;;  %v3182_v31 = vmul.f32 0.05, %v7533_v2  ;;  %v2922_v6 = vpop.f32.mrb[35].mxu0 }
 0x251   :  { %3312 = vst.msk [vmem:[#allocation4 + $0x300] sm:$0xff] %vm3279_vm3, %v9874_v1  ;;  %3985 = vst.msk [vmem:[#allocation4 + $0x230] sm:$0xff] %vm3279_vm3, %v9874_v1  ;;  %vm3115_vm8 = vcmp.ge.f32.partialorder %v2922_v6, 0.0  ;;  %v3181_v8 = vmul.f32 0.05, %v2922_v6  ;;  %v7705_v57 = vld [vmem:[%s11260_s4 + $0x70] sm:$0xff]  }
 0x252   :  { %7592 = vmatmul.mubr.msk.bf16.gmra.mrb[76].mxu0 %vm3279_vm3, %v4468_v4  ;;  %v4348_v9 = vld [vmem:[#allocation4 + $0x148] sm:$0xff]  ;;  %v9887_v10 = vsel %vm3116_vm7, %v7533_v2, %v3182_v31  ;;  %vm3714_vm7 = vcmask 785920  }
 0x253   :  { %3596 = vrot.lane.b32.xlu1 %v9649_v38, %s7768_s18  ;;  %3402 = vrot.lane.b32.xlu0 %v9659_v39, %s7767_s0  ;;  %v4345_v11 = vld [vmem:[#allocation4 + $0x130] sm:$0xff]  ;;  %4276 = vst.msk [vmem:[#allocation4 + $0x1a8] sm:$0xff] %vm3279_vm3, %v9887_v10  ;;  %3315 = vst.msk [vmem:[#allocation4 + $0x348] sm:$0xff] %vm3279_vm3, %v9887_v10  ;;  %v9899_v12 = vsel %vm3115_vm8, %v2922_v6, %v3181_v8  ;;  %v7536_v14 = vpop.f32.mrb[36].mxu0 }
 0x254   :  { %3988 = vst.msk [vmem:[#allocation4 + $0x278] sm:$0xff] %vm3279_vm3, %v9887_v10  ;;  %v4471_v16 = vpack.c.bf16 %v4348_v9, %v4345_v11  ;;  %4275 = vst.msk [vmem:[#allocation4 + $0x190] sm:$0xff] %vm3279_vm3, %v9899_v12  ;;  %vm3118_vm9 = vcmp.ge.f32.partialorder %v7536_v14, 0.0  ;;  %v3184_v38 = vmul.f32 0.05, %v7536_v14  ;;  %v2932_v17 = vpop.f32.mrb[37].mxu0 }
 0x255   :  { %3314 = vst.msk [vmem:[#allocation4 + $0x330] sm:$0xff] %vm3279_vm3, %v9899_v12  ;;  %3987 = vst.msk [vmem:[#allocation4 + $0x260] sm:$0xff] %vm3279_vm3, %v9899_v12  ;;  %vm3117_vm10 = vcmp.ge.f32.partialorder %v2932_v17, 0.0  ;;  %v3183_v19 = vmul.f32 0.05, %v2932_v17 }
 0x256   :  { %7595 = vmatprep.mubr.msk.bf16.mxu0 %vm3279_vm3, %v4471_v16  ;;  %v4354_v20 = vld [vmem:[#allocation4 + $0x178] sm:$0xff]  ;;  %v9912_v21 = vsel %vm3118_vm9, %v7536_v14, %v3184_v38  ;;  %vm3913_vm9 = vcmask 1048320  }
 0x257   :  { %3781 = vrot.lane.b32.xlu0 %v9659_v39, %s7770_s21  ;;  %3600 = vrot.lane.b32.xlu1 %v9669_v45, %s7768_s18  ;;  %v4351_v22 = vld [vmem:[#allocation4 + $0x160] sm:$0xff]  ;;  %4278 = vst.msk [vmem:[#allocation4 + $0x1d8] sm:$0xff] %vm3279_vm3, %v9912_v21  ;;  %3317 = vst.msk [vmem:[#allocation4 + $0x378] sm:$0xff] %vm3279_vm3, %v9912_v21  ;;  %v9924_v24 = vsel %vm3117_vm10, %v2932_v17, %v3183_v19  ;;  %v7539_v27 = vpop.f32.mrb[38].mxu0 }
 0x258   :  { %3990 = vst.msk [vmem:[#allocation4 + $0x2a8] sm:$0xff] %vm3279_vm3, %v9912_v21  ;;  %v4474_v28 = vpack.c.bf16 %v4354_v20, %v4351_v22  ;;  %4277 = vst.msk [vmem:[#allocation4 + $0x1c0] sm:$0xff] %vm3279_vm3, %v9924_v24  ;;  %vm3120_vm11 = vcmp.ge.f32.partialorder %v7539_v27, 0.0  ;;  %v3186_v25 = vmul.f32 0.05, %v7539_v27  ;;  %v2942_v32 = vpop.f32.mrb[39].mxu0 }
 0x259   :  { %3316 = vst.msk [vmem:[#allocation4 + $0x360] sm:$0xff] %vm3279_vm3, %v9924_v24  ;;  %3989 = vst.msk [vmem:[#allocation4 + $0x290] sm:$0xff] %vm3279_vm3, %v9924_v24  ;;  %v3185_v37 = vmul.f32 0.05, %v2942_v32  ;;  %vm3119_vm12 = vcmp.ge.f32.partialorder %v2942_v32, 0.0 }
 0x25a   :  { %7596 = vmatmul.mubr.msk.bf16.gmra.mrb[80].mxu0 %vm3279_vm3, %v4474_v28  ;;  %v4360_v33 = vld [vmem:[#allocation4 + $0x1a8] sm:$0xff]  ;;  %v9937_v34 = vsel %vm3120_vm11, %v7539_v27, %v3186_v25 }
 0x25b   :  { %3594 = vrot.lane.b32.xlu0 %v9659_v39, %s7768_s18  ;;  %3408 = vrot.lane.b32.xlu1 %v9669_v45, %s7767_s0  ;;  %v4357_v41 = vld [vmem:[#allocation4 + $0x190] sm:$0xff]  ;;  %4280 = vst.msk [vmem:[#allocation4 + $0x208] sm:$0xff] %vm3279_vm3, %v9937_v34  ;;  %3319 = vst.msk [vmem:[#allocation4 + $0x3a8] sm:$0xff] %vm3279_vm3, %v9937_v34  ;;  %v9949_v30 = vsel %vm3119_vm12, %v2942_v32, %v3185_v37  ;;  %v7704_v39 = vld [vmem:[%s11260_s4 + $0x68] sm:$0xff]   ;;  %v7542_v43 = vpop.f32.mrb[40].mxu0 }
 0x25c   :  { %3992 = vst.msk [vmem:[#allocation4 + $0x2d8] sm:$0xff] %vm3279_vm3, %v9937_v34  ;;  %v4477_v42 = vpack.c.bf16 %v4360_v33, %v4357_v41  ;;  %4279 = vst.msk [vmem:[#allocation4 + $0x1f0] sm:$0xff] %vm3279_vm3, %v9949_v30  ;;  %vm3122_vm13 = vcmp.ge.f32.partialorder %v7542_v43, 0.0  ;;  %v3188_v47 = vmul.f32 0.05, %v7542_v43  ;;  %v2952_v48 = vpop.f32.mrb[41].mxu0  ;;  %4766 = vmatpush1.bf16.msra.mxu1 %v7704_v39 }
 0x25d   :  { %3318 = vst.msk [vmem:[#allocation4 + $0x390] sm:$0xff] %vm3279_vm3, %v9949_v30  ;;  %3991 = vst.msk [vmem:[#allocation4 + $0x2c0] sm:$0xff] %vm3279_vm3, %v9949_v30  ;;  %vm3121_vm14 = vcmp.ge.f32.partialorder %v2952_v48, 0.0  ;;  %v3187_v54 = vmul.f32 0.05, %v2952_v48  ;;  %4767 = vmatprep.subr.bf16.mxu1 %v7769_v35 }
 0x25e   :  { %7599 = vmatprep.mubr.msk.bf16.mxu0 %vm3279_vm3, %v4477_v42  ;;  %v4366_v44 = vld [vmem:[#allocation4 + $0x1d8] sm:$0xff]  ;;  %v9966_v56 = vsel %vm3122_vm13, %v7542_v43, %v3188_v47 }
 0x25f   :  { %3787 = vrot.lane.b32.xlu0 %v9669_v45, %s7770_s21  ;;  %3785 = vrot.lane.b32.xlu1 %v9679_v46, %s7770_s21  ;;  %v4363_v50 = vld [vmem:[#allocation4 + $0x1c0] sm:$0xff]  ;;  %4282 = vst.msk [vmem:[#allocation4 + $0x238] sm:$0xff] %vm3279_vm3, %v9966_v56  ;;  %3321 = vst.msk [vmem:[#allocation4 + $0x3d8] sm:$0xff] %vm3279_vm3, %v9966_v56  ;;  %v9978_v45 = vsel %vm3121_vm14, %v2952_v48, %v3187_v54  ;;  %v7545_v2 = vpop.f32.mrb[42].mxu0 }
 0x260   :  { %v4480_v55 = vpack.c.bf16 %v4366_v44, %v4363_v50  ;;  %3994 = vst.msk [vmem:[#allocation4 + $0x308] sm:$0xff] %vm3279_vm3, %v9966_v56  ;;  %4281 = vst.msk [vmem:[#allocation4 + $0x220] sm:$0xff] %vm3279_vm3, %v9978_v45  ;;  %4768 = vmatpush1.bf16.msra.mxu1 %v7705_v57  ;;  %vm3124_vm15 = vcmp.ge.f32.partialorder %v7545_v2, 0.0  ;;  %v3190_v4 = vmul.f32 0.05, %v7545_v2  ;;  %v2962_v31 = vpop.f32.mrb[43].mxu0 }
 0x261   :  { %3320 = vst.msk [vmem:[#allocation4 + $0x3c0] sm:$0xff] %vm3279_vm3, %v9978_v45  ;;  %3993 = vst.msk [vmem:[#allocation4 + $0x2f0] sm:$0xff] %vm3279_vm3, %v9978_v45  ;;  %4769 = vmatprep.subr.bf16.mxu1 %v7769_v35  ;;  %vm3123_vm0 = vcmp.ge.f32.partialorder %v2962_v31, 0.0  ;;  %v3189_v9 = vmul.f32 0.05, %v2962_v31 }
 0x262   :  { %7600 = vmatmul.mubr.msk.bf16.gmra.mrb[84].mxu0 %vm3279_vm3, %v4480_v55  ;;  %v4372_v62 = vld [vmem:[#allocation4 + $0x208] sm:$0xff]  ;;  %v10000_v8 = vsel %vm3124_vm15, %v7545_v2, %v3190_v4 }
 0x263   :  { %3598 = vrot.lane.b32.xlu0 %v9679_v46, %s7768_s18  ;;  %3604 = vrot.lane.b32.xlu1 %v9689_v52, %s7768_s18  ;;  %v4369_v61 = vld [vmem:[#allocation4 + $0x1f0] sm:$0xff]  ;;  %4284 = vst.msk [vmem:[#allocation4 + $0x268] sm:$0xff] %vm3279_vm3, %v10000_v8  ;;  %3323 = vst.msk [vmem:[#allocation4 + $0x408] sm:$0xff] %vm3279_vm3, %v10000_v8 }
 0x264   :  { %v4483_v0 = vpack.c.bf16 %v4372_v62, %v4369_v61  ;;  %4770 = vmatpush1.bf16.msra.mxu1 %v7706_v58  ;;  %3996 = vst.msk [vmem:[#allocation4 + $0x338] sm:$0xff] %vm3279_vm3, %v10000_v8 }
 0x266   :  { %7603 = vmatprep.mubr.msk.bf16.mxu0 %vm3279_vm3, %v4483_v0  ;;  %v4378_v7 = vld [vmem:[#allocation4 + $0x238] sm:$0xff] }
 0x267   :  { %3406 = vrot.lane.b32.xlu0 %v9679_v46, %s7767_s0  ;;  %3412 = vrot.lane.b32.xlu1 %v9689_v52, %s7767_s0  ;;  %v4375_v6 = vld [vmem:[#allocation4 + $0x220] sm:$0xff]  ;;  %v10012_v46 = vsel %vm3123_vm0, %v2962_v31, %v3189_v9 }
 0x268   :  { %v4486_v11 = vpack.c.bf16 %v4378_v7, %v4375_v6  ;;  %4283 = vst.msk [vmem:[#allocation4 + $0x250] sm:$0xff] %vm3279_vm3, %v10012_v46  ;;  %3322 = vst.msk [vmem:[#allocation4 + $0x3f0] sm:$0xff] %vm3279_vm3, %v10012_v46 }
 0x269   :  { %3995 = vst.msk [vmem:[#allocation4 + $0x320] sm:$0xff] %vm3279_vm3, %v10012_v46 }
 0x26a   :  { %7604 = vmatmul.mubr.msk.bf16.gmra.mrb[88].mxu0 %vm3279_vm3, %v4486_v11  ;;  %v4384_v20 = vld [vmem:[#allocation4 + $0x268] sm:$0xff] }
 0x26b   :  { %3791 = vrot.lane.b32.xlu0 %v9689_v52, %s7770_s21  ;;  %3789 = vrot.lane.b32.xlu1 %v9701_v53, %s7770_s21  ;;  %v7548_v52 = vpop.f32.mrb[44].mxu0 }
 0x26c   :  { %vm3126_vm1 = vcmp.ge.f32.partialorder %v7548_v52, 0.0  ;;  %v3192_v14 = vmul.f32 0.05, %v7548_v52  ;;  %v2972_v16 = vpop.f32.mrb[45].mxu0 }
 0x26d   :  { %v3191_v38 = vmul.f32 0.05, %v2972_v16  ;;  %vm3125_vm2 = vcmp.ge.f32.partialorder %v2972_v16, 0.0  ;;  %v7551_v22 = vpop.f32.mrb[46].mxu0 }
 0x26e   :  { %v10029_v17 = vsel %vm3126_vm1, %v7548_v52, %v3192_v14  ;;  %vm3128_vm4 = vcmp.ge.f32.partialorder %v7551_v22, 0.0  ;;  %v3194_v27 = vmul.f32 0.05, %v7551_v22  ;;  %v2982_v28 = vpop.f32.mrb[47].mxu0 }
 0x26f   :  { %3602 = vrot.lane.b32.xlu0 %v9701_v53, %s7768_s18  ;;  %3608 = vrot.lane.b32.xlu1 %v9713_v59, %s7768_s18  ;;  %4286 = vst.msk [vmem:[#allocation4 + $0x298] sm:$0xff] %vm3279_vm3, %v10029_v17  ;;  %3325 = vst.msk [vmem:[#allocation4 + $0x438] sm:$0xff] %vm3279_vm3, %v10029_v17  ;;  %v10037_v18 = vsel %vm3125_vm2, %v2972_v16, %v3191_v38  ;;  %v4381_v19 = vld [vmem:[#allocation4 + $0x250] sm:$0xff]  ;;  %vm3127_vm5 = vcmp.ge.f32.partialorder %v2982_v28, 0.0  ;;  %v3193_v25 = vmul.f32 0.05, %v2982_v28 }
 0x270   :  { %3998 = vst.msk [vmem:[#allocation4 + $0x368] sm:$0xff] %vm3279_vm3, %v10029_v17  ;;  %4285 = vst.msk [vmem:[#allocation4 + $0x280] sm:$0xff] %vm3279_vm3, %v10037_v18 }
 0x271   :  { %3324 = vst.msk [vmem:[#allocation4 + $0x420] sm:$0xff] %vm3279_vm3, %v10037_v18  ;;  %3997 = vst.msk [vmem:[#allocation4 + $0x350] sm:$0xff] %vm3279_vm3, %v10037_v18  ;;  %v10062_v37 = vsel %vm3127_vm5, %v2982_v28, %v3193_v25 }
 0x272   :  { %4287 = vst.msk [vmem:[#allocation4 + $0x2b0] sm:$0xff] %vm3279_vm3, %v10062_v37  ;;  %3326 = vst.msk [vmem:[#allocation4 + $0x450] sm:$0xff] %vm3279_vm3, %v10062_v37 }
 0x273   :  { %3410 = vrot.lane.b32.xlu0 %v9701_v53, %s7767_s0  ;;  %3416 = vrot.lane.b32.xlu1 %v9713_v59, %s7767_s0  ;;  %v4489_v53 = vpack.c.bf16 %v4384_v20, %v4381_v19  ;;  %3999 = vst.msk [vmem:[#allocation4 + $0x380] sm:$0xff] %vm3279_vm3, %v10062_v37 }
 0x275   :  { %7607 = vmatprep.mubr.msk.bf16.mxu0 %vm3279_vm3, %v4489_v53 }
 0x276   :  { %v4390_v32 = vld [vmem:[#allocation4 + $0x298] sm:$0xff] }
 0x277   :  { %3795 = vrot.lane.b32.xlu0 %v9713_v59, %s7770_s21  ;;  %3793 = vrot.lane.b32.xlu1 %v9725_v60, %s7770_s21  ;;  %v4387_v29 = vld [vmem:[#allocation4 + $0x280] sm:$0xff]  ;;  %v10054_v59 = vsel %vm3128_vm4, %v7551_v22, %v3194_v27 }
 0x278   :  { %v4492_v33 = vpack.c.bf16 %v4390_v32, %v4387_v29  ;;  %4288 = vst.msk [vmem:[#allocation4 + $0x2c8] sm:$0xff] %vm3279_vm3, %v10054_v59  ;;  %3327 = vst.msk [vmem:[#allocation4 + $0x468] sm:$0xff] %vm3279_vm3, %v10054_v59 }
 0x279   :  { %4000 = vst.msk [vmem:[#allocation4 + $0x398] sm:$0xff] %vm3279_vm3, %v10054_v59  ;;  %v4393_v39 = vld [vmem:[#allocation4 + $0x2b0] sm:$0xff] }
 0x27a   :  { %7608 = vmatmul.mubr.msk.bf16.gmra.mrb[92].mxu0 %vm3279_vm3, %v4492_v33 }
 0x27b   :  { %3606 = vrot.lane.b32.xlu0 %v9725_v60, %s7768_s18  ;;  %3612 = vrot.lane.b32.xlu1 %v9737_v3, %s7768_s18 }
 0x27f   :  { %3414 = vrot.lane.b32.xlu0 %v9725_v60, %s7767_s0  ;;  %3420 = vrot.lane.b32.xlu1 %v9737_v3, %s7767_s0  ;;  %v4396_v43 = vld [vmem:[#allocation4 + $0x2c8] sm:$0xff] }
 0x280   :  { %v4495_v44 = vpack.c.bf16 %v4396_v43, %v4393_v39 }
 0x281   :  { %v3377_v41 = vpop.permute.xlu1 %3376 }
 0x282   :  { %3521 = vst.msk [vmem:[#allocation4] sm:$0xff] %vm3520_vm6, %v3377_v41  ;;  %7611 = vmatprep.mubr.msk.bf16.mxu0 %vm3279_vm3, %v4495_v44 }
 0x283   :  { %3799 = vrot.lane.b32.xlu0 %v9737_v3, %s7770_s21  ;;  %3797 = vrot.lane.b32.xlu1 %v9749_v5, %s7770_s21 }
 0x285   :  { %v3381_v60 = vpop.permute.xlu0 %3380  ;;  %v3573_v42 = vpop.permute.xlu1 %3572 }
 0x286   :  { %3523 = vst.msk [vmem:[#allocation4 + $0x30] sm:$0xff] %vm3520_vm6, %v3381_v60 }
 0x287   :  { %3610 = vrot.lane.b32.xlu0 %v9749_v5, %s7768_s18  ;;  %3803 = vrot.lane.b32.xlu1 %v9762_v13, %s7770_s21 }
 0x289   :  { %v3571_v47 = vpop.permute.xlu0 %3570  ;;  %v3379_v48 = vpop.permute.xlu1 %3378 }
 0x28a   :  { %3715 = vst.msk [vmem:[#allocation4] sm:$0xff] %vm3714_vm7, %v3571_v47 }
 0x28b   :  { %3522 = vst.msk [vmem:[#allocation4 + $0x18] sm:$0xff] %vm3520_vm6, %v3379_v48  ;;  %3418 = vrot.lane.b32.xlu0 %v9749_v5, %s7767_s0  ;;  %3424 = vrot.lane.b32.xlu1 %v9762_v13, %s7767_s0  ;;  %v7554_v5 = vpop.f32.mrb[48].mxu0 }
 0x28c   :  { %3716 = vst.msk [vmem:[#allocation4 + $0x18] sm:$0xff] %vm3714_vm7, %v3573_v42  ;;  %vm3130_vm8 = vcmp.ge.f32.partialorder %v7554_v5, 0.0  ;;  %v2992_v0 = vpop.f32.mrb[49].mxu0 }
 0x28d   :  { %v3385_v3 = vpop.permute.xlu0 %3384  ;;  %v3577_v50 = vpop.permute.xlu1 %3576  ;;  %vm3129_vm10 = vcmp.ge.f32.partialorder %v2992_v0, 0.0  ;;  %v3195_v2 = vmul.f32 0.05, %v2992_v0 }
 0x28e   :  { %3525 = vst.msk [vmem:[#allocation4 + $0x60] sm:$0xff] %vm3520_vm6, %v3385_v3 }
 0x28f   :  { %3616 = vrot.lane.b32.xlu0 %v9762_v13, %s7768_s18  ;;  %3801 = vrot.lane.b32.xlu1 %v9774_v15, %s7770_s21  ;;  %v3196_v13 = vmul.f32 0.05, %v7554_v5  ;;  %v10125_v6 = vsel %vm3129_vm10, %v2992_v0, %v3195_v2 }
 0x290   :  { %4289 = vst.msk [vmem:[#allocation4 + $0x2e0] sm:$0xff] %vm3279_vm3, %v10125_v6  ;;  %4001 = vst.msk [vmem:[#allocation4 + $0x3b0] sm:$0xff] %vm3279_vm3, %v10125_v6 }
 0x291   :  { %v3575_v54 = vpop.permute.xlu0 %3574  ;;  %v3383_v55 = vpop.permute.xlu1 %3382  ;;  %v10106_v61 = vsel %vm3130_vm8, %v7554_v5, %v3196_v13 }
 0x292   :  { %3717 = vst.msk [vmem:[#allocation4 + $0x30] sm:$0xff] %vm3714_vm7, %v3575_v54 }
 0x293   :  { %3524 = vst.msk [vmem:[#allocation4 + $0x48] sm:$0xff] %vm3520_vm6, %v3383_v55  ;;  %3422 = vrot.lane.b32.xlu0 %v9774_v15, %s7767_s0  ;;  %3614 = vrot.lane.b32.xlu1 %v9774_v15, %s7768_s18 }
 0x294   :  { %3718 = vst.msk [vmem:[#allocation4 + $0x48] sm:$0xff] %vm3714_vm7, %v3577_v50 }
 0x295   :  { %v3389_v57 = vpop.permute.xlu0 %3388  ;;  %v3581_v58 = vpop.permute.xlu1 %3580  ;;  %4290 = vst.msk [vmem:[#allocation4 + $0x2f8] sm:$0xff] %vm3279_vm3, %v10106_v61  ;;  %4002 = vst.msk [vmem:[#allocation4 + $0x3c8] sm:$0xff] %vm3279_vm3, %v10106_v61 }
 0x296   :  { %3527 = vst.msk [vmem:[#allocation4 + $0x90] sm:$0xff] %vm3520_vm6, %v3389_v57 }
 0x297   :  { %3807 = vrot.lane.b32.xlu0 %v9787_v23, %s7770_s21  ;;  %3620 = vrot.lane.b32.xlu1 %v9787_v23, %s7768_s18 }
 0x299   :  { %v3579_v15 = vpop.permute.xlu0 %3578  ;;  %v3387_v62 = vpop.permute.xlu1 %3386 }
 0x29a   :  { %3719 = vst.msk [vmem:[#allocation4 + $0x60] sm:$0xff] %vm3714_vm7, %v3579_v15 }
 0x29b   :  { %3526 = vst.msk [vmem:[#allocation4 + $0x78] sm:$0xff] %vm3520_vm6, %v3387_v62  ;;  %3428 = vrot.lane.b32.xlu1 %v9787_v23, %s7767_s0  ;;  %3805 = vrot.lane.b32.xlu0 %v9799_v26, %s7770_s21  ;;  %v7557_v23 = vpop.f32.mrb[50].mxu0 }
 0x29c   :  { %3720 = vst.msk [vmem:[#allocation4 + $0x78] sm:$0xff] %vm3714_vm7, %v3581_v58  ;;  %vm3132_vm11 = vcmp.ge.f32.partialorder %v7557_v23, 0.0  ;;  %v3198_v7 = vmul.f32 0.05, %v7557_v23 }
 0x29d   :  { %v3393_v4 = vpop.permute.xlu0 %3392  ;;  %v3772_v31 = vpop.permute.xlu1 %3771 }
 0x29e   :  { %3529 = vst.msk [vmem:[#allocation4 + $0xc0] sm:$0xff] %vm3520_vm6, %v3393_v4  ;;  %v10136_v52 = vsel %vm3132_vm11, %v7557_v23, %v3198_v7 }
 0x29f   :  { %3915 = vst.msk [vmem:[#allocation4 + $0x18] sm:$0xff] %vm3913_vm9, %v3772_v31  ;;  %3618 = vrot.lane.b32.xlu0 %v9799_v26, %s7768_s18  ;;  %3624 = vrot.lane.b32.xlu1 %v9812_v36, %s7768_s18 }
 0x2a0   :  { %4292 = vst.msk [vmem:[#allocation4 + $0x328] sm:$0xff] %vm3279_vm3, %v10136_v52  ;;  %4004 = vst.msk [vmem:[#allocation4 + $0x3f8] sm:$0xff] %vm3279_vm3, %v10136_v52 }
 0x2a1   :  { %v3585_v9 = vpop.permute.xlu1 %3584  ;;  %v3770_v11 = vpop.permute.xlu0 %3769 }
 0x2a2   :  { %3914 = vst.msk [vmem:[#allocation4] sm:$0xff] %vm3913_vm9, %v3770_v11 }
 0x2a3   :  { %3426 = vrot.lane.b32.xlu0 %v9799_v26, %s7767_s0  ;;  %3432 = vrot.lane.b32.xlu1 %v9812_v36, %s7767_s0  ;;  %v3002_v26 = vpop.f32.mrb[51].mxu0 }
 0x2a4   :  { %vm3131_vm12 = vcmp.ge.f32.partialorder %v3002_v26, 0.0  ;;  %v3197_v38 = vmul.f32 0.05, %v3002_v26 }
 0x2a5   :  { %v3391_v14 = vpop.permute.xlu1 %3390  ;;  %v3583_v16 = vpop.permute.xlu0 %3582 }
 0x2a6   :  { %3528 = vst.msk [vmem:[#allocation4 + $0xa8] sm:$0xff] %vm3520_vm6, %v3391_v14  ;;  %v10156_v53 = vsel %vm3131_vm12, %v3002_v26, %v3197_v38 }
 0x2a7   :  { %3721 = vst.msk [vmem:[#allocation4 + $0x90] sm:$0xff] %vm3714_vm7, %v3583_v16  ;;  %3722 = vst.msk [vmem:[#allocation4 + $0xa8] sm:$0xff] %vm3714_vm7, %v3585_v9  ;;  %3811 = vrot.lane.b32.xlu0 %v9812_v36, %s7770_s21  ;;  %3809 = vrot.lane.b32.xlu1 %v9824_v40, %s7770_s21  ;;  %v7560_v36 = vpop.f32.mrb[52].mxu0 }
 0x2a8   :  { %4291 = vst.msk [vmem:[#allocation4 + $0x310] sm:$0xff] %vm3279_vm3, %v10156_v53  ;;  %4003 = vst.msk [vmem:[#allocation4 + $0x3e0] sm:$0xff] %vm3279_vm3, %v10156_v53  ;;  %vm3134_vm13 = vcmp.ge.f32.partialorder %v7560_v36, 0.0  ;;  %v3200_v22 = vmul.f32 0.05, %v7560_v36 }
 0x2a9   :  { %v3776_v19 = vpop.permute.xlu1 %3775  ;;  %v3397_v20 = vpop.permute.xlu0 %3396 }
 0x2aa   :  { %3917 = vst.msk [vmem:[#allocation4 + $0x48] sm:$0xff] %vm3913_vm9, %v3776_v19  ;;  %v10167_v25 = vsel %vm3134_vm13, %v7560_v36, %v3200_v22 }
 0x2ab   :  { %3531 = vst.msk [vmem:[#allocation4 + $0xf0] sm:$0xff] %vm3520_vm6, %v3397_v20  ;;  %4040 = vst.msk [vmem:[#allocation4 + $0x20] sm:$0xff] %vm3520_vm6, %v3397_v20  ;;  %3622 = vrot.lane.b32.xlu0 %v9824_v40, %s7768_s18  ;;  %3628 = vrot.lane.b32.xlu1 %v9837_v49, %s7768_s18 }
 0x2ac   :  { %4294 = vst.msk [vmem:[#allocation4 + $0x358] sm:$0xff] %vm3279_vm3, %v10167_v25  ;;  %4006 = vst.msk [vmem:[#allocation4 + $0x428] sm:$0xff] %vm3279_vm3, %v10167_v25 }
 0x2ad   :  { %v3589_v27 = vpop.permute.xlu0 %3588  ;;  %v3587_v28 = vpop.permute.xlu1 %3586 }
 0x2ae   :  { %3723 = vst.msk [vmem:[#allocation4 + $0xc0] sm:$0xff] %vm3714_vm7, %v3587_v28 }
 0x2af   :  { %3430 = vrot.lane.b32.xlu0 %v9824_v40, %s7767_s0  ;;  %3436 = vrot.lane.b32.xlu1 %v9837_v49, %s7767_s0  ;;  %v3012_v40 = vpop.f32.mrb[53].mxu0 }
 0x2b0   :  { %vm3133_vm14 = vcmp.ge.f32.partialorder %v3012_v40, 0.0  ;;  %v3199_v33 = vmul.f32 0.05, %v3012_v40 }
 0x2b1   :  { %v3395_v29 = vpop.permute.xlu0 %3394  ;;  %v3401_v32 = vpop.permute.xlu1 %3400 }
 0x2b2   :  { %3530 = vst.msk [vmem:[#allocation4 + $0xd8] sm:$0xff] %vm3520_vm6, %v3395_v29  ;;  %4039 = vst.msk [vmem:[#allocation4 + $0x8] sm:$0xff] %vm3520_vm6, %v3395_v29  ;;  %v10188_v42 = vsel %vm3133_vm14, %v3012_v40, %v3199_v33 }
 0x2b3   :  { %3533 = vst.msk [vmem:[#allocation4 + $0x120] sm:$0xff] %vm3520_vm6, %v3401_v32  ;;  %4042 = vst.msk [vmem:[#allocation4 + $0x50] sm:$0xff] %vm3520_vm6, %v3401_v32  ;;  %3815 = vrot.lane.b32.xlu0 %v9837_v49, %s7770_s21  ;;  %3813 = vrot.lane.b32.xlu1 %v9849_v51, %s7770_s21  ;;  %v7563_v49 = vpop.f32.mrb[54].mxu0 }
 0x2b4   :  { %3724 = vst.msk [vmem:[#allocation4 + $0xd8] sm:$0xff] %vm3714_vm7, %v3589_v27  ;;  %vm3136_vm15 = vcmp.ge.f32.partialorder %v7563_v49, 0.0  ;;  %v3202_v39 = vmul.f32 0.05, %v7563_v49 }
 0x2b5   :  { %v3774_v41 = vpop.permute.xlu0 %3773  ;;  %v3780_v60 = vpop.permute.xlu1 %3779  ;;  %4293 = vst.msk [vmem:[#allocation4 + $0x340] sm:$0xff] %vm3279_vm3, %v10188_v42  ;;  %4005 = vst.msk [vmem:[#allocation4 + $0x410] sm:$0xff] %vm3279_vm3, %v10188_v42 }
 0x2b6   :  { %3916 = vst.msk [vmem:[#allocation4 + $0x30] sm:$0xff] %vm3913_vm9, %v3774_v41  ;;  %3919 = vst.msk [vmem:[#allocation4 + $0x78] sm:$0xff] %vm3913_vm9, %v3780_v60  ;;  %v10200_v47 = vsel %vm3136_vm15, %v7563_v49, %v3202_v39 }
 0x2b7   :  { %3626 = vrot.lane.b32.xlu0 %v9849_v51, %s7768_s18  ;;  %3632 = vrot.lane.b32.xlu1 %v9862_v63, %s7768_s18  ;;  %4296 = vst.msk [vmem:[#allocation4 + $0x388] sm:$0xff] %vm3279_vm3, %v10200_v47  ;;  %4008 = vst.msk [vmem:[#allocation4 + $0x458] sm:$0xff] %vm3279_vm3, %v10200_v47 }
 0x2b9   :  { %v3593_v43 = vpop.permute.xlu1 %3592  ;;  %v3399_v44 = vpop.permute.xlu0 %3398 }
 0x2ba   :  { %3532 = vst.msk [vmem:[#allocation4 + $0x108] sm:$0xff] %vm3520_vm6, %v3399_v44  ;;  %4041 = vst.msk [vmem:[#allocation4 + $0x38] sm:$0xff] %vm3520_vm6, %v3399_v44  ;;  %v4310_v44 = vld [vmem:[#allocation4 + $0x18] sm:$0xff] }
 0x2bb   :  { %3726 = vst.msk [vmem:[#allocation4 + $0x108] sm:$0xff] %vm3714_vm7, %v3593_v43  ;;  %3434 = vrot.lane.b32.xlu0 %v9849_v51, %s7767_s0  ;;  %3440 = vrot.lane.b32.xlu1 %v9862_v63, %s7767_s0  ;;  %v3022_v51 = vpop.f32.mrb[55].mxu0 }
 0x2bc   :  { %vm3135_vm0 = vcmp.ge.f32.partialorder %v3022_v51, 0.0  ;;  %v3201_v50 = vmul.f32 0.05, %v3022_v51  ;;  %v7566_v13 = vpop.f32.mrb[56].mxu0 }
 0x2bd   :  { %v3778_v48 = vpop.permute.xlu0 %3777  ;;  %v3405_v3 = vpop.permute.xlu1 %3404  ;;  %vm3138_vm1 = vcmp.ge.f32.partialorder %v7566_v13, 0.0 }
 0x2be   :  { %3918 = vst.msk [vmem:[#allocation4 + $0x60] sm:$0xff] %vm3913_vm9, %v3778_v48  ;;  %v10220_v5 = vsel %vm3135_vm0, %v3022_v51, %v3201_v50  ;;  %v3032_v57 = vpop.f32.mrb[57].mxu0 }
 0x2bf   :  { %3535 = vst.msk [vmem:[#allocation4 + $0x150] sm:$0xff] %vm3520_vm6, %v3405_v3  ;;  %4044 = vst.msk [vmem:[#allocation4 + $0x80] sm:$0xff] %vm3520_vm6, %v3405_v3  ;;  %3819 = vrot.lane.b32.xlu0 %v9862_v63, %s7770_s21  ;;  %3817 = vrot.lane.b32.xlu1 %v9874_v1, %s7770_s21  ;;  %v3204_v63 = vmul.f32 0.05, %v7566_v13  ;;  %vm3137_vm2 = vcmp.ge.f32.partialorder %v3032_v57, 0.0  ;;  %v10230_v15 = vpop.f32.mrb[58].mxu0 }
 0x2c0   :  { %4295 = vst.msk [vmem:[#allocation4 + $0x370] sm:$0xff] %vm3279_vm3, %v10220_v5  ;;  %4007 = vst.msk [vmem:[#allocation4 + $0x440] sm:$0xff] %vm3279_vm3, %v10220_v5  ;;  %v3203_v58 = vmul.f32 0.05, %v3032_v57  ;;  %v10236_v4 = vpop.f32.mrb[59].mxu0  ;;  %vm3140_vm5 = vcmp.ge.f32.partialorder %v10230_v15, 0.0 }
 0x2c1   :  { %v3591_v54 = vpop.permute.xlu0 %3590  ;;  %v3784_v55 = vpop.permute.xlu1 %3783  ;;  %v10238_v31 = vsel %vm3138_vm1, %v7566_v13, %v3204_v63  ;;  %v3206_v48 = vmul.f32 0.05, %v10230_v15  ;;  %vm3139_vm8 = vcmp.ge.f32.partialorder %v10236_v4, 0.0 }
 0x2c2   :  { %3725 = vst.msk [vmem:[#allocation4 + $0xf0] sm:$0xff] %vm3714_vm7, %v3591_v54  ;;  %v10234_v2 = vsel %vm3137_vm2, %v3032_v57, %v3203_v58  ;;  %v10249_v23 = vpop.f32.mrb[60].mxu0  ;;  %v3205_v54 = vmul.f32 0.05, %v10236_v4  ;;  %v4313_v58 = vld [vmem:[#allocation4 + $0x30] sm:$0xff] }
 0x2c3   :  { %3921 = vst.msk [vmem:[#allocation4 + $0xa8] sm:$0xff] %vm3913_vm9, %v3784_v55  ;;  %3630 = vrot.lane.b32.xlu0 %v9874_v1, %s7768_s18  ;;  %3636 = vrot.lane.b32.xlu1 %v9887_v10, %s7768_s18  ;;  %v10253_v7 = vpop.f32.mrb[61].mxu0  ;;  %v10329_v55 = vsel %vm3140_vm5, %v10230_v15, %v3206_v48  ;;  %vm3142_vm10 = vcmp.ge.f32.partialorder %v10249_v23, 0.0 }
 0x2c4   :  { %4297 = vst.msk [vmem:[#allocation4 + $0x3a0] sm:$0xff] %vm3279_vm3, %v10234_v2  ;;  %4009 = vst.msk [vmem:[#allocation4 + $0x470] sm:$0xff] %vm3279_vm3, %v10234_v2  ;;  %v10342_v57 = vsel %vm3139_vm8, %v10236_v4, %v3205_v54  ;;  %vm3141_vm11 = vcmp.ge.f32.partialorder %v10253_v7, 0.0 }
 0x2c5   :  { %v3597_v62 = vpop.permute.xlu1 %3596  ;;  %v3403_v0 = vpop.permute.xlu0 %3402  ;;  %4298 = vst.msk [vmem:[#allocation4 + $0x3b8] sm:$0xff] %vm3279_vm3, %v10238_v31  ;;  %4300 = vst.msk [vmem:[#allocation4 + $0x3e8] sm:$0xff] %vm3279_vm3, %v10329_v55 }
 0x2c6   :  { %3534 = vst.msk [vmem:[#allocation4 + $0x138] sm:$0xff] %vm3520_vm6, %v3403_v0  ;;  %4043 = vst.msk [vmem:[#allocation4 + $0x68] sm:$0xff] %vm3520_vm6, %v3403_v0 }
 0x2c7   :  { %3728 = vst.msk [vmem:[#allocation4 + $0x138] sm:$0xff] %vm3714_vm7, %v3597_v62  ;;  %3438 = vrot.lane.b32.xlu0 %v9874_v1, %s7767_s0  ;;  %3444 = vrot.lane.b32.xlu1 %v9887_v10, %s7767_s0  ;;  %v10257_v1 = vpop.f32.mrb[62].mxu0 }
 0x2c8   :  { %v10263_v14 = vpop.f32.mrb[63].mxu0  ;;  %4299 = vst.msk [vmem:[#allocation4 + $0x3d0] sm:$0xff] %vm3279_vm3, %v10342_v57  ;;  %vm3144_vm13 = vcmp.ge.f32.partialorder %v10257_v1, 0.0 }
 0x2c9   :  { %v3782_v9 = vpop.permute.xlu0 %3781  ;;  %v3601_v11 = vpop.permute.xlu1 %3600  ;;  %vm3143_vm12 = vcmp.ge.f32.partialorder %v10263_v14, 0.0 }
 0x2ca   :  { %3920 = vst.msk [vmem:[#allocation4 + $0x90] sm:$0xff] %vm3913_vm9, %v3782_v9  ;;  %v7578_v16 = vpop.f32.mrb[64].mxu0 }
 0x2cb   :  { %4136 = vst.msk [vmem:[#allocation4 + $0x20] sm:$0xff] %vm3714_vm7, %v3601_v11  ;;  %3823 = vrot.lane.b32.xlu0 %v9887_v10, %s7770_s21  ;;  %3821 = vrot.lane.b32.xlu1 %v9899_v12, %s7770_s21  ;;  %vm3146_vm4 = vcmp.ge.f32.partialorder %v7578_v16, 0.0  ;;  %v3212_v19 = vmul.f32 0.05, %v7578_v16  ;;  %v10268_v20 = vpop.f32.mrb[65].mxu0 }
 0x2cc   :  { %vm3145_vm14 = vcmp.ge.f32.partialorder %v10268_v20, 0.0 }
 0x2cd   :  { %v3595_v26 = vpop.permute.xlu0 %3594  ;;  %v3409_v38 = vpop.permute.xlu1 %3408  ;;  %v3278_v10 = vsel %vm3146_vm4, %v7578_v16, %v3212_v19  ;;  %v4399_v19 = vld [vmem:[#allocation4 + $0x2e0] sm:$0xff] }
 0x2ce   :  { %3727 = vst.msk [vmem:[#allocation4 + $0x120] sm:$0xff] %vm3714_vm7, %v3595_v26 }
 0x2cf   :  { %3537 = vst.msk [vmem:[#allocation4 + $0x180] sm:$0xff] %vm3520_vm6, %v3409_v38  ;;  %4046 = vst.msk [vmem:[#allocation4 + $0xb0] sm:$0xff] %vm3520_vm6, %v3409_v38  ;;  %3634 = vrot.lane.b32.xlu0 %v9899_v12, %s7768_s18  ;;  %3640 = vrot.lane.b32.xlu1 %v9912_v21, %s7768_s18 }
 0x2d0   :  { %4306 = vst.msk [vmem:[#allocation4 + $0x478] sm:$0xff] %vm3279_vm3, %v3278_v10  ;;  %v4402_v10 = vld [vmem:[#allocation4 + $0x2f8] sm:$0xff] }
 0x2d1   :  { %v3788_v36 = vpop.permute.xlu0 %3787  ;;  %v3786_v22 = vpop.permute.xlu1 %3785 }
 0x2d2   :  { %3923 = vst.msk [vmem:[#allocation4 + $0xd8] sm:$0xff] %vm3913_vm9, %v3788_v36  ;;  %3922 = vst.msk [vmem:[#allocation4 + $0xc0] sm:$0xff] %vm3913_vm9, %v3786_v22 }
 0x2d3   :  { %3442 = vrot.lane.b32.xlu0 %v9899_v12, %s7767_s0  ;;  %3448 = vrot.lane.b32.xlu1 %v9912_v21, %s7767_s0 }
 0x2d5   :  { %v3599_v27 = vpop.permute.xlu0 %3598  ;;  %v3605_v28 = vpop.permute.xlu1 %3604 }
 0x2d6   :  { %3729 = vst.msk [vmem:[#allocation4 + $0x150] sm:$0xff] %vm3714_vm7, %v3599_v27  ;;  %4135 = vst.msk [vmem:[#allocation4 + $0x8] sm:$0xff] %vm3714_vm7, %v3599_v27  ;;  %v4319_v27 = vld [vmem:[#allocation4 + $0x60] sm:$0xff] }
 0x2d7   :  { %4138 = vst.msk [vmem:[#allocation4 + $0x50] sm:$0xff] %vm3714_vm7, %v3605_v28  ;;  %3827 = vrot.lane.b32.xlu0 %v9912_v21, %s7770_s21  ;;  %3825 = vrot.lane.b32.xlu1 %v9924_v24, %s7770_s21 }
 0x2d8   :  { %4211 = vst.msk [vmem:[#allocation4 + $0x8] sm:$0xff] %vm3913_vm9, %v3788_v36 }
 0x2d9   :  { %v3407_v12 = vpop.permute.xlu0 %3406  ;;  %v3413_v29 = vpop.permute.xlu1 %3412 }
 0x2da   :  { %3536 = vst.msk [vmem:[#allocation4 + $0x168] sm:$0xff] %vm3520_vm6, %v3407_v12  ;;  %4045 = vst.msk [vmem:[#allocation4 + $0x98] sm:$0xff] %vm3520_vm6, %v3407_v12 }
 0x2db   :  { %3539 = vst.msk [vmem:[#allocation4 + $0x1b0] sm:$0xff] %vm3520_vm6, %v3413_v29  ;;  %4048 = vst.msk [vmem:[#allocation4 + $0xe0] sm:$0xff] %vm3520_vm6, %v3413_v29  ;;  %3638 = vrot.lane.b32.xlu0 %v9924_v24, %s7768_s18  ;;  %3644 = vrot.lane.b32.xlu1 %v9937_v34, %s7768_s18 }
 0x2dc   :  { %3730 = vst.msk [vmem:[#allocation4 + $0x168] sm:$0xff] %vm3714_vm7, %v3601_v11  ;;  %v4316_v11 = vld [vmem:[#allocation4 + $0x48] sm:$0xff] }
 0x2dd   :  { %v3792_v21 = vpop.permute.xlu0 %3791  ;;  %v3790_v32 = vpop.permute.xlu1 %3789  ;;  %v4454_v16 = vpack.c.bf16 %v4316_v11, %v4313_v58 }
 0x2de   :  { %3925 = vst.msk [vmem:[#allocation4 + $0x108] sm:$0xff] %vm3913_vm9, %v3792_v21  ;;  %3924 = vst.msk [vmem:[#allocation4 + $0xf0] sm:$0xff] %vm3913_vm9, %v3790_v32 }
 0x2df   :  { %4212 = vst.msk [vmem:[#allocation4 + $0x20] sm:$0xff] %vm3913_vm9, %v3790_v32  ;;  %3446 = vrot.lane.b32.xlu0 %v9924_v24, %s7767_s0  ;;  %3829 = vrot.lane.b32.xlu1 %v9949_v30, %s7770_s21  ;;  %v4307_v24 = vld [vmem:[#allocation4] sm:$0xff]  ;;  %v4308_v49 = vld [vmem:[#allocation4 + $0x8] sm:$0xff] }
 0x2e0   :  { %v4451_v3 = vpack.c.bf16 %v4310_v44, %v4307_v24 }
 0x2e1   :  { %v3603_v40 = vpop.permute.xlu0 %3602  ;;  %v3609_v33 = vpop.permute.xlu1 %3608 }
 0x2e2   :  { %3731 = vst.msk [vmem:[#allocation4 + $0x180] sm:$0xff] %vm3714_vm7, %v3603_v40  ;;  %4137 = vst.msk [vmem:[#allocation4 + $0x38] sm:$0xff] %vm3714_vm7, %v3603_v40  ;;  %v4322_v40 = vld [vmem:[#allocation4 + $0x78] sm:$0xff] }
 0x2e3   :  { %4140 = vst.msk [vmem:[#allocation4 + $0x80] sm:$0xff] %vm3714_vm7, %v3609_v33  ;;  %3831 = vrot.lane.b32.xlu0 %v9937_v34, %s7770_s21  ;;  %3648 = vrot.lane.b32.xlu1 %v9966_v56, %s7768_s18 }
 0x2e4   :  { %4213 = vst.msk [vmem:[#allocation4 + $0x38] sm:$0xff] %vm3913_vm9, %v3792_v21 }
 0x2e5   :  { %v3411_v41 = vpop.permute.xlu0 %3410  ;;  %v3417_v60 = vpop.permute.xlu1 %3416 }
 0x2e6   :  { %v4311_v39 = vld [vmem:[#allocation4 + $0x20] sm:$0xff]  ;;  %3538 = vst.msk [vmem:[#allocation4 + $0x198] sm:$0xff] %vm3520_vm6, %v3411_v41  ;;  %4047 = vst.msk [vmem:[#allocation4 + $0xc8] sm:$0xff] %vm3520_vm6, %v3411_v41 }
 0x2e7   :  { %3541 = vst.msk [vmem:[#allocation4 + $0x1e0] sm:$0xff] %vm3520_vm6, %v3417_v60  ;;  %4050 = vst.msk [vmem:[#allocation4 + $0x110] sm:$0xff] %vm3520_vm6, %v3417_v60  ;;  %v4452_v43 = vpack.c.bf16 %v4311_v39, %v4308_v49  ;;  %3642 = vrot.lane.b32.xlu0 %v9949_v30, %s7768_s18  ;;  %3833 = vrot.lane.b32.xlu1 %v9978_v45, %s7770_s21 }
 0x2e8   :  { %3732 = vst.msk [vmem:[#allocation4 + $0x198] sm:$0xff] %vm3714_vm7, %v3605_v28 }
 0x2e9   :  { %4771 = vmatprep.mubr.bf16.mxu1 %v4452_v43  ;;  %v3796_v51 = vpop.permute.xlu0 %3795  ;;  %v3794_v50 = vpop.permute.xlu1 %3793 }
 0x2ea   :  { %4772 = vmatmul.mubr.bf16.vlgmr.msra.gmra.mrb[0].mxu1 %v4451_v3  ;;  %3927 = vst.msk [vmem:[#allocation4 + $0x138] sm:$0xff] %vm3913_vm9, %v3796_v51  ;;  %3926 = vst.msk [vmem:[#allocation4 + $0x120] sm:$0xff] %vm3913_vm9, %v3794_v50  ;;  %v4328_v3 = vld [vmem:[#allocation4 + $0xa8] sm:$0xff] }
 0x2eb   :  { %4214 = vst.msk [vmem:[#allocation4 + $0x50] sm:$0xff] %vm3913_vm9, %v3794_v50  ;;  %3835 = vrot.lane.b32.xlu0 %v9966_v56, %s7770_s21  ;;  %3652 = vrot.lane.b32.xlu1 %v10000_v8, %s7768_s18  ;;  %v4314_v0 = vld [vmem:[#allocation4 + $0x38] sm:$0xff] }
 0x2ed   :  { %v3607_v13 = vpop.permute.xlu0 %3606  ;;  %v3613_v63 = vpop.permute.xlu1 %3612 }
 0x2ee   :  { %3733 = vst.msk [vmem:[#allocation4 + $0x1b0] sm:$0xff] %vm3714_vm7, %v3607_v13  ;;  %4139 = vst.msk [vmem:[#allocation4 + $0x68] sm:$0xff] %vm3714_vm7, %v3607_v13  ;;  %v4334_v13 = vld [vmem:[#allocation4 + $0xd8] sm:$0xff] }
 0x2ef   :  { %4142 = vst.msk [vmem:[#allocation4 + $0xb0] sm:$0xff] %vm3714_vm7, %v3613_v63  ;;  %3646 = vrot.lane.b32.xlu0 %v9978_v45, %s7768_s18  ;;  %3837 = vrot.lane.b32.xlu1 %v10012_v46, %s7770_s21 }
 0x2f0   :  { %4215 = vst.msk [vmem:[#allocation4 + $0x68] sm:$0xff] %vm3913_vm9, %v3796_v51 }
 0x2f1   :  { %v3415_v15 = vpop.permute.xlu0 %3414  ;;  %v3421_v62 = vpop.permute.xlu1 %3420 }
 0x2f2   :  { %v4317_v9 = vld [vmem:[#allocation4 + $0x50] sm:$0xff]  ;;  %3540 = vst.msk [vmem:[#allocation4 + $0x1c8] sm:$0xff] %vm3520_vm6, %v3415_v15  ;;  %4049 = vst.msk [vmem:[#allocation4 + $0xf8] sm:$0xff] %vm3520_vm6, %v3415_v15 }
 0x2f3   :  { %3543 = vst.msk [vmem:[#allocation4 + $0x210] sm:$0xff] %vm3520_vm6, %v3421_v62  ;;  %4052 = vst.msk [vmem:[#allocation4 + $0x140] sm:$0xff] %vm3520_vm6, %v3421_v62  ;;  %v4455_v4 = vpack.c.bf16 %v4317_v9, %v4314_v0  ;;  %3839 = vrot.lane.b32.xlu0 %v10000_v8, %s7770_s21  ;;  %3452 = vrot.lane.b32.xlu1 %v9937_v34, %s7767_s0  ;;  %v4498_v34 = vpack.c.bf16 %v4402_v10, %v4399_v19  ;;  %v4337_v10 = vld [vmem:[#allocation4 + $0xf0] sm:$0xff] }
 0x2f4   :  { %3734 = vst.msk [vmem:[#allocation4 + $0x1c8] sm:$0xff] %vm3714_vm7, %v3609_v33 }
 0x2f5   :  { %4779 = vmatprep.mubr.bf16.mxu1 %v4455_v4  ;;  %v3800_v26 = vpop.permute.xlu0 %3799  ;;  %v3798_v38 = vpop.permute.xlu1 %3797  ;;  %7612 = vmatmul.mubr.msk.bf16.gmra.mrb[96].mxu0 %vm3279_vm3, %v4498_v34  ;;  %v4340_v34 = vld [vmem:[#allocation4 + $0x108] sm:$0xff] }
 0x2f6   :  { %4780 = vmatmul.mubr.bf16.gmra.mrb[4].mxu1 %v4454_v16  ;;  %3929 = vst.msk [vmem:[#allocation4 + $0x168] sm:$0xff] %vm3913_vm9, %v3800_v26  ;;  %3928 = vst.msk [vmem:[#allocation4 + $0x150] sm:$0xff] %vm3913_vm9, %v3798_v38 }
 0x2f7   :  { %4216 = vst.msk [vmem:[#allocation4 + $0x80] sm:$0xff] %vm3913_vm9, %v3798_v38  ;;  %3650 = vrot.lane.b32.xlu0 %v10012_v46, %s7768_s18  ;;  %3841 = vrot.lane.b32.xlu1 %v10037_v18, %s7770_s21  ;;  %v4320_v29 = vld [vmem:[#allocation4 + $0x68] sm:$0xff] }
 0x2f9   :  { %v3611_v36 = vpop.permute.xlu0 %3610  ;;  %v3804_v22 = vpop.permute.xlu1 %3803 }
 0x2fa   :  { %3735 = vst.msk [vmem:[#allocation4 + $0x1e0] sm:$0xff] %vm3714_vm7, %v3611_v36  ;;  %4141 = vst.msk [vmem:[#allocation4 + $0x98] sm:$0xff] %vm3714_vm7, %v3611_v36 }
 0x2fb   :  { %3931 = vst.msk [vmem:[#allocation4 + $0x198] sm:$0xff] %vm3913_vm9, %v3804_v22  ;;  %4217 = vst.msk [vmem:[#allocation4 + $0x98] sm:$0xff] %vm3913_vm9, %v3800_v26  ;;  %3450 = vrot.lane.b32.xlu0 %v9949_v30, %s7767_s0  ;;  %3656 = vrot.lane.b32.xlu1 %v10029_v17, %s7768_s18  ;;  %v4457_v30 = vpack.c.bf16 %v4322_v40, %v4319_v27 }
 0x2fd   :  { %v3419_v28 = vpop.permute.xlu0 %3418  ;;  %v3425_v12 = vpop.permute.xlu1 %3424 }
 0x2fe   :  { %v4323_v21 = vld [vmem:[#allocation4 + $0x80] sm:$0xff]  ;;  %3542 = vst.msk [vmem:[#allocation4 + $0x1f8] sm:$0xff] %vm3520_vm6, %v3419_v28  ;;  %4051 = vst.msk [vmem:[#allocation4 + $0x128] sm:$0xff] %vm3520_vm6, %v3419_v28 }
 0x2ff   :  { %3545 = vst.msk [vmem:[#allocation4 + $0x240] sm:$0xff] %vm3520_vm6, %v3425_v12  ;;  %4054 = vst.msk [vmem:[#allocation4 + $0x170] sm:$0xff] %vm3520_vm6, %v3425_v12  ;;  %v4458_v32 = vpack.c.bf16 %v4323_v21, %v4320_v29  ;;  %3654 = vrot.lane.b32.xlu0 %v10037_v18, %s7768_s18  ;;  %3845 = vrot.lane.b32.xlu1 %v10062_v37, %s7770_s21  ;;  %v4466_v21 = vpack.c.bf16 %v4340_v34, %v4337_v10 }
 0x300   :  { %3736 = vst.msk [vmem:[#allocation4 + $0x1f8] sm:$0xff] %vm3714_vm7, %v3613_v63 }
 0x301   :  { %4787 = vmatprep.mubr.bf16.mxu1 %v4458_v32  ;;  %v3617_v33 = vpop.permute.xlu0 %3616  ;;  %v3802_v24 = vpop.permute.xlu1 %3801 }
 0x302   :  { %4788 = vmatmul.mubr.bf16.gmra.mrb[8].mxu1 %v4457_v30  ;;  %4144 = vst.msk [vmem:[#allocation4 + $0xe0] sm:$0xff] %vm3714_vm7, %v3617_v33  ;;  %v4326_v43 = vld [vmem:[#allocation4 + $0x98] sm:$0xff] }
 0x303   :  { %3930 = vst.msk [vmem:[#allocation4 + $0x180] sm:$0xff] %vm3913_vm9, %v3802_v24  ;;  %4218 = vst.msk [vmem:[#allocation4 + $0xb0] sm:$0xff] %vm3913_vm9, %v3802_v24  ;;  %3843 = vrot.lane.b32.xlu0 %v10029_v17, %s7770_s21  ;;  %3456 = vrot.lane.b32.xlu1 %v9966_v56, %s7767_s0  ;;  %v4325_v56 = vld [vmem:[#allocation4 + $0x90] sm:$0xff] }
 0x305   :  { %v3423_v41 = vpop.permute.xlu0 %3422  ;;  %v3615_v60 = vpop.permute.xlu1 %3614 }
 0x306   :  { %3544 = vst.msk [vmem:[#allocation4 + $0x228] sm:$0xff] %vm3520_vm6, %v3423_v41  ;;  %4053 = vst.msk [vmem:[#allocation4 + $0x158] sm:$0xff] %vm3520_vm6, %v3423_v41 }
 0x307   :  { %3737 = vst.msk [vmem:[#allocation4 + $0x210] sm:$0xff] %vm3714_vm7, %v3615_v60  ;;  %4143 = vst.msk [vmem:[#allocation4 + $0xc8] sm:$0xff] %vm3714_vm7, %v3615_v60  ;;  %3454 = vrot.lane.b32.xlu0 %v9978_v45, %s7767_s0  ;;  %3660 = vrot.lane.b32.xlu1 %v10054_v59, %s7768_s18  ;;  %v4460_v45 = vpack.c.bf16 %v4328_v3, %v4325_v56 }
 0x308   :  { %3738 = vst.msk [vmem:[#allocation4 + $0x228] sm:$0xff] %vm3714_vm7, %v3617_v33 }
 0x309   :  { %4219 = vst.msk [vmem:[#allocation4 + $0xc8] sm:$0xff] %vm3913_vm9, %v3804_v22  ;;  %v3808_v49 = vpop.permute.xlu0 %3807  ;;  %v3621_v39 = vpop.permute.xlu1 %3620 }
 0x30a   :  { %v4329_v44 = vld [vmem:[#allocation4 + $0xb0] sm:$0xff]  ;;  %3933 = vst.msk [vmem:[#allocation4 + $0x1c8] sm:$0xff] %vm3913_vm9, %v3808_v49 }
 0x30b   :  { %4146 = vst.msk [vmem:[#allocation4 + $0x110] sm:$0xff] %vm3714_vm7, %v3621_v39  ;;  %v4461_v48 = vpack.c.bf16 %v4329_v44, %v4326_v43  ;;  %3847 = vrot.lane.b32.xlu0 %v10054_v59, %s7770_s21  ;;  %3460 = vrot.lane.b32.xlu1 %v10000_v8, %s7767_s0 }
 0x30d   :  { %4795 = vmatprep.mubr.bf16.mxu1 %v4461_v48  ;;  %v3429_v51 = vpop.permute.xlu1 %3428  ;;  %v3806_v50 = vpop.permute.xlu0 %3805 }
 0x30e   :  { %4796 = vmatmul.mubr.bf16.gmra.mrb[12].mxu1 %v4460_v45  ;;  %3547 = vst.msk [vmem:[#allocation4 + $0x270] sm:$0xff] %vm3520_vm6, %v3429_v51  ;;  %4056 = vst.msk [vmem:[#allocation4 + $0x1a0] sm:$0xff] %vm3520_vm6, %v3429_v51 }
 0x30f   :  { %3932 = vst.msk [vmem:[#allocation4 + $0x1b0] sm:$0xff] %vm3913_vm9, %v3806_v50  ;;  %4220 = vst.msk [vmem:[#allocation4 + $0xe0] sm:$0xff] %vm3913_vm9, %v3806_v50  ;;  %3458 = vrot.lane.b32.xlu0 %v10012_v46, %s7767_s0  ;;  %3464 = vrot.lane.b32.xlu1 %v10029_v17, %s7767_s0  ;;  %v4331_v46 = vld [vmem:[#allocation4 + $0xc0] sm:$0xff]  ;;  %v3207_v50 = vmul.f32 0.05, %v10253_v7 }
 0x310   :  { %v4332_v58 = vld [vmem:[#allocation4 + $0xc8] sm:$0xff] }
 0x311   :  { %v3619_v8 = vpop.permute.xlu0 %3618  ;;  %v3625_v54 = vpop.permute.xlu1 %3624 }
 0x312   :  { %3739 = vst.msk [vmem:[#allocation4 + $0x240] sm:$0xff] %vm3714_vm7, %v3619_v8  ;;  %4145 = vst.msk [vmem:[#allocation4 + $0xf8] sm:$0xff] %vm3714_vm7, %v3619_v8 }
 0x313   :  { %4148 = vst.msk [vmem:[#allocation4 + $0x140] sm:$0xff] %vm3714_vm7, %v3625_v54  ;;  %3462 = vrot.lane.b32.xlu0 %v10037_v18, %s7767_s0  ;;  %3468 = vrot.lane.b32.xlu1 %v10054_v59, %s7767_s0  ;;  %v4463_v18 = vpack.c.bf16 %v4334_v13, %v4331_v46 }
 0x314   :  { %4221 = vst.msk [vmem:[#allocation4 + $0xf8] sm:$0xff] %vm3913_vm9, %v3808_v49  ;;  %v4343_v49 = vld [vmem:[#allocation4 + $0x120] sm:$0xff] }
 0x315   :  { %v3427_v63 = vpop.permute.xlu0 %3426  ;;  %v3433_v17 = vpop.permute.xlu1 %3432 }
 0x316   :  { %v4335_v15 = vld [vmem:[#allocation4 + $0xe0] sm:$0xff]  ;;  %3546 = vst.msk [vmem:[#allocation4 + $0x258] sm:$0xff] %vm3520_vm6, %v3427_v63  ;;  %4055 = vst.msk [vmem:[#allocation4 + $0x188] sm:$0xff] %vm3520_vm6, %v3427_v63  ;;  %v10428_v0 = vpop.f32.mrb[68].mxu0 }
 0x317   :  { %3549 = vst.msk [vmem:[#allocation4 + $0x2a0] sm:$0xff] %vm3520_vm6, %v3433_v17  ;;  %4058 = vst.msk [vmem:[#allocation4 + $0x1d0] sm:$0xff] %vm3520_vm6, %v3433_v17  ;;  %v4464_v62 = vpack.c.bf16 %v4335_v15, %v4332_v58  ;;  %3658 = vrot.lane.b32.xlu0 %v10062_v37, %s7768_s18  ;;  %3664 = vrot.lane.b32.xlu1 %v10106_v61, %s7768_s18  ;;  %v10435_v59 = vpop.f32.mrb[69].mxu0 }
 0x318   :  { %3740 = vst.msk [vmem:[#allocation4 + $0x258] sm:$0xff] %vm3714_vm7, %v3621_v39  ;;  %v10437_v9 = vpop.f32.mrb[70].mxu0  ;;  %v4346_v39 = vld [vmem:[#allocation4 + $0x138] sm:$0xff] }
 0x319   :  { %4803 = vmatprep.mubr.bf16.mxu1 %v4464_v62  ;;  %v3812_v4 = vpop.permute.xlu0 %3811  ;;  %v3810_v11 = vpop.permute.xlu1 %3809  ;;  %v4469_v51 = vpack.c.bf16 %v4346_v39, %v4343_v49 }
 0x31a   :  { %4804 = vmatmul.mubr.bf16.gmra.mrb[16].mxu1 %v4463_v18  ;;  %3935 = vst.msk [vmem:[#allocation4 + $0x1f8] sm:$0xff] %vm3913_vm9, %v3812_v4  ;;  %3934 = vst.msk [vmem:[#allocation4 + $0x1e0] sm:$0xff] %vm3913_vm9, %v3810_v11  ;;  %v10442_v16 = vpop.f32.mrb[71].mxu0  ;;  %v4349_v18 = vld [vmem:[#allocation4 + $0x150] sm:$0xff] }
 0x31b   :  { %4222 = vst.msk [vmem:[#allocation4 + $0x110] sm:$0xff] %vm3913_vm9, %v3810_v11  ;;  %3466 = vrot.lane.b32.xlu0 %v10062_v37, %s7767_s0  ;;  %4012 = vrot.lane.b32.xlu1 %v10106_v61, %s7767_s0  ;;  %v4338_v28 = vld [vmem:[#allocation4 + $0xf8] sm:$0xff] }
 0x31d   :  { %v3623_v26 = vpop.permute.xlu0 %3622  ;;  %v3629_v38 = vpop.permute.xlu1 %3628 }
 0x31e   :  { %3741 = vst.msk [vmem:[#allocation4 + $0x270] sm:$0xff] %vm3714_vm7, %v3623_v26  ;;  %4147 = vst.msk [vmem:[#allocation4 + $0x128] sm:$0xff] %vm3714_vm7, %v3623_v26  ;;  %v10451_v19 = vpop.f32.mrb[72].mxu0 }
 0x31f   :  { %4150 = vst.msk [vmem:[#allocation4 + $0x170] sm:$0xff] %vm3714_vm7, %v3629_v38  ;;  %3849 = vrot.lane.b32.xlu1 %v10125_v6, %s7770_s21  ;;  %3851 = vrot.lane.b32.xlu0 %v10106_v61, %s7770_s21  ;;  %v10458_v37 = vpop.f32.mrb[73].mxu0 }
 0x320   :  { %4223 = vst.msk [vmem:[#allocation4 + $0x128] sm:$0xff] %vm3913_vm9, %v3812_v4  ;;  %v10460_v36 = vpop.f32.mrb[74].mxu0  ;;  %v4352_v4 = vld [vmem:[#allocation4 + $0x168] sm:$0xff] }
 0x321   :  { %v3431_v22 = vpop.permute.xlu0 %3430  ;;  %v3437_v27 = vpop.permute.xlu1 %3436 }
 0x322   :  { %v4341_v12 = vld [vmem:[#allocation4 + $0x110] sm:$0xff]  ;;  %3548 = vst.msk [vmem:[#allocation4 + $0x288] sm:$0xff] %vm3520_vm6, %v3431_v22  ;;  %4057 = vst.msk [vmem:[#allocation4 + $0x1b8] sm:$0xff] %vm3520_vm6, %v3431_v22  ;;  %v10466_v61 = vpop.f32.mrb[75].mxu0 }
 0x323   :  { %3551 = vst.msk [vmem:[#allocation4 + $0x2d0] sm:$0xff] %vm3520_vm6, %v3437_v27  ;;  %4060 = vst.msk [vmem:[#allocation4 + $0x200] sm:$0xff] %vm3520_vm6, %v3437_v27  ;;  %v4467_v29 = vpack.c.bf16 %v4341_v12, %v4338_v28  ;;  %4095 = vrot.lane.b32.xlu1 %v10136_v52, %s7768_s18  ;;  %3662 = vrot.lane.b32.xlu0 %v10125_v6, %s7768_s18  ;;  %v4472_v27 = vpack.c.bf16 %v4352_v4, %v4349_v18  ;;  %v3210_v28 = vmul.f32 0.05, %v10257_v1  ;;  %v4364_v4 = vld [vmem:[#allocation4 + $0x1c8] sm:$0xff] }
 0x324   :  { %3742 = vst.msk [vmem:[#allocation4 + $0x288] sm:$0xff] %vm3714_vm7, %v3625_v54 }
 0x325   :  { %4811 = vmatprep.mubr.bf16.mxu1 %v4467_v29  ;;  %v3816_v32 = vpop.permute.xlu0 %3815  ;;  %v3814_v40 = vpop.permute.xlu1 %3813 }
 0x326   :  { %4812 = vmatmul.mubr.bf16.gmra.mrb[20].mxu1 %v4466_v21  ;;  %3937 = vst.msk [vmem:[#allocation4 + $0x228] sm:$0xff] %vm3913_vm9, %v3816_v32  ;;  %3936 = vst.msk [vmem:[#allocation4 + $0x210] sm:$0xff] %vm3913_vm9, %v3814_v40  ;;  %v10476_v30 = vpop.f32.mrb[76].mxu0 }
 0x327   :  { %4224 = vst.msk [vmem:[#allocation4 + $0x140] sm:$0xff] %vm3913_vm9, %v3814_v40  ;;  %4016 = vrot.lane.b32.xlu1 %v10136_v52, %s7767_s0  ;;  %3470 = vrot.lane.b32.xlu0 %v10125_v6, %s7767_s0  ;;  %v10482_v33 = vpop.f32.mrb[77].mxu0  ;;  %v3208_v6 = vmul.f32 0.05, %v10249_v23  ;;  %v4344_v48 = vld [vmem:[#allocation4 + $0x128] sm:$0xff] }
 0x328   :  { %v10484_v24 = vpop.f32.mrb[78].mxu0 }
 0x329   :  { %v3627_v41 = vpop.permute.xlu0 %3626  ;;  %v10486_v60 = vpop.permute.xlu1 %3632  ;;  %v10518_v54 = vsel %vm3142_vm10, %v10249_v23, %v3208_v6  ;;  %v10535_v23 = vsel %vm3141_vm11, %v10253_v7, %v3207_v50 }
 0x32a   :  { %3743 = vst.msk [vmem:[#allocation4 + $0x2a0] sm:$0xff] %vm3714_vm7, %v3627_v41  ;;  %4149 = vst.msk [vmem:[#allocation4 + $0x158] sm:$0xff] %vm3714_vm7, %v3627_v41  ;;  %v10492_v56 = vpop.f32.mrb[79].mxu0 }
 0x32b   :  { %4152 = vst.msk [vmem:[#allocation4 + $0x1a0] sm:$0xff] %vm3714_vm7, %v10486_v60  ;;  %3853 = vrot.lane.b32.xlu1 %v10156_v53, %s7770_s21  ;;  %3855 = vrot.lane.b32.xlu0 %v10136_v52, %s7770_s21 }
 0x32c   :  { %4225 = vst.msk [vmem:[#allocation4 + $0x158] sm:$0xff] %vm3913_vm9, %v3816_v32  ;;  %v10589_v32 = vsel %vm3144_vm13, %v10257_v1, %v3210_v28  ;;  %v4355_v1 = vld [vmem:[#allocation4 + $0x180] sm:$0xff] }
 0x32d   :  { %v3435_v43 = vpop.permute.xlu0 %3434  ;;  %v3441_v44 = vpop.permute.xlu1 %3440  ;;  %4302 = vst.msk [vmem:[#allocation4 + $0x418] sm:$0xff] %vm3279_vm3, %v10518_v54  ;;  %4301 = vst.msk [vmem:[#allocation4 + $0x400] sm:$0xff] %vm3279_vm3, %v10535_v23 }
 0x32e   :  { %v4347_v3 = vld [vmem:[#allocation4 + $0x140] sm:$0xff]  ;;  %3550 = vst.msk [vmem:[#allocation4 + $0x2b8] sm:$0xff] %vm3520_vm6, %v3435_v43  ;;  %4059 = vst.msk [vmem:[#allocation4 + $0x1e8] sm:$0xff] %vm3520_vm6, %v3435_v43  ;;  %v10505_v52 = vpop.f32.mrb[80].mxu0 }
 0x32f   :  { %3553 = vst.msk [vmem:[#allocation4 + $0x300] sm:$0xff] %vm3520_vm6, %v3441_v44  ;;  %4062 = vst.msk [vmem:[#allocation4 + $0x230] sm:$0xff] %vm3520_vm6, %v3441_v44  ;;  %v4470_v45 = vpack.c.bf16 %v4347_v3, %v4344_v48  ;;  %4099 = vrot.lane.b32.xlu1 %v10167_v25, %s7768_s18  ;;  %4093 = vrot.lane.b32.xlu0 %v10156_v53, %s7768_s18  ;;  %v10513_v8 = vpop.f32.mrb[81].mxu0  ;;  %v4358_v3 = vld [vmem:[#allocation4 + $0x198] sm:$0xff] }
 0x330   :  { %3744 = vst.msk [vmem:[#allocation4 + $0x2b8] sm:$0xff] %vm3714_vm7, %v3629_v38  ;;  %v10521_v46 = vpop.f32.mrb[82].mxu0 }
 0x331   :  { %4819 = vmatprep.mubr.bf16.mxu1 %v4470_v45  ;;  %v3820_v13 = vpop.permute.xlu0 %3819  ;;  %v3818_v63 = vpop.permute.xlu1 %3817  ;;  %4304 = vst.msk [vmem:[#allocation4 + $0x448] sm:$0xff] %vm3279_vm3, %v10589_v32 }
 0x332   :  { %4820 = vmatmul.mubr.bf16.gmra.mrb[24].mxu1 %v4469_v51  ;;  %3939 = vst.msk [vmem:[#allocation4 + $0x258] sm:$0xff] %vm3913_vm9, %v3820_v13  ;;  %3938 = vst.msk [vmem:[#allocation4 + $0x240] sm:$0xff] %vm3913_vm9, %v3818_v63  ;;  %v10528_v17 = vpop.f32.mrb[83].mxu0 }
 0x333   :  { %4226 = vst.msk [vmem:[#allocation4 + $0x170] sm:$0xff] %vm3913_vm9, %v3818_v63  ;;  %4020 = vrot.lane.b32.xlu1 %v10167_v25, %s7767_s0  ;;  %4014 = vrot.lane.b32.xlu0 %v10156_v53, %s7767_s0  ;;  %v3209_v53 = vmul.f32 0.05, %v10263_v14  ;;  %v4350_v10 = vld [vmem:[#allocation4 + $0x158] sm:$0xff]  ;;  %v4361_v63 = vld [vmem:[#allocation4 + $0x1b0] sm:$0xff] }
 0x335   :  { %v3631_v58 = vpop.permute.xlu0 %3630  ;;  %v10539_v15 = vpop.permute.xlu1 %3636  ;;  %v10574_v12 = vsel %vm3143_vm12, %v10263_v14, %v3209_v53 }
 0x336   :  { %3745 = vst.msk [vmem:[#allocation4 + $0x2d0] sm:$0xff] %vm3714_vm7, %v3631_v58  ;;  %4151 = vst.msk [vmem:[#allocation4 + $0x188] sm:$0xff] %vm3714_vm7, %v3631_v58  ;;  %v10545_v62 = vpop.f32.mrb[84].mxu0 }
 0x337   :  { %4154 = vst.msk [vmem:[#allocation4 + $0x1d0] sm:$0xff] %vm3714_vm7, %v10539_v15  ;;  %3857 = vrot.lane.b32.xlu1 %v10188_v42, %s7770_s21  ;;  %3859 = vrot.lane.b32.xlu0 %v10167_v25, %s7770_s21  ;;  %v10553_v7 = vpop.f32.mrb[85].mxu0 }
 0x338   :  { %4227 = vst.msk [vmem:[#allocation4 + $0x188] sm:$0xff] %vm3913_vm9, %v3820_v13  ;;  %v10556_v11 = vpop.f32.mrb[86].mxu0 }
 0x339   :  { %v3439_v26 = vpop.permute.xlu0 %3438  ;;  %v3445_v38 = vpop.permute.xlu1 %3444  ;;  %4303 = vst.msk [vmem:[#allocation4 + $0x430] sm:$0xff] %vm3279_vm3, %v10574_v12 }
 0x33a   :  { %v4353_v34 = vld [vmem:[#allocation4 + $0x170] sm:$0xff]  ;;  %3552 = vst.msk [vmem:[#allocation4 + $0x2e8] sm:$0xff] %vm3520_vm6, %v3439_v26  ;;  %4061 = vst.msk [vmem:[#allocation4 + $0x218] sm:$0xff] %vm3520_vm6, %v3439_v26  ;;  %v10562_v22 = vpop.f32.mrb[87].mxu0  ;;  %v4478_v26 = vpack.c.bf16 %v4364_v4, %v4361_v63 }
 0x33b   :  { %3555 = vst.msk [vmem:[#allocation4 + $0x330] sm:$0xff] %vm3520_vm6, %v3445_v38  ;;  %4064 = vst.msk [vmem:[#allocation4 + $0x260] sm:$0xff] %vm3520_vm6, %v3445_v38  ;;  %v4473_v25 = vpack.c.bf16 %v4353_v34, %v4350_v10  ;;  %4103 = vrot.lane.b32.xlu1 %v10200_v47, %s7768_s18  ;;  %4097 = vrot.lane.b32.xlu0 %v10188_v42, %s7768_s18  ;;  %v4405_v10 = vld [vmem:[#allocation4 + $0x310] sm:$0xff]  ;;  %v4408_v34 = vld [vmem:[#allocation4 + $0x328] sm:$0xff] }
 0x33c   :  { %3746 = vst.msk [vmem:[#allocation4 + $0x2e8] sm:$0xff] %vm3714_vm7, %v10486_v60 }
 0x33d   :  { %4827 = vmatprep.mubr.bf16.mxu1 %v4473_v25  ;;  %v3824_v29 = vpop.permute.xlu0 %3823  ;;  %v3822_v21 = vpop.permute.xlu1 %3821 }
 0x33e   :  { %4828 = vmatmul.mubr.bf16.gmra.mrb[28].mxu1 %v4472_v27  ;;  %3941 = vst.msk [vmem:[#allocation4 + $0x288] sm:$0xff] %vm3913_vm9, %v3824_v29  ;;  %3940 = vst.msk [vmem:[#allocation4 + $0x270] sm:$0xff] %vm3913_vm9, %v3822_v21  ;;  %v10586_v14 = vpop.f32.mrb[88].mxu0  ;;  %v4501_v27 = vpack.c.bf16 %v4408_v34, %v4405_v10  ;;  %v4379_v34 = vld [vmem:[#allocation4 + $0x240] sm:$0xff] }
 0x33f   :  { %4228 = vst.msk [vmem:[#allocation4 + $0x1a0] sm:$0xff] %vm3913_vm9, %v3822_v21  ;;  %4024 = vrot.lane.b32.xlu1 %v10200_v47, %s7767_s0  ;;  %4018 = vrot.lane.b32.xlu0 %v10188_v42, %s7767_s0  ;;  %v10593_v40 = vpop.f32.mrb[89].mxu0  ;;  %v4356_v43 = vld [vmem:[#allocation4 + $0x188] sm:$0xff] }
 0x340   :  { %v10598_v6 = vpop.f32.mrb[90].mxu0  ;;  %7615 = vmatprep.mubr.msk.bf16.mxu0 %vm3279_vm3, %v4501_v27  ;;  %v4382_v27 = vld [vmem:[#allocation4 + $0x258] sm:$0xff] }
 0x341   :  { %v3635_v41 = vpop.permute.xlu0 %3634  ;;  %v3641_v60 = vpop.permute.xlu1 %3640 }
 0x342   :  { %3747 = vst.msk [vmem:[#allocation4 + $0x300] sm:$0xff] %vm3714_vm7, %v3635_v41  ;;  %4153 = vst.msk [vmem:[#allocation4 + $0x1b8] sm:$0xff] %vm3714_vm7, %v3635_v41  ;;  %v10605_v42 = vpop.f32.mrb[91].mxu0 }
 0x343   :  { %4156 = vst.msk [vmem:[#allocation4 + $0x200] sm:$0xff] %vm3714_vm7, %v3641_v60  ;;  %3861 = vrot.lane.b32.xlu1 %v10220_v5, %s7770_s21  ;;  %3863 = vrot.lane.b32.xlu0 %v10200_v47, %s7770_s21  ;;  %v4475_v47 = vpack.c.bf16 %v4358_v3, %v4355_v1  ;;  %v4370_v1 = vld [vmem:[#allocation4 + $0x1f8] sm:$0xff] }
 0x344   :  { %4229 = vst.msk [vmem:[#allocation4 + $0x1b8] sm:$0xff] %vm3913_vm9, %v3824_v29  ;;  %v4414_v3 = vld [vmem:[#allocation4 + $0x358] sm:$0xff] }
 0x345   :  { %v3443_v49 = vpop.permute.xlu0 %3442  ;;  %v3449_v39 = vpop.permute.xlu1 %3448 }
 0x346   :  { %v4359_v44 = vld [vmem:[#allocation4 + $0x1a0] sm:$0xff]  ;;  %3554 = vst.msk [vmem:[#allocation4 + $0x318] sm:$0xff] %vm3520_vm6, %v3443_v49  ;;  %4063 = vst.msk [vmem:[#allocation4 + $0x248] sm:$0xff] %vm3520_vm6, %v3443_v49 }
 0x347   :  { %3557 = vst.msk [vmem:[#allocation4 + $0x360] sm:$0xff] %vm3520_vm6, %v3449_v39  ;;  %4066 = vst.msk [vmem:[#allocation4 + $0x290] sm:$0xff] %vm3520_vm6, %v3449_v39  ;;  %v4476_v48 = vpack.c.bf16 %v4359_v44, %v4356_v43  ;;  %4107 = vrot.lane.b32.xlu1 %v10238_v31, %s7768_s18  ;;  %4101 = vrot.lane.b32.xlu0 %v10220_v5, %s7768_s18 }
 0x348   :  { %3748 = vst.msk [vmem:[#allocation4 + $0x318] sm:$0xff] %vm3714_vm7, %v10539_v15 }
 0x349   :  { %4835 = vmatprep.mubr.bf16.mxu1 %v4476_v48  ;;  %v3828_v45 = vpop.permute.xlu0 %3827  ;;  %v3826_v51 = vpop.permute.xlu1 %3825  ;;  %v4411_v48 = vld [vmem:[#allocation4 + $0x340] sm:$0xff] }
 0x34a   :  { %4836 = vmatmul.mubr.bf16.gmra.mrb[32].mxu1 %v4475_v47  ;;  %3943 = vst.msk [vmem:[#allocation4 + $0x2b8] sm:$0xff] %vm3913_vm9, %v3828_v45  ;;  %3942 = vst.msk [vmem:[#allocation4 + $0x2a0] sm:$0xff] %vm3913_vm9, %v3826_v51 }
 0x34b   :  { %4230 = vst.msk [vmem:[#allocation4 + $0x1d0] sm:$0xff] %vm3913_vm9, %v3826_v51  ;;  %4184 = vrot.lane.b32.xlu1 %v10234_v2, %s7770_s21  ;;  %4022 = vrot.lane.b32.xlu0 %v10220_v5, %s7767_s0  ;;  %v4362_v15 = vld [vmem:[#allocation4 + $0x1b8] sm:$0xff] }
 0x34d   :  { %v3639_v50 = vpop.permute.xlu0 %3638  ;;  %v10624_v13 = vpop.permute.xlu1 %3644 }
 0x34e   :  { %3749 = vst.msk [vmem:[#allocation4 + $0x330] sm:$0xff] %vm3714_vm7, %v3639_v50  ;;  %4155 = vst.msk [vmem:[#allocation4 + $0x1e8] sm:$0xff] %vm3714_vm7, %v3639_v50  ;;  %v10644_v38 = vpop.f32.mrb[92].mxu0 }
 0x34f   :  { %4158 = vst.msk [vmem:[#allocation4 + $0x230] sm:$0xff] %vm3714_vm7, %v10624_v13  ;;  %4186 = vrot.lane.b32.xlu0 %v10238_v31, %s7770_s21  ;;  %4111 = vrot.lane.b32.xlu1 %v10329_v55, %s7768_s18  ;;  %v10646_v25 = vpop.f32.mrb[93].mxu0 }
 0x350   :  { %4231 = vst.msk [vmem:[#allocation4 + $0x1e8] sm:$0xff] %vm3913_vm9, %v3828_v45  ;;  %v10653_v21 = vpop.f32.mrb[94].mxu0  ;;  %v4504_v45 = vpack.c.bf16 %v4414_v3, %v4411_v48 }
 0x351   :  { %v3447_v5 = vpop.permute.xlu0 %3446  ;;  %v3830_v58 = vpop.permute.xlu1 %3829 }
 0x352   :  { %v4365_v53 = vld [vmem:[#allocation4 + $0x1d0] sm:$0xff]  ;;  %3556 = vst.msk [vmem:[#allocation4 + $0x348] sm:$0xff] %vm3520_vm6, %v3447_v5  ;;  %4065 = vst.msk [vmem:[#allocation4 + $0x278] sm:$0xff] %vm3520_vm6, %v3447_v5  ;;  %v10660_v41 = vpop.f32.mrb[95].mxu0  ;;  %7616 = vmatmul.mubr.msk.bf16.gmra.mrb[100].mxu0 %vm3279_vm3, %v4504_v45 }
 0x353   :  { %3944 = vst.msk [vmem:[#allocation4 + $0x2d0] sm:$0xff] %vm3913_vm9, %v3830_v58  ;;  %4232 = vst.msk [vmem:[#allocation4 + $0x200] sm:$0xff] %vm3913_vm9, %v3830_v58  ;;  %v4479_v18 = vpack.c.bf16 %v4365_v53, %v4362_v15  ;;  %4105 = vrot.lane.b32.xlu0 %v10234_v2, %s7768_s18  ;;  %4188 = vrot.lane.b32.xlu1 %v10342_v57, %s7770_s21  ;;  %v4373_v58 = vld [vmem:[#allocation4 + $0x210] sm:$0xff]  ;;  %v4376_v15 = vld [vmem:[#allocation4 + $0x228] sm:$0xff] }
 0x354   :  { %3750 = vst.msk [vmem:[#allocation4 + $0x348] sm:$0xff] %vm3714_vm7, %v3641_v60  ;;  %v4367_v60 = vld [vmem:[#allocation4 + $0x1e0] sm:$0xff]  ;;  %v7707_v45 = vld [vmem:[%s11261_s5 + $0xc0] sm:$0xff]  }
 0x355   :  { %4843 = vmatprep.mubr.bf16.mxu1 %v4479_v18  ;;  %v3832_v28 = vpop.permute.xlu0 %3831  ;;  %v10648_v29 = vpop.permute.xlu1 %3648  ;;  %v4481_v47 = vpack.c.bf16 %v4370_v1, %v4367_v60  ;;  %v4420_v1 = vld [vmem:[#allocation4 + $0x388] sm:$0xff]  ;;  %7416 = vmatprep.subr.bf16.mxu1 %v7707_v45 }
 0x356   :  { %4844 = vmatmul.mubr.bf16.gmra.mrb[36].mxu1 %v4478_v26  ;;  %3945 = vst.msk [vmem:[#allocation4 + $0x2e8] sm:$0xff] %vm3913_vm9, %v3832_v28  ;;  %v4444_v45 = vld [vmem:[#allocation4 + $0x448] sm:$0xff] }
 0x357   :  { %4160 = vst.msk [vmem:[#allocation4 + $0x260] sm:$0xff] %vm3714_vm7, %v10648_v29  ;;  %4190 = vrot.lane.b32.xlu0 %v10329_v55, %s7770_s21  ;;  %4115 = vrot.lane.b32.xlu1 %v10518_v54, %s7768_s18  ;;  %v4368_v43 = vld [vmem:[#allocation4 + $0x1e8] sm:$0xff] }
 0x359   :  { %v3643_v49 = vpop.permute.xlu0 %3642  ;;  %v3834_v39 = vpop.permute.xlu1 %3833 }
 0x35a   :  { %v4371_v44 = vld [vmem:[#allocation4 + $0x200] sm:$0xff]  ;;  %3751 = vst.msk [vmem:[#allocation4 + $0x360] sm:$0xff] %vm3714_vm7, %v3643_v49  ;;  %4157 = vst.msk [vmem:[#allocation4 + $0x218] sm:$0xff] %vm3714_vm7, %v3643_v49  ;;  %v4487_v49 = vpack.c.bf16 %v4382_v27, %v4379_v34 }
 0x35b   :  { %3946 = vst.msk [vmem:[#allocation4 + $0x300] sm:$0xff] %vm3913_vm9, %v3834_v39  ;;  %4234 = vst.msk [vmem:[#allocation4 + $0x230] sm:$0xff] %vm3913_vm9, %v3834_v39  ;;  %v4482_v55 = vpack.c.bf16 %v4371_v44, %v4368_v43  ;;  %4109 = vrot.lane.b32.xlu0 %v10342_v57, %s7768_s18  ;;  %4192 = vrot.lane.b32.xlu1 %v10535_v23, %s7770_s21 }
 0x35c   :  { %4233 = vst.msk [vmem:[#allocation4 + $0x218] sm:$0xff] %vm3913_vm9, %v3832_v28 }
 0x35d   :  { %4851 = vmatprep.mubr.bf16.mxu1 %v4482_v55  ;;  %v3836_v51 = vpop.permute.xlu0 %3835  ;;  %v10671_v50 = vpop.permute.xlu1 %3652 }
 0x35e   :  { %4852 = vmatmul.mubr.bf16.gmra.mrb[40].mxu1 %v4481_v47  ;;  %3947 = vst.msk [vmem:[#allocation4 + $0x318] sm:$0xff] %vm3913_vm9, %v3836_v51  ;;  %v4388_v47 = vld [vmem:[#allocation4 + $0x288] sm:$0xff] }
 0x35f   :  { %4162 = vst.msk [vmem:[#allocation4 + $0x290] sm:$0xff] %vm3714_vm7, %v10671_v50  ;;  %4194 = vrot.lane.b32.xlu0 %v10518_v54, %s7770_s21  ;;  %4028 = vrot.lane.b32.xlu1 %v10238_v31, %s7767_s0  ;;  %v4484_v31 = vpack.c.bf16 %v4376_v15, %v4373_v58  ;;  %v4426_v58 = vld [vmem:[#allocation4 + $0x3b8] sm:$0xff] }
 0x361   :  { %v3647_v57 = vpop.permute.xlu0 %3646  ;;  %v3838_v63 = vpop.permute.xlu1 %3837 }
 0x362   :  { %v4377_v5 = vld [vmem:[#allocation4 + $0x230] sm:$0xff]  ;;  %4159 = vst.msk [vmem:[#allocation4 + $0x248] sm:$0xff] %vm3714_vm7, %v3647_v57 }
 0x363   :  { %3948 = vst.msk [vmem:[#allocation4 + $0x330] sm:$0xff] %vm3913_vm9, %v3838_v63  ;;  %4236 = vst.msk [vmem:[#allocation4 + $0x260] sm:$0xff] %vm3913_vm9, %v3838_v63  ;;  %v4374_v53 = vld [vmem:[#allocation4 + $0x218] sm:$0xff]  ;;  %4113 = vrot.lane.b32.xlu0 %v10535_v23, %s7768_s18  ;;  %4196 = vrot.lane.b32.xlu1 %v10574_v12, %s7770_s21 }
 0x364   :  { %4235 = vst.msk [vmem:[#allocation4 + $0x248] sm:$0xff] %vm3913_vm9, %v3836_v51  ;;  %v4485_v18 = vpack.c.bf16 %v4377_v5, %v4374_v53  ;;  %v4423_v5 = vld [vmem:[#allocation4 + $0x3a0] sm:$0xff] }
 0x365   :  { %v3840_v54 = vpop.permute.xlu0 %3839  ;;  %v3453_v4 = vpop.permute.xlu1 %3452 }
 0x366   :  { %4859 = vmatprep.mubr.bf16.mxu1 %v4485_v18  ;;  %3949 = vst.msk [vmem:[#allocation4 + $0x348] sm:$0xff] %vm3913_vm9, %v3840_v54  ;;  %v4510_v18 = vpack.c.bf16 %v4426_v58, %v4423_v5  ;;  %v7709_v5 = vld [vmem:[%s11261_s5 + $0xc8] sm:$0xff]  }
 0x367   :  { %3559 = vst.msk [vmem:[#allocation4 + $0x390] sm:$0xff] %vm3520_vm6, %v3453_v4  ;;  %4068 = vst.msk [vmem:[#allocation4 + $0x2c0] sm:$0xff] %vm3520_vm6, %v3453_v4  ;;  %4860 = vmatmul.mubr.bf16.gmra.mrb[44].mxu1 %v4484_v31  ;;  %4026 = vrot.lane.b32.xlu0 %v10234_v2, %s7767_s0  ;;  %v4417_v2 = vld [vmem:[#allocation4 + $0x370] sm:$0xff]  ;;  %v7710_v58 = vld [vmem:[%s11261_s5 + $0x88] sm:$0xff]  }
 0x368   :  { %3753 = vst.msk [vmem:[#allocation4 + $0x390] sm:$0xff] %vm3714_vm7, %v3647_v57  ;;  %4119 = vrot.lane.b32.xlu1 %v10589_v32, %s7768_s18  ;;  %v4507_v39 = vpack.c.bf16 %v4420_v1, %v4417_v2  ;;  %v4432_v2 = vld [vmem:[#allocation4 + $0x3e8] sm:$0xff] }
 0x369   :  { %v3651_v23 = vpop.permute.xlu0 %3650  ;;  %v3842_v26 = vpop.permute.xlu1 %3841 }
 0x36a   :  { %v4383_v10 = vld [vmem:[#allocation4 + $0x260] sm:$0xff]  ;;  %4161 = vst.msk [vmem:[#allocation4 + $0x278] sm:$0xff] %vm3714_vm7, %v3651_v23  ;;  %7619 = vmatprep.mubr.msk.bf16.mxu0 %vm3279_vm3, %v4507_v39  ;;  %v4438_v39 = vld [vmem:[#allocation4 + $0x418] sm:$0xff] }
 0x36b   :  { %3950 = vst.msk [vmem:[#allocation4 + $0x360] sm:$0xff] %vm3913_vm9, %v3842_v26  ;;  %4238 = vst.msk [vmem:[#allocation4 + $0x290] sm:$0xff] %vm3913_vm9, %v3842_v26  ;;  %v4380_v28 = vld [vmem:[#allocation4 + $0x248] sm:$0xff]  ;;  %4117 = vrot.lane.b32.xlu0 %v10574_v12, %s7768_s18  ;;  %v4385_v12 = vld [vmem:[#allocation4 + $0x270] sm:$0xff]  ;;  %7620 = vmatmul.mubr.msk.bf16.gmra.mrb[104].mxu0 %vm3279_vm3, %v4510_v18 }
 0x36c   :  { %4237 = vst.msk [vmem:[#allocation4 + $0x278] sm:$0xff] %vm3913_vm9, %v3840_v54  ;;  %v4488_v60 = vpack.c.bf16 %v4383_v10, %v4380_v28  ;;  %v4490_v63 = vpack.c.bf16 %v4388_v47, %v4385_v12  ;;  %v4394_v26 = vld [vmem:[#allocation4 + $0x2b8] sm:$0xff]  ;;  %v4441_v47 = vld [vmem:[#allocation4 + $0x430] sm:$0xff] }
 0x36d   :  { %v3451_v43 = vpop.permute.xlu0 %3450  ;;  %v10703_v44 = vpop.permute.xlu1 %3656 }
 0x36e   :  { %4867 = vmatprep.mubr.bf16.mxu1 %v4488_v60  ;;  %3558 = vst.msk [vmem:[#allocation4 + $0x378] sm:$0xff] %vm3520_vm6, %v3451_v43  ;;  %4067 = vst.msk [vmem:[#allocation4 + $0x2a8] sm:$0xff] %vm3520_vm6, %v3451_v43  ;;  %v4429_v60 = vld [vmem:[#allocation4 + $0x3d0] sm:$0xff] }
 0x36f   :  { %4164 = vst.msk [vmem:[#allocation4 + $0x2c0] sm:$0xff] %vm3714_vm7, %v10703_v44  ;;  %4868 = vmatmul.mubr.bf16.gmra.mrb[48].mxu1 %v4487_v49  ;;  %3752 = vst.msk [vmem:[#allocation4 + $0x378] sm:$0xff] %vm3714_vm7, %v10624_v13  ;;  %4198 = vrot.lane.b32.xlu0 %v10589_v32, %s7770_s21  ;;  %v7708_v32 = vld [vmem:[%s11261_s5 + $0x80] sm:$0xff]   ;;  %v3211_v13 = vmul.f32 0.05, %v10268_v20  ;;  %v4513_v49 = vpack.c.bf16 %v4432_v2, %v4429_v60 }
 0x370   :  { %7417 = vmatpush3.bf16.msra.mxu1 %v7708_v32 }
 0x371   :  { %v3655_v55 = vpop.permute.xlu0 %3654  ;;  %v3846_v48 = vpop.permute.xlu1 %3845  ;;  %v10734_v31 = vsel %vm3145_vm14, %v10268_v20, %v3211_v13  ;;  %7623 = vmatprep.mubr.msk.bf16.mxu0 %vm3279_vm3, %v4513_v49  ;;  %v4450_v13 = vld [vmem:[#allocation4 + $0x478] sm:$0xff]  ;;  %7418 = vmatprep.subr.bf16.mxu1 %v7709_v5 }
 0x372   :  { %v4389_v3 = vld [vmem:[#allocation4 + $0x290] sm:$0xff]  ;;  %4163 = vst.msk [vmem:[#allocation4 + $0x2a8] sm:$0xff] %vm3714_vm7, %v3655_v55 }
 0x373   :  { %3952 = vst.msk [vmem:[#allocation4 + $0x390] sm:$0xff] %vm3913_vm9, %v3846_v48  ;;  %4240 = vst.msk [vmem:[#allocation4 + $0x2c0] sm:$0xff] %vm3913_vm9, %v3846_v48  ;;  %v4386_v51 = vld [vmem:[#allocation4 + $0x278] sm:$0xff] }
 0x374   :  { %v4491_v57 = vpack.c.bf16 %v4389_v3, %v4386_v51  ;;  %4305 = vst.msk [vmem:[#allocation4 + $0x460] sm:$0xff] %vm3279_vm3, %v10734_v31  ;;  %v4519_v51 = vpack.c.bf16 %v4444_v45, %v4441_v47  ;;  %7419 = vmatpush3.bf16.msra.mxu1 %v7710_v58  ;;  %v4412_v58 = vld [vmem:[#allocation4 + $0x348] sm:$0xff] }
 0x375   :  { %v3844_v15 = vpop.permute.xlu0 %3843  ;;  %v3457_v53 = vpop.permute.xlu1 %3456 }
 0x376   :  { %4875 = vmatprep.mubr.bf16.mxu1 %v4491_v57  ;;  %3951 = vst.msk [vmem:[#allocation4 + $0x378] sm:$0xff] %vm3913_vm9, %v3844_v15  ;;  %4239 = vst.msk [vmem:[#allocation4 + $0x2a8] sm:$0xff] %vm3913_vm9, %v3844_v15 }
 0x377   :  { %3561 = vst.msk [vmem:[#allocation4 + $0x3c0] sm:$0xff] %vm3520_vm6, %v3457_v53  ;;  %4070 = vst.msk [vmem:[#allocation4 + $0x2f0] sm:$0xff] %vm3520_vm6, %v3457_v53  ;;  %4876 = vmatmul.mubr.bf16.gmra.mrb[52].mxu1 %v4490_v63 }
 0x378   :  { %3755 = vst.msk [vmem:[#allocation4 + $0x3c0] sm:$0xff] %vm3714_vm7, %v3651_v23  ;;  %v4391_v23 = vld [vmem:[#allocation4 + $0x2a0] sm:$0xff] }
 0x379   :  { %v3455_v54 = vpop.permute.xlu0 %3454  ;;  %v10738_v4 = vpop.permute.xlu1 %3660  ;;  %v4493_v1 = vpack.c.bf16 %v4394_v26, %v4391_v23  ;;  %v4400_v26 = vld [vmem:[#allocation4 + $0x2e8] sm:$0xff] }
 0x37a   :  { %3560 = vst.msk [vmem:[#allocation4 + $0x3a8] sm:$0xff] %vm3520_vm6, %v3455_v54  ;;  %4069 = vst.msk [vmem:[#allocation4 + $0x2d8] sm:$0xff] %vm3520_vm6, %v3455_v54  ;;  %v4395_v27 = vld [vmem:[#allocation4 + $0x2c0] sm:$0xff] }
 0x37b   :  { %4166 = vst.msk [vmem:[#allocation4 + $0x2f0] sm:$0xff] %vm3714_vm7, %v10738_v4  ;;  %3754 = vst.msk [vmem:[#allocation4 + $0x3a8] sm:$0xff] %vm3714_vm7, %v10648_v29  ;;  %v4435_v29 = vld [vmem:[#allocation4 + $0x400] sm:$0xff] }
 0x37c   :  { %v4516_v43 = vpack.c.bf16 %v4438_v39, %v4435_v29  ;;  %v4447_v32 = vld [vmem:[#allocation4 + $0x460] sm:$0xff] }
 0x37d   :  { %v3848_v20 = vpop.permute.xlu0 %3847  ;;  %v3461_v10 = vpop.permute.xlu1 %3460  ;;  %v4392_v34 = vld [vmem:[#allocation4 + $0x2a8] sm:$0xff]  ;;  %v4522_v57 = vpack.c.bf16 %v4450_v13, %v4447_v32  ;;  %v7711_v39 = vld [vmem:[%s11261_s5 + $0xd0] sm:$0xff]  }
 0x37e   :  { %3953 = vst.msk [vmem:[#allocation4 + $0x3a8] sm:$0xff] %vm3913_vm9, %v3848_v20  ;;  %v4494_v28 = vpack.c.bf16 %v4395_v27, %v4392_v34  ;;  %7624 = vmatmul.mubr.msk.bf16.gmra.mrb[108].mxu0 %vm3279_vm3, %v4516_v43  ;;  %v7712_v43 = vld [vmem:[%s11261_s5 + $0x90] sm:$0xff]   ;;  %7420 = vmatprep.subr.bf16.mxu1 %v7711_v39 }
 0x37f   :  { %3563 = vst.msk [vmem:[#allocation4 + $0x3f0] sm:$0xff] %vm3520_vm6, %v3461_v10  ;;  %4072 = vst.msk [vmem:[#allocation4 + $0x320] sm:$0xff] %vm3520_vm6, %v3461_v10  ;;  %7627 = vmatprep.mubr.msk.bf16.mxu0 %vm3279_vm3, %v4519_v51  ;;  %7421 = vmatpush3.bf16.msra.mxu1 %v7712_v43  ;;  %v4403_v51 = vld [vmem:[#allocation4 + $0x300] sm:$0xff] }
 0x380   :  { %3757 = vst.msk [vmem:[#allocation4 + $0x3f0] sm:$0xff] %vm3714_vm7, %v3655_v55  ;;  %4883 = vmatprep.mubr.bf16.mxu1 %v4494_v28  ;;  %v4397_v28 = vld [vmem:[#allocation4 + $0x2d0] sm:$0xff] }
 0x381   :  { %v3459_v12 = vpop.permute.xlu0 %3458  ;;  %4884 = vmatmul.mubr.bf16.gmra.mrb[56].mxu1 %v4493_v1  ;;  %v3465_v48 = vpop.permute.xlu1 %3464  ;;  %v4496_v60 = vpack.c.bf16 %v4400_v26, %v4397_v28 }
 0x382   :  { %3562 = vst.msk [vmem:[#allocation4 + $0x3d8] sm:$0xff] %vm3520_vm6, %v3459_v12  ;;  %4071 = vst.msk [vmem:[#allocation4 + $0x308] sm:$0xff] %vm3520_vm6, %v3459_v12 }
 0x383   :  { %3565 = vst.msk [vmem:[#allocation4 + $0x420] sm:$0xff] %vm3520_vm6, %v3465_v48  ;;  %4074 = vst.msk [vmem:[#allocation4 + $0x350] sm:$0xff] %vm3520_vm6, %v3465_v48  ;;  %v4406_v48 = vld [vmem:[#allocation4 + $0x318] sm:$0xff] }
 0x384   :  { %3756 = vst.msk [vmem:[#allocation4 + $0x3d8] sm:$0xff] %vm3714_vm7, %v10671_v50  ;;  %v4499_v32 = vpack.c.bf16 %v4406_v48, %v4403_v51  ;;  %v4415_v48 = vld [vmem:[#allocation4 + $0x360] sm:$0xff] }
 0x385   :  { %v3463_v55 = vpop.permute.xlu0 %3462  ;;  %v3469_v3 = vpop.permute.xlu1 %3468 }
 0x386   :  { %3564 = vst.msk [vmem:[#allocation4 + $0x408] sm:$0xff] %vm3520_vm6, %v3463_v55  ;;  %4073 = vst.msk [vmem:[#allocation4 + $0x338] sm:$0xff] %vm3520_vm6, %v3463_v55  ;;  %7628 = vmatmul.mubr.msk.bf16.gmra.mrb[112].mxu0 %vm3279_vm3, %v4522_v57  ;;  %vm5243_vm3 = vcmask 523264  }
 0x387   :  { %3567 = vst.msk [vmem:[#allocation4 + $0x450] sm:$0xff] %vm3520_vm6, %v3469_v3  ;;  %4076 = vst.msk [vmem:[#allocation4 + $0x380] sm:$0xff] %vm3520_vm6, %v3469_v3 }
 0x388   :  { %3758 = vst.msk [vmem:[#allocation4 + $0x408] sm:$0xff] %vm3714_vm7, %v10703_v44 }
 0x389   :  { %v3659_v50 = vpop.permute.xlu0 %3658  ;;  %v3665_v63 = vpop.permute.xlu1 %3664 }
 0x38a   :  { %3759 = vst.msk [vmem:[#allocation4 + $0x420] sm:$0xff] %vm3714_vm7, %v3659_v50  ;;  %4165 = vst.msk [vmem:[#allocation4 + $0x2d8] sm:$0xff] %vm3714_vm7, %v3659_v50 }
 0x38b   :  { %4168 = vst.msk [vmem:[#allocation4 + $0x320] sm:$0xff] %vm3714_vm7, %v3665_v63 }
 0x38c   :  { %4241 = vst.msk [vmem:[#allocation4 + $0x2d8] sm:$0xff] %vm3913_vm9, %v3848_v20 }
 0x38d   :  { %v3467_v44 = vpop.permute.xlu0 %3466  ;;  %v4013_v15 = vpop.permute.xlu1 %4012 }
 0x38e   :  { %3566 = vst.msk [vmem:[#allocation4 + $0x438] sm:$0xff] %vm3520_vm6, %v3467_v44  ;;  %4075 = vst.msk [vmem:[#allocation4 + $0x368] sm:$0xff] %vm3520_vm6, %v3467_v44 }
 0x38f   :  { %4078 = vst.msk [vmem:[#allocation4 + $0x3b0] sm:$0xff] %vm3520_vm6, %v4013_v15 }
 0x390   :  { %3760 = vst.msk [vmem:[#allocation4 + $0x438] sm:$0xff] %vm3714_vm7, %v10738_v4 }
 0x391   :  { %v3850_v53 = vpop.permute.xlu1 %3849  ;;  %v3852_v18 = vpop.permute.xlu0 %3851 }
 0x392   :  { %3954 = vst.msk [vmem:[#allocation4 + $0x3c0] sm:$0xff] %vm3913_vm9, %v3850_v53  ;;  %4242 = vst.msk [vmem:[#allocation4 + $0x2f0] sm:$0xff] %vm3913_vm9, %v3850_v53 }
 0x393   :  { %3955 = vst.msk [vmem:[#allocation4 + $0x3d8] sm:$0xff] %vm3913_vm9, %v3852_v18  ;;  %v4398_v10 = vld [vmem:[#allocation4 + $0x2d8] sm:$0xff] }
 0x395   :  { %v4096_v54 = vpop.permute.xlu1 %4095  ;;  %v3663_v23 = vpop.permute.xlu0 %3662 }
 0x396   :  { %4170 = vst.msk [vmem:[#allocation4 + $0x350] sm:$0xff] %vm3714_vm7, %v4096_v54  ;;  %3761 = vst.msk [vmem:[#allocation4 + $0x450] sm:$0xff] %vm3714_vm7, %v3663_v23  ;;  %v4409_v54 = vld [vmem:[#allocation4 + $0x330] sm:$0xff] }
 0x397   :  { %4167 = vst.msk [vmem:[#allocation4 + $0x308] sm:$0xff] %vm3714_vm7, %v3663_v23  ;;  %v4502_v23 = vpack.c.bf16 %v4412_v58, %v4409_v54 }
 0x398   :  { %4243 = vst.msk [vmem:[#allocation4 + $0x308] sm:$0xff] %vm3913_vm9, %v3852_v18 }
 0x399   :  { %v4017_v4 = vpop.permute.xlu1 %4016  ;;  %v3471_v20 = vpop.permute.xlu0 %3470  ;;  %v4401_v34 = vld [vmem:[#allocation4 + $0x2f0] sm:$0xff] }
 0x39a   :  { %4080 = vst.msk [vmem:[#allocation4 + $0x3e0] sm:$0xff] %vm3520_vm6, %v4017_v4  ;;  %3568 = vst.msk [vmem:[#allocation4 + $0x468] sm:$0xff] %vm3520_vm6, %v3471_v20  ;;  %v4497_v27 = vpack.c.bf16 %v4401_v34, %v4398_v10  ;;  %v7714_v10 = vld [vmem:[%s11261_s5 + $0x98] sm:$0xff]  }
 0x39b   :  { %4077 = vst.msk [vmem:[#allocation4 + $0x398] sm:$0xff] %vm3520_vm6, %v3471_v20  ;;  %v7713_v20 = vld [vmem:[%s11261_s5 + $0xd8] sm:$0xff]  }
 0x39c   :  { %3762 = vst.msk [vmem:[#allocation4 + $0x468] sm:$0xff] %vm3714_vm7, %v3665_v63  ;;  %4891 = vmatprep.mubr.bf16.mxu1 %v4497_v27  ;;  %7422 = vmatprep.subr.bf16.mxu1 %v7713_v20 }
 0x39d   :  { %4892 = vmatmul.mubr.bf16.gmra.mrb[60].mxu1 %v4496_v60  ;;  %v3854_v2 = vpop.permute.xlu1 %3853  ;;  %v3856_v1 = vpop.permute.xlu0 %3855 }
 0x39e   :  { %3956 = vst.msk [vmem:[#allocation4 + $0x3f0] sm:$0xff] %vm3913_vm9, %v3854_v2  ;;  %4244 = vst.msk [vmem:[#allocation4 + $0x320] sm:$0xff] %vm3913_vm9, %v3854_v2  ;;  %7423 = vmatpush3.bf16.msra.mxu1 %v7714_v10  ;;  %v4418_v2 = vld [vmem:[#allocation4 + $0x378] sm:$0xff] }
 0x39f   :  { %3957 = vst.msk [vmem:[#allocation4 + $0x408] sm:$0xff] %vm3913_vm9, %v3856_v1  ;;  %v4404_v12 = vld [vmem:[#allocation4 + $0x308] sm:$0xff] }
 0x3a1   :  { %v4100_v49 = vpop.permute.xlu1 %4099  ;;  %v4094_v29 = vpop.permute.xlu0 %4093 }
 0x3a2   :  { %4172 = vst.msk [vmem:[#allocation4 + $0x380] sm:$0xff] %vm3714_vm7, %v4100_v49  ;;  %4169 = vst.msk [vmem:[#allocation4 + $0x338] sm:$0xff] %vm3714_vm7, %v4094_v29 }
 0x3a3   :  { %4245 = vst.msk [vmem:[#allocation4 + $0x338] sm:$0xff] %vm3913_vm9, %v3856_v1 }
 0x3a5   :  { %v4021_v55 = vpop.permute.xlu1 %4020  ;;  %v4015_v3 = vpop.permute.xlu0 %4014  ;;  %v4407_v47 = vld [vmem:[#allocation4 + $0x320] sm:$0xff] }
 0x3a6   :  { %4082 = vst.msk [vmem:[#allocation4 + $0x410] sm:$0xff] %vm3520_vm6, %v4021_v55  ;;  %4079 = vst.msk [vmem:[#allocation4 + $0x3c8] sm:$0xff] %vm3520_vm6, %v4015_v3  ;;  %v4500_v45 = vpack.c.bf16 %v4407_v47, %v4404_v12  ;;  %v7715_v3 = vld [vmem:[%s11261_s5 + $0x40] sm:$0xff]  }
 0x3a7   :  { %v7716_v47 = vld [vmem:[%s11261_s5] sm:$0xff]   ;;  %7364 = vmatprep.subr.bf16.mxu0 %v7715_v3 }
 0x3a8   :  { %4897 = vmatprep.mubr.bf16.mxu1 %v4500_v45  ;;  %7365 = vmatpush3.bf16.msra.mxu0 %v7716_v47 }
 0x3a9   :  { %4898 = vmatmul.mubr.bf16.gmra.mrb[64].mxu1 %v4499_v32  ;;  %v3858_v13 = vpop.permute.xlu1 %3857  ;;  %v3860_v57 = vpop.permute.xlu0 %3859  ;;  %v4505_v32 = vpack.c.bf16 %v4418_v2, %v4415_v48 }
 0x3aa   :  { %3958 = vst.msk [vmem:[#allocation4 + $0x420] sm:$0xff] %vm3913_vm9, %v3858_v13  ;;  %4246 = vst.msk [vmem:[#allocation4 + $0x350] sm:$0xff] %vm3913_vm9, %v3858_v13  ;;  %v4410_v5 = vld [vmem:[#allocation4 + $0x338] sm:$0xff] }
 0x3ab   :  { %3959 = vst.msk [vmem:[#allocation4 + $0x438] sm:$0xff] %vm3913_vm9, %v3860_v57 }
 0x3ad   :  { %v4104_v50 = vpop.permute.xlu1 %4103  ;;  %v4098_v63 = vpop.permute.xlu0 %4097 }
 0x3ae   :  { %4174 = vst.msk [vmem:[#allocation4 + $0x3b0] sm:$0xff] %vm3714_vm7, %v4104_v50  ;;  %4171 = vst.msk [vmem:[#allocation4 + $0x368] sm:$0xff] %vm3714_vm7, %v4098_v63 }
 0x3af   :  { %4247 = vst.msk [vmem:[#allocation4 + $0x368] sm:$0xff] %vm3913_vm9, %v3860_v57 }
 0x3b1   :  { %v4025_v44 = vpop.permute.xlu1 %4024  ;;  %v4019_v15 = vpop.permute.xlu0 %4018  ;;  %v4413_v53 = vld [vmem:[#allocation4 + $0x350] sm:$0xff] }
 0x3b2   :  { %4084 = vst.msk [vmem:[#allocation4 + $0x440] sm:$0xff] %vm3520_vm6, %v4025_v44  ;;  %4081 = vst.msk [vmem:[#allocation4 + $0x3f8] sm:$0xff] %vm3520_vm6, %v4019_v15  ;;  %v4503_v18 = vpack.c.bf16 %v4413_v53, %v4410_v5 }
 0x3b4   :  { %4903 = vmatprep.mubr.bf16.mxu1 %v4503_v18  ;;  %v4421_v18 = vld [vmem:[#allocation4 + $0x390] sm:$0xff] }
 0x3b5   :  { %4904 = vmatmul.mubr.bf16.gmra.mrb[68].mxu1 %v4502_v23  ;;  %v3862_v26 = vpop.permute.xlu1 %3861  ;;  %v3864_v4 = vpop.permute.xlu0 %3863  ;;  %v7717_v23 = vld [vmem:[%s11261_s5 + $0x48] sm:$0xff]  }
 0x3b6   :  { %3960 = vst.msk [vmem:[#allocation4 + $0x450] sm:$0xff] %vm3913_vm9, %v3862_v26  ;;  %4248 = vst.msk [vmem:[#allocation4 + $0x380] sm:$0xff] %vm3913_vm9, %v3862_v26  ;;  %v4416_v28 = vld [vmem:[#allocation4 + $0x368] sm:$0xff]  ;;  %7366 = vmatprep.subr.bf16.mxu0 %v7717_v23 }
 0x3b7   :  { %3961 = vst.msk [vmem:[#allocation4 + $0x468] sm:$0xff] %vm3913_vm9, %v3864_v4 }
 0x3b9   :  { %v4108_v34 = vpop.permute.xlu1 %4107  ;;  %v4102_v27 = vpop.permute.xlu0 %4101 }
 0x3ba   :  { %4176 = vst.msk [vmem:[#allocation4 + $0x3e0] sm:$0xff] %vm3714_vm7, %v4108_v34  ;;  %4173 = vst.msk [vmem:[#allocation4 + $0x398] sm:$0xff] %vm3714_vm7, %v4102_v27 }
 0x3bb   :  { %4249 = vst.msk [vmem:[#allocation4 + $0x398] sm:$0xff] %vm3913_vm9, %v3864_v4  ;;  %v7718_v4 = vld [vmem:[%s11261_s5 + $0x8] sm:$0xff]  }
 0x3bc   :  { %7367 = vmatpush3.bf16.msra.mxu0 %v7718_v4 }
 0x3bd   :  { %v4773_v60 = vpop.f32.mrb[0].mxu1  ;;  %v4185_v29 = vpop.permute.xlu1 %4184  ;;  %v4419_v39 = vld [vmem:[#allocation4 + $0x380] sm:$0xff] }
 0x3be   :  { %v4981_v1 = vadd.f32 %v10435_v59, %v4773_v60  ;;  %v4775_v49 = vpop.f32.mrb[1].mxu1  ;;  %4250 = vst.msk [vmem:[#allocation4 + $0x3b0] sm:$0xff] %vm3913_vm9, %v4185_v29  ;;  %v4506_v12 = vpack.c.bf16 %v4419_v39, %v4416_v28  ;;  %v4023_v55 = vpop.permute.xlu0 %4022  ;;  %v4427_v29 = vld [vmem:[#allocation4 + $0x3c0] sm:$0xff]  ;;  %v4430_v39 = vld [vmem:[#allocation4 + $0x3d8] sm:$0xff] }
 0x3bf   :  { %v4776_v43 = vpop.f32.mrb[2].mxu1  ;;  %4083 = vst.msk [vmem:[#allocation4 + $0x428] sm:$0xff] %vm3520_vm6, %v4023_v55 }
 0x3c0   :  { %vm5153_vm15 = vcmp.ge.f32.partialorder %v4981_v1, 0.0  ;;  %v5183_v59 = vmul.f32 0.05, %v4981_v1  ;;  %v4984_v45 = vadd.f32 %v10442_v16, %v4776_v43  ;;  %v4778_v51 = vpop.f32.mrb[3].mxu1  ;;  %4909 = vmatprep.mubr.bf16.mxu1 %v4506_v12  ;;  %v4424_v16 = vld [vmem:[#allocation4 + $0x3a8] sm:$0xff] }
 0x3c1   :  { %4910 = vmatmul.mubr.bf16.gmra.mrb[72].mxu1 %v4505_v32  ;;  %v4112_v57 = vpop.permute.xlu1 %4111  ;;  %v4508_v26 = vpack.c.bf16 %v4424_v16, %v4421_v18  ;;  %v4511_v51 = vpack.c.bf16 %v4430_v39, %v4427_v29  ;;  %v4439_v39 = vld [vmem:[#allocation4 + $0x420] sm:$0xff] }
 0x3c2   :  { %vm5154_vm0 = vcmp.ge.f32.partialorder %v4984_v45, 0.0  ;;  %v5184_v13 = vmul.f32 0.05, %v4984_v45  ;;  %v5213_v50 = vsel %vm5153_vm15, %v4981_v1, %v5183_v59  ;;  %v4187_v63 = vpop.permute.xlu0 %4186  ;;  %4178 = vst.msk [vmem:[#allocation4 + $0x410] sm:$0xff] %vm3714_vm7, %v4112_v57  ;;  %v4422_v58 = vld [vmem:[#allocation4 + $0x398] sm:$0xff] }
 0x3c3   :  { %5244 = vst.msk [vmem:[#allocation5] sm:$0xff] %vm5243_vm3, %v5213_v50 }
 0x3c4   :  { %v5214_v5 = vsel %vm5154_vm0, %v4984_v45, %v5184_v13  ;;  %v7720_v13 = vld [vmem:[%s11261_s5 + $0xa0] sm:$0xff]  }
 0x3c5   :  { %5268 = vrot.lane.b32.xlu0 %v5214_v5, %s7768_s18  ;;  %5245 = vst.msk [vmem:[#allocation5 + $0x28] sm:$0xff] %vm5243_vm3, %v5214_v5  ;;  %v4425_v44 = vld [vmem:[#allocation4 + $0x3b0] sm:$0xff]  ;;  %v4189_v15 = vpop.permute.xlu1 %4188  ;;  %v7721_v5 = vld [vmem:[%s11261_s5 + $0x50] sm:$0xff]  }
 0x3c6   :  { %v4509_v53 = vpack.c.bf16 %v4425_v44, %v4422_v58  ;;  %v4106_v54 = vpop.permute.xlu0 %4105  ;;  %4252 = vst.msk [vmem:[#allocation4 + $0x3e0] sm:$0xff] %vm3913_vm9, %v4189_v15  ;;  %7368 = vmatprep.subr.bf16.mxu0 %v7721_v5  ;;  %v4433_v44 = vld [vmem:[#allocation4 + $0x3f0] sm:$0xff]  ;;  %v4436_v15 = vld [vmem:[#allocation4 + $0x408] sm:$0xff] }
 0x3c7   :  { %4175 = vst.msk [vmem:[#allocation4 + $0x3c8] sm:$0xff] %vm3714_vm7, %v4106_v54 }
 0x3c8   :  { %4915 = vmatprep.mubr.bf16.mxu1 %v4509_v53  ;;  %4251 = vst.msk [vmem:[#allocation4 + $0x3c8] sm:$0xff] %vm3913_vm9, %v4187_v63  ;;  %v7613_v55 = vpop.f32.mrb[96].mxu0 }
 0x3c9   :  { %v4781_v20 = vpop.f32.mrb[4].mxu1  ;;  %4916 = vmatmul.mubr.bf16.gmra.mrb[76].mxu1 %v4508_v26  ;;  %v4116_v27 = vpop.permute.xlu1 %4115 }
 0x3ca   :  { %v4989_v10 = vadd.f32 %v10428_v0, %v4781_v20  ;;  %v4783_v34 = vpop.f32.mrb[5].mxu1  ;;  %v4191_v60 = vpop.permute.xlu0 %4190  ;;  %4180 = vst.msk [vmem:[#allocation4 + $0x440] sm:$0xff] %vm3714_vm7, %v4116_v27 }
 0x3cb   :  { %v4784_v28 = vpop.f32.mrb[6].mxu1  ;;  %v10856_v47 = vpop.f32.mrb[97].mxu0 }
 0x3cc   :  { %vm5155_vm1 = vcmp.ge.f32.partialorder %v4989_v10, 0.0  ;;  %v5185_v2 = vmul.f32 0.05, %v4989_v10  ;;  %v4992_v1 = vadd.f32 %v10437_v9, %v4784_v28  ;;  %v4786_v49 = vpop.f32.mrb[7].mxu1  ;;  %v7719_v9 = vld [vmem:[%s11261_s5 + $0xe0] sm:$0xff]   ;;  %v7614_v32 = vpop.f32.mrb[98].mxu0  ;;  %v4514_v28 = vpack.c.bf16 %v4436_v15, %v4433_v44 }
 0x3cd   :  { %v4431_v48 = vld [vmem:[#allocation4 + $0x3e0] sm:$0xff]  ;;  %v4193_v0 = vpop.permute.xlu1 %4192  ;;  %7424 = vmatprep.subr.bf16.mxu1 %v7719_v9  ;;  %v10869_v50 = vpop.f32.mrb[99].mxu0  ;;  %v7727_v15 = vld [vmem:[%s11261_s5 + $0x68] sm:$0xff]  }
 0x3ce   :  { %vm5156_vm2 = vcmp.ge.f32.partialorder %v4992_v1, 0.0  ;;  %v5186_v43 = vmul.f32 0.05, %v4992_v1  ;;  %v5215_v12 = vsel %vm5155_vm1, %v4989_v10, %v5185_v2  ;;  %v4110_v3 = vpop.permute.xlu0 %4109  ;;  %4254 = vst.msk [vmem:[#allocation4 + $0x410] sm:$0xff] %vm3913_vm9, %v4193_v0  ;;  %7425 = vmatpush3.bf16.msra.mxu1 %v7720_v13  ;;  %v7725_v0 = vld [vmem:[%s11261_s5 + $0x60] sm:$0xff]  }
 0x3cf   :  { %5270 = vrot.lane.b32.xlu1 %v5215_v12, %s7768_s18  ;;  %5246 = vst.msk [vmem:[#allocation5 + $0x50] sm:$0xff] %vm5243_vm3, %v5215_v12  ;;  %5317 = vst.msk [vmem:[#allocation5 + $0x8] sm:$0xff] %vm5243_vm3, %v5215_v12  ;;  %v4428_v45 = vld [vmem:[#allocation4 + $0x3c8] sm:$0xff] }
 0x3d0   :  { %v5216_v59 = vsel %vm5156_vm2, %v4992_v1, %v5186_v43  ;;  %4177 = vst.msk [vmem:[#allocation4 + $0x3f8] sm:$0xff] %vm3714_vm7, %v4110_v3  ;;  %v4512_v57 = vpack.c.bf16 %v4431_v48, %v4428_v45  ;;  %v4442_v43 = vld [vmem:[#allocation4 + $0x438] sm:$0xff]  ;;  %v7723_v12 = vld [vmem:[%s11261_s5 + $0x58] sm:$0xff]   ;;  %v7726_v45 = vld [vmem:[%s11261_s5 + $0x20] sm:$0xff]  }
 0x3d1   :  { %5272 = vrot.lane.b32.xlu0 %v5216_v59, %s7768_s18  ;;  %4253 = vst.msk [vmem:[#allocation4 + $0x3f8] sm:$0xff] %vm3913_vm9, %v4191_v60  ;;  %v4029_v63 = vpop.permute.xlu1 %4028  ;;  %v7724_v48 = vld [vmem:[%s11261_s5 + $0x18] sm:$0xff]  }
 0x3d2   :  { %5247 = vst.msk [vmem:[#allocation5 + $0x78] sm:$0xff] %vm5243_vm3, %v5216_v59  ;;  %5318 = vst.msk [vmem:[#allocation5 + $0x30] sm:$0xff] %vm5243_vm3, %v5216_v59  ;;  %4921 = vmatprep.mubr.bf16.mxu1 %v4512_v57  ;;  %v4195_v58 = vpop.permute.xlu0 %4194  ;;  %v4517_v59 = vpack.c.bf16 %v4442_v43, %v4439_v39 }
 0x3d3   :  { %4086 = vst.msk [vmem:[#allocation4 + $0x470] sm:$0xff] %vm3520_vm6, %v4029_v63  ;;  %4922 = vmatmul.mubr.bf16.gmra.mrb[80].mxu1 %v4511_v51 }
 0x3d5   :  { %v4789_v16 = vpop.f32.mrb[8].mxu1  ;;  %v4197_v54 = vpop.permute.xlu1 %4196  ;;  %v4437_v23 = vld [vmem:[#allocation4 + $0x410] sm:$0xff] }
 0x3d6   :  { %v4997_v53 = vadd.f32 %v10458_v37, %v4789_v16  ;;  %v4791_v18 = vpop.f32.mrb[9].mxu1  ;;  %v4114_v4 = vpop.permute.xlu0 %4113  ;;  %4256 = vst.msk [vmem:[#allocation4 + $0x440] sm:$0xff] %vm3913_vm9, %v4197_v54  ;;  %v7722_v37 = vld [vmem:[%s11261_s5 + $0x10] sm:$0xff]   ;;  %v7729_v54 = vld [vmem:[%s11261_s5 + $0xe8] sm:$0xff]  }
 0x3d7   :  { %v4792_v26 = vpop.f32.mrb[10].mxu1  ;;  %4179 = vst.msk [vmem:[#allocation4 + $0x428] sm:$0xff] %vm3714_vm7, %v4114_v4  ;;  %7369 = vmatpush3.bf16.msra.mxu0 %v7722_v37  ;;  %v7728_v18 = vld [vmem:[%s11261_s5 + $0x28] sm:$0xff]   ;;  %7426 = vmatprep.subr.bf16.mxu1 %v7729_v54  ;;  %v7732_v4 = vld [vmem:[%s11261_s5 + $0x30] sm:$0xff]  }
 0x3d8   :  { %vm5157_vm4 = vcmp.ge.f32.partialorder %v4997_v53, 0.0  ;;  %v5187_v20 = vmul.f32 0.05, %v4997_v53  ;;  %v5000_v10 = vadd.f32 %v10466_v61, %v4792_v26  ;;  %v4794_v34 = vpop.f32.mrb[11].mxu1  ;;  %v4434_v27 = vld [vmem:[#allocation4 + $0x3f8] sm:$0xff]  ;;  %4255 = vst.msk [vmem:[#allocation4 + $0x428] sm:$0xff] %vm3913_vm9, %v4195_v58  ;;  %7370 = vmatprep.subr.bf16.mxu0 %v7723_v12 }
 0x3d9   :  { %v4515_v60 = vpack.c.bf16 %v4437_v23, %v4434_v27  ;;  %v7730_v23 = vld [vmem:[%s11261_s5 + $0xa8] sm:$0xff]   ;;  %v7731_v26 = vld [vmem:[%s11261_s5 + $0x70] sm:$0xff]  }
 0x3da   :  { %vm5158_vm5 = vcmp.ge.f32.partialorder %v5000_v10, 0.0  ;;  %v5188_v2 = vmul.f32 0.05, %v5000_v10  ;;  %v5217_v1 = vsel %vm5157_vm4, %v4997_v53, %v5187_v20  ;;  %v4120_v49 = vpop.permute.xlu1 %4119  ;;  %v4027_v61 = vpop.permute.xlu0 %4026  ;;  %7427 = vmatpush3.bf16.msra.mxu1 %v7730_v23  ;;  %v7733_v20 = vld [vmem:[%s11261_s5 + $0x78] sm:$0xff]  }
 0x3db   :  { %5274 = vrot.lane.b32.xlu1 %v5217_v1, %s7768_s18  ;;  %5248 = vst.msk [vmem:[#allocation5 + $0xa0] sm:$0xff] %vm5243_vm3, %v5217_v1  ;;  %5319 = vst.msk [vmem:[#allocation5 + $0x58] sm:$0xff] %vm5243_vm3, %v5217_v1  ;;  %4927 = vmatprep.mubr.bf16.mxu1 %v4515_v60 }
 0x3dc   :  { %4182 = vst.msk [vmem:[#allocation4 + $0x470] sm:$0xff] %vm3714_vm7, %v4120_v49  ;;  %v10887_v29 = vsel %vm5158_vm5, %v5000_v10, %v5188_v2  ;;  %4928 = vmatmul.mubr.bf16.gmra.mrb[84].mxu1 %v4514_v28  ;;  %7371 = vmatpush3.bf16.msra.mxu0 %v7724_v48  ;;  %v7734_v10 = vld [vmem:[%s11261_s5 + $0x38] sm:$0xff]  }
 0x3dd   :  { %4085 = vst.msk [vmem:[#allocation4 + $0x458] sm:$0xff] %vm3520_vm6, %v4027_v61  ;;  %v4443_v55 = vld [vmem:[#allocation4 + $0x440] sm:$0xff]  ;;  %7372 = vmatprep.subr.bf16.mxu0 %v7725_v0 }
 0x3de   :  { %5249 = vst.msk [vmem:[#allocation5 + $0xc8] sm:$0xff] %vm5243_vm3, %v10887_v29  ;;  %5320 = vst.msk [vmem:[#allocation5 + $0x80] sm:$0xff] %vm5243_vm3, %v10887_v29  ;;  %v4118_v3 = vpop.permute.xlu0 %4117 }
 0x3df   :  { %4181 = vst.msk [vmem:[#allocation4 + $0x458] sm:$0xff] %vm3714_vm7, %v4118_v3  ;;  %v4440_v9 = vld [vmem:[#allocation4 + $0x428] sm:$0xff] }
 0x3e0   :  { %v4518_v32 = vpack.c.bf16 %v4443_v55, %v4440_v9  ;;  %7373 = vmatpush3.bf16.msra.mxu0 %v7726_v45 }
 0x3e1   :  { %v4797_v51 = vpop.f32.mrb[12].mxu1  ;;  %7374 = vmatprep.subr.bf16.mxu0 %v7727_v15 }
 0x3e2   :  { %v5005_v13 = vadd.f32 %v10451_v19, %v4797_v51  ;;  %v4799_v57 = vpop.f32.mrb[13].mxu1  ;;  %v4199_v5 = vpop.permute.xlu0 %4198  ;;  %4933 = vmatprep.mubr.bf16.mxu1 %v4518_v32 }
 0x3e3   :  { %v4800_v63 = vpop.f32.mrb[14].mxu1  ;;  %4257 = vst.msk [vmem:[#allocation4 + $0x458] sm:$0xff] %vm3913_vm9, %v4199_v5 }
 0x3e4   :  { %vm5159_vm6 = vcmp.ge.f32.partialorder %v5005_v13, 0.0  ;;  %v5189_v58 = vmul.f32 0.05, %v5005_v13  ;;  %v5008_v16 = vadd.f32 %v10460_v36, %v4800_v63  ;;  %v4802_v44 = vpop.f32.mrb[15].mxu1  ;;  %4934 = vmatmul.mubr.bf16.gmra.mrb[88].mxu1 %v4517_v59  ;;  %7375 = vmatpush3.bf16.msra.mxu0 %v7728_v18 }
 0x3e5   :  { %7376 = vmatprep.subr.bf16.mxu0 %v7731_v26  ;;  %v7737_v26 = vld [vmem:[%s11261_s5 + $0xf8] sm:$0xff]  }
 0x3e6   :  { %vm5160_vm7 = vcmp.ge.f32.partialorder %v5008_v16, 0.0  ;;  %v5190_v53 = vmul.f32 0.05, %v5008_v16  ;;  %v10913_v19 = vsel %vm5159_vm6, %v5005_v13, %v5189_v58 }
 0x3e7   :  { %5250 = vst.msk [vmem:[#allocation5 + $0xf0] sm:$0xff] %vm5243_vm3, %v10913_v19  ;;  %5321 = vst.msk [vmem:[#allocation5 + $0xa8] sm:$0xff] %vm5243_vm3, %v10913_v19 }
 0x3e8   :  { %v10922_v36 = vsel %vm5160_vm7, %v5008_v16, %v5190_v53  ;;  %7377 = vmatpush3.bf16.msra.mxu0 %v7732_v4  ;;  %vm5304_vm7 = vcmask 1048064  }
 0x3e9   :  { %5251 = vst.msk [vmem:[#allocation5 + $0x118] sm:$0xff] %vm5243_vm3, %v10922_v36  ;;  %5322 = vst.msk [vmem:[#allocation5 + $0xd0] sm:$0xff] %vm5243_vm3, %v10922_v36  ;;  %7378 = vmatprep.subr.bf16.mxu0 %v7733_v20 }
 0x3ec   :  { %7379 = vmatpush3.bf16.msra.mxu0 %v7734_v10 }
 0x3ed   :  { %v4805_v34 = vpop.f32.mrb[16].mxu1 }
 0x3ee   :  { %v5013_v27 = vadd.f32 %v10482_v33, %v4805_v34  ;;  %v4807_v28 = vpop.f32.mrb[17].mxu1 }
 0x3ef   :  { %v4808_v37 = vpop.f32.mrb[18].mxu1 }
 0x3f0   :  { %vm5161_vm8 = vcmp.ge.f32.partialorder %v5013_v27, 0.0  ;;  %v5191_v60 = vmul.f32 0.05, %v5013_v27  ;;  %v5016_v2 = vadd.f32 %v10492_v56, %v4808_v37  ;;  %v4810_v1 = vpop.f32.mrb[19].mxu1 }
 0x3f2   :  { %vm5162_vm10 = vcmp.ge.f32.partialorder %v5016_v2, 0.0  ;;  %v5192_v49 = vmul.f32 0.05, %v5016_v2  ;;  %v5221_v61 = vsel %vm5161_vm8, %v5013_v27, %v5191_v60 }
 0x3f3   :  { %5282 = vrot.lane.b32.xlu0 %v5221_v61, %s7768_s18  ;;  %5252 = vst.msk [vmem:[#allocation5 + $0x140] sm:$0xff] %vm5243_vm3, %v5221_v61  ;;  %5323 = vst.msk [vmem:[#allocation5 + $0xf8] sm:$0xff] %vm5243_vm3, %v5221_v61 }
 0x3f4   :  { %v5222_v39 = vsel %vm5162_vm10, %v5016_v2, %v5192_v49 }
 0x3f5   :  { %5284 = vrot.lane.b32.xlu1 %v5222_v39, %s7768_s18  ;;  %5253 = vst.msk [vmem:[#allocation5 + $0x168] sm:$0xff] %vm5243_vm3, %v5222_v39  ;;  %5324 = vst.msk [vmem:[#allocation5 + $0x120] sm:$0xff] %vm5243_vm3, %v5222_v39 }
 0x3f6   :  { %5369 = vst.msk [vmem:[#allocation5 + $0x10] sm:$0xff] %vm5243_vm3, %v5222_v39 }
 0x3f7   :  { %5276 = vrot.lane.b32.xlu0 %v10887_v29, %s7768_s18 }
 0x3f9   :  { %v4813_v33 = vpop.f32.mrb[20].mxu1  ;;  %4200 = vrot.lane.b32.xlu1 %v10734_v31, %s7770_s21 }
 0x3fa   :  { %v5021_v56 = vadd.f32 %v10476_v30, %v4813_v33  ;;  %v4815_v43 = vpop.f32.mrb[21].mxu1  ;;  %v7735_v30 = vld [vmem:[%s11261_s5 + $0xf0] sm:$0xff]  }
 0x3fb   :  { %v4816_v12 = vpop.f32.mrb[22].mxu1  ;;  %7428 = vmatprep.subr.bf16.mxu1 %v7735_v30 }
 0x3fc   :  { %vm5163_vm11 = vcmp.ge.f32.partialorder %v5021_v56, 0.0  ;;  %v5193_v48 = vmul.f32 0.05, %v5021_v56  ;;  %v5024_v0 = vadd.f32 %v10484_v24, %v4816_v12  ;;  %v4818_v55 = vpop.f32.mrb[23].mxu1  ;;  %v7736_v24 = vld [vmem:[%s11261_s5 + $0xb0] sm:$0xff]  }
 0x3fd   :  { %7429 = vmatpush3.bf16.msra.mxu1 %v7736_v24 }
 0x3fe   :  { %vm5164_vm12 = vcmp.ge.f32.partialorder %v5024_v0, 0.0  ;;  %v5194_v3 = vmul.f32 0.05, %v5024_v0  ;;  %v5223_v9 = vsel %vm5163_vm11, %v5021_v56, %v5193_v48  ;;  %7430 = vmatprep.subr.bf16.mxu1 %v7737_v26 }
 0x3ff   :  { %5286 = vrot.lane.b32.xlu0 %v5223_v9, %s7768_s18  ;;  %5254 = vst.msk [vmem:[#allocation5 + $0x190] sm:$0xff] %vm5243_vm3, %v5223_v9  ;;  %5325 = vst.msk [vmem:[#allocation5 + $0x148] sm:$0xff] %vm5243_vm3, %v5223_v9 }
 0x400   :  { %5370 = vst.msk [vmem:[#allocation5 + $0x38] sm:$0xff] %vm5243_vm3, %v5223_v9  ;;  %v5224_v31 = vsel %vm5164_vm12, %v5024_v0, %v5194_v3 }
 0x401   :  { %5288 = vrot.lane.b32.xlu1 %v5224_v31, %s7768_s18  ;;  %5255 = vst.msk [vmem:[#allocation5 + $0x1b8] sm:$0xff] %vm5243_vm3, %v5224_v31  ;;  %5326 = vst.msk [vmem:[#allocation5 + $0x170] sm:$0xff] %vm5243_vm3, %v5224_v31 }
 0x402   :  { %5371 = vst.msk [vmem:[#allocation5 + $0x60] sm:$0xff] %vm5243_vm3, %v5224_v31 }
 0x405   :  { %v4821_v29 = vpop.f32.mrb[24].mxu1  ;;  %5278 = vrot.lane.b32.xlu1 %v10913_v19, %s7768_s18 }
 0x406   :  { %v5029_v59 = vadd.f32 %v10513_v8, %v4821_v29  ;;  %v4823_v45 = vpop.f32.mrb[25].mxu1 }
 0x407   :  { %v4824_v51 = vpop.f32.mrb[26].mxu1 }
 0x408   :  { %vm5165_vm13 = vcmp.ge.f32.partialorder %v5029_v59, 0.0  ;;  %v5195_v32 = vmul.f32 0.05, %v5029_v59  ;;  %v5032_v13 = vadd.f32 %v10528_v17, %v4824_v51  ;;  %v4826_v57 = vpop.f32.mrb[27].mxu1 }
 0x40a   :  { %vm5166_vm14 = vcmp.ge.f32.partialorder %v5032_v13, 0.0  ;;  %v5196_v63 = vmul.f32 0.05, %v5032_v13  ;;  %v5225_v5 = vsel %vm5165_vm13, %v5029_v59, %v5195_v32 }
 0x40b   :  { %5290 = vrot.lane.b32.xlu0 %v5225_v5, %s7768_s18  ;;  %5327 = vst.msk [vmem:[#allocation5 + $0x198] sm:$0xff] %vm5243_vm3, %v5225_v5  ;;  %5372 = vst.msk [vmem:[#allocation5 + $0x88] sm:$0xff] %vm5243_vm3, %v5225_v5 }
 0x40c   :  { %v5226_v58 = vsel %vm5166_vm14, %v5032_v13, %v5196_v63 }
 0x40d   :  { %5336 = vrot.lane.b32.xlu1 %v5226_v58, %s7768_s18  ;;  %5328 = vst.msk [vmem:[#allocation5 + $0x1c0] sm:$0xff] %vm5243_vm3, %v5226_v58  ;;  %5373 = vst.msk [vmem:[#allocation5 + $0xb0] sm:$0xff] %vm5243_vm3, %v5226_v58 }
 0x411   :  { %v4829_v8 = vpop.f32.mrb[28].mxu1 }
 0x412   :  { %v5037_v17 = vadd.f32 %v10505_v52, %v4829_v8  ;;  %v4831_v16 = vpop.f32.mrb[29].mxu1  ;;  %v7738_v52 = vld [vmem:[%s11261_s5 + $0xb8] sm:$0xff]  }
 0x413   :  { %v4832_v44 = vpop.f32.mrb[30].mxu1  ;;  %7431 = vmatpush3.bf16.msra.mxu1 %v7738_v52 }
 0x414   :  { %vm5167_vm15 = vcmp.ge.f32.partialorder %v5037_v17, 0.0  ;;  %v5197_v15 = vmul.f32 0.05, %v5037_v17  ;;  %v5040_v53 = vadd.f32 %v10521_v46, %v4832_v44  ;;  %v4834_v19 = vpop.f32.mrb[31].mxu1  ;;  %v10999_v46 = vld [vmem:[%s11261_s5 + $0x100] sm:$0xff]  }
 0x415   :  { %7631 = vmatprep.subr.bf16.mxu0 %v10999_v46 }
 0x416   :  { %vm5168_vm0 = vcmp.ge.f32.partialorder %v5040_v53, 0.0  ;;  %v5198_v18 = vmul.f32 0.05, %v5040_v53  ;;  %v5227_v54 = vsel %vm5167_vm15, %v5037_v17, %v5197_v15 }
 0x417   :  { %5338 = vrot.lane.b32.xlu0 %v5227_v54, %s7768_s18  ;;  %5374 = vst.msk [vmem:[#allocation5 + $0xd8] sm:$0xff] %vm5243_vm3, %v5227_v54 }
 0x418   :  { %v5228_v23 = vsel %vm5168_vm0, %v5040_v53, %v5198_v18 }
 0x419   :  { %5375 = vst.msk [vmem:[#allocation5 + $0x100] sm:$0xff] %vm5243_vm3, %v5228_v23 }
 0x41d   :  { %v4837_v4 = vpop.f32.mrb[32].mxu1 }
 0x41e   :  { %v5045_v20 = vadd.f32 %v10553_v7, %v4837_v4  ;;  %v4839_v10 = vpop.f32.mrb[33].mxu1 }
 0x41f   :  { %v4840_v34 = vpop.f32.mrb[34].mxu1 }
 0x420   :  { %vm5169_vm1 = vcmp.ge.f32.partialorder %v5045_v20, 0.0  ;;  %v5199_v27 = vmul.f32 0.05, %v5045_v20  ;;  %v5048_v28 = vadd.f32 %v10562_v22, %v4840_v34  ;;  %v4842_v37 = vpop.f32.mrb[35].mxu1 }
 0x422   :  { %vm5170_vm2 = vcmp.ge.f32.partialorder %v5048_v28, 0.0  ;;  %v5200_v60 = vmul.f32 0.05, %v5048_v28  ;;  %v5229_v2 = vsel %vm5169_vm1, %v5045_v20, %v5199_v27 }
 0x423   :  { %5376 = vst.msk [vmem:[#allocation5 + $0x128] sm:$0xff] %vm5243_vm3, %v5229_v2  ;;  %5401 = vst.msk [vmem:[#allocation5 + $0x18] sm:$0xff] %vm5243_vm3, %v5229_v2 }
 0x424   :  { %v5230_v1 = vsel %vm5170_vm2, %v5048_v28, %v5200_v60 }
 0x425   :  { %5344 = vrot.lane.b32.xlu0 %v5230_v1, %s7768_s18  ;;  %5377 = vst.msk [vmem:[#allocation5 + $0x150] sm:$0xff] %vm5243_vm3, %v5230_v1  ;;  %5402 = vst.msk [vmem:[#allocation5 + $0x40] sm:$0xff] %vm5243_vm3, %v5230_v1 }
 0x429   :  { %v4845_v7 = vpop.f32.mrb[36].mxu1  ;;  %5280 = vrot.lane.b32.xlu0 %v10922_v36, %s7768_s18 }
 0x42a   :  { %v5053_v22 = vadd.f32 %v10545_v62, %v4845_v7  ;;  %v4847_v49 = vpop.f32.mrb[37].mxu1 }
 0x42b   :  { %v4848_v61 = vpop.f32.mrb[38].mxu1 }
 0x42c   :  { %vm5171_vm4 = vcmp.ge.f32.partialorder %v5053_v22, 0.0  ;;  %v5201_v39 = vmul.f32 0.05, %v5053_v22  ;;  %v5056_v33 = vadd.f32 %v10556_v11, %v4848_v61  ;;  %v4850_v56 = vpop.f32.mrb[39].mxu1  ;;  %v7617_v11 = vpop.f32.mrb[100].mxu0 }
 0x42d   :  { %v5106_v55 = vpop.f32.mrb[101].mxu0 }
 0x42e   :  { %vm5172_vm5 = vcmp.ge.f32.partialorder %v5056_v33, 0.0  ;;  %v5202_v43 = vmul.f32 0.05, %v5056_v33  ;;  %v5231_v12 = vsel %vm5171_vm4, %v5053_v22, %v5201_v39  ;;  %v7618_v9 = vpop.f32.mrb[102].mxu0 }
 0x42f   :  { %5453 = vst.msk [vmem:[#allocation5 + $0x20] sm:$0xff] %vm5243_vm3, %v5231_v12  ;;  %5346 = vrot.lane.b32.xlu1 %v5231_v12, %s7768_s18  ;;  %5378 = vst.msk [vmem:[#allocation5 + $0x178] sm:$0xff] %vm5243_vm3, %v5231_v12  ;;  %v5108_v29 = vpop.f32.mrb[103].mxu0 }
 0x430   :  { %5403 = vst.msk [vmem:[#allocation5 + $0x68] sm:$0xff] %vm5243_vm3, %v5231_v12  ;;  %v5232_v36 = vsel %vm5172_vm5, %v5056_v33, %v5202_v43 }
 0x431   :  { %v4853_v62 = vpop.f32.mrb[40].mxu1  ;;  %5454 = vst.msk [vmem:[#allocation5 + $0x48] sm:$0xff] %vm5243_vm3, %v5232_v36  ;;  %5379 = vst.msk [vmem:[#allocation5 + $0x1a0] sm:$0xff] %vm5243_vm3, %v5232_v36 }
 0x432   :  { %5404 = vst.msk [vmem:[#allocation5 + $0x90] sm:$0xff] %vm5243_vm3, %v5232_v36  ;;  %v5061_v48 = vadd.f32 %v10593_v40, %v4853_v62  ;;  %v4855_v0 = vpop.f32.mrb[41].mxu1 }
 0x433   :  { %v4856_v3 = vpop.f32.mrb[42].mxu1  ;;  %5340 = vrot.lane.b32.xlu1 %v5228_v23, %s7768_s18 }
 0x434   :  { %vm5173_vm6 = vcmp.ge.f32.partialorder %v5061_v48, 0.0  ;;  %v5203_v31 = vmul.f32 0.05, %v5061_v48  ;;  %v5064_v30 = vadd.f32 %v10605_v42, %v4856_v3  ;;  %v4858_v24 = vpop.f32.mrb[43].mxu1 }
 0x436   :  { %vm5174_vm8 = vcmp.ge.f32.partialorder %v5064_v30, 0.0  ;;  %v5204_v59 = vmul.f32 0.05, %v5064_v30  ;;  %v5233_v45 = vsel %vm5173_vm6, %v5061_v48, %v5203_v31 }
 0x437   :  { %5455 = vst.msk [vmem:[#allocation5 + $0x70] sm:$0xff] %vm5243_vm3, %v5233_v45  ;;  %5383 = vrot.lane.b32.xlu0 %v5233_v45, %s7768_s18  ;;  %5380 = vst.msk [vmem:[#allocation5 + $0x1c8] sm:$0xff] %vm5243_vm3, %v5233_v45  ;;  %v5269_v40 = vpop.permute.xlu0 %5268  ;;  %5348 = vrot.lane.b32.xlu1 %v5232_v36, %s7768_s18 }
 0x438   :  { %5405 = vst.msk [vmem:[#allocation5 + $0xb8] sm:$0xff] %vm5243_vm3, %v5233_v45  ;;  %v5234_v42 = vsel %vm5174_vm8, %v5064_v30, %v5204_v59 }
 0x439   :  { %5305 = vst.msk [vmem:[#allocation5] sm:$0xff] %vm5304_vm7, %v5269_v40 }
 0x43a   :  { %5456 = vst.msk [vmem:[#allocation5 + $0x98] sm:$0xff] %vm5243_vm3, %v5234_v42  ;;  %5406 = vst.msk [vmem:[#allocation5 + $0xe0] sm:$0xff] %vm5243_vm3, %v5234_v42  ;;  %v4861_v51 = vpop.f32.mrb[44].mxu1 }
 0x43b   :  { %v5069_v32 = vadd.f32 %v10586_v14, %v4861_v51  ;;  %v4863_v13 = vpop.f32.mrb[45].mxu1  ;;  %5385 = vrot.lane.b32.xlu0 %v5234_v42, %s7768_s18  ;;  %5342 = vrot.lane.b32.xlu1 %v5229_v2, %s7768_s18 }
 0x43c   :  { %v4864_v57 = vpop.f32.mrb[46].mxu1 }
 0x43d   :  { %vm5175_vm10 = vcmp.ge.f32.partialorder %v5069_v32, 0.0  ;;  %v5205_v63 = vmul.f32 0.05, %v5069_v32  ;;  %v5072_v5 = vadd.f32 %v10598_v6, %v4864_v57  ;;  %v4866_v58 = vpop.f32.mrb[47].mxu1 }
 0x43e   :  { %v7621_v10 = vpop.f32.mrb[104].mxu0  ;;  %v7740_v58 = vld [vmem:[%s11261_s5 + $0x108] sm:$0xff]  }
 0x43f   :  { %vm5176_vm11 = vcmp.ge.f32.partialorder %v5072_v5, 0.0  ;;  %v5206_v8 = vmul.f32 0.05, %v5072_v5  ;;  %v5235_v17 = vsel %vm5175_vm10, %v5069_v32, %v5205_v63  ;;  %v5118_v27 = vpop.f32.mrb[105].mxu0 }
 0x440   :  { %5457 = vst.msk [vmem:[#allocation5 + $0xc0] sm:$0xff] %vm5243_vm3, %v5235_v17  ;;  %5420 = vrot.lane.b32.xlu1 %v5235_v17, %s7768_s18  ;;  %5407 = vst.msk [vmem:[#allocation5 + $0x108] sm:$0xff] %vm5243_vm3, %v5235_v17  ;;  %v7622_v1 = vpop.f32.mrb[106].mxu0  ;;  %v5465_v32 = vld [vmem:[#allocation5] sm:$0xff]  ;;  %v4445_v17 = vld [vmem:[#allocation4 + $0x450] sm:$0xff] }
 0x441   :  { %v5271_v14 = vpop.permute.xlu1 %5270  ;;  %v5236_v16 = vsel %vm5176_vm11, %v5072_v5, %v5206_v8  ;;  %v5120_v49 = vpop.f32.mrb[107].mxu0  ;;  %v4446_v5 = vld [vmem:[#allocation4 + $0x458] sm:$0xff] }
 0x442   :  { %5306 = vst.msk [vmem:[#allocation5 + $0x28] sm:$0xff] %vm5304_vm7, %v5271_v14  ;;  %v4869_v44 = vpop.f32.mrb[48].mxu1  ;;  %5422 = vrot.lane.b32.xlu0 %v5236_v16, %s7768_s18  ;;  %v4448_v14 = vld [vmem:[#allocation4 + $0x468] sm:$0xff] }
 0x443   :  { %5458 = vst.msk [vmem:[#allocation5 + $0xe8] sm:$0xff] %vm5243_vm3, %v5236_v16  ;;  %5408 = vst.msk [vmem:[#allocation5 + $0x130] sm:$0xff] %vm5243_vm3, %v5236_v16  ;;  %v5077_v6 = vadd.f32 %v10646_v25, %v4869_v44  ;;  %v4871_v15 = vpop.f32.mrb[49].mxu1  ;;  %v5273_v53 = vpop.permute.xlu0 %5272 }
 0x444   :  { %5307 = vst.msk [vmem:[#allocation5 + $0x50] sm:$0xff] %vm5304_vm7, %v5273_v53  ;;  %v4872_v19 = vpop.f32.mrb[50].mxu1 }
 0x445   :  { %vm5177_vm12 = vcmp.ge.f32.partialorder %v5077_v6, 0.0  ;;  %v5207_v18 = vmul.f32 0.05, %v5077_v6  ;;  %v5080_v54 = vadd.f32 %v10660_v41, %v4872_v19  ;;  %v4874_v23 = vpop.f32.mrb[51].mxu1  ;;  %v4520_v19 = vpack.c.bf16 %v4448_v14, %v4445_v17 }
 0x446   :  { %v7742_v23 = vld [vmem:[%s11261_s5 + $0x118] sm:$0xff]  }
 0x447   :  { %vm5178_vm13 = vcmp.ge.f32.partialorder %v5080_v54, 0.0  ;;  %v5208_v26 = vmul.f32 0.05, %v5080_v54  ;;  %v5237_v52 = vsel %vm5177_vm12, %v5077_v6, %v5207_v18  ;;  %v7741_v18 = vld [vmem:[%s11261_s5 + $0x110] sm:$0xff]  }
 0x448   :  { %5459 = vst.msk [vmem:[#allocation5 + $0x110] sm:$0xff] %vm5243_vm3, %v5237_v52  ;;  %5424 = vrot.lane.b32.xlu1 %v5237_v52, %s7768_s18  ;;  %5409 = vst.msk [vmem:[#allocation5 + $0x158] sm:$0xff] %vm5243_vm3, %v5237_v52 }
 0x449   :  { %v5238_v25 = vsel %vm5178_vm13, %v5080_v54, %v5208_v26  ;;  %v5470_v45 = vld [vmem:[#allocation5 + $0x28] sm:$0xff] }
 0x44a   :  { %v4877_v4 = vpop.f32.mrb[52].mxu1  ;;  %5460 = vst.msk [vmem:[#allocation5 + $0x138] sm:$0xff] %vm5243_vm3, %v5238_v25  ;;  %5426 = vrot.lane.b32.xlu0 %v5238_v25, %s7768_s18  ;;  %5410 = vst.msk [vmem:[#allocation5 + $0x180] sm:$0xff] %vm5243_vm3, %v5238_v25  ;;  %v5525_v63 = vpack.c.bf16 %v5470_v45, %v5465_v32 }
 0x44b   :  { %v5085_v41 = vadd.f32 %v10644_v38, %v4877_v4  ;;  %v4879_v20 = vpop.f32.mrb[53].mxu1  ;;  %v5475_v4 = vld [vmem:[#allocation5 + $0x50] sm:$0xff] }
 0x44c   :  { %v4880_v34 = vpop.f32.mrb[54].mxu1 }
 0x44d   :  { %vm5179_vm14 = vcmp.ge.f32.partialorder %v5085_v41, 0.0  ;;  %v5209_v28 = vmul.f32 0.05, %v5085_v41  ;;  %v5088_v37 = vadd.f32 %v10653_v21, %v4880_v34  ;;  %v4882_v60 = vpop.f32.mrb[55].mxu1  ;;  %v5275_v2 = vpop.permute.xlu1 %5274 }
 0x44e   :  { %5308 = vst.msk [vmem:[#allocation5 + $0x78] sm:$0xff] %vm5304_vm7, %v5275_v2 }
 0x44f   :  { %vm5180_vm15 = vcmp.ge.f32.partialorder %v5088_v37, 0.0  ;;  %v5210_v7 = vmul.f32 0.05, %v5088_v37  ;;  %v5239_v22 = vsel %vm5179_vm14, %v5085_v41, %v5209_v28 }
 0x450   :  { %5461 = vst.msk [vmem:[#allocation5 + $0x160] sm:$0xff] %vm5243_vm3, %v5239_v22  ;;  %5428 = vrot.lane.b32.xlu1 %v5239_v22, %s7768_s18  ;;  %5411 = vst.msk [vmem:[#allocation5 + $0x1a8] sm:$0xff] %vm5243_vm3, %v5239_v22 }
 0x451   :  { %v5240_v38 = vsel %vm5180_vm15, %v5088_v37, %v5210_v7  ;;  %v7625_v33 = vpop.f32.mrb[108].mxu0 }
 0x452   :  { %5462 = vst.msk [vmem:[#allocation5 + $0x188] sm:$0xff] %vm5243_vm3, %v5240_v38  ;;  %5430 = vrot.lane.b32.xlu0 %v5240_v38, %s7768_s18  ;;  %5412 = vst.msk [vmem:[#allocation5 + $0x1d0] sm:$0xff] %vm5243_vm3, %v5240_v38  ;;  %v5130_v43 = vpop.f32.mrb[109].mxu0 }
 0x453   :  { %v7626_v11 = vpop.f32.mrb[110].mxu0 }
 0x454   :  { %v4885_v21 = vpop.f32.mrb[56].mxu1  ;;  %v5132_v48 = vpop.f32.mrb[111].mxu0 }
 0x455   :  { %v5093_v61 = vadd.f32 %v10856_v47, %v4885_v21  ;;  %v4887_v39 = vpop.f32.mrb[57].mxu1  ;;  %v5480_v26 = vld [vmem:[#allocation5 + $0x78] sm:$0xff] }
 0x456   :  { %v4888_v56 = vpop.f32.mrb[58].mxu1  ;;  %v5530_v10 = vpack.c.bf16 %v5480_v26, %v5475_v4 }
 0x457   :  { %vm5181_vm0 = vcmp.ge.f32.partialorder %v5093_v61, 0.0  ;;  %v5211_v12 = vmul.f32 0.05, %v5093_v61  ;;  %v5096_v36 = vadd.f32 %v10869_v50, %v4888_v56  ;;  %v4890_v62 = vpop.f32.mrb[59].mxu1 }
 0x459   :  { %vm5182_vm1 = vcmp.ge.f32.partialorder %v5096_v36, 0.0  ;;  %v5212_v0 = vmul.f32 0.05, %v5096_v36  ;;  %v5241_v55 = vsel %vm5181_vm0, %v5093_v61, %v5211_v12  ;;  %v7629_v47 = vpop.f32.mrb[112].mxu0 }
 0x45a   :  { %5463 = vst.msk [vmem:[#allocation5 + $0x1b0] sm:$0xff] %vm5243_vm3, %v5241_v55  ;;  %5432 = vrot.lane.b32.xlu1 %v5241_v55, %s7768_s18  ;;  %v5142_v9 = vpop.f32.mrb[113].mxu0 }
 0x45b   :  { %v5242_v3 = vsel %vm5182_vm1, %v5096_v36, %v5212_v0  ;;  %v7630_v31 = vpop.f32.mrb[114].mxu0 }
 0x45c   :  { %5464 = vst.msk [vmem:[#allocation5 + $0x1d8] sm:$0xff] %vm5243_vm3, %v5242_v3  ;;  %v5144_v30 = vpop.f32.mrb[115].mxu0 }
 0x465   :  { %v5283_v24 = vpop.permute.xlu0 %5282 }
 0x466   :  { %5312 = vst.msk [vmem:[#allocation5 + $0x118] sm:$0xff] %vm5304_vm7, %v5283_v24  ;;  %5357 = vst.msk [vmem:[#allocation5 + $0x8] sm:$0xff] %vm5304_vm7, %v5283_v24 }
 0x467   :  { %v5285_v50 = vpop.permute.xlu1 %5284 }
 0x468   :  { %5313 = vst.msk [vmem:[#allocation5 + $0x140] sm:$0xff] %vm5304_vm7, %v5285_v50  ;;  %5358 = vst.msk [vmem:[#allocation5 + $0x30] sm:$0xff] %vm5304_vm7, %v5285_v50 }
 0x469   :  { %v5277_v29 = vpop.permute.xlu0 %5276 }
 0x46a   :  { %5309 = vst.msk [vmem:[#allocation5 + $0xa0] sm:$0xff] %vm5304_vm7, %v5277_v29 }
 0x46b   :  { %v4201_v59 = vpop.permute.xlu1 %4200 }
 0x46c   :  { %4258 = vst.msk [vmem:[#allocation4 + $0x470] sm:$0xff] %vm3913_vm9, %v4201_v59 }
 0x46d   :  { %v5466_v40 = vld [vmem:[#allocation5 + $0x8] sm:$0xff]  ;;  %v5500_v14 = vld [vmem:[#allocation5 + $0x118] sm:$0xff] }
 0x46f   :  { %v5471_v42 = vld [vmem:[#allocation5 + $0x30] sm:$0xff] }
 0x470   :  { %v5526_v51 = vpack.c.bf16 %v5471_v42, %v5466_v40  ;;  %v4893_v13 = vpop.f32.mrb[60].mxu1 }
 0x471   :  { %v5287_v57 = vpop.permute.xlu0 %5286  ;;  %v4894_v8 = vpop.f32.mrb[61].mxu1  ;;  %v5485_v22 = vld [vmem:[#allocation5 + $0xa0] sm:$0xff] }
 0x472   :  { %5314 = vst.msk [vmem:[#allocation5 + $0x168] sm:$0xff] %vm5304_vm7, %v5287_v57  ;;  %5359 = vst.msk [vmem:[#allocation5 + $0x58] sm:$0xff] %vm5304_vm7, %v5287_v57  ;;  %5893 = vmatprep.mubr.bf16.mxu0 %v5526_v51  ;;  %v4895_v16 = vpop.f32.mrb[62].mxu1 }
 0x473   :  { %5389 = vst.msk [vmem:[#allocation5 + $0x10] sm:$0xff] %vm5304_vm7, %v5287_v57  ;;  %v5289_v44 = vpop.permute.xlu1 %5288  ;;  %5894 = vmatmul.mubr.bf16.vlgmr.msra.gmra.mrb[116].mxu0 %v5525_v63  ;;  %v4449_v6 = vld [vmem:[#allocation4 + $0x470] sm:$0xff]  ;;  %v4896_v15 = vpop.f32.mrb[63].mxu1 }
 0x474   :  { %5315 = vst.msk [vmem:[#allocation5 + $0x190] sm:$0xff] %vm5304_vm7, %v5289_v44  ;;  %5360 = vst.msk [vmem:[#allocation5 + $0x80] sm:$0xff] %vm5304_vm7, %v5289_v44  ;;  %v4521_v53 = vpack.c.bf16 %v4449_v6, %v4446_v5  ;;  %7632 = vmatpush3.bf16.msra.mxu0 %v10999_v46 }
 0x475   :  { %5390 = vst.msk [vmem:[#allocation5 + $0x38] sm:$0xff] %vm5304_vm7, %v5289_v44  ;;  %7633 = vmatprep.subr.bf16.mxu0 %v7740_v58 }
 0x476   :  { %4939 = vmatprep.mubr.bf16.mxu1 %v4521_v53 }
 0x477   :  { %4940 = vmatmul.mubr.bf16.gmra.mrb[92].mxu1 %v4520_v19  ;;  %v5279_v54 = vpop.permute.xlu1 %5278 }
 0x478   :  { %5310 = vst.msk [vmem:[#allocation5 + $0xc8] sm:$0xff] %vm5304_vm7, %v5279_v54  ;;  %7634 = vmatpush3.bf16.msra.mxu0 %v7740_v58 }
 0x479   :  { %7635 = vmatprep.subr.bf16.mxu0 %v7741_v18  ;;  %v5476_v52 = vld [vmem:[#allocation5 + $0x58] sm:$0xff]  ;;  %v5510_v4 = vld [vmem:[#allocation5 + $0x168] sm:$0xff] }
 0x47a   :  { %v5467_v42 = vld [vmem:[#allocation5 + $0x10] sm:$0xff] }
 0x47b   :  { %v5481_v46 = vld [vmem:[#allocation5 + $0x80] sm:$0xff] }
 0x47c   :  { %v5531_v25 = vpack.c.bf16 %v5481_v46, %v5476_v52  ;;  %7636 = vmatpush3.bf16.msra.mxu0 %v7741_v18  ;;  %v4899_v41 = vpop.f32.mrb[64].mxu1  ;;  %v5472_v30 = vld [vmem:[#allocation5 + $0x38] sm:$0xff] }
 0x47d   :  { %v5291_v20 = vpop.permute.xlu0 %5290  ;;  %7637 = vmatprep.subr.bf16.mxu0 %v7742_v23  ;;  %v4900_v34 = vpop.f32.mrb[65].mxu1  ;;  %v5527_v32 = vpack.c.bf16 %v5472_v30, %v5467_v42  ;;  %v5489_v42 = vld [vmem:[#allocation5 + $0xc0] sm:$0xff] }
 0x47e   :  { %5316 = vst.msk [vmem:[#allocation5 + $0x1b8] sm:$0xff] %vm5304_vm7, %v5291_v20  ;;  %5361 = vst.msk [vmem:[#allocation5 + $0xa8] sm:$0xff] %vm5304_vm7, %v5291_v20  ;;  %5901 = vmatprep.mubr.bf16.mxu0 %v5531_v25  ;;  %v4901_v27 = vpop.f32.mrb[66].mxu1 }
 0x47f   :  { %5391 = vst.msk [vmem:[#allocation5 + $0x60] sm:$0xff] %vm5304_vm7, %v5291_v20  ;;  %v5337_v28 = vpop.permute.xlu1 %5336  ;;  %5902 = vmatmul.mubr.bf16.gmra.mrb[120].mxu0 %v5530_v10  ;;  %v4902_v37 = vpop.f32.mrb[67].mxu1  ;;  %v5490_v60 = vld [vmem:[#allocation5 + $0xc8] sm:$0xff]  ;;  %v5505_v27 = vld [vmem:[#allocation5 + $0x140] sm:$0xff] }
 0x480   :  { %5362 = vst.msk [vmem:[#allocation5 + $0xd0] sm:$0xff] %vm5304_vm7, %v5337_v28  ;;  %5392 = vst.msk [vmem:[#allocation5 + $0x88] sm:$0xff] %vm5304_vm7, %v5337_v28  ;;  %7638 = vmatpush3.bf16.msra.mxu0 %v7742_v23  ;;  %v5535_v21 = vpack.c.bf16 %v5490_v60, %v5485_v22  ;;  %v5545_v28 = vpack.c.bf16 %v5510_v4, %v5505_v27 }
 0x485   :  { %v5486_v2 = vld [vmem:[#allocation5 + $0xa8] sm:$0xff] }
 0x486   :  { %v5477_v26 = vld [vmem:[#allocation5 + $0x60] sm:$0xff] }
 0x487   :  { %v5491_v1 = vld [vmem:[#allocation5 + $0xd0] sm:$0xff]  ;;  %v5482_v6 = vld [vmem:[#allocation5 + $0x88] sm:$0xff] }
 0x488   :  { %v5536_v7 = vpack.c.bf16 %v5491_v1, %v5486_v2  ;;  %v4905_v49 = vpop.f32.mrb[68].mxu1  ;;  %v5532_v46 = vpack.c.bf16 %v5482_v6, %v5477_v26  ;;  %v5509_v6 = vld [vmem:[#allocation5 + $0x160] sm:$0xff] }
 0x489   :  { %v5339_v38 = vpop.permute.xlu0 %5338  ;;  %v4906_v61 = vpop.f32.mrb[69].mxu1 }
 0x48a   :  { %5363 = vst.msk [vmem:[#allocation5 + $0xf8] sm:$0xff] %vm5304_vm7, %v5339_v38  ;;  %5393 = vst.msk [vmem:[#allocation5 + $0xb0] sm:$0xff] %vm5304_vm7, %v5339_v38  ;;  %5909 = vmatprep.mubr.bf16.mxu0 %v5536_v7  ;;  %v4907_v39 = vpop.f32.mrb[70].mxu1 }
 0x48b   :  { %5910 = vmatmul.mubr.bf16.gmra.mrb[124].mxu0 %v5535_v21  ;;  %v4908_v33 = vpop.f32.mrb[71].mxu1 }
 0x491   :  { %v5496_v58 = vld [vmem:[#allocation5 + $0xf8] sm:$0xff]  ;;  %v5487_v33 = vld [vmem:[#allocation5 + $0xb0] sm:$0xff] }
 0x494   :  { %v4911_v56 = vpop.f32.mrb[72].mxu1 }
 0x495   :  { %v4912_v43 = vpop.f32.mrb[73].mxu1 }
 0x496   :  { %v4913_v12 = vpop.f32.mrb[74].mxu1 }
 0x497   :  { %v5345_v36 = vpop.permute.xlu0 %5344  ;;  %v4914_v62 = vpop.f32.mrb[75].mxu1  ;;  %v5520_v12 = vld [vmem:[#allocation5 + $0x1b8] sm:$0xff] }
 0x498   :  { %5366 = vst.msk [vmem:[#allocation5 + $0x170] sm:$0xff] %vm5304_vm7, %v5345_v36  ;;  %5396 = vst.msk [vmem:[#allocation5 + $0x128] sm:$0xff] %vm5304_vm7, %v5345_v36  ;;  %v5515_v62 = vld [vmem:[#allocation5 + $0x190] sm:$0xff] }
 0x499   :  { %5441 = vst.msk [vmem:[#allocation5 + $0x18] sm:$0xff] %vm5304_vm7, %v5345_v36  ;;  %v5474_v36 = vld [vmem:[#allocation5 + $0x48] sm:$0xff] }
 0x49b   :  { %v5281_v11 = vpop.permute.xlu0 %5280 }
 0x49c   :  { %5311 = vst.msk [vmem:[#allocation5 + $0xf0] sm:$0xff] %vm5304_vm7, %v5281_v11  ;;  %v4917_v48 = vpop.f32.mrb[76].mxu1  ;;  %v5550_v11 = vpack.c.bf16 %v5520_v12, %v5515_v62 }
 0x49d   :  { %v4918_v0 = vpop.f32.mrb[77].mxu1  ;;  %v5469_v48 = vld [vmem:[#allocation5 + $0x20] sm:$0xff] }
 0x49e   :  { %v4919_v55 = vpop.f32.mrb[78].mxu1  ;;  %v5529_v0 = vpack.c.bf16 %v5474_v36, %v5469_v48 }
 0x49f   :  { %v4920_v3 = vpop.f32.mrb[79].mxu1  ;;  %v5511_v20 = vld [vmem:[#allocation5 + $0x170] sm:$0xff]  ;;  %v5502_v30 = vld [vmem:[#allocation5 + $0x128] sm:$0xff] }
 0x4a0   :  { %v5468_v59 = vld [vmem:[#allocation5 + $0x18] sm:$0xff] }
 0x4a1   :  { %v5347_v47 = vpop.permute.xlu1 %5346 }
 0x4a2   :  { %5367 = vst.msk [vmem:[#allocation5 + $0x198] sm:$0xff] %vm5304_vm7, %v5347_v47  ;;  %5397 = vst.msk [vmem:[#allocation5 + $0x150] sm:$0xff] %vm5304_vm7, %v5347_v47 }
 0x4a3   :  { %5442 = vst.msk [vmem:[#allocation5 + $0x40] sm:$0xff] %vm5304_vm7, %v5347_v47  ;;  %v5495_v57 = vld [vmem:[#allocation5 + $0xf0] sm:$0xff] }
 0x4a4   :  { %v5540_v16 = vpack.c.bf16 %v5500_v14, %v5495_v57  ;;  %v5514_v14 = vld [vmem:[#allocation5 + $0x188] sm:$0xff] }
 0x4a5   :  { %v5341_v9 = vpop.permute.xlu1 %5340 }
 0x4a6   :  { %5364 = vst.msk [vmem:[#allocation5 + $0x120] sm:$0xff] %vm5304_vm7, %v5341_v9  ;;  %5394 = vst.msk [vmem:[#allocation5 + $0xd8] sm:$0xff] %vm5304_vm7, %v5341_v9  ;;  %v4923_v31 = vpop.f32.mrb[80].mxu1 }
 0x4a7   :  { %v4924_v24 = vpop.f32.mrb[81].mxu1 }
 0x4a8   :  { %v4925_v51 = vpop.f32.mrb[82].mxu1 }
 0x4a9   :  { %v5384_v50 = vpop.permute.xlu0 %5383  ;;  %v5349_v29 = vpop.permute.xlu1 %5348  ;;  %v5516_v37 = vld [vmem:[#allocation5 + $0x198] sm:$0xff] }
 0x4aa   :  { %v5473_v45 = vld [vmem:[#allocation5 + $0x40] sm:$0xff]  ;;  %5399 = vst.msk [vmem:[#allocation5 + $0x1a0] sm:$0xff] %vm5304_vm7, %v5384_v50  ;;  %5444 = vst.msk [vmem:[#allocation5 + $0x90] sm:$0xff] %vm5304_vm7, %v5384_v50  ;;  %v4926_v13 = vpop.f32.mrb[83].mxu1 }
 0x4ab   :  { %5368 = vst.msk [vmem:[#allocation5 + $0x1c0] sm:$0xff] %vm5304_vm7, %v5349_v29  ;;  %5398 = vst.msk [vmem:[#allocation5 + $0x178] sm:$0xff] %vm5304_vm7, %v5349_v29  ;;  %v5528_v40 = vpack.c.bf16 %v5473_v45, %v5468_v59  ;;  %v5494_v59 = vld [vmem:[#allocation5 + $0xe8] sm:$0xff]  ;;  %v5479_v45 = vld [vmem:[#allocation5 + $0x70] sm:$0xff] }
 0x4ac   :  { %5443 = vst.msk [vmem:[#allocation5 + $0x68] sm:$0xff] %vm5304_vm7, %v5349_v29  ;;  %v5484_v29 = vld [vmem:[#allocation5 + $0x98] sm:$0xff]  ;;  %v5539_v51 = vpack.c.bf16 %v5494_v59, %v5489_v42 }
 0x4ad   :  { %5970 = vmatprep.mubr.bf16.mxu1 %v5528_v40  ;;  %v5386_v63 = vpop.permute.xlu0 %5385  ;;  %v5343_v5 = vpop.permute.xlu1 %5342  ;;  %v5501_v8 = vld [vmem:[#allocation5 + $0x120] sm:$0xff]  ;;  %v5492_v7 = vld [vmem:[#allocation5 + $0xd8] sm:$0xff]  ;;  %v5534_v40 = vpack.c.bf16 %v5484_v29, %v5479_v45 }
 0x4ae   :  { %5971 = vmatmul.mubr.bf16.vlgmr.msra.gmra.mrb[96].mxu1 %v5527_v32  ;;  %5400 = vst.msk [vmem:[#allocation5 + $0x1c8] sm:$0xff] %vm5304_vm7, %v5386_v63  ;;  %5445 = vst.msk [vmem:[#allocation5 + $0xb8] sm:$0xff] %vm5304_vm7, %v5386_v63  ;;  %v5541_v17 = vpack.c.bf16 %v5501_v8, %v5496_v58  ;;  %v5537_v43 = vpack.c.bf16 %v5492_v7, %v5487_v33  ;;  %v5504_v8 = vld [vmem:[#allocation5 + $0x138] sm:$0xff] }
 0x4af   :  { %5365 = vst.msk [vmem:[#allocation5 + $0x148] sm:$0xff] %vm5304_vm7, %v5343_v5  ;;  %5395 = vst.msk [vmem:[#allocation5 + $0x100] sm:$0xff] %vm5304_vm7, %v5343_v5  ;;  %v4929_v44 = vpop.f32.mrb[84].mxu1  ;;  %v5507_v5 = vld [vmem:[#allocation5 + $0x150] sm:$0xff] }
 0x4b0   :  { %5915 = vmatprep.mubr.bf16.mxu0 %v5541_v17  ;;  %v4930_v15 = vpop.f32.mrb[85].mxu1 }
 0x4b1   :  { %5916 = vmatmul.mubr.bf16.gmra.mrb[128].mxu0 %v5540_v16  ;;  %v5483_v19 = vld [vmem:[#allocation5 + $0x90] sm:$0xff]  ;;  %v4931_v18 = vpop.f32.mrb[86].mxu1  ;;  %v5549_v15 = vpack.c.bf16 %v5514_v14, %v5509_v6  ;;  %v5517_v26 = vld [vmem:[#allocation5 + $0x1a0] sm:$0xff] }
 0x4b2   :  { %v5421_v54 = vpop.permute.xlu1 %5420  ;;  %v4932_v52 = vpop.f32.mrb[87].mxu1  ;;  %v5521_v10 = vld [vmem:[#allocation5 + $0x1c0] sm:$0xff]  ;;  %v5512_v32 = vld [vmem:[#allocation5 + $0x178] sm:$0xff]  ;;  %v5499_v16 = vld [vmem:[#allocation5 + $0x110] sm:$0xff] }
 0x4b3   :  { %v5478_v53 = vld [vmem:[#allocation5 + $0x68] sm:$0xff]  ;;  %5446 = vst.msk [vmem:[#allocation5 + $0xe0] sm:$0xff] %vm5304_vm7, %v5421_v54  ;;  %v5551_v2 = vpack.c.bf16 %v5521_v10, %v5516_v37  ;;  %v5547_v58 = vpack.c.bf16 %v5512_v32, %v5507_v5  ;;  %v5544_v44 = vpack.c.bf16 %v5504_v8, %v5499_v16  ;;  %v5519_v52 = vld [vmem:[#allocation5 + $0x1b0] sm:$0xff] }
 0x4b4   :  { %v5533_v23 = vpack.c.bf16 %v5483_v19, %v5478_v53  ;;  %v5423_v25 = vpop.permute.xlu0 %5422  ;;  %v5524_v19 = vld [vmem:[#allocation5 + $0x1d8] sm:$0xff] }
 0x4b5   :  { %5447 = vst.msk [vmem:[#allocation5 + $0x108] sm:$0xff] %vm5304_vm7, %v5423_v25  ;;  %v5488_v38 = vld [vmem:[#allocation5 + $0xb8] sm:$0xff]  ;;  %v5522_v53 = vld [vmem:[#allocation5 + $0x1c8] sm:$0xff]  ;;  %v5554_v25 = vpack.c.bf16 %v5524_v19, %v5519_v52 }
 0x4b6   :  { %5978 = vmatprep.mubr.bf16.mxu1 %v5533_v23  ;;  %v5506_v41 = vld [vmem:[#allocation5 + $0x148] sm:$0xff]  ;;  %v5497_v55 = vld [vmem:[#allocation5 + $0x100] sm:$0xff] }
 0x4b7   :  { %5979 = vmatmul.mubr.bf16.gmra.mrb[100].mxu1 %v5532_v46  ;;  %v5546_v34 = vpack.c.bf16 %v5511_v20, %v5506_v41  ;;  %v4935_v60 = vpop.f32.mrb[88].mxu1  ;;  %v5542_v50 = vpack.c.bf16 %v5502_v30, %v5497_v55  ;;  %v5552_v46 = vpack.c.bf16 %v5522_v53, %v5517_v26 }
 0x4b8   :  { %v4936_v1 = vpop.f32.mrb[89].mxu1 }
 0x4b9   :  { %5921 = vmatprep.mubr.bf16.mxu0 %v5546_v34  ;;  %v4937_v22 = vpop.f32.mrb[90].mxu1 }
 0x4ba   :  { %5922 = vmatmul.mubr.bf16.gmra.mrb[132].mxu0 %v5545_v28  ;;  %v5425_v49 = vpop.permute.xlu1 %5424  ;;  %v5493_v21 = vld [vmem:[#allocation5 + $0xe0] sm:$0xff]  ;;  %v4938_v61 = vpop.f32.mrb[91].mxu1 }
 0x4bb   :  { %5929 = vmatprep.mubr.bf16.mxu0 %v5551_v2  ;;  %5448 = vst.msk [vmem:[#allocation5 + $0x130] sm:$0xff] %vm5304_vm7, %v5425_v49  ;;  %v5538_v39 = vpack.c.bf16 %v5493_v21, %v5488_v38 }
 0x4bc   :  { %v5427_v56 = vpop.permute.xlu0 %5426  ;;  %v5498_v47 = vld [vmem:[#allocation5 + $0x108] sm:$0xff] }
 0x4bd   :  { %5449 = vst.msk [vmem:[#allocation5 + $0x158] sm:$0xff] %vm5304_vm7, %v5427_v56  ;;  %5986 = vmatprep.mubr.bf16.mxu1 %v5538_v39 }
 0x4bf   :  { %5987 = vmatmul.mubr.bf16.gmra.mrb[104].mxu1 %v5537_v43 }
 0x4c2   :  { %5930 = vmatmul.mubr.bf16.gmra.mrb[136].mxu0 %v5550_v11  ;;  %v5429_v3 = vpop.permute.xlu1 %5428  ;;  %v5503_v9 = vld [vmem:[#allocation5 + $0x130] sm:$0xff] }
 0x4c3   :  { %7639 = vmatprep.mubr.msk.bf16.mxu0 %vm5243_vm3, %v5529_v0  ;;  %5450 = vst.msk [vmem:[#allocation5 + $0x180] sm:$0xff] %vm5304_vm7, %v5429_v3  ;;  %v5543_v31 = vpack.c.bf16 %v5503_v9, %v5498_v47 }
 0x4c4   :  { %v5431_v24 = vpop.permute.xlu0 %5430  ;;  %v5508_v13 = vld [vmem:[#allocation5 + $0x158] sm:$0xff] }
 0x4c5   :  { %5451 = vst.msk [vmem:[#allocation5 + $0x1a8] sm:$0xff] %vm5304_vm7, %v5431_v24  ;;  %5992 = vmatprep.mubr.bf16.mxu1 %v5543_v31 }
 0x4c7   :  { %5993 = vmatmul.mubr.bf16.gmra.mrb[108].mxu1 %v5542_v50 }
 0x4ca   :  { %7640 = vmatmul.mubr.msk.bf16.vlgmr.msra.gmra.mrb[140].mxu0 %vm5243_vm3, %v5534_v40  ;;  %v5513_v57 = vld [vmem:[#allocation5 + $0x180] sm:$0xff] }
 0x4cb   :  { %7643 = vmatprep.mubr.msk.bf16.mxu0 %vm5243_vm3, %v5539_v51  ;;  %v5548_v63 = vpack.c.bf16 %v5513_v57, %v5508_v13 }
 0x4cc   :  { %v5433_v17 = vpop.permute.xlu1 %5432  ;;  %v5518_v18 = vld [vmem:[#allocation5 + $0x1a8] sm:$0xff] }
 0x4cd   :  { %5998 = vmatprep.mubr.bf16.mxu1 %v5548_v63  ;;  %5452 = vst.msk [vmem:[#allocation5 + $0x1d0] sm:$0xff] %vm5304_vm7, %v5433_v17 }
 0x4cf   :  { %5999 = vmatmul.mubr.bf16.gmra.mrb[112].mxu1 %v5547_v58 }
 0x4d2   :  { %7644 = vmatmul.mubr.msk.bf16.gmra.mrb[144].mxu0 %vm5243_vm3, %v5544_v44 }
 0x4d3   :  { %7647 = vmatprep.mubr.msk.bf16.mxu0 %vm5243_vm3, %v5549_v15 }
 0x4d4   :  { %v5523_v54 = vld [vmem:[#allocation5 + $0x1d0] sm:$0xff] }
 0x4d5   :  { %v5553_v23 = vpack.c.bf16 %v5523_v54, %v5518_v18 }
 0x4d7   :  { %6006 = vmatprep.mubr.bf16.mxu1 %v5553_v23 }
 0x4d8   :  { %6007 = vmatmul.mubr.bf16.gmra.mrb[116].mxu1 %v5552_v46 }
 0x4da   :  { %7648 = vmatmul.mubr.msk.bf16.gmra.mrb[148].mxu0 %vm5243_vm3, %v5554_v25 }
 0x546   :  { %v7380_v4 = vpop.f32.mrb[116].mxu0 }
 0x547   :  { %v7381_v41 = vpop.f32.mrb[117].mxu0 }
 0x548   :  { %v7382_v20 = vadd.f32 %v7381_v41, %v7380_v4  ;;  %v7383_v10 = vpop.f32.mrb[118].mxu0 }
 0x549   :  { %v7384_v34 = vpop.f32.mrb[119].mxu0 }
 0x54a   :  { %v7385_v27 = vadd.f32 %v7384_v34, %v7383_v10  ;;  %v4941_v28 = vpop.f32.mrb[92].mxu1 }
 0x54b   :  { %v4942_v37 = vpop.f32.mrb[93].mxu1 }
 0x54c   :  { %v4943_v60 = vpop.f32.mrb[94].mxu1 }
 0x54d   :  { %v4944_v2 = vpop.f32.mrb[95].mxu1 }
 0x552   :  { %v7386_v1 = vpop.f32.mrb[120].mxu0 }
 0x553   :  { %v7387_v7 = vpop.f32.mrb[121].mxu0 }
 0x554   :  { %v7388_v22 = vadd.f32 %v7387_v7, %v7386_v1  ;;  %v7389_v49 = vpop.f32.mrb[122].mxu0 }
 0x555   :  { %v7390_v38 = vpop.f32.mrb[123].mxu0 }
 0x556   :  { %v7391_v21 = vadd.f32 %v7390_v38, %v7389_v49 }
 0x55e   :  { %v7392_v61 = vpop.f32.mrb[124].mxu0 }
 0x55f   :  { %v7393_v39 = vpop.f32.mrb[125].mxu0 }
 0x560   :  { %v7395_v33 = vpop.f32.mrb[126].mxu0 }
 0x561   :  { %v7396_v56 = vpop.f32.mrb[127].mxu0 }
 0x581   :  { %v7432_v43 = vpop.f32.mrb[96].mxu1 }
 0x582   :  { %v7433_v12 = vpop.f32.mrb[97].mxu1 }
 0x583   :  { %v7434_v36 = vadd.f32 %v7433_v12, %v7432_v43  ;;  %v7435_v62 = vpop.f32.mrb[98].mxu1 }
 0x584   :  { %v7436_v11 = vpop.f32.mrb[99].mxu1  ;;  %v7398_v0 = vpop.f32.mrb[128].mxu0 }
 0x585   :  { %v7437_v48 = vadd.f32 %v7436_v11, %v7435_v62  ;;  %v5973_v55 = vadd.f32 %v7434_v36, %v7382_v20  ;;  %v7399_v3 = vpop.f32.mrb[129].mxu0 }
 0x586   :  { %v7401_v47 = vpop.f32.mrb[130].mxu0 }
 0x587   :  { %v5976_v9 = vadd.f32 %v7437_v48, %v7385_v27  ;;  %v7402_v31 = vpop.f32.mrb[131].mxu0 }
 0x58a   :  { %v7438_v30 = vpop.f32.mrb[100].mxu1 }
 0x58b   :  { %v7439_v24 = vpop.f32.mrb[101].mxu1 }
 0x58c   :  { %v7440_v50 = vadd.f32 %v7439_v24, %v7438_v30  ;;  %v7441_v29 = vpop.f32.mrb[102].mxu1 }
 0x58d   :  { %v7442_v59 = vpop.f32.mrb[103].mxu1  ;;  %v7404_v40 = vpop.f32.mrb[132].mxu0 }
 0x58e   :  { %v7443_v45 = vadd.f32 %v7442_v59, %v7441_v29  ;;  %v5981_v42 = vadd.f32 %v7440_v50, %v7388_v22  ;;  %v7405_v51 = vpop.f32.mrb[133].mxu0 }
 0x58f   :  { %v7406_v32 = vadd.f32 %v7405_v51, %v7404_v40  ;;  %v7407_v13 = vpop.f32.mrb[134].mxu0 }
 0x590   :  { %v5984_v57 = vadd.f32 %v7443_v45, %v7391_v21  ;;  %v7408_v63 = vpop.f32.mrb[135].mxu0 }
 0x591   :  { %v7409_v5 = vadd.f32 %v7408_v63, %v7407_v13 }
 0x592   :  { %v7444_v58 = vpop.f32.mrb[104].mxu1 }
 0x593   :  { %v7445_v8 = vpop.f32.mrb[105].mxu1 }
 0x594   :  { %v7447_v17 = vpop.f32.mrb[106].mxu1 }
 0x595   :  { %v7410_v14 = vpop.f32.mrb[136].mxu0  ;;  %v7448_v16 = vpop.f32.mrb[107].mxu1 }
 0x596   :  { %v7411_v44 = vpop.f32.mrb[137].mxu0 }
 0x597   :  { %v7412_v6 = vadd.f32 %v7411_v44, %v7410_v14  ;;  %v7413_v15 = vpop.f32.mrb[138].mxu0 }
 0x598   :  { %v7414_v53 = vpop.f32.mrb[139].mxu0 }
 0x599   :  { %v7415_v19 = vadd.f32 %v7414_v53, %v7413_v15 }
 0x59a   :  { %v7450_v18 = vpop.f32.mrb[108].mxu1 }
 0x59b   :  { %v7451_v54 = vpop.f32.mrb[109].mxu1 }
 0x59c   :  { %v7453_v23 = vpop.f32.mrb[110].mxu1 }
 0x59d   :  { %v7454_v26 = vpop.f32.mrb[111].mxu1  ;;  %v7641_v52 = vpop.f32.mrb[140].mxu0 }
 0x59e   :  { %v6058_v46 = vadd.f32 %v7641_v52, %v5981_v42  ;;  %v6049_v25 = vpop.f32.mrb[141].mxu0 }
 0x59f   :  { %v6050_v4 = vadd.f32 %v6049_v25, %v5973_v55  ;;  %v7642_v41 = vpop.f32.mrb[142].mxu0 }
 0x5a0   :  { %vm6094_vm9 = vcmp.ge.f32.partialorder %v6058_v46, 0.0  ;;  %v6102_v20 = vmul.f32 0.05, %v6058_v46  ;;  %v6061_v10 = vadd.f32 %v7642_v41, %v5984_v57  ;;  %v6052_v34 = vpop.f32.mrb[143].mxu0 }
 0x5a1   :  { %vm6092_vm2 = vcmp.ge.f32.partialorder %v6050_v4, 0.0  ;;  %v6100_v27 = vmul.f32 0.05, %v6050_v4  ;;  %v6053_v28 = vadd.f32 %v6052_v34, %v5976_v9 }
 0x5a2   :  { %v11126_v37 = vsel %vm6094_vm9, %v6058_v46, %v6102_v20  ;;  %vm6095_vm4 = vcmp.ge.f32.partialorder %v6061_v10, 0.0  ;;  %v6103_v60 = vmul.f32 0.05, %v6061_v10  ;;  %v7456_v2 = vpop.f32.mrb[112].mxu1 }
 0x5a3   :  { %v11128_v1 = vsel %vm6092_vm2, %v6050_v4, %v6100_v27  ;;  %vm6093_vm5 = vcmp.ge.f32.partialorder %v6053_v28, 0.0  ;;  %v6101_v7 = vmul.f32 0.05, %v6053_v28  ;;  %v7457_v22 = vpop.f32.mrb[113].mxu1 }
 0x5a4   :  { %v11130_v49 = vsel %vm6095_vm4, %v6061_v10, %v6103_v60  ;;  %v7458_v38 = vadd.f32 %v7457_v22, %v7456_v2  ;;  %v7459_v21 = vpop.f32.mrb[114].mxu1 }
 0x5a5   :  { %v6109_v61 = vsel %vm6093_vm5, %v6053_v28, %v6101_v7  ;;  %v7460_v39 = vpop.f32.mrb[115].mxu1  ;;  %v7645_v33 = vpop.f32.mrb[144].mxu0 }
 0x5a6   :  { %v7461_v56 = vadd.f32 %v7460_v39, %v7459_v21  ;;  %v6065_v43 = vpop.f32.mrb[145].mxu0  ;;  %v6001_v12 = vadd.f32 %v7458_v38, %v7406_v32 }
 0x5a7   :  { %v7646_v36 = vpop.f32.mrb[146].mxu0 }
 0x5a8   :  { %v6067_v62 = vpop.f32.mrb[147].mxu0  ;;  %v6004_v11 = vadd.f32 %v7461_v56, %v7409_v5 }
 0x5ab   :  { %v7462_v48 = vpop.f32.mrb[116].mxu1 }
 0x5ac   :  { %v7463_v55 = vpop.f32.mrb[117].mxu1 }
 0x5ad   :  { %v7649_v0 = vpop.f32.mrb[148].mxu0  ;;  %v7464_v47 = vadd.f32 %v7463_v55, %v7462_v48  ;;  %v7465_v31 = vpop.f32.mrb[118].mxu1 }
 0x5ae   :  { %v6077_v3 = vpop.f32.mrb[149].mxu0  ;;  %v7466_v24 = vpop.f32.mrb[119].mxu1 }
 0x5af   :  { %v6078_v9 = vadd.f32 %v6077_v3, %v6001_v12  ;;  %v7650_v30 = vpop.f32.mrb[150].mxu0  ;;  %v6009_v29 = vadd.f32 %v7464_v47, %v7412_v6  ;;  %v7467_v45 = vadd.f32 %v7466_v24, %v7465_v31 }
 0x5b0   :  { %v6080_v50 = vpop.f32.mrb[151].mxu0 }
 0x5b1   :  { %vm6096_vm6 = vcmp.ge.f32.partialorder %v6078_v9, 0.0  ;;  %v6104_v59 = vmul.f32 0.05, %v6078_v9  ;;  %v6081_v40 = vadd.f32 %v6080_v50, %v6004_v11  ;;  %v6086_v42 = vadd.f32 %v7649_v0, %v6009_v29 }
 0x5b2   :  { %v6012_v32 = vadd.f32 %v7467_v45, %v7415_v19 }
 0x5b3   :  { %v11132_v51 = vsel %vm6096_vm6, %v6078_v9, %v6104_v59  ;;  %vm6097_vm7 = vcmp.ge.f32.partialorder %v6081_v40, 0.0  ;;  %v6105_v13 = vmul.f32 0.05, %v6081_v40  ;;  %vm6098_vm8 = vcmp.ge.f32.partialorder %v6086_v42, 0.0 }
 0x5b4   :  { %v6106_v57 = vmul.f32 0.05, %v6086_v42  ;;  %v6089_v63 = vadd.f32 %v7650_v30, %v6012_v32 }
 0x5b5   :  { %v11134_v5 = vsel %vm6097_vm7, %v6081_v40, %v6105_v13 }
 0x5b6   :  { %v11136_v58 = vsel %vm6098_vm8, %v6086_v42, %v6106_v57  ;;  %vm6099_vm10 = vcmp.ge.f32.partialorder %v6089_v63, 0.0  ;;  %v6107_v8 = vmul.f32 0.05, %v6089_v63 }
 0x5b8   :  { %v11138_v17 = vsel %vm6099_vm10, %v6089_v63, %v6107_v8 }
 0x5b9   :  { %7763 = dma.done.wait [#allocation6], 16640 }
 0x5ba   :  { %7764 = vsyncadd [#allocation6], 4294950656  ;;  %v6122_v14 = vpack.c.bf16 %v6109_v61, %v6109_v61  ;;  %v6131_v16 = vld [vmem:[#allocation2 + $0x8] sm:$0xff]  ;;  %v6130_v44 = vld [vmem:[#allocation2] sm:$0xff]  ;;  %v6121_v62 = vpack.c.bf16 %v11128_v1, %v11128_v1  ;;  %v6124_v11 = vpack.c.bf16 %v11130_v49, %v11130_v49  ;;  %vm6272_vm11 = vcmask 130048  }
 0x5bb   :  { %v6133_v6 = vld [vmem:[#allocation2 + $0x18] sm:$0xff]  ;;  %6276 = vmatprep.subr.bf16.mxu1 %v6131_v16  ;;  %v6132_v15 = vld [vmem:[#allocation2 + $0x10] sm:$0xff]  ;;  %v6135_v53 = vld [vmem:[#allocation2 + $0x28] sm:$0xff] }
 0x5bc   :  { %6308 = vmatprep.mubr.bf16.mxu1 %v6122_v14  ;;  %6277 = vmatpush1.bf16.msra.mxu1 %v6130_v44  ;;  %v6134_v19 = vld [vmem:[#allocation2 + $0x20] sm:$0xff]  ;;  %v6137_v18 = vld [vmem:[#allocation2 + $0x38] sm:$0xff]  ;;  %v6136_v54 = vld [vmem:[#allocation2 + $0x30] sm:$0xff] }
 0x5bd   :  { %6278 = vmatprep.subr.bf16.mxu1 %v6133_v6  ;;  %v6139_v23 = vld [vmem:[#allocation2 + $0x48] sm:$0xff]  ;;  %v6138_v26 = vld [vmem:[#allocation2 + $0x40] sm:$0xff]  ;;  %v6141_v52 = vld [vmem:[#allocation2 + $0x58] sm:$0xff] }
 0x5be   :  { %v6140_v46 = vld [vmem:[#allocation2 + $0x50] sm:$0xff]  ;;  %v6143_v25 = vld [vmem:[#allocation2 + $0x68] sm:$0xff]  ;;  %v6142_v4 = vld [vmem:[#allocation2 + $0x60] sm:$0xff] }
 0x5bf   :  { %v6145_v41 = vld [vmem:[#allocation2 + $0x78] sm:$0xff]  ;;  %v6144_v20 = vld [vmem:[#allocation2 + $0x70] sm:$0xff]  ;;  %v6147_v10 = vld [vmem:[#allocation2 + $0x88] sm:$0xff] }
 0x5c0   :  { %6279 = vmatpush1.bf16.msra.mxu1 %v6132_v15  ;;  %v6146_v34 = vld [vmem:[#allocation2 + $0x80] sm:$0xff]  ;;  %v6149_v27 = vld [vmem:[#allocation2 + $0x98] sm:$0xff]  ;;  %v6148_v28 = vld [vmem:[#allocation2 + $0x90] sm:$0xff] }
 0x5c1   :  { %6280 = vmatprep.subr.bf16.mxu1 %v6135_v53  ;;  %v6151_v60 = vld [vmem:[#allocation2 + $0xa8] sm:$0xff]  ;;  %v6150_v2 = vld [vmem:[#allocation2 + $0xa0] sm:$0xff]  ;;  %v6153_v7 = vld [vmem:[#allocation2 + $0xb8] sm:$0xff] }
 0x5c2   :  { %v6152_v22 = vld [vmem:[#allocation2 + $0xb0] sm:$0xff]  ;;  %v6155_v38 = vld [vmem:[#allocation2 + $0xc8] sm:$0xff]  ;;  %v6154_v21 = vld [vmem:[#allocation2 + $0xc0] sm:$0xff] }
 0x5c3   :  { %v6157_v61 = vld [vmem:[#allocation2 + $0xd8] sm:$0xff]  ;;  %v6156_v39 = vld [vmem:[#allocation2 + $0xd0] sm:$0xff]  ;;  %v6159_v33 = vld [vmem:[#allocation2 + $0xe8] sm:$0xff] }
 0x5c4   :  { %6281 = vmatpush1.bf16.msra.mxu1 %v6134_v19  ;;  %v6158_v56 = vld [vmem:[#allocation2 + $0xe0] sm:$0xff]  ;;  %v6161_v43 = vld [vmem:[#allocation2 + $0xf8] sm:$0xff]  ;;  %v6160_v12 = vld [vmem:[#allocation2 + $0xf0] sm:$0xff] }
 0x5c5   :  { %6282 = vmatprep.subr.bf16.mxu1 %v6137_v18  ;;  %v6163_v36 = vld [vmem:[#allocation2 + $0x108] sm:$0xff]  ;;  %v6162_v48 = vld [vmem:[#allocation2 + $0x100] sm:$0xff]  ;;  %v6165_v0 = vld [vmem:[#allocation2 + $0x118] sm:$0xff] }
 0x5c6   :  { %v6164_v55 = vld [vmem:[#allocation2 + $0x110] sm:$0xff]  ;;  %v6167_v3 = vld [vmem:[#allocation2 + $0x128] sm:$0xff]  ;;  %v6166_v47 = vld [vmem:[#allocation2 + $0x120] sm:$0xff] }
 0x5c7   :  { %v6169_v9 = vld [vmem:[#allocation2 + $0x138] sm:$0xff]  ;;  %v6168_v1 = vld [vmem:[#allocation2 + $0x130] sm:$0xff]  ;;  %v6171_v31 = vld [vmem:[#allocation2 + $0x148] sm:$0xff] }
 0x5c8   :  { %6283 = vmatpush1.bf16.msra.mxu1 %v6136_v54  ;;  %v6170_v49 = vld [vmem:[#allocation2 + $0x140] sm:$0xff]  ;;  %v6173_v30 = vld [vmem:[#allocation2 + $0x158] sm:$0xff]  ;;  %v6172_v24 = vld [vmem:[#allocation2 + $0x150] sm:$0xff] }
 0x5c9   :  { %6284 = vmatprep.subr.bf16.mxu1 %v6139_v23  ;;  %v6175_v50 = vld [vmem:[#allocation2 + $0x168] sm:$0xff]  ;;  %v6174_v29 = vld [vmem:[#allocation2 + $0x160] sm:$0xff]  ;;  %v6177_v59 = vld [vmem:[#allocation2 + $0x178] sm:$0xff] }
 0x5ca   :  { %v6176_v45 = vld [vmem:[#allocation2 + $0x170] sm:$0xff]  ;;  %v6179_v40 = vld [vmem:[#allocation2 + $0x188] sm:$0xff]  ;;  %v6178_v42 = vld [vmem:[#allocation2 + $0x180] sm:$0xff] }
 0x5cb   :  { %v6181_v32 = vld [vmem:[#allocation2 + $0x198] sm:$0xff]  ;;  %v6180_v13 = vld [vmem:[#allocation2 + $0x190] sm:$0xff]  ;;  %v6183_v57 = vld [vmem:[#allocation2 + $0x1a8] sm:$0xff] }
 0x5cc   :  { %6285 = vmatpush1.bf16.msra.mxu1 %v6138_v26  ;;  %v6182_v63 = vld [vmem:[#allocation2 + $0x1a0] sm:$0xff]  ;;  %v6185_v8 = vld [vmem:[#allocation2 + $0x1b8] sm:$0xff]  ;;  %v6184_v14 = vld [vmem:[#allocation2 + $0x1b0] sm:$0xff]  ;;  %v6123_v26 = vpack.c.bf16 %v11126_v37, %v11126_v37 }
 0x5cd   :  { %6286 = vmatprep.subr.bf16.mxu1 %v6141_v52  ;;  %v6187_v16 = vld [vmem:[#allocation2 + $0x1c8] sm:$0xff]  ;;  %v6186_v44 = vld [vmem:[#allocation2 + $0x1c0] sm:$0xff]  ;;  %v6189_v6 = vld [vmem:[#allocation2 + $0x1d8] sm:$0xff]  ;;  %v6126_v52 = vpack.c.bf16 %v11134_v5, %v11134_v5 }
 0x5ce   :  { %v6188_v15 = vld [vmem:[#allocation2 + $0x1d0] sm:$0xff]  ;;  %v6191_v53 = vld [vmem:[#allocation2 + $0x1e8] sm:$0xff]  ;;  %v6190_v19 = vld [vmem:[#allocation2 + $0x1e0] sm:$0xff] }
 0x5cf   :  { %v6193_v18 = vld [vmem:[#allocation2 + $0x1f8] sm:$0xff]  ;;  %v6192_v54 = vld [vmem:[#allocation2 + $0x1f0] sm:$0xff]  ;;  %v6195_v23 = vld [vmem:[#allocation2 + $0x208] sm:$0xff] }
 0x5d0   :  { %6287 = vmatpush1.bf16.msra.mxu1 %v6140_v46  ;;  %v6194_v46 = vld [vmem:[#allocation2 + $0x200] sm:$0xff]  ;;  %v6200_v37 = vld [vmem:[#allocation2 + $0x230] sm:$0xff] }
 0x5d1   :  { %6288 = vmatprep.subr.bf16.mxu1 %v6143_v25  ;;  %v6197_v25 = vld [vmem:[#allocation2 + $0x218] sm:$0xff]  ;;  %v6202_v5 = vld [vmem:[#allocation2 + $0x240] sm:$0xff] }
 0x5d4   :  { %6289 = vmatpush1.bf16.msra.mxu1 %v6142_v4  ;;  %v6196_v4 = vld [vmem:[#allocation2 + $0x210] sm:$0xff] }
 0x5d5   :  { %6290 = vmatprep.subr.bf16.mxu1 %v6145_v41  ;;  %v6199_v41 = vld [vmem:[#allocation2 + $0x228] sm:$0xff] }
 0x5d8   :  { %6291 = vmatpush1.bf16.msra.mxu1 %v6144_v20  ;;  %v6198_v20 = vld [vmem:[#allocation2 + $0x220] sm:$0xff] }
 0x5d9   :  { %6292 = vmatprep.subr.bf16.mxu1 %v6147_v10  ;;  %v6201_v10 = vld [vmem:[#allocation2 + $0x238] sm:$0xff] }
 0x5dc   :  { %6293 = vmatpush1.bf16.msra.mxu1 %v6146_v34  ;;  %v6203_v34 = vld [vmem:[#allocation2 + $0x248] sm:$0xff] }
 0x5dd   :  { %6294 = vmatprep.subr.bf16.mxu1 %v6149_v27  ;;  %v6205_v27 = vld [vmem:[#allocation2 + $0x258] sm:$0xff] }
 0x5e0   :  { %6295 = vmatpush1.bf16.msra.mxu1 %v6148_v28  ;;  %v6204_v28 = vld [vmem:[#allocation2 + $0x250] sm:$0xff] }
 0x5e1   :  { %6296 = vmatprep.subr.bf16.mxu1 %v6151_v60  ;;  %v6207_v60 = vld [vmem:[#allocation2 + $0x268] sm:$0xff] }
 0x5e4   :  { %6297 = vmatpush1.bf16.msra.mxu1 %v6150_v2  ;;  %v6206_v2 = vld [vmem:[#allocation2 + $0x260] sm:$0xff] }
 0x5e5   :  { %6298 = vmatprep.subr.bf16.mxu1 %v6153_v7  ;;  %v6209_v7 = vld [vmem:[#allocation2 + $0x278] sm:$0xff] }
 0x5e8   :  { %6299 = vmatpush1.bf16.msra.mxu1 %v6152_v22  ;;  %v6208_v22 = vld [vmem:[#allocation2 + $0x270] sm:$0xff] }
 0x5e9   :  { %6300 = vmatprep.subr.bf16.mxu1 %v6155_v38  ;;  %v6211_v38 = vld [vmem:[#allocation2 + $0x288] sm:$0xff] }
 0x5ec   :  { %6301 = vmatpush1.bf16.msra.mxu1 %v6154_v21  ;;  %v6210_v21 = vld [vmem:[#allocation2 + $0x280] sm:$0xff] }
 0x5ed   :  { %6302 = vmatprep.subr.bf16.mxu1 %v6157_v61  ;;  %v6213_v61 = vld [vmem:[#allocation2 + $0x298] sm:$0xff] }
 0x5f0   :  { %6303 = vmatpush1.bf16.msra.mxu1 %v6156_v39  ;;  %v6212_v39 = vld [vmem:[#allocation2 + $0x290] sm:$0xff] }
 0x5f1   :  { %6304 = vmatprep.subr.bf16.mxu1 %v6159_v33  ;;  %v6215_v33 = vld [vmem:[#allocation2 + $0x2a8] sm:$0xff] }
 0x5f4   :  { %6305 = vmatpush1.bf16.msra.mxu1 %v6158_v56  ;;  %v6214_v56 = vld [vmem:[#allocation2 + $0x2a0] sm:$0xff] }
 0x5f5   :  { %6306 = vmatprep.subr.bf16.mxu1 %v6161_v43  ;;  %v6217_v43 = vld [vmem:[#allocation2 + $0x2b8] sm:$0xff] }
 0x5f8   :  { %6307 = vmatpush1.bf16.msra.mxu1 %v6160_v12  ;;  %v6216_v12 = vld [vmem:[#allocation2 + $0x2b0] sm:$0xff] }
 0x5f9   :  { %6317 = vmatprep.subr.bf16.mxu1 %v6163_v36  ;;  %v6219_v36 = vld [vmem:[#allocation2 + $0x2c8] sm:$0xff] }
 0x5fb   :  { %6309 = vmatmul.mubr.bf16.vlgmr.msra.gmra.mrb[120].mxu1 %v6121_v62  ;;  %v6218_v62 = vld [vmem:[#allocation2 + $0x2c0] sm:$0xff] }
 0x5fc   :  { %6318 = vmatpush1.bf16.msra.mxu1 %v6162_v48  ;;  %6349 = vmatprep.mubr.bf16.mxu1 %v6124_v11  ;;  %v6221_v11 = vld [vmem:[#allocation2 + $0x2d8] sm:$0xff]  ;;  %v6220_v48 = vld [vmem:[#allocation2 + $0x2d0] sm:$0xff] }
 0x5fd   :  { %6319 = vmatprep.subr.bf16.mxu1 %v6165_v0  ;;  %v6223_v0 = vld [vmem:[#allocation2 + $0x2e8] sm:$0xff] }
 0x600   :  { %6320 = vmatpush1.bf16.msra.mxu1 %v6164_v55  ;;  %v6222_v55 = vld [vmem:[#allocation2 + $0x2e0] sm:$0xff] }
 0x601   :  { %6321 = vmatprep.subr.bf16.mxu1 %v6167_v3  ;;  %v6225_v3 = vld [vmem:[#allocation2 + $0x2f8] sm:$0xff] }
 0x604   :  { %6322 = vmatpush1.bf16.msra.mxu1 %v6166_v47  ;;  %v6224_v47 = vld [vmem:[#allocation2 + $0x2f0] sm:$0xff] }
 0x605   :  { %6323 = vmatprep.subr.bf16.mxu1 %v6169_v9  ;;  %v6227_v9 = vld [vmem:[#allocation2 + $0x308] sm:$0xff] }
 0x608   :  { %6324 = vmatpush1.bf16.msra.mxu1 %v6168_v1  ;;  %v6125_v1 = vpack.c.bf16 %v11132_v51, %v11132_v51  ;;  %v6232_v51 = vld [vmem:[#allocation2 + $0x330] sm:$0xff] }
 0x609   :  { %6325 = vmatprep.subr.bf16.mxu1 %v6171_v31  ;;  %v6128_v31 = vpack.c.bf16 %v11138_v17, %v11138_v17  ;;  %v6234_v17 = vld [vmem:[#allocation2 + $0x340] sm:$0xff] }
 0x60c   :  { %6326 = vmatpush1.bf16.msra.mxu1 %v6170_v49  ;;  %v6226_v49 = vld [vmem:[#allocation2 + $0x300] sm:$0xff] }
 0x60d   :  { %6327 = vmatprep.subr.bf16.mxu1 %v6173_v30  ;;  %v6229_v30 = vld [vmem:[#allocation2 + $0x318] sm:$0xff] }
 0x610   :  { %6328 = vmatpush1.bf16.msra.mxu1 %v6172_v24  ;;  %v6228_v24 = vld [vmem:[#allocation2 + $0x310] sm:$0xff] }
 0x611   :  { %6329 = vmatprep.subr.bf16.mxu1 %v6175_v50  ;;  %v6231_v50 = vld [vmem:[#allocation2 + $0x328] sm:$0xff] }
 0x614   :  { %6330 = vmatpush1.bf16.msra.mxu1 %v6174_v29  ;;  %v6230_v29 = vld [vmem:[#allocation2 + $0x320] sm:$0xff] }
 0x615   :  { %6331 = vmatprep.subr.bf16.mxu1 %v6177_v59  ;;  %v6233_v59 = vld [vmem:[#allocation2 + $0x338] sm:$0xff] }
 0x618   :  { %6332 = vmatpush1.bf16.msra.mxu1 %v6176_v45  ;;  %v6235_v45 = vld [vmem:[#allocation2 + $0x348] sm:$0xff] }
 0x619   :  { %6333 = vmatprep.subr.bf16.mxu1 %v6179_v40  ;;  %v6237_v40 = vld [vmem:[#allocation2 + $0x358] sm:$0xff] }
 0x61c   :  { %6334 = vmatpush1.bf16.msra.mxu1 %v6178_v42  ;;  %v6236_v42 = vld [vmem:[#allocation2 + $0x350] sm:$0xff] }
 0x61d   :  { %6335 = vmatprep.subr.bf16.mxu1 %v6181_v32  ;;  %v6239_v32 = vld [vmem:[#allocation2 + $0x368] sm:$0xff] }
 0x620   :  { %6336 = vmatpush1.bf16.msra.mxu1 %v6180_v13  ;;  %v6238_v13 = vld [vmem:[#allocation2 + $0x360] sm:$0xff] }
 0x621   :  { %6337 = vmatprep.subr.bf16.mxu1 %v6183_v57  ;;  %v6241_v57 = vld [vmem:[#allocation2 + $0x378] sm:$0xff] }
 0x624   :  { %6338 = vmatpush1.bf16.msra.mxu1 %v6182_v63  ;;  %v6240_v63 = vld [vmem:[#allocation2 + $0x370] sm:$0xff] }
 0x625   :  { %6339 = vmatprep.subr.bf16.mxu1 %v6185_v8  ;;  %v6243_v8 = vld [vmem:[#allocation2 + $0x388] sm:$0xff] }
 0x628   :  { %6340 = vmatpush1.bf16.msra.mxu1 %v6184_v14  ;;  %v6242_v14 = vld [vmem:[#allocation2 + $0x380] sm:$0xff] }
 0x629   :  { %6341 = vmatprep.subr.bf16.mxu1 %v6187_v16  ;;  %v6245_v16 = vld [vmem:[#allocation2 + $0x398] sm:$0xff] }
 0x62c   :  { %6342 = vmatpush1.bf16.msra.mxu1 %v6186_v44  ;;  %v6244_v44 = vld [vmem:[#allocation2 + $0x390] sm:$0xff] }
 0x62d   :  { %6343 = vmatprep.subr.bf16.mxu1 %v6189_v6  ;;  %v6247_v6 = vld [vmem:[#allocation2 + $0x3a8] sm:$0xff] }
 0x630   :  { %6344 = vmatpush1.bf16.msra.mxu1 %v6188_v15  ;;  %v6246_v15 = vld [vmem:[#allocation2 + $0x3a0] sm:$0xff] }
 0x631   :  { %6345 = vmatprep.subr.bf16.mxu1 %v6191_v53  ;;  %v6249_v53 = vld [vmem:[#allocation2 + $0x3b8] sm:$0xff] }
 0x634   :  { %6346 = vmatpush1.bf16.msra.mxu1 %v6190_v19  ;;  %v6248_v19 = vld [vmem:[#allocation2 + $0x3b0] sm:$0xff] }
 0x635   :  { %6347 = vmatprep.subr.bf16.mxu1 %v6193_v18  ;;  %v6251_v18 = vld [vmem:[#allocation2 + $0x3c8] sm:$0xff] }
 0x638   :  { %6348 = vmatpush1.bf16.msra.mxu1 %v6192_v54  ;;  %v6250_v54 = vld [vmem:[#allocation2 + $0x3c0] sm:$0xff] }
 0x639   :  { %6358 = vmatprep.subr.bf16.mxu1 %v6195_v23  ;;  %v6253_v23 = vld [vmem:[#allocation2 + $0x3d8] sm:$0xff] }
 0x63b   :  { %6350 = vmatmul.mubr.bf16.vlgmr.msra.gmra.mrb[120].mxu1 %v6123_v26  ;;  %v6252_v26 = vld [vmem:[#allocation2 + $0x3d0] sm:$0xff] }
 0x63c   :  { %6359 = vmatpush1.bf16.msra.mxu1 %v6194_v46  ;;  %6390 = vmatprep.mubr.bf16.mxu1 %v6126_v52  ;;  %v6255_v52 = vld [vmem:[#allocation2 + $0x3e8] sm:$0xff]  ;;  %v6254_v46 = vld [vmem:[#allocation2 + $0x3e0] sm:$0xff] }
 0x63d   :  { %6360 = vmatprep.subr.bf16.mxu1 %v6197_v25  ;;  %v6257_v25 = vld [vmem:[#allocation2 + $0x3f8] sm:$0xff] }
 0x640   :  { %6361 = vmatpush1.bf16.msra.mxu1 %v6196_v4  ;;  %v6256_v4 = vld [vmem:[#allocation2 + $0x3f0] sm:$0xff] }
 0x641   :  { %6362 = vmatprep.subr.bf16.mxu1 %v6199_v41  ;;  %v6259_v41 = vld [vmem:[#allocation2 + $0x408] sm:$0xff] }
 0x644   :  { %6363 = vmatpush1.bf16.msra.mxu1 %v6198_v20  ;;  %v6127_v20 = vpack.c.bf16 %v11136_v58, %v11136_v58  ;;  %v6260_v58 = vld [vmem:[%s11264_s8] sm:$0x3] }
 0x645   :  { %6364 = vmatprep.subr.bf16.mxu1 %v6201_v10  ;;  %v6258_v10 = vld [vmem:[#allocation2 + $0x400] sm:$0xff] }
 0x648   :  { %6365 = vmatpush1.bf16.msra.mxu1 %v6200_v37  ;;  %v6120_v37 = vld [vmem:[%s11257_s1] sm:$0xff] }
 0x649   :  { %6366 = vmatprep.subr.bf16.mxu1 %v6203_v34  ;;  %v6129_v34 = vpack.c.bf16 %v6120_v37, %v6120_v37 }
 0x64c   :  { %6367 = vmatpush1.bf16.msra.mxu1 %v6202_v5  ;;  %v6262_v5 = vlaneseq }
 0x64d   :  { %6368 = vmatprep.subr.bf16.mxu1 %v6205_v27 }
 0x64e   :  { %v11158_v27 = vshrl.u32 %v6262_v5, 7 }
 0x650   :  { %6369 = vmatpush1.bf16.msra.mxu1 %v6204_v28  ;;  %v11161_v28 = vsub.s32 0, %v11158_v27 }
 0x651   :  { %6370 = vmatprep.subr.bf16.mxu1 %v6207_v60  ;;  %v11167_v60 = vsub.s32 1, %v11158_v27 }
 0x654   :  { %6371 = vmatpush1.bf16.msra.mxu1 %v6206_v2  ;;  %v6265_v2 = vrot.slane %v6260_v58, %v11161_v28 }
 0x655   :  { %6372 = vmatprep.subr.bf16.mxu1 %v6209_v7  ;;  %v6269_v7 = vrot.slane %v6260_v58, %v11167_v60 }
 0x658   :  { %6373 = vmatpush1.bf16.msra.mxu1 %v6208_v22 }
 0x659   :  { %6374 = vmatprep.subr.bf16.mxu1 %v6211_v38 }
 0x65c   :  { %6375 = vmatpush1.bf16.msra.mxu1 %v6210_v21 }
 0x65d   :  { %6376 = vmatprep.subr.bf16.mxu1 %v6213_v61 }
 0x660   :  { %6377 = vmatpush1.bf16.msra.mxu1 %v6212_v39 }
 0x661   :  { %6378 = vmatprep.subr.bf16.mxu1 %v6215_v33 }
 0x664   :  { %6379 = vmatpush1.bf16.msra.mxu1 %v6214_v56 }
 0x665   :  { %6380 = vmatprep.subr.bf16.mxu1 %v6217_v43 }
 0x668   :  { %6381 = vmatpush1.bf16.msra.mxu1 %v6216_v12 }
 0x669   :  { %6382 = vmatprep.subr.bf16.mxu1 %v6219_v36 }
 0x66c   :  { %6383 = vmatpush1.bf16.msra.mxu1 %v6218_v62 }
 0x66d   :  { %6384 = vmatprep.subr.bf16.mxu1 %v6221_v11 }
 0x670   :  { %6385 = vmatpush1.bf16.msra.mxu1 %v6220_v48 }
 0x671   :  { %6386 = vmatprep.subr.bf16.mxu1 %v6223_v0 }
 0x674   :  { %6387 = vmatpush1.bf16.msra.mxu1 %v6222_v55 }
 0x675   :  { %6388 = vmatprep.subr.bf16.mxu1 %v6225_v3 }
 0x678   :  { %6389 = vmatpush1.bf16.msra.mxu1 %v6224_v47 }
 0x679   :  { %6399 = vmatprep.subr.bf16.mxu1 %v6227_v9 }
 0x67b   :  { %6391 = vmatmul.mubr.bf16.vlgmr.msra.gmra.mrb[120].mxu1 %v6125_v1 }
 0x67c   :  { %6400 = vmatpush1.bf16.msra.mxu1 %v6226_v49  ;;  %6431 = vmatprep.mubr.bf16.mxu1 %v6128_v31 }
 0x67d   :  { %6401 = vmatprep.subr.bf16.mxu1 %v6229_v30 }
 0x680   :  { %6402 = vmatpush1.bf16.msra.mxu1 %v6228_v24 }
 0x681   :  { %6403 = vmatprep.subr.bf16.mxu1 %v6231_v50 }
 0x684   :  { %6404 = vmatpush1.bf16.msra.mxu1 %v6230_v29 }
 0x685   :  { %6405 = vmatprep.subr.bf16.mxu1 %v6233_v59 }
 0x688   :  { %6406 = vmatpush1.bf16.msra.mxu1 %v6232_v51 }
 0x689   :  { %6407 = vmatprep.subr.bf16.mxu1 %v6235_v45 }
 0x68c   :  { %6408 = vmatpush1.bf16.msra.mxu1 %v6234_v17 }
 0x68d   :  { %6409 = vmatprep.subr.bf16.mxu1 %v6237_v40 }
 0x690   :  { %6410 = vmatpush1.bf16.msra.mxu1 %v6236_v42 }
 0x691   :  { %6411 = vmatprep.subr.bf16.mxu1 %v6239_v32 }
 0x694   :  { %6412 = vmatpush1.bf16.msra.mxu1 %v6238_v13 }
 0x695   :  { %6413 = vmatprep.subr.bf16.mxu1 %v6241_v57 }
 0x698   :  { %6414 = vmatpush1.bf16.msra.mxu1 %v6240_v63 }
 0x699   :  { %6415 = vmatprep.subr.bf16.mxu1 %v6243_v8 }
 0x69c   :  { %6416 = vmatpush1.bf16.msra.mxu1 %v6242_v14 }
 0x69d   :  { %6417 = vmatprep.subr.bf16.mxu1 %v6245_v16 }
 0x6a0   :  { %6418 = vmatpush1.bf16.msra.mxu1 %v6244_v44 }
 0x6a1   :  { %6419 = vmatprep.subr.bf16.mxu1 %v6247_v6 }
 0x6a4   :  { %6420 = vmatpush1.bf16.msra.mxu1 %v6246_v15 }
 0x6a5   :  { %6421 = vmatprep.subr.bf16.mxu1 %v6249_v53 }
 0x6a8   :  { %6422 = vmatpush1.bf16.msra.mxu1 %v6248_v19 }
 0x6a9   :  { %6423 = vmatprep.subr.bf16.mxu1 %v6251_v18 }
 0x6ac   :  { %6424 = vmatpush1.bf16.msra.mxu1 %v6250_v54 }
 0x6ad   :  { %6425 = vmatprep.subr.bf16.mxu1 %v6253_v23 }
 0x6b0   :  { %6426 = vmatpush1.bf16.msra.mxu1 %v6252_v26 }
 0x6b1   :  { %6427 = vmatprep.subr.bf16.mxu1 %v6255_v52 }
 0x6b4   :  { %6428 = vmatpush1.bf16.msra.mxu1 %v6254_v46 }
 0x6b5   :  { %6429 = vmatprep.subr.bf16.mxu1 %v6257_v25 }
 0x6b8   :  { %6430 = vmatpush1.bf16.msra.mxu1 %v6256_v4 }
 0x6b9   :  { %6440 = vmatprep.subr.bf16.mxu1 %v6259_v41 }
 0x6bb   :  { %6432 = vmatmul.mubr.bf16.vlgmr.msra.gmra.mrb[120].mxu1 %v6127_v20 }
 0x6bc   :  { %6441 = vmatpush1.bf16.msra.mxu1 %v6258_v10  ;;  %6472 = vmatprep.mubr.bf16.mxu1 %v7769_v35 }
 0x6c7   :  { %7261 = vmatmul.mubr.msk.bf16.vlgmr.msra.gmra.mrb[120].mxu1 %vm6272_vm11, %v6129_v34 }
 0x79a   :  { %v6474_v22 = vpop.f32.mrb[120].mxu1 }
 0x79b   :  { %v7651_v38 = vadd.f32 %v6474_v22, %v6265_v2  ;;  %v6476_v21 = vpop.f32.mrb[121].mxu1 }
 0x79c   :  { %v7652_v61 = vadd.f32 %v6476_v21, %v6269_v7  ;;  %v6478_v39 = vpop.f32.mrb[122].mxu1 }
 0x79d   :  { %vm6481_vm12 = vcmp.ge.f32.partialorder %v7651_v38, 0.0  ;;  %v6483_v33 = vmul.f32 0.05, %v7651_v38  ;;  %v6479_v56 = vpop.f32.mrb[123].mxu1 }
 0x79e   :  { %vm6482_vm13 = vcmp.ge.f32.partialorder %v7652_v61, 0.0  ;;  %v6484_v43 = vmul.f32 0.05, %v7652_v61 }
 0x79f   :  { %v6485_v12 = vsel %vm6481_vm12, %v7651_v38, %v6483_v33 }
 0x7a0   :  { %v6486_v36 = vsel %vm6482_vm13, %v7652_v61, %v6484_v43 }
 0x7a1   :  { %7765 = dma.done.wait [#allocation6 + $0x1], 19968 }
 0x7a2   :  { %7766 = vsyncadd [#allocation6 + $0x1], 4294947328  ;;  %v11171_v62 = vpack.c.bf16 %v6486_v36, %v6486_v36  ;;  %7020 = vmatprep.subr.bf16.mxu1 %v7769_v35  ;;  %v6496_v11 = vld [vmem:[#allocation3 + $0x8] sm:$0xff]  ;;  %v6495_v48 = vld [vmem:[#allocation3] sm:$0xff]  ;;  %v11176_v14 = vpack.c.bf16 %v6485_v12, %v6485_v12 }
 0x7a3   :  { %v6502_v0 = vld [vmem:[#allocation3 + $0x70] sm:$0xff]  ;;  %6602 = vmatprep.subr.bf16.mxu0 %v6496_v11  ;;  %v6501_v55 = vld [vmem:[#allocation3 + $0x68] sm:$0xff]  ;;  %v6508_v3 = vld [vmem:[#allocation3 + $0xd8] sm:$0xff] }
 0x7a4   :  { %7262 = vmatprep.mubr.msk.bf16.mxu0 %vm5243_vm3, %v11171_v62  ;;  %6603 = vmatpush1.bf16.msra.mxu0 %v6495_v48  ;;  %v6507_v47 = vld [vmem:[#allocation3 + $0xd0] sm:$0xff]  ;;  %v6514_v9 = vld [vmem:[#allocation3 + $0x140] sm:$0xff]  ;;  %v6513_v1 = vld [vmem:[#allocation3 + $0x138] sm:$0xff] }
 0x7a5   :  { %6604 = vmatprep.subr.bf16.mxu0 %v6502_v0  ;;  %v6520_v31 = vld [vmem:[#allocation3 + $0x1a8] sm:$0xff]  ;;  %v6519_v49 = vld [vmem:[#allocation3 + $0x1a0] sm:$0xff]  ;;  %v6526_v30 = vld [vmem:[#allocation3 + $0x210] sm:$0xff] }
 0x7a6   :  { %v6525_v24 = vld [vmem:[#allocation3 + $0x208] sm:$0xff]  ;;  %v6532_v50 = vld [vmem:[#allocation3 + $0x278] sm:$0xff]  ;;  %v6531_v29 = vld [vmem:[#allocation3 + $0x270] sm:$0xff] }
 0x7a7   :  { %v6538_v59 = vld [vmem:[#allocation3 + $0x2e0] sm:$0xff]  ;;  %v6537_v51 = vld [vmem:[#allocation3 + $0x2d8] sm:$0xff]  ;;  %v6544_v45 = vld [vmem:[#allocation3 + $0x348] sm:$0xff] }
 0x7a8   :  { %6605 = vmatpush1.bf16.msra.mxu0 %v6501_v55  ;;  %v6543_v17 = vld [vmem:[#allocation3 + $0x340] sm:$0xff]  ;;  %v6550_v40 = vld [vmem:[#allocation3 + $0x3b0] sm:$0xff]  ;;  %v6549_v42 = vld [vmem:[#allocation3 + $0x3a8] sm:$0xff] }
 0x7a9   :  { %6606 = vmatprep.subr.bf16.mxu0 %v6508_v3  ;;  %v6556_v32 = vld [vmem:[#allocation3 + $0x418] sm:$0xff]  ;;  %v6555_v13 = vld [vmem:[#allocation3 + $0x410] sm:$0xff]  ;;  %v6562_v57 = vld [vmem:[#allocation3 + $0x480] sm:$0xff] }
 0x7aa   :  { %v6561_v63 = vld [vmem:[#allocation3 + $0x478] sm:$0xff]  ;;  %v6497_v16 = vld [vmem:[#allocation3 + $0x10] sm:$0xff]  ;;  %v6504_v44 = vld [vmem:[#allocation3 + $0x80] sm:$0xff] }
 0x7ab   :  { %v6498_v8 = vld [vmem:[#allocation3 + $0x18] sm:$0xff]  ;;  %v6510_v15 = vld [vmem:[#allocation3 + $0xe8] sm:$0xff]  ;;  %v6509_v53 = vld [vmem:[#allocation3 + $0xe0] sm:$0xff] }
 0x7ac   :  { %6607 = vmatpush1.bf16.msra.mxu0 %v6507_v47  ;;  %v6503_v6 = vld [vmem:[#allocation3 + $0x78] sm:$0xff]  ;;  %v6516_v19 = vld [vmem:[#allocation3 + $0x150] sm:$0xff]  ;;  %v6515_v18 = vld [vmem:[#allocation3 + $0x148] sm:$0xff] }
 0x7ad   :  { %6608 = vmatprep.subr.bf16.mxu0 %v6514_v9  ;;  %v6522_v54 = vld [vmem:[#allocation3 + $0x1b8] sm:$0xff]  ;;  %v6521_v23 = vld [vmem:[#allocation3 + $0x1b0] sm:$0xff]  ;;  %v6528_v26 = vld [vmem:[#allocation3 + $0x220] sm:$0xff] }
 0x7ae   :  { %v6527_v52 = vld [vmem:[#allocation3 + $0x218] sm:$0xff]  ;;  %v6534_v46 = vld [vmem:[#allocation3 + $0x288] sm:$0xff]  ;;  %v6533_v25 = vld [vmem:[#allocation3 + $0x280] sm:$0xff] }
 0x7af   :  { %v6540_v4 = vld [vmem:[#allocation3 + $0x2f0] sm:$0xff]  ;;  %v6539_v41 = vld [vmem:[#allocation3 + $0x2e8] sm:$0xff]  ;;  %v6546_v20 = vld [vmem:[#allocation3 + $0x358] sm:$0xff] }
 0x7b0   :  { %6609 = vmatpush1.bf16.msra.mxu0 %v6513_v1  ;;  %v6545_v10 = vld [vmem:[#allocation3 + $0x350] sm:$0xff]  ;;  %v6552_v37 = vld [vmem:[#allocation3 + $0x3c0] sm:$0xff]  ;;  %v6551_v34 = vld [vmem:[#allocation3 + $0x3b8] sm:$0xff] }
 0x7b1   :  { %6610 = vmatprep.subr.bf16.mxu0 %v6520_v31  ;;  %v6558_v5 = vld [vmem:[#allocation3 + $0x428] sm:$0xff]  ;;  %v6557_v58 = vld [vmem:[#allocation3 + $0x420] sm:$0xff]  ;;  %v6564_v2 = vld [vmem:[#allocation3 + $0x490] sm:$0xff] }
 0x7b2   :  { %v6563_v7 = vld [vmem:[#allocation3 + $0x488] sm:$0xff]  ;;  %v6499_v38 = vld [vmem:[#allocation3 + $0x20] sm:$0xff]  ;;  %v6506_v21 = vld [vmem:[#allocation3 + $0x90] sm:$0xff] }
 0x7b3   :  { %v6500_v22 = vld [vmem:[#allocation3 + $0x28] sm:$0xff]  ;;  %v6512_v39 = vld [vmem:[#allocation3 + $0xf8] sm:$0xff]  ;;  %v6511_v33 = vld [vmem:[#allocation3 + $0xf0] sm:$0xff] }
 0x7b4   :  { %6611 = vmatpush1.bf16.msra.mxu0 %v6519_v49  ;;  %v6505_v61 = vld [vmem:[#allocation3 + $0x88] sm:$0xff]  ;;  %v6518_v56 = vld [vmem:[#allocation3 + $0x160] sm:$0xff]  ;;  %v6517_v43 = vld [vmem:[#allocation3 + $0x158] sm:$0xff] }
 0x7b5   :  { %6612 = vmatprep.subr.bf16.mxu0 %v6526_v30  ;;  %v6524_v12 = vld [vmem:[#allocation3 + $0x1c8] sm:$0xff]  ;;  %v6523_v36 = vld [vmem:[#allocation3 + $0x1c0] sm:$0xff]  ;;  %v6530_v11 = vld [vmem:[#allocation3 + $0x230] sm:$0xff] }
 0x7b6   :  { %v6529_v48 = vld [vmem:[#allocation3 + $0x228] sm:$0xff]  ;;  %v6536_v0 = vld [vmem:[#allocation3 + $0x298] sm:$0xff]  ;;  %v6542_v55 = vld [vmem:[#allocation3 + $0x300] sm:$0xff] }
 0x7b7   :  { %v6541_v3 = vld [vmem:[#allocation3 + $0x2f8] sm:$0xff]  ;;  %v6548_v47 = vld [vmem:[#allocation3 + $0x368] sm:$0xff]  ;;  %v6547_v9 = vld [vmem:[#allocation3 + $0x360] sm:$0xff] }
 0x7b8   :  { %6613 = vmatpush1.bf16.msra.mxu0 %v6525_v24  ;;  %v6554_v1 = vld [vmem:[#allocation3 + $0x3d0] sm:$0xff]  ;;  %v6553_v31 = vld [vmem:[#allocation3 + $0x3c8] sm:$0xff]  ;;  %v6560_v49 = vld [vmem:[#allocation3 + $0x438] sm:$0xff] }
 0x7b9   :  { %6614 = vmatprep.subr.bf16.mxu0 %v6532_v50  ;;  %v6559_v30 = vld [vmem:[#allocation3 + $0x430] sm:$0xff]  ;;  %v6566_v24 = vld [vmem:[#allocation3 + $0x4a0] sm:$0xff]  ;;  %v6565_v50 = vld [vmem:[#allocation3 + $0x498] sm:$0xff] }
 0x7bc   :  { %6615 = vmatpush1.bf16.msra.mxu0 %v6531_v29  ;;  %v11187_v29 = vld [vmem:[%s11258_s2 + $0x8] sm:$0xff] }
 0x7bd   :  { %6616 = vmatprep.subr.bf16.mxu0 %v6538_v59  ;;  %v6728_v59 = vld [vmem:[#allocation3 + $0x38] sm:$0xff] }
 0x7c0   :  { %6617 = vmatpush1.bf16.msra.mxu0 %v6537_v51  ;;  %v11191_v51 = vpack.c.bf16 %v11187_v29, %v11187_v29 }
 0x7c1   :  { %6618 = vmatprep.subr.bf16.mxu0 %v6544_v45  ;;  %v6727_v45 = vld [vmem:[#allocation3 + $0x30] sm:$0xff] }
 0x7c4   :  { %6619 = vmatpush1.bf16.msra.mxu0 %v6543_v17  ;;  %v6734_v17 = vld [vmem:[#allocation3 + $0xa0] sm:$0xff] }
 0x7c5   :  { %6620 = vmatprep.subr.bf16.mxu0 %v6550_v40  ;;  %v6733_v40 = vld [vmem:[#allocation3 + $0x98] sm:$0xff] }
 0x7c8   :  { %6621 = vmatpush1.bf16.msra.mxu0 %v6549_v42  ;;  %v6740_v42 = vld [vmem:[#allocation3 + $0x108] sm:$0xff] }
 0x7c9   :  { %6622 = vmatprep.subr.bf16.mxu0 %v6556_v32  ;;  %v6739_v32 = vld [vmem:[#allocation3 + $0x100] sm:$0xff] }
 0x7cc   :  { %6623 = vmatpush1.bf16.msra.mxu0 %v6555_v13  ;;  %v6746_v13 = vld [vmem:[#allocation3 + $0x170] sm:$0xff] }
 0x7cd   :  { %6624 = vmatprep.subr.bf16.mxu0 %v6562_v57  ;;  %v6745_v57 = vld [vmem:[#allocation3 + $0x168] sm:$0xff] }
 0x7d0   :  { %6625 = vmatpush1.bf16.msra.mxu0 %v6561_v63  ;;  %v6752_v63 = vld [vmem:[#allocation3 + $0x1d8] sm:$0xff] }
 0x7d1   :  { %6643 = vmatprep.subr.bf16.mxu0 %v6498_v8  ;;  %v6751_v8 = vld [vmem:[#allocation3 + $0x1d0] sm:$0xff] }
 0x7d3   :  { %6635 = vmatmul.mubr.bf16.vlgmr.msra.gmra.mrb[152].mxu0 %v11176_v14 }
 0x7d4   :  { %6644 = vmatpush1.bf16.msra.mxu0 %v6497_v16  ;;  %7263 = vmatprep.mubr.msk.bf16.mxu0 %vm5243_vm3, %v11171_v62  ;;  %v6758_v16 = vld [vmem:[#allocation3 + $0x240] sm:$0xff] }
 0x7d5   :  { %6645 = vmatprep.subr.bf16.mxu0 %v6504_v44  ;;  %v6764_v44 = vld [vmem:[#allocation3 + $0x2a8] sm:$0xff] }
 0x7d8   :  { %6646 = vmatpush1.bf16.msra.mxu0 %v6503_v6  ;;  %v6763_v6 = vld [vmem:[#allocation3 + $0x2a0] sm:$0xff] }
 0x7d9   :  { %6647 = vmatprep.subr.bf16.mxu0 %v6510_v15  ;;  %v6770_v15 = vld [vmem:[#allocation3 + $0x310] sm:$0xff] }
 0x7dc   :  { %6648 = vmatpush1.bf16.msra.mxu0 %v6509_v53  ;;  %v6769_v53 = vld [vmem:[#allocation3 + $0x308] sm:$0xff] }
 0x7dd   :  { %6649 = vmatprep.subr.bf16.mxu0 %v6516_v19  ;;  %v6776_v19 = vld [vmem:[#allocation3 + $0x378] sm:$0xff] }
 0x7e0   :  { %6650 = vmatpush1.bf16.msra.mxu0 %v6515_v18  ;;  %v6775_v18 = vld [vmem:[#allocation3 + $0x370] sm:$0xff] }
 0x7e1   :  { %6651 = vmatprep.subr.bf16.mxu0 %v6522_v54  ;;  %v6782_v54 = vld [vmem:[#allocation3 + $0x3e0] sm:$0xff] }
 0x7e4   :  { %6652 = vmatpush1.bf16.msra.mxu0 %v6521_v23  ;;  %v6781_v23 = vld [vmem:[#allocation3 + $0x3d8] sm:$0xff] }
 0x7e5   :  { %6653 = vmatprep.subr.bf16.mxu0 %v6528_v26  ;;  %v6788_v26 = vld [vmem:[#allocation3 + $0x448] sm:$0xff] }
 0x7e8   :  { %6654 = vmatpush1.bf16.msra.mxu0 %v6527_v52  ;;  %v6787_v52 = vld [vmem:[#allocation3 + $0x440] sm:$0xff] }
 0x7e9   :  { %6655 = vmatprep.subr.bf16.mxu0 %v6534_v46  ;;  %v6794_v46 = vld [vmem:[#allocation3 + $0x4b0] sm:$0xff] }
 0x7ec   :  { %6656 = vmatpush1.bf16.msra.mxu0 %v6533_v25  ;;  %v11199_v25 = vld [vmem:[%s11258_s2] sm:$0xff] }
 0x7ed   :  { %6657 = vmatprep.subr.bf16.mxu0 %v6540_v4  ;;  %v6793_v4 = vld [vmem:[#allocation3 + $0x4a8] sm:$0xff] }
 0x7f0   :  { %6658 = vmatpush1.bf16.msra.mxu0 %v6539_v41  ;;  %v6730_v41 = vld [vmem:[#allocation3 + $0x48] sm:$0xff] }
 0x7f1   :  { %6659 = vmatprep.subr.bf16.mxu0 %v6546_v20  ;;  %v11203_v20 = vpack.c.bf16 %v11199_v25, %v11199_v25 }
 0x7f4   :  { %6660 = vmatpush1.bf16.msra.mxu0 %v6545_v10  ;;  %v6729_v10 = vld [vmem:[#allocation3 + $0x40] sm:$0xff] }
 0x7f5   :  { %6661 = vmatprep.subr.bf16.mxu0 %v6552_v37  ;;  %v6736_v37 = vld [vmem:[#allocation3 + $0xb0] sm:$0xff] }
 0x7f8   :  { %6662 = vmatpush1.bf16.msra.mxu0 %v6551_v34  ;;  %v6735_v34 = vld [vmem:[#allocation3 + $0xa8] sm:$0xff] }
 0x7f9   :  { %6663 = vmatprep.subr.bf16.mxu0 %v6558_v5  ;;  %v6742_v5 = vld [vmem:[#allocation3 + $0x118] sm:$0xff] }
 0x7fc   :  { %6664 = vmatpush1.bf16.msra.mxu0 %v6557_v58  ;;  %v6741_v58 = vld [vmem:[#allocation3 + $0x110] sm:$0xff] }
 0x7fd   :  { %6665 = vmatprep.subr.bf16.mxu0 %v6564_v2  ;;  %v6748_v2 = vld [vmem:[#allocation3 + $0x180] sm:$0xff] }
 0x800   :  { %6666 = vmatpush1.bf16.msra.mxu0 %v6563_v7  ;;  %v6747_v7 = vld [vmem:[#allocation3 + $0x178] sm:$0xff] }
 0x801   :  { %6684 = vmatprep.subr.bf16.mxu0 %v6500_v22  ;;  %v6754_v22 = vld [vmem:[#allocation3 + $0x1e8] sm:$0xff] }
 0x803   :  { %6676 = vmatmul.mubr.bf16.vlgmr.msra.gmra.mrb[156].mxu0 %v11176_v14 }
 0x804   :  { %6685 = vmatpush1.bf16.msra.mxu0 %v6499_v38  ;;  %7264 = vmatprep.mubr.msk.bf16.mxu0 %vm5243_vm3, %v11171_v62  ;;  %v6535_v62 = vld [vmem:[#allocation3 + $0x290] sm:$0xff]  ;;  %v6753_v38 = vld [vmem:[#allocation3 + $0x1e0] sm:$0xff] }
 0x805   :  { %6686 = vmatprep.subr.bf16.mxu0 %v6506_v21  ;;  %v6760_v21 = vld [vmem:[#allocation3 + $0x250] sm:$0xff] }
 0x808   :  { %6687 = vmatpush1.bf16.msra.mxu0 %v6505_v61  ;;  %v6759_v61 = vld [vmem:[#allocation3 + $0x248] sm:$0xff] }
 0x809   :  { %6688 = vmatprep.subr.bf16.mxu0 %v6512_v39  ;;  %v6766_v39 = vld [vmem:[#allocation3 + $0x2b8] sm:$0xff] }
 0x80c   :  { %6689 = vmatpush1.bf16.msra.mxu0 %v6511_v33  ;;  %v6765_v33 = vld [vmem:[#allocation3 + $0x2b0] sm:$0xff] }
 0x80d   :  { %6690 = vmatprep.subr.bf16.mxu0 %v6518_v56  ;;  %v6772_v56 = vld [vmem:[#allocation3 + $0x320] sm:$0xff] }
 0x810   :  { %6691 = vmatpush1.bf16.msra.mxu0 %v6517_v43  ;;  %v6771_v43 = vld [vmem:[#allocation3 + $0x318] sm:$0xff] }
 0x811   :  { %6692 = vmatprep.subr.bf16.mxu0 %v6524_v12  ;;  %v6778_v12 = vld [vmem:[#allocation3 + $0x388] sm:$0xff] }
 0x814   :  { %6693 = vmatpush1.bf16.msra.mxu0 %v6523_v36  ;;  %v6777_v36 = vld [vmem:[#allocation3 + $0x380] sm:$0xff] }
 0x815   :  { %6694 = vmatprep.subr.bf16.mxu0 %v6530_v11  ;;  %v6784_v11 = vld [vmem:[#allocation3 + $0x3f0] sm:$0xff] }
 0x818   :  { %6695 = vmatpush1.bf16.msra.mxu0 %v6529_v48  ;;  %v6783_v48 = vld [vmem:[#allocation3 + $0x3e8] sm:$0xff] }
 0x819   :  { %6696 = vmatprep.subr.bf16.mxu0 %v6536_v0  ;;  %v6790_v0 = vld [vmem:[#allocation3 + $0x458] sm:$0xff] }
 0x81c   :  { %6697 = vmatpush1.bf16.msra.mxu0 %v6535_v62  ;;  %v6789_v62 = vld [vmem:[#allocation3 + $0x450] sm:$0xff] }
 0x81d   :  { %6698 = vmatprep.subr.bf16.mxu0 %v6542_v55  ;;  %v6796_v55 = vld [vmem:[#allocation3 + $0x4c0] sm:$0xff] }
 0x820   :  { %6699 = vmatpush1.bf16.msra.mxu0 %v6541_v3  ;;  %v6795_v3 = vld [vmem:[#allocation3 + $0x4b8] sm:$0xff] }
 0x821   :  { %6700 = vmatprep.subr.bf16.mxu0 %v6548_v47  ;;  %v6732_v47 = vld [vmem:[#allocation3 + $0x58] sm:$0xff] }
 0x824   :  { %6701 = vmatpush1.bf16.msra.mxu0 %v6547_v9  ;;  %v6731_v9 = vld [vmem:[#allocation3 + $0x50] sm:$0xff] }
 0x825   :  { %6702 = vmatprep.subr.bf16.mxu0 %v6554_v1  ;;  %v6738_v1 = vld [vmem:[#allocation3 + $0xc0] sm:$0xff] }
 0x828   :  { %6703 = vmatpush1.bf16.msra.mxu0 %v6553_v31  ;;  %v6737_v31 = vld [vmem:[#allocation3 + $0xb8] sm:$0xff] }
 0x829   :  { %6704 = vmatprep.subr.bf16.mxu0 %v6560_v49  ;;  %v6744_v49 = vld [vmem:[#allocation3 + $0x128] sm:$0xff] }
 0x82c   :  { %6705 = vmatpush1.bf16.msra.mxu0 %v6559_v30  ;;  %v6743_v30 = vld [vmem:[#allocation3 + $0x120] sm:$0xff] }
 0x82d   :  { %6706 = vmatprep.subr.bf16.mxu0 %v6566_v24  ;;  %v6750_v24 = vld [vmem:[#allocation3 + $0x190] sm:$0xff] }
 0x830   :  { %6707 = vmatpush1.bf16.msra.mxu0 %v6565_v50  ;;  %v6749_v50 = vld [vmem:[#allocation3 + $0x188] sm:$0xff] }
 0x831   :  { %6834 = vmatprep.subr.bf16.mxu0 %v6728_v59  ;;  %v6756_v59 = vld [vmem:[#allocation3 + $0x1f8] sm:$0xff] }
 0x833   :  { %6717 = vmatmul.mubr.bf16.vlgmr.msra.gmra.mrb[160].mxu0 %v11176_v14  ;;  %v6757_v14 = vld [vmem:[#allocation3 + $0x238] sm:$0xff] }
 0x834   :  { %6835 = vmatpush1.bf16.msra.mxu0 %v6727_v45  ;;  %7265 = vmatprep.mubr.msk.bf16.mxu0 %vm5243_vm3, %v11191_v51  ;;  %v6755_v45 = vld [vmem:[#allocation3 + $0x1f0] sm:$0xff] }
 0x835   :  { %6836 = vmatprep.subr.bf16.mxu0 %v6734_v17  ;;  %v6762_v17 = vld [vmem:[#allocation3 + $0x260] sm:$0xff] }
 0x838   :  { %6837 = vmatpush1.bf16.msra.mxu0 %v6733_v40  ;;  %v6761_v40 = vld [vmem:[#allocation3 + $0x258] sm:$0xff] }
 0x839   :  { %6838 = vmatprep.subr.bf16.mxu0 %v6740_v42  ;;  %v6768_v42 = vld [vmem:[#allocation3 + $0x2c8] sm:$0xff] }
 0x83c   :  { %6839 = vmatpush1.bf16.msra.mxu0 %v6739_v32  ;;  %v6774_v32 = vld [vmem:[#allocation3 + $0x330] sm:$0xff] }
 0x83d   :  { %6840 = vmatprep.subr.bf16.mxu0 %v6746_v13  ;;  %v6773_v13 = vld [vmem:[#allocation3 + $0x328] sm:$0xff] }
 0x840   :  { %6841 = vmatpush1.bf16.msra.mxu0 %v6745_v57  ;;  %v6780_v57 = vld [vmem:[#allocation3 + $0x398] sm:$0xff] }
 0x841   :  { %6842 = vmatprep.subr.bf16.mxu0 %v6752_v63  ;;  %v6779_v63 = vld [vmem:[#allocation3 + $0x390] sm:$0xff] }
 0x844   :  { %6843 = vmatpush1.bf16.msra.mxu0 %v6751_v8  ;;  %v6786_v8 = vld [vmem:[#allocation3 + $0x400] sm:$0xff] }
 0x845   :  { %6844 = vmatprep.subr.bf16.mxu0 %v6758_v16  ;;  %v6785_v16 = vld [vmem:[#allocation3 + $0x3f8] sm:$0xff] }
 0x848   :  { %6845 = vmatpush1.bf16.msra.mxu0 %v6757_v14  ;;  %v6792_v14 = vld [vmem:[#allocation3 + $0x468] sm:$0xff] }
 0x849   :  { %6846 = vmatprep.subr.bf16.mxu0 %v6764_v44  ;;  %v6791_v44 = vld [vmem:[#allocation3 + $0x460] sm:$0xff] }
 0x84c   :  { %6847 = vmatpush1.bf16.msra.mxu0 %v6763_v6  ;;  %v6798_v6 = vld [vmem:[#allocation3 + $0x4d0] sm:$0xff] }
 0x84d   :  { %6848 = vmatprep.subr.bf16.mxu0 %v6770_v15  ;;  %v6797_v15 = vld [vmem:[#allocation3 + $0x4c8] sm:$0xff] }
 0x850   :  { %6849 = vmatpush1.bf16.msra.mxu0 %v6769_v53  ;;  %v7005_v53 = vld [vmem:[#allocation3 + $0x60] sm:$0xff] }
 0x851   :  { %6850 = vmatprep.subr.bf16.mxu0 %v6776_v19  ;;  %7021 = vmatpush1.bf16.msra.mxu1 %v7005_v53  ;;  %v7006_v19 = vld [vmem:[#allocation3 + $0xc8] sm:$0xff] }
 0x852   :  { %7022 = vmatprep.subr.bf16.mxu1 %v7769_v35 }
 0x854   :  { %6851 = vmatpush1.bf16.msra.mxu0 %v6775_v18  ;;  %v7007_v18 = vld [vmem:[#allocation3 + $0x130] sm:$0xff] }
 0x855   :  { %6852 = vmatprep.subr.bf16.mxu0 %v6782_v54  ;;  %7023 = vmatpush1.bf16.msra.mxu1 %v7006_v19  ;;  %v7008_v54 = vld [vmem:[#allocation3 + $0x198] sm:$0xff] }
 0x856   :  { %7024 = vmatprep.subr.bf16.mxu1 %v7769_v35 }
 0x858   :  { %6853 = vmatpush1.bf16.msra.mxu0 %v6781_v23 }
 0x859   :  { %6854 = vmatprep.subr.bf16.mxu0 %v6788_v26  ;;  %7025 = vmatpush1.bf16.msra.mxu1 %v7007_v18 }
 0x85a   :  { %7026 = vmatprep.subr.bf16.mxu1 %v7769_v35 }
 0x85c   :  { %6855 = vmatpush1.bf16.msra.mxu0 %v6787_v52 }
 0x85d   :  { %6856 = vmatprep.subr.bf16.mxu0 %v6794_v46  ;;  %7027 = vmatpush1.bf16.msra.mxu1 %v7008_v54 }
 0x85e   :  { %7028 = vmatprep.subr.bf16.mxu1 %v7769_v35 }
 0x860   :  { %6857 = vmatpush1.bf16.msra.mxu0 %v6793_v4  ;;  %v7009_v4 = vld [vmem:[#allocation3 + $0x200] sm:$0xff] }
 0x861   :  { %6875 = vmatprep.subr.bf16.mxu0 %v6730_v41  ;;  %7029 = vmatpush1.bf16.msra.mxu1 %v7009_v4  ;;  %v7010_v41 = vld [vmem:[#allocation3 + $0x268] sm:$0xff] }
 0x862   :  { %7030 = vmatprep.subr.bf16.mxu1 %v7769_v35 }
 0x863   :  { %6867 = vmatmul.mubr.bf16.vlgmr.msra.gmra.mrb[152].mxu0 %v11203_v20 }
 0x864   :  { %6876 = vmatpush1.bf16.msra.mxu0 %v6729_v10  ;;  %7266 = vmatprep.mubr.msk.bf16.mxu0 %vm5243_vm3, %v11191_v51  ;;  %v7012_v10 = vld [vmem:[#allocation3 + $0x338] sm:$0xff] }
 0x865   :  { %6877 = vmatprep.subr.bf16.mxu0 %v6736_v37  ;;  %7031 = vmatpush1.bf16.msra.mxu1 %v7010_v41  ;;  %v7013_v37 = vld [vmem:[#allocation3 + $0x3a0] sm:$0xff] }
 0x866   :  { %7032 = vmatprep.subr.bf16.mxu1 %v7769_v35 }
 0x868   :  { %6878 = vmatpush1.bf16.msra.mxu0 %v6735_v34  ;;  %v7014_v34 = vld [vmem:[#allocation3 + $0x408] sm:$0xff] }
 0x869   :  { %6879 = vmatprep.subr.bf16.mxu0 %v6742_v5  ;;  %v7015_v5 = vld [vmem:[#allocation3 + $0x470] sm:$0xff] }
 0x86c   :  { %6880 = vmatpush1.bf16.msra.mxu0 %v6741_v58  ;;  %v7016_v58 = vld [vmem:[#allocation3 + $0x4d8] sm:$0xff] }
 0x86d   :  { %6881 = vmatprep.subr.bf16.mxu0 %v6748_v2 }
 0x870   :  { %6882 = vmatpush1.bf16.msra.mxu0 %v6747_v7 }
 0x871   :  { %6883 = vmatprep.subr.bf16.mxu0 %v6754_v22 }
 0x874   :  { %6884 = vmatpush1.bf16.msra.mxu0 %v6753_v38 }
 0x875   :  { %6885 = vmatprep.subr.bf16.mxu0 %v6760_v21  ;;  %v6799_v21 = vld [vmem:[%s11264_s8 + $0x8] sm:$0x3f] }
 0x878   :  { %6886 = vmatpush1.bf16.msra.mxu0 %v6759_v61 }
 0x879   :  { %6887 = vmatprep.subr.bf16.mxu0 %v6766_v39 }
 0x87c   :  { %6888 = vmatpush1.bf16.msra.mxu0 %v6765_v33  ;;  %v6567_v33 = vld [vmem:[%s11264_s8 + $0x2] sm:$0x3f] }
 0x87d   :  { %6889 = vmatprep.subr.bf16.mxu0 %v6772_v56 }
 0x880   :  { %6890 = vmatpush1.bf16.msra.mxu0 %v6771_v43  ;;  %v6572_v43 = vrot.slane %v6567_v33, %v11161_v28 }
 0x881   :  { %6891 = vmatprep.subr.bf16.mxu0 %v6778_v12 }
 0x884   :  { %6892 = vmatpush1.bf16.msra.mxu0 %v6777_v36  ;;  %v6576_v36 = vrot.slane %v6567_v33, %v11167_v60 }
 0x885   :  { %6893 = vmatprep.subr.bf16.mxu0 %v6784_v11  ;;  %v6808_v11 = vrot.slane %v6799_v21, %v11167_v60 }
 0x888   :  { %6894 = vmatpush1.bf16.msra.mxu0 %v6783_v48 }
 0x889   :  { %6895 = vmatprep.subr.bf16.mxu0 %v6790_v0  ;;  %v7655_v0 = vadd.f32 %v6808_v11, %v6576_v36 }
 0x88c   :  { %6896 = vmatpush1.bf16.msra.mxu0 %v6789_v62  ;;  %v6579_v62 = vsub.s32 2, %v11158_v27 }
 0x88d   :  { %6897 = vmatprep.subr.bf16.mxu0 %v6796_v55 }
 0x890   :  { %6898 = vmatpush1.bf16.msra.mxu0 %v6795_v3  ;;  %v6583_v3 = vsub.s32 3, %v11158_v27 }
 0x891   :  { %6916 = vmatprep.subr.bf16.mxu0 %v6732_v47 }
 0x893   :  { %6908 = vmatmul.mubr.bf16.vlgmr.msra.gmra.mrb[156].mxu0 %v11203_v20 }
 0x894   :  { %6917 = vmatpush1.bf16.msra.mxu0 %v6731_v9  ;;  %7267 = vmatprep.mubr.msk.bf16.mxu0 %vm5243_vm3, %v11191_v51  ;;  %v6767_v51 = vld [vmem:[#allocation3 + $0x2c0] sm:$0xff]  ;;  %v6580_v9 = vrot.slane %v6567_v33, %v6579_v62 }
 0x895   :  { %6918 = vmatprep.subr.bf16.mxu0 %v6738_v1  ;;  %v6812_v1 = vrot.slane %v6799_v21, %v6579_v62 }
 0x898   :  { %6919 = vmatpush1.bf16.msra.mxu0 %v6737_v31 }
 0x899   :  { %6920 = vmatprep.subr.bf16.mxu0 %v6744_v49  ;;  %v6584_v49 = vrot.slane %v6567_v33, %v6583_v3 }
 0x89c   :  { %6921 = vmatpush1.bf16.msra.mxu0 %v6743_v30  ;;  %v6816_v30 = vrot.slane %v6799_v21, %v6583_v3 }
 0x89d   :  { %6922 = vmatprep.subr.bf16.mxu0 %v6750_v24 }
 0x8a0   :  { %6923 = vmatpush1.bf16.msra.mxu0 %v6749_v50 }
 0x8a1   :  { %6924 = vmatprep.subr.bf16.mxu0 %v6756_v59  ;;  %v7659_v59 = vadd.f32 %v6816_v30, %v6584_v49 }
 0x8a4   :  { %6925 = vmatpush1.bf16.msra.mxu0 %v6755_v45 }
 0x8a5   :  { %6926 = vmatprep.subr.bf16.mxu0 %v6762_v17 }
 0x8a8   :  { %6927 = vmatpush1.bf16.msra.mxu0 %v6761_v40 }
 0x8a9   :  { %6928 = vmatprep.subr.bf16.mxu0 %v6768_v42 }
 0x8ac   :  { %6929 = vmatpush1.bf16.msra.mxu0 %v6767_v51 }
 0x8ad   :  { %6930 = vmatprep.subr.bf16.mxu0 %v6774_v32 }
 0x8b0   :  { %6931 = vmatpush1.bf16.msra.mxu0 %v6773_v13 }
 0x8b1   :  { %6932 = vmatprep.subr.bf16.mxu0 %v6780_v57 }
 0x8b4   :  { %6933 = vmatpush1.bf16.msra.mxu0 %v6779_v63 }
 0x8b5   :  { %6934 = vmatprep.subr.bf16.mxu0 %v6786_v8 }
 0x8b8   :  { %6935 = vmatpush1.bf16.msra.mxu0 %v6785_v16  ;;  %v6587_v16 = vsub.s32 4, %v11158_v27 }
 0x8b9   :  { %6936 = vmatprep.subr.bf16.mxu0 %v6792_v14 }
 0x8ba   :  { %v6588_v19 = vrot.slane %v6567_v33, %v6587_v16 }
 0x8bc   :  { %6937 = vmatpush1.bf16.msra.mxu0 %v6791_v44  ;;  %v6591_v44 = vsub.s32 5, %v11158_v27 }
 0x8bd   :  { %6938 = vmatprep.subr.bf16.mxu0 %v6798_v6 }
 0x8be   :  { %v6824_v53 = vrot.slane %v6799_v21, %v6591_v44  ;;  %v6592_v54 = vrot.slane %v6567_v33, %v6591_v44 }
 0x8c0   :  { %6939 = vmatpush1.bf16.msra.mxu0 %v6797_v15  ;;  %v6820_v15 = vrot.slane %v6799_v21, %v6587_v16 }
 0x8c3   :  { %6949 = vmatmul.mubr.bf16.vlgmr.msra.gmra.mrb[164].mxu0 %v11203_v20  ;;  %v7011_v20 = vld [vmem:[#allocation3 + $0x2d0] sm:$0xff] }
 0x8c4   :  { %7033 = vmatpush1.bf16.msra.mxu1 %v7011_v20 }
 0x8c5   :  { %7034 = vmatprep.subr.bf16.mxu1 %v7769_v35 }
 0x8c8   :  { %7035 = vmatpush1.bf16.msra.mxu1 %v7012_v10 }
 0x8c9   :  { %7036 = vmatprep.subr.bf16.mxu1 %v7769_v35 }
 0x8cc   :  { %7037 = vmatpush1.bf16.msra.mxu1 %v7013_v37 }
 0x8cd   :  { %7038 = vmatprep.subr.bf16.mxu1 %v7769_v35 }
 0x8d0   :  { %7039 = vmatpush1.bf16.msra.mxu1 %v7014_v34 }
 0x8d1   :  { %7040 = vmatprep.subr.bf16.mxu1 %v7769_v35 }
 0x8d4   :  { %7041 = vmatpush1.bf16.msra.mxu1 %v7015_v5 }
 0x8d5   :  { %7042 = vmatprep.subr.bf16.mxu1 %v7769_v35  ;;  %v6804_v35 = vrot.slane %v6799_v21, %v11161_v28  ;;  %v7657_v28 = vadd.f32 %v6812_v1, %v6580_v9 }
 0x8d7   :  { %v7653_v48 = vadd.f32 %v6804_v35, %v6572_v43 }
 0x8d8   :  { %7043 = vmatpush1.bf16.msra.mxu1 %v7016_v58 }
 0x906   :  { %v11215_v23 = vpop.f32.mrb[160].mxu0 }
 0x907   :  { %v11217_v26 = vpop.f32.mrb[161].mxu0  ;;  %v6719_v5 = vadd.f32 %v11215_v23, %v6588_v19 }
 0x908   :  { %v6722_v52 = vpop.f32.mrb[162].mxu0  ;;  %v6721_v27 = vadd.f32 %v11217_v26, %v6592_v54 }
 0x909   :  { %v6723_v46 = vpop.f32.mrb[163].mxu0 }
 0x936   :  { %v6868_v2 = vpop.f32.mrb[152].mxu0 }
 0x937   :  { %v6870_v7 = vpop.f32.mrb[153].mxu0  ;;  %v7654_v55 = vadd.f32 %v7653_v48, %v6868_v2 }
 0x938   :  { %v6872_v22 = vpop.f32.mrb[154].mxu0  ;;  %v7656_v47 = vadd.f32 %v7655_v0, %v6870_v7 }
 0x939   :  { %v6873_v38 = vpop.f32.mrb[155].mxu0  ;;  %v6959_v31 = vsub.f32 0.0, %v7654_v55 }
 0x93a   :  { %v6960_v24 = vsub.f32 0.0, %v7656_v47 }
 0x93b   :  { %v6961_v50 = vmul.f32 1.442695, %v6959_v31 }
 0x93c   :  { %v6963_v45 = vmul.f32 1.442695, %v6960_v24 }
 0x93d   :  { %7743 = vpow2.f32 %v6961_v50 }
 0x93e   :  { %7745 = vpow2.f32 %v6963_v45 }
 0x947   :  { %v7744_v13 = vpop.eup %7743 }
 0x948   :  { %v7746_v57 = vpop.eup %7745  ;;  %v6965_v63 = vadd.f32 1.0, %v7744_v13 }
 0x949   :  { %v6966_v8 = vadd.f32 1.0, %v7746_v57 }
 0x966   :  { %v6909_v61 = vpop.f32.mrb[156].mxu0 }
 0x967   :  { %v6911_v39 = vpop.f32.mrb[157].mxu0  ;;  %v7658_v17 = vadd.f32 %v7657_v28, %v6909_v61 }
 0x968   :  { %v6913_v56 = vpop.f32.mrb[158].mxu0  ;;  %v7660_v60 = vadd.f32 %v7659_v59, %v6911_v39 }
 0x969   :  { %v6914_v12 = vpop.f32.mrb[159].mxu0  ;;  %v6971_v40 = vsub.f32 0.0, %v7658_v17 }
 0x96a   :  { %v6972_v42 = vsub.f32 0.0, %v7660_v60 }
 0x96b   :  { %v6973_v51 = vmul.f32 1.442695, %v6971_v40 }
 0x96c   :  { %v6975_v32 = vmul.f32 1.442695, %v6972_v42 }
 0x96d   :  { %7747 = vpow2.f32 %v6973_v51 }
 0x96e   :  { %7749 = vpow2.f32 %v6975_v32 }
 0x96f   :  { %7751 = vrcp.f32 %v6965_v63 }
 0x970   :  { %7753 = vrcp.f32 %v6966_v8 }
 0x977   :  { %v7748_v14 = vpop.eup %7747 }
 0x978   :  { %v7750_v6 = vpop.eup %7749  ;;  %v6977_v18 = vadd.f32 1.0, %v7748_v14 }
 0x979   :  { %v6978_v52 = vadd.f32 1.0, %v7750_v6  ;;  %v7752_v20 = vpop.eup %7751 }
 0x97a   :  { %v7754_v34 = vpop.eup %7753  ;;  %7755 = vrcp.f32 %v6977_v18 }
 0x97b   :  { %7757 = vrcp.f32 %v6978_v52 }
 0x984   :  { %v7756_v21 = vpop.eup %7755 }
 0x985   :  { %v7758_v61 = vpop.eup %7757  ;;  %v6987_v39 = vsub.f32 1.0, %v7756_v21  ;;  %v6991_v23 = vmul.f32 %v7756_v21, %v11199_v25 }
 0x986   :  { %v6988_v56 = vsub.f32 1.0, %v7758_v61  ;;  %v6992_v36 = vmul.f32 %v7758_v61, %v11187_v29 }
 0x996   :  { %v6950_v46 = vpop.f32.mrb[164].mxu0 }
 0x997   :  { %v6951_v4 = vadd.f32 %v6950_v46, %v6820_v15  ;;  %v6952_v41 = vpop.f32.mrb[165].mxu0 }
 0x998   :  { %v6953_v10 = vadd.f32 %v6952_v41, %v6824_v53  ;;  %v6954_v37 = vpop.f32.mrb[166].mxu0 }
 0x999   :  { %v6981_v58 = vmul.f32 %v7752_v20, %v6951_v4  ;;  %v6955_v2 = vpop.f32.mrb[167].mxu0 }
 0x99a   :  { %v6982_v7 = vmul.f32 %v7754_v34, %v6953_v10 }
 0x99b   :  { %v6983_v22 = vadd.f32 %v6981_v58, %v6719_v5 }
 0x99c   :  { %v6984_v38 = vadd.f32 %v6982_v7, %v6721_v27 }
 0x99d   :  { %7759 = vtanh.f32 %v6983_v22 }
 0x99e   :  { %7761 = vtanh.f32 %v6984_v38 }
 0x9a7   :  { %v7760_v33 = vpop.eup %7759 }
 0x9a8   :  { %v7762_v43 = vpop.eup %7761  ;;  %v6989_v35 = vmul.f32 %v7760_v33, %v6987_v39 }
 0x9a9   :  { %v6990_v12 = vmul.f32 %v7762_v43, %v6988_v56 }
 0x9aa   :  { %v6993_v11 = vadd.f32 %v6991_v23, %v6989_v35 }
 0x9ab   :  { %v6994_v26 = vadd.f32 %v6992_v36, %v6990_v12 }
 0x9ac   :  { %6995 = vst [vmem:[%s11266_s10] sm:$0xff] %v6993_v11  ;;  %vm6997_vm14 = vcmp.ge.f32.partialorder %v6993_v11, 0.0  ;;  %v6999_v48 = vmul.f32 0.05, %v6993_v11 }
 0x9ad   :  { %6996 = vst.msk [vmem:[%s11266_s10 + $0x8] sm:$0xff] %vm5243_vm3, %v6994_v26  ;;  %vm6998_vm15 = vcmp.ge.f32.partialorder %v6994_v26, 0.0  ;;  %v7000_v0 = vmul.f32 0.05, %v6994_v26 }
 0x9ae   :  { %v7001_v62 = vsel %vm6997_vm14, %v6993_v11, %v6999_v48 }
 0x9af   :  { %v7002_v25 = vsel %vm6998_vm15, %v6994_v26, %v7000_v0  ;;  %v7003_v3 = vpack.c.bf16 %v7001_v62, %v7001_v62 }
 0x9b0   :  { %v7004_v55 = vpack.c.bf16 %v7002_v25, %v7002_v25 }
 0x9b2   :  { %7268 = vmatprep.mubr.msk.bf16.mxu1 %vm5243_vm3, %v7004_v55 }
 0x9b3   :  { %7053 = vmatmul.mubr.bf16.vlgmr.msra.gmra.mrb[124].mxu1 %v7003_v3 }
 0xa86   :  { %v7054_v29 = vpop.f32.mrb[124].mxu1 }
 0xa87   :  { %7060 = vst [vmem:[%s11265_s9] sm:$0xff] %v7054_v29  ;;  %v7056_v47 = vpop.f32.mrb[125].mxu1 }
 0xa88   :  { %v7057_v9 = vpop.f32.mrb[126].mxu1 }
 0xa89   :  { %v7058_v1 = vpop.f32.mrb[127].mxu1 }
 0xa8a   :  { %7069 = vsyncmov [#allocation6] }
 0xa8d   :  { %s7070_s22 = vpop.sfrf %7069 }
 0xa8e   :  { %p7269_p0 = scmp.ne.s32.totalorder %s7070_s22, 0 }
 0xa90   :  { %7074 = shalt.err (%p7269_p0)  }
 0xa91   :  { %7076 = vsyncmov [#allocation6 + $0x1] }
 0xa94   :  { %s7077_s10 = vpop.sfrf %7076 }
 0xa95   :  { %p7270_p1 = scmp.ne.s32.totalorder %s7077_s10, 0 }
 0xa97   :  { %7081 = shalt.err (%p7270_p1)  }

</bundles_post_ra>
